<compile_context>
chip_gen: v7x
topology: tpu7x:2x2x1
jax: 0.10.0
libtpu: 0.0.40
codegen_flags: <defaults>
</compile_context>

<pallas_src>
import math
from functools import partial

import jax
import jax.numpy as jnp
from jax.experimental import pallas as pl
from jax.experimental.pallas import tpu as pltpu


CPAD = 128           # all output-channel dims are padded to 128 (lane width)
BN_EPS = 1e-5


# ----------------------------------------------------------------------------
# helpers
# ----------------------------------------------------------------------------
def _round_up(x, m):
    return ((x + m - 1) // m) * m


def _get_padding(kernel_size, stride=1, dilation=1):
    return (stride - 1 + dilation * (kernel_size - 1)) // 2


# ----------------------------------------------------------------------------
# Pallas kernel 1: fused matmul + BN(scale,bias) [+ residual] [+ ReLU]
#   A: [M, K] bf16, B: [K, 128] bf16, scale/bias: [1, 128] f32,
#   optional residual: [M, 128] bf16.  f32 accumulate, bf16 store.
# ----------------------------------------------------------------------------
def _conv_mm_kernel(a_ref, b_ref, s_ref, c_ref, o_ref, *, relu):
    acc = jnp.dot(a_ref[...], b_ref[...], preferred_element_type=jnp.float32)
    out = acc * s_ref[...] + c_ref[...]
    if relu:
        out = jnp.maximum(out, 0.0)
    o_ref[...] = out.astype(o_ref.dtype)


def _conv_mm_res_kernel(a_ref, b_ref, s_ref, c_ref, r_ref, o_ref, *, relu):
    acc = jnp.dot(a_ref[...], b_ref[...], preferred_element_type=jnp.float32)
    out = acc * s_ref[...] + c_ref[...] + r_ref[...].astype(jnp.float32)
    if relu:
        out = jnp.maximum(out, 0.0)
    o_ref[...] = out.astype(o_ref.dtype)


def matmul_bn_act(a, b, scale, bias, *, relu, residual=None,
                  out_dtype=jnp.bfloat16):
    M, K = a.shape
    K2, N = b.shape
    assert K == K2 and N % 128 == 0

    # Full-K, full-N blocks.  M tile: keep >=2 parallel blocks when M allows
    # (v7x has 2 TensorCores per chip); otherwise a single full-M block.
    tm = 256 if (M % 256 == 0 and M > 256) else M
    grid = (M // tm,)

    in_specs = [
        pl.BlockSpec((tm, K), lambda i: (i, 0)),
        pl.BlockSpec((K, N), lambda i: (0, 0)),
        pl.BlockSpec((1, N), lambda i: (0, 0)),
        pl.BlockSpec((1, N), lambda i: (0, 0)),
    ]
    args = [a, b, scale, bias]
    if residual is not None:
        in_specs.append(pl.BlockSpec((tm, N), lambda i: (i, 0)))
        args.append(residual)
        kern = partial(_conv_mm_res_kernel, relu=relu)
    else:
        kern = partial(_conv_mm_kernel, relu=relu)

    return pl.pallas_call(
        kern,
        out_shape=jax.ShapeDtypeStruct((M, N), out_dtype),
        grid_spec=pltpu.PrefetchScalarGridSpec(
            num_scalar_prefetch=0,
            grid=grid,
            in_specs=in_specs,
            out_specs=pl.BlockSpec((tm, N), lambda i: (i, 0)),
        ),
        compiler_params=pltpu.CompilerParams(
            dimension_semantics=("parallel",),
            vmem_limit_bytes=32 * 1024 * 1024,   # safe on v5e/v6e/v7x
        ),
    )(*args)


# ----------------------------------------------------------------------------
# Pallas kernel 2: MaxPool2d(kernel=3, stride=2, padding=1) over NHWC.
#   Inputs are the 4 stride-2 phases of the (-inf padded) input; the 3x3 window
#   max becomes a 9-way max tree of unit-shifted windows (no strides in-kernel).
# ----------------------------------------------------------------------------
def _maxpool_kernel(ee_ref, eo_ref, oe_ref, oo_ref, o_ref, *, Ho, Wo):
    m = oo_ref[:, 0:Ho, 0:Wo, :]
    m = jnp.maximum(m, ee_ref[:, 0:Ho, 0:Wo, :])
    m = jnp.maximum(m, ee_ref[:, 1:Ho + 1, 0:Wo, :])
    m = jnp.maximum(m, ee_ref[:, 0:Ho, 1:Wo + 1, :])
    m = jnp.maximum(m, ee_ref[:, 1:Ho + 1, 1:Wo + 1, :])
    m = jnp.maximum(m, eo_ref[:, 0:Ho, 0:Wo, :])
    m = jnp.maximum(m, eo_ref[:, 1:Ho + 1, 0:Wo, :])
    m = jnp.maximum(m, oe_ref[:, 0:Ho, 0:Wo, :])
    m = jnp.maximum(m, oe_ref[:, 0:Ho, 1:Wo + 1, :])
    o_ref[...] = m


def maxpool_3x3_s2_p1(x):
    B, H, W, C = x.shape
    Ho = (H + 2 - 3) // 2 + 1
    Wo = (W + 2 - 3) // 2 + 1
    xp = jnp.pad(x, ((0, 0), (1, 1), (1, 1), (0, 0)),
                 constant_values=-jnp.inf)
    ee = xp[:, 0::2, 0::2, :]
    eo = xp[:, 0::2, 1::2, :]
    oe = xp[:, 1::2, 0::2, :]
    oo = xp[:, 1::2, 1::2, :]
    return pl.pallas_call(
        partial(_maxpool_kernel, Ho=Ho, Wo=Wo),
        out_shape=jax.ShapeDtypeStruct((B, Ho, Wo, C), x.dtype),
    )(ee, eo, oe, oo)


# ----------------------------------------------------------------------------
# Pallas kernel 3: fused AdaptiveAvgPool2d(1) + Linear classifier.
#   x: [B, H*W, C] bf16, w: [C, 128] bf16, b: [1, 128] f32 -> logits [B, 128] f32
# ----------------------------------------------------------------------------
def _avgpool_fc_kernel(x_ref, w_ref, b_ref, o_ref, *, inv_hw):
    x = x_ref[...].astype(jnp.float32)
    feats = jnp.sum(x, axis=1) * inv_hw                      # [B, C]
    logits = jnp.dot(feats.astype(jnp.bfloat16), w_ref[...],
                     preferred_element_type=jnp.float32) + b_ref[...]
    o_ref[...] = logits


def avgpool_fc(x, w, b):
    B, H, W, C = x.shape
    xf = x.reshape(B, H * W, C)
    return pl.pallas_call(
        partial(_avgpool_fc_kernel, inv_hw=1.0 / float(H * W)),
        out_shape=jax.ShapeDtypeStruct((B, w.shape[1]), jnp.float32),
    )(xf, w, b)


# ----------------------------------------------------------------------------
# conv = NHWC bf16 im2col (XLA glue) + fused Pallas matmul epilogue
# ----------------------------------------------------------------------------
def conv_bn_act(x, cp, *, k, stride, relu, residual=None):
    """Conv2d(bias=False) -> BatchNorm(eval) -> [+residual] -> [ReLU]."""
    w, scale, bias = cp["w"], cp["scale"], cp["bias"]
    B, H, W, C = x.shape
    pad = _get_padding(k, stride=stride)
    Ho = (H + 2 * pad - k) // stride + 1
    Wo = (W + 2 * pad - k) // stride + 1

    if k == 1:
        patches = x[:, ::stride, ::stride, :].reshape(B * Ho * Wo, C)
    else:
        xp = jnp.pad(x, ((0, 0), (pad, pad), (pad, pad), (0, 0)))
        slabs = [xp[:, i:i + stride * Ho:stride, j:j + stride * Wo:stride, :]
                 for i in range(k) for j in range(k)]
        patches = jnp.concatenate(slabs, axis=-1).reshape(B * Ho * Wo, k * k * C)

    Kdim = patches.shape[1]
    Kw = w.shape[0]
    if Kw > Kdim:                       # layer0: K=147 padded to 160 (zeros)
        patches = jnp.pad(patches, ((0, 0), (0, Kw - Kdim)))

    res2d = None if residual is None else residual.reshape(B * Ho * Wo, w.shape[1])
    out = matmul_bn_act(patches, w, scale, bias, relu=relu, residual=res2d)
    return out.reshape(B, Ho, Wo, w.shape[1])


# ----------------------------------------------------------------------------
# parameter construction (deterministic; all static config stays Python-side)
# ----------------------------------------------------------------------------
def _bn_scale_bias(c_real):
    gamma = jnp.ones((c_real,), jnp.float32)
    beta = jnp.zeros((c_real,), jnp.float32)
    mean = jnp.zeros((c_real,), jnp.float32)
    var = jnp.ones((c_real,), jnp.float32)
    scale = gamma * jax.lax.rsqrt(var + BN_EPS)
    bias = beta - mean * scale
    scale = jnp.pad(scale, (0, CPAD - c_real)).reshape(1, CPAD)
    bias = jnp.pad(bias, (0, CPAD - c_real)).reshape(1, CPAD)
    return scale, bias


def _conv_param(key, cin_real, cout_real, k, cin_alloc, kpad_to=None):
    """Weights laid out as [k*k*cin_alloc, CPAD] bf16 (tap-major, HWIO)."""
    fan_in = cin_real * k * k
    bound = 1.0 / math.sqrt(fan_in)
    w = jax.random.uniform(key, (k, k, cin_real, cout_real), jnp.float32,
                           -bound, bound)
    w_full = jnp.zeros((k, k, cin_alloc, CPAD), jnp.float32)
    w_full = w_full.at[:, :, :cin_real, :cout_real].set(w)
    wm = w_full.reshape(k * k * cin_alloc, CPAD)
    if kpad_to is not None and wm.shape[0] < kpad_to:
        wm = jnp.pad(wm, ((0, kpad_to - wm.shape[0]), (0, 0)))
    scale, bias = _bn_scale_bias(cout_real)
    return {"w": wm.astype(jnp.bfloat16), "scale": scale, "bias": bias}


def make_params(key, in_chans=3, num_classes=10):
    ks = jax.random.split(key, 11)
    p = {}
    # layer0: 7x7 stride2, in_chans -> 64 (padded to 128), BN, ReLU
    p["l0"] = _conv_param(ks[0], in_chans, 64, 7, cin_alloc=in_chans,
                          kpad_to=_round_up(49 * in_chans, 16))
    # BasicBlocks (expansion = 1), layers = [1, 1, 1]
    p["layer1"] = [{
        "conv1": _conv_param(ks[1], 64, 64, 3, cin_alloc=CPAD),
        "conv2": _conv_param(ks[2], 64, 64, 3, cin_alloc=CPAD),
    }]
    p["layer2"] = [{
        "conv1": _conv_param(ks[3], 64, 96, 3, cin_alloc=CPAD),
        "conv2": _conv_param(ks[4], 96, 96, 3, cin_alloc=CPAD),
        "ds":    _conv_param(ks[5], 64, 96, 1, cin_alloc=CPAD),
    }]
    p["layer3"] = [{
        "conv1": _conv_param(ks[6], 96, 128, 3, cin_alloc=CPAD),
        "conv2": _conv_param(ks[7], 128, 128, 3, cin_alloc=CPAD),
        "ds":    _conv_param(ks[8], 96, 128, 1, cin_alloc=CPAD),
    }]
    # classifier: Linear(128 -> num_classes), padded to 128 outputs
    bound = 1.0 / math.sqrt(128)
    fc_w = jax.random.uniform(ks[9], (128, num_classes), jnp.float32, -bound, bound)
    fc_b = jax.random.uniform(ks[10], (num_classes,), jnp.float32, -bound, bound)
    p["fc_w"] = jnp.pad(fc_w, ((0, 0), (0, CPAD - num_classes))).astype(jnp.bfloat16)
    p["fc_b"] = jnp.pad(fc_b, (0, CPAD - num_classes)).reshape(1, CPAD)
    return p


# ----------------------------------------------------------------------------
# forward pass
# ----------------------------------------------------------------------------
def basic_block(x, bp, stride):
    h = conv_bn_act(x, bp["conv1"], k=3, stride=stride, relu=True)
    if "ds" in bp:
        res = conv_bn_act(x, bp["ds"], k=1, stride=stride, relu=False)
    else:
        res = x
    # conv2 + BN + residual add + ReLU, all fused in the matmul epilogue
    return conv_bn_act(h, bp["conv2"], k=3, stride=1, relu=True, residual=res)


def resnet_forward(params, x_nchw):
    # single layout change at the boundary: NCHW f32 -> NHWC bf16
    x = jnp.transpose(x_nchw, (0, 2, 3, 1)).astype(jnp.bfloat16)
    x = conv_bn_act(x, params["l0"], k=7, stride=2, relu=True)
    x = maxpool_3x3_s2_p1(x)
    for bp in params["layer1"]:
        x = basic_block(x, bp, stride=1)
    for i, bp in enumerate(params["layer2"]):
        x = basic_block(x, bp, stride=2 if i == 0 else 1)
    for i, bp in enumerate(params["layer3"]):
        x = basic_block(x, bp, stride=2 if i == 0 else 1)
    # fused global average pool + classifier; returns [B, 128] padded logits
    return avgpool_fc(x, params["fc_w"], params["fc_b"])


# ----------------------------------------------------------------------------
# main
# ----------------------------------------------------------------------------
if __name__ == "__main__":
    key = jax.random.PRNGKey(0)
    pkey, xkey = jax.random.split(key)

    num_classes = 10
    params = make_params(pkey, in_chans=3, num_classes=num_classes)

    # small NCHW input (matches the PyTorch module interface)
    x = jax.random.normal(xkey, (2, 3, 32, 32), jnp.float32)

    fwd = jax.jit(resnet_forward)
    logits_padded = jax.block_until_ready(fwd(params, x))
    logits = logits_padded[:, :num_classes]

    assert logits.shape == (2, num_classes), logits.shape
    assert jnp.all(jnp.isfinite(logits))
    print("KERNEL_OK")
</pallas_src>

<mosaic_0001>
module attributes {stable_mosaic.version = 11 : i64} {
  func.func @_conv_mm_kernel(%arg0: i32, %arg1: memref<256x160xbf16, #tpu.memory_space<vmem>>, %arg2: memref<160x128xbf16, #tpu.memory_space<vmem>>, %arg3: memref<1x128xf32, #tpu.memory_space<vmem>>, %arg4: memref<1x128xf32, #tpu.memory_space<vmem>>, %arg5: memref<256x128xbf16, #tpu.memory_space<vmem>>) attributes {dimension_semantics = [#tpu.dimension_semantics<parallel>], iteration_bounds = array<i64: 2>, scalar_prefetch = 0 : i64, scratch_operands = 0 : i64, tpu.core_type = #tpu.core_type<tc>, window_params = [{transform_indices = @transform_0, window_bounds = array<i64: 256, 160>}, {pipeline_mode = #tpu.pipeline_mode<synchronous>, transform_indices = @transform_1, window_bounds = array<i64: 160, 128>}, {pipeline_mode = #tpu.pipeline_mode<synchronous>, transform_indices = @transform_2, window_bounds = array<i64: 1, 128>}, {pipeline_mode = #tpu.pipeline_mode<synchronous>, transform_indices = @transform_3, window_bounds = array<i64: 1, 128>}, {transform_indices = @transform_4, window_bounds = array<i64: 256, 128>}]} {
    %c0 = arith.constant 0 : index
    %c0_0 = arith.constant 0 : index
    %0 = vector.load %arg1[%c0, %c0_0] : memref<256x160xbf16, #tpu.memory_space<vmem>>, vector<256x160xbf16>
    %c0_1 = arith.constant 0 : index
    %c0_2 = arith.constant 0 : index
    %1 = vector.load %arg2[%c0_1, %c0_2] : memref<160x128xbf16, #tpu.memory_space<vmem>>, vector<160x128xbf16>
    %cst = arith.constant dense<0.000000e+00> : vector<256x128xf32>
    %2 = tpu.matmul %0, %1, %cst {dimension_numbers = #tpu.dot_dimension_numbers<[1], [0], [0], [1], [0, 0, 1, 1], [], []>} : vector<256x160xbf16>, vector<160x128xbf16>, vector<256x128xf32> -> vector<256x128xf32>
    %c0_3 = arith.constant 0 : index
    %c0_4 = arith.constant 0 : index
    %3 = vector.load %arg3[%c0_3, %c0_4] : memref<1x128xf32, #tpu.memory_space<vmem>>, vector<1x128xf32>
    %4 = vector.broadcast %3 : vector<1x128xf32> to vector<256x128xf32>
    %5 = arith.mulf %2, %4 : vector<256x128xf32>
    %c0_5 = arith.constant 0 : index
    %c0_6 = arith.constant 0 : index
    %6 = vector.load %arg4[%c0_5, %c0_6] : memref<1x128xf32, #tpu.memory_space<vmem>>, vector<1x128xf32>
    %7 = vector.broadcast %6 : vector<1x128xf32> to vector<256x128xf32>
    %8 = arith.addf %5, %7 : vector<256x128xf32>
    %cst_7 = arith.constant 0.000000e+00 : f32
    %9 = vector.broadcast %cst_7 : f32 to vector<256x128xf32>
    %10 = arith.maximumf %8, %9 : vector<256x128xf32>
    %11 = arith.truncf %10 : vector<256x128xf32> to vector<256x128xbf16>
    %c0_8 = arith.constant 0 : index
    %c0_9 = arith.constant 0 : index
    %12 = vector.load %arg5[%c0_8, %c0_9] : memref<256x128xbf16, #tpu.memory_space<vmem>>, vector<256x128xbf16>
    tpu.vector_store %arg5[%c0_8, %c0_9], %11 {strides = array<i32>} : memref<256x128xbf16, #tpu.memory_space<vmem>>, vector<256x128xbf16>,
    return
  }
  func.func @transform_0(%arg0: i32) -> (i32, i32) {
    %c0_i32 = arith.constant 0 : i32
    %c0_i32_0 = arith.constant 0 : i32
    return %arg0, %c0_i32 : i32, i32
  }
  func.func @transform_1(%arg0: i32) -> (i32, i32) {
    %c0_i32 = arith.constant 0 : i32
    %c0_i32_0 = arith.constant 0 : i32
    %c0_i32_1 = arith.constant 0 : i32
    return %c0_i32, %c0_i32_0 : i32, i32
  }
  func.func @transform_2(%arg0: i32) -> (i32, i32) {
    %c0_i32 = arith.constant 0 : i32
    %c0_i32_0 = arith.constant 0 : i32
    %c0_i32_1 = arith.constant 0 : i32
    return %c0_i32, %c0_i32_0 : i32, i32
  }
  func.func @transform_3(%arg0: i32) -> (i32, i32) {
    %c0_i32 = arith.constant 0 : i32
    %c0_i32_0 = arith.constant 0 : i32
    %c0_i32_1 = arith.constant 0 : i32
    return %c0_i32, %c0_i32_0 : i32, i32
  }
  func.func @transform_4(%arg0: i32) -> (i32, i32) {
    %c0_i32 = arith.constant 0 : i32
    %c0_i32_0 = arith.constant 0 : i32
    return %arg0, %c0_i32 : i32, i32
  }
}

module attributes {stable_mosaic.version = 11 : i64} {
  func.func @_maxpool_kernel(%arg0: memref<2x9x9x128xbf16, #tpu.memory_space<vmem>>, %arg1: memref<2x9x9x128xbf16, #tpu.memory_space<vmem>>, %arg2: memref<2x9x9x128xbf16, #tpu.memory_space<vmem>>, %arg3: memref<2x9x9x128xbf16, #tpu.memory_space<vmem>>, %arg4: memref<2x8x8x128xbf16, #tpu.memory_space<vmem>>) attributes {dimension_semantics = [], scalar_prefetch = 0 : i64, scratch_operands = 0 : i64, tpu.core_type = #tpu.core_type<tc>} {
    %c0 = arith.constant 0 : index
    %c0_0 = arith.constant 0 : index
    %c0_1 = arith.constant 0 : index
    %c0_2 = arith.constant 0 : index
    %0 = vector.load %arg3[%c0, %c0_0, %c0_1, %c0_2] : memref<2x9x9x128xbf16, #tpu.memory_space<vmem>>, vector<2x8x8x128xbf16>
    %c0_3 = arith.constant 0 : index
    %c0_4 = arith.constant 0 : index
    %c0_5 = arith.constant 0 : index
    %c0_6 = arith.constant 0 : index
    %1 = vector.load %arg0[%c0_3, %c0_4, %c0_5, %c0_6] : memref<2x9x9x128xbf16, #tpu.memory_space<vmem>>, vector<2x8x8x128xbf16>
    %2 = arith.maximumf %0, %1 : vector<2x8x8x128xbf16>
    %c0_7 = arith.constant 0 : index
    %c1 = arith.constant 1 : index
    %c0_8 = arith.constant 0 : index
    %c0_9 = arith.constant 0 : index
    %3 = vector.load %arg0[%c0_7, %c1, %c0_8, %c0_9] : memref<2x9x9x128xbf16, #tpu.memory_space<vmem>>, vector<2x8x8x128xbf16>
    %4 = arith.maximumf %2, %3 : vector<2x8x8x128xbf16>
    %c0_10 = arith.constant 0 : index
    %c0_11 = arith.constant 0 : index
    %c1_12 = arith.constant 1 : index
    %c0_13 = arith.constant 0 : index
    %5 = vector.load %arg0[%c0_10, %c0_11, %c1_12, %c0_13] : memref<2x9x9x128xbf16, #tpu.memory_space<vmem>>, vector<2x8x8x128xbf16>
    %6 = arith.maximumf %4, %5 : vector<2x8x8x128xbf16>
    %c0_14 = arith.constant 0 : index
    %c1_15 = arith.constant 1 : index
    %c1_16 = arith.constant 1 : index
    %c0_17 = arith.constant 0 : index
    %7 = vector.load %arg0[%c0_14, %c1_15, %c1_16, %c0_17] : memref<2x9x9x128xbf16, #tpu.memory_space<vmem>>, vector<2x8x8x128xbf16>
    %8 = arith.maximumf %6, %7 : vector<2x8x8x128xbf16>
    %c0_18 = arith.constant 0 : index
    %c0_19 = arith.constant 0 : index
    %c0_20 = arith.constant 0 : index
    %c0_21 = arith.constant 0 : index
    %9 = vector.load %arg1[%c0_18, %c0_19, %c0_20, %c0_21] : memref<2x9x9x128xbf16, #tpu.memory_space<vmem>>, vector<2x8x8x128xbf16>
    %10 = arith.maximumf %8, %9 : vector<2x8x8x128xbf16>
    %c0_22 = arith.constant 0 : index
    %c1_23 = arith.constant 1 : index
    %c0_24 = arith.constant 0 : index
    %c0_25 = arith.constant 0 : index
    %11 = vector.load %arg1[%c0_22, %c1_23, %c0_24, %c0_25] : memref<2x9x9x128xbf16, #tpu.memory_space<vmem>>, vector<2x8x8x128xbf16>
    %12 = arith.maximumf %10, %11 : vector<2x8x8x128xbf16>
    %c0_26 = arith.constant 0 : index
    %c0_27 = arith.constant 0 : index
    %c0_28 = arith.constant 0 : index
    %c0_29 = arith.constant 0 : index
    %13 = vector.load %arg2[%c0_26, %c0_27, %c0_28, %c0_29] : memref<2x9x9x128xbf16, #tpu.memory_space<vmem>>, vector<2x8x8x128xbf16>
    %14 = arith.maximumf %12, %13 : vector<2x8x8x128xbf16>
    %c0_30 = arith.constant 0 : index
    %c0_31 = arith.constant 0 : index
    %c1_32 = arith.constant 1 : index
    %c0_33 = arith.constant 0 : index
    %15 = vector.load %arg2[%c0_30, %c0_31, %c1_32, %c0_33] : memref<2x9x9x128xbf16, #tpu.memory_space<vmem>>, vector<2x8x8x128xbf16>
    %16 = arith.maximumf %14, %15 : vector<2x8x8x128xbf16>
    %c0_34 = arith.constant 0 : index
    %c0_35 = arith.constant 0 : index
    %c0_36 = arith.constant 0 : index
    %c0_37 = arith.constant 0 : index
    %17 = vector.load %arg4[%c0_34, %c0_35, %c0_36, %c0_37] : memref<2x8x8x128xbf16, #tpu.memory_space<vmem>>, vector<2x8x8x128xbf16>
    tpu.vector_store %arg4[%c0_34, %c0_35, %c0_36, %c0_37], %16 {strides = array<i32>} : memref<2x8x8x128xbf16, #tpu.memory_space<vmem>>, vector<2x8x8x128xbf16>,
    return
  }
}

module attributes {stable_mosaic.version = 11 : i64} {
  func.func @_conv_mm_kernel(%arg0: i32, %arg1: memref<128x1152xbf16, #tpu.memory_space<vmem>>, %arg2: memref<1152x128xbf16, #tpu.memory_space<vmem>>, %arg3: memref<1x128xf32, #tpu.memory_space<vmem>>, %arg4: memref<1x128xf32, #tpu.memory_space<vmem>>, %arg5: memref<128x128xbf16, #tpu.memory_space<vmem>>) attributes {dimension_semantics = [#tpu.dimension_semantics<parallel>], iteration_bounds = array<i64: 1>, scalar_prefetch = 0 : i64, scratch_operands = 0 : i64, tpu.core_type = #tpu.core_type<tc>, window_params = [{transform_indices = @transform_0, window_bounds = array<i64: 128, 1152>}, {pipeline_mode = #tpu.pipeline_mode<synchronous>, transform_indices = @transform_1, window_bounds = array<i64: 1152, 128>}, {pipeline_mode = #tpu.pipeline_mode<synchronous>, transform_indices = @transform_2, window_bounds = array<i64: 1, 128>}, {pipeline_mode = #tpu.pipeline_mode<synchronous>, transform_indices = @transform_3, window_bounds = array<i64: 1, 128>}, {transform_indices = @transform_4, window_bounds = array<i64: 128, 128>}]} {
    %c0 = arith.constant 0 : index
    %c0_0 = arith.constant 0 : index
    %0 = vector.load %arg1[%c0, %c0_0] : memref<128x1152xbf16, #tpu.memory_space<vmem>>, vector<128x1152xbf16>
    %c0_1 = arith.constant 0 : index
    %c0_2 = arith.constant 0 : index
    %1 = vector.load %arg2[%c0_1, %c0_2] : memref<1152x128xbf16, #tpu.memory_space<vmem>>, vector<1152x128xbf16>
    %cst = arith.constant dense<0.000000e+00> : vector<128x128xf32>
    %2 = tpu.matmul %0, %1, %cst {dimension_numbers = #tpu.dot_dimension_numbers<[1], [0], [0], [1], [0, 0, 1, 1], [], []>} : vector<128x1152xbf16>, vector<1152x128xbf16>, vector<128x128xf32> -> vector<128x128xf32>
    %c0_3 = arith.constant 0 : index
    %c0_4 = arith.constant 0 : index
    %3 = vector.load %arg3[%c0_3, %c0_4] : memref<1x128xf32, #tpu.memory_space<vmem>>, vector<1x128xf32>
    %4 = vector.broadcast %3 : vector<1x128xf32> to vector<128x128xf32>
    %5 = arith.mulf %2, %4 : vector<128x128xf32>
    %c0_5 = arith.constant 0 : index
    %c0_6 = arith.constant 0 : index
    %6 = vector.load %arg4[%c0_5, %c0_6] : memref<1x128xf32, #tpu.memory_space<vmem>>, vector<1x128xf32>
    %7 = vector.broadcast %6 : vector<1x128xf32> to vector<128x128xf32>
    %8 = arith.addf %5, %7 : vector<128x128xf32>
    %cst_7 = arith.constant 0.000000e+00 : f32
    %9 = vector.broadcast %cst_7 : f32 to vector<128x128xf32>
    %10 = arith.maximumf %8, %9 : vector<128x128xf32>
    %11 = arith.truncf %10 : vector<128x128xf32> to vector<128x128xbf16>
    %c0_8 = arith.constant 0 : index
    %c0_9 = arith.constant 0 : index
    %12 = vector.load %arg5[%c0_8, %c0_9] : memref<128x128xbf16, #tpu.memory_space<vmem>>, vector<128x128xbf16>
    tpu.vector_store %arg5[%c0_8, %c0_9], %11 {strides = array<i32>} : memref<128x128xbf16, #tpu.memory_space<vmem>>, vector<128x128xbf16>,
    return
  }
  func.func @transform_0(%arg0: i32) -> (i32, i32) {
    %c0_i32 = arith.constant 0 : i32
    %c0_i32_0 = arith.constant 0 : i32
    return %arg0, %c0_i32 : i32, i32
  }
  func.func @transform_1(%arg0: i32) -> (i32, i32) {
    %c0_i32 = arith.constant 0 : i32
    %c0_i32_0 = arith.constant 0 : i32
    %c0_i32_1 = arith.constant 0 : i32
    return %c0_i32, %c0_i32_0 : i32, i32
  }
  func.func @transform_2(%arg0: i32) -> (i32, i32) {
    %c0_i32 = arith.constant 0 : i32
    %c0_i32_0 = arith.constant 0 : i32
    %c0_i32_1 = arith.constant 0 : i32
    return %c0_i32, %c0_i32_0 : i32, i32
  }
  func.func @transform_3(%arg0: i32) -> (i32, i32) {
    %c0_i32 = arith.constant 0 : i32
    %c0_i32_0 = arith.constant 0 : i32
    %c0_i32_1 = arith.constant 0 : i32
    return %c0_i32, %c0_i32_0 : i32, i32
  }
  func.func @transform_4(%arg0: i32) -> (i32, i32) {
    %c0_i32 = arith.constant 0 : i32
    %c0_i32_0 = arith.constant 0 : i32
    return %arg0, %c0_i32 : i32, i32
  }
}

module attributes {stable_mosaic.version = 11 : i64} {
  func.func @_conv_mm_res_kernel(%arg0: i32, %arg1: memref<128x1152xbf16, #tpu.memory_space<vmem>>, %arg2: memref<1152x128xbf16, #tpu.memory_space<vmem>>, %arg3: memref<1x128xf32, #tpu.memory_space<vmem>>, %arg4: memref<1x128xf32, #tpu.memory_space<vmem>>, %arg5: memref<128x128xbf16, #tpu.memory_space<vmem>>, %arg6: memref<128x128xbf16, #tpu.memory_space<vmem>>) attributes {dimension_semantics = [#tpu.dimension_semantics<parallel>], iteration_bounds = array<i64: 1>, scalar_prefetch = 0 : i64, scratch_operands = 0 : i64, tpu.core_type = #tpu.core_type<tc>, window_params = [{transform_indices = @transform_0, window_bounds = array<i64: 128, 1152>}, {pipeline_mode = #tpu.pipeline_mode<synchronous>, transform_indices = @transform_1, window_bounds = array<i64: 1152, 128>}, {pipeline_mode = #tpu.pipeline_mode<synchronous>, transform_indices = @transform_2, window_bounds = array<i64: 1, 128>}, {pipeline_mode = #tpu.pipeline_mode<synchronous>, transform_indices = @transform_3, window_bounds = array<i64: 1, 128>}, {transform_indices = @transform_4, window_bounds = array<i64: 128, 128>}, {transform_indices = @transform_5, window_bounds = array<i64: 128, 128>}]} {
    %c0 = arith.constant 0 : index
    %c0_0 = arith.constant 0 : index
    %0 = vector.load %arg1[%c0, %c0_0] : memref<128x1152xbf16, #tpu.memory_space<vmem>>, vector<128x1152xbf16>
    %c0_1 = arith.constant 0 : index
    %c0_2 = arith.constant 0 : index
    %1 = vector.load %arg2[%c0_1, %c0_2] : memref<1152x128xbf16, #tpu.memory_space<vmem>>, vector<1152x128xbf16>
    %cst = arith.constant dense<0.000000e+00> : vector<128x128xf32>
    %2 = tpu.matmul %0, %1, %cst {dimension_numbers = #tpu.dot_dimension_numbers<[1], [0], [0], [1], [0, 0, 1, 1], [], []>} : vector<128x1152xbf16>, vector<1152x128xbf16>, vector<128x128xf32> -> vector<128x128xf32>
    %c0_3 = arith.constant 0 : index
    %c0_4 = arith.constant 0 : index
    %3 = vector.load %arg3[%c0_3, %c0_4] : memref<1x128xf32, #tpu.memory_space<vmem>>, vector<1x128xf32>
    %4 = vector.broadcast %3 : vector<1x128xf32> to vector<128x128xf32>
    %5 = arith.mulf %2, %4 : vector<128x128xf32>
    %c0_5 = arith.constant 0 : index
    %c0_6 = arith.constant 0 : index
    %6 = vector.load %arg4[%c0_5, %c0_6] : memref<1x128xf32, #tpu.memory_space<vmem>>, vector<1x128xf32>
    %7 = vector.broadcast %6 : vector<1x128xf32> to vector<128x128xf32>
    %8 = arith.addf %5, %7 : vector<128x128xf32>
    %c0_7 = arith.constant 0 : index
    %c0_8 = arith.constant 0 : index
    %9 = vector.load %arg5[%c0_7, %c0_8] : memref<128x128xbf16, #tpu.memory_space<vmem>>, vector<128x128xbf16>
    %10 = arith.extf %9 : vector<128x128xbf16> to vector<128x128xf32>
    %11 = arith.addf %8, %10 : vector<128x128xf32>
    %cst_9 = arith.constant 0.000000e+00 : f32
    %12 = vector.broadcast %cst_9 : f32 to vector<128x128xf32>
    %13 = arith.maximumf %11, %12 : vector<128x128xf32>
    %14 = arith.truncf %13 : vector<128x128xf32> to vector<128x128xbf16>
    %c0_10 = arith.constant 0 : index
    %c0_11 = arith.constant 0 : index
    %15 = vector.load %arg6[%c0_10, %c0_11] : memref<128x128xbf16, #tpu.memory_space<vmem>>, vector<128x128xbf16>
    tpu.vector_store %arg6[%c0_10, %c0_11], %14 {strides = array<i32>} : memref<128x128xbf16, #tpu.memory_space<vmem>>, vector<128x128xbf16>,
    return
  }
  func.func @transform_0(%arg0: i32) -> (i32, i32) {
    %c0_i32 = arith.constant 0 : i32
    %c0_i32_0 = arith.constant 0 : i32
    return %arg0, %c0_i32 : i32, i32
  }
  func.func @transform_1(%arg0: i32) -> (i32, i32) {
    %c0_i32 = arith.constant 0 : i32
    %c0_i32_0 = arith.constant 0 : i32
    %c0_i32_1 = arith.constant 0 : i32
    return %c0_i32, %c0_i32_0 : i32, i32
  }
  func.func @transform_2(%arg0: i32) -> (i32, i32) {
    %c0_i32 = arith.constant 0 : i32
    %c0_i32_0 = arith.constant 0 : i32
    %c0_i32_1 = arith.constant 0 : i32
    return %c0_i32, %c0_i32_0 : i32, i32
  }
  func.func @transform_3(%arg0: i32) -> (i32, i32) {
    %c0_i32 = arith.constant 0 : i32
    %c0_i32_0 = arith.constant 0 : i32
    %c0_i32_1 = arith.constant 0 : i32
    return %c0_i32, %c0_i32_0 : i32, i32
  }
  func.func @transform_4(%arg0: i32) -> (i32, i32) {
    %c0_i32 = arith.constant 0 : i32
    %c0_i32_0 = arith.constant 0 : i32
    return %arg0, %c0_i32 : i32, i32
  }
  func.func @transform_5(%arg0: i32) -> (i32, i32) {
    %c0_i32 = arith.constant 0 : i32
    %c0_i32_0 = arith.constant 0 : i32
    return %arg0, %c0_i32 : i32, i32
  }
}

module attributes {stable_mosaic.version = 11 : i64} {
  func.func @_conv_mm_kernel(%arg0: i32, %arg1: memref<32x128xbf16, #tpu.memory_space<vmem>>, %arg2: memref<128x128xbf16, #tpu.memory_space<vmem>>, %arg3: memref<1x128xf32, #tpu.memory_space<vmem>>, %arg4: memref<1x128xf32, #tpu.memory_space<vmem>>, %arg5: memref<32x128xbf16, #tpu.memory_space<vmem>>) attributes {dimension_semantics = [#tpu.dimension_semantics<parallel>], iteration_bounds = array<i64: 1>, scalar_prefetch = 0 : i64, scratch_operands = 0 : i64, tpu.core_type = #tpu.core_type<tc>, window_params = [{transform_indices = @transform_0, window_bounds = array<i64: 32, 128>}, {pipeline_mode = #tpu.pipeline_mode<synchronous>, transform_indices = @transform_1, window_bounds = array<i64: 128, 128>}, {pipeline_mode = #tpu.pipeline_mode<synchronous>, transform_indices = @transform_2, window_bounds = array<i64: 1, 128>}, {pipeline_mode = #tpu.pipeline_mode<synchronous>, transform_indices = @transform_3, window_bounds = array<i64: 1, 128>}, {transform_indices = @transform_4, window_bounds = array<i64: 32, 128>}]} {
    %c0 = arith.constant 0 : index
    %c0_0 = arith.constant 0 : index
    %0 = vector.load %arg1[%c0, %c0_0] : memref<32x128xbf16, #tpu.memory_space<vmem>>, vector<32x128xbf16>
    %c0_1 = arith.constant 0 : index
    %c0_2 = arith.constant 0 : index
    %1 = vector.load %arg2[%c0_1, %c0_2] : memref<128x128xbf16, #tpu.memory_space<vmem>>, vector<128x128xbf16>
    %cst = arith.constant dense<0.000000e+00> : vector<32x128xf32>
    %2 = tpu.matmul %0, %1, %cst {dimension_numbers = #tpu.dot_dimension_numbers<[1], [0], [0], [1], [0, 0, 1, 1], [], []>} : vector<32x128xbf16>, vector<128x128xbf16>, vector<32x128xf32> -> vector<32x128xf32>
    %c0_3 = arith.constant 0 : index
    %c0_4 = arith.constant 0 : index
    %3 = vector.load %arg3[%c0_3, %c0_4] : memref<1x128xf32, #tpu.memory_space<vmem>>, vector<1x128xf32>
    %4 = vector.broadcast %3 : vector<1x128xf32> to vector<32x128xf32>
    %5 = arith.mulf %2, %4 : vector<32x128xf32>
    %c0_5 = arith.constant 0 : index
    %c0_6 = arith.constant 0 : index
    %6 = vector.load %arg4[%c0_5, %c0_6] : memref<1x128xf32, #tpu.memory_space<vmem>>, vector<1x128xf32>
    %7 = vector.broadcast %6 : vector<1x128xf32> to vector<32x128xf32>
    %8 = arith.addf %5, %7 : vector<32x128xf32>
    %9 = arith.truncf %8 : vector<32x128xf32> to vector<32x128xbf16>
    %c0_7 = arith.constant 0 : index
    %c0_8 = arith.constant 0 : index
    %10 = vector.load %arg5[%c0_7, %c0_8] : memref<32x128xbf16, #tpu.memory_space<vmem>>, vector<32x128xbf16>
    tpu.vector_store %arg5[%c0_7, %c0_8], %9 {strides = array<i32>} : memref<32x128xbf16, #tpu.memory_space<vmem>>, vector<32x128xbf16>,
    return
  }
  func.func @transform_0(%arg0: i32) -> (i32, i32) {
    %c0_i32 = arith.constant 0 : i32
    %c0_i32_0 = arith.constant 0 : i32
    return %arg0, %c0_i32 : i32, i32
  }
  func.func @transform_1(%arg0: i32) -> (i32, i32) {
    %c0_i32 = arith.constant 0 : i32
    %c0_i32_0 = arith.constant 0 : i32
    %c0_i32_1 = arith.constant 0 : i32
    return %c0_i32, %c0_i32_0 : i32, i32
  }
  func.func @transform_2(%arg0: i32) -> (i32, i32) {
    %c0_i32 = arith.constant 0 : i32
    %c0_i32_0 = arith.constant 0 : i32
    %c0_i32_1 = arith.constant 0 : i32
    return %c0_i32, %c0_i32_0 : i32, i32
  }
  func.func @transform_3(%arg0: i32) -> (i32, i32) {
    %c0_i32 = arith.constant 0 : i32
    %c0_i32_0 = arith.constant 0 : i32
    %c0_i32_1 = arith.constant 0 : i32
    return %c0_i32, %c0_i32_0 : i32, i32
  }
  func.func @transform_4(%arg0: i32) -> (i32, i32) {
    %c0_i32 = arith.constant 0 : i32
    %c0_i32_0 = arith.constant 0 : i32
    return %arg0, %c0_i32 : i32, i32
  }
}

module attributes {stable_mosaic.version = 11 : i64} {
  func.func @_conv_mm_kernel(%arg0: i32, %arg1: memref<32x1152xbf16, #tpu.memory_space<vmem>>, %arg2: memref<1152x128xbf16, #tpu.memory_space<vmem>>, %arg3: memref<1x128xf32, #tpu.memory_space<vmem>>, %arg4: memref<1x128xf32, #tpu.memory_space<vmem>>, %arg5: memref<32x128xbf16, #tpu.memory_space<vmem>>) attributes {dimension_semantics = [#tpu.dimension_semantics<parallel>], iteration_bounds = array<i64: 1>, scalar_prefetch = 0 : i64, scratch_operands = 0 : i64, tpu.core_type = #tpu.core_type<tc>, window_params = [{transform_indices = @transform_0, window_bounds = array<i64: 32, 1152>}, {pipeline_mode = #tpu.pipeline_mode<synchronous>, transform_indices = @transform_1, window_bounds = array<i64: 1152, 128>}, {pipeline_mode = #tpu.pipeline_mode<synchronous>, transform_indices = @transform_2, window_bounds = array<i64: 1, 128>}, {pipeline_mode = #tpu.pipeline_mode<synchronous>, transform_indices = @transform_3, window_bounds = array<i64: 1, 128>}, {transform_indices = @transform_4, window_bounds = array<i64: 32, 128>}]} {
    %c0 = arith.constant 0 : index
    %c0_0 = arith.constant 0 : index
    %0 = vector.load %arg1[%c0, %c0_0] : memref<32x1152xbf16, #tpu.memory_space<vmem>>, vector<32x1152xbf16>
    %c0_1 = arith.constant 0 : index
    %c0_2 = arith.constant 0 : index
    %1 = vector.load %arg2[%c0_1, %c0_2] : memref<1152x128xbf16, #tpu.memory_space<vmem>>, vector<1152x128xbf16>
    %cst = arith.constant dense<0.000000e+00> : vector<32x128xf32>
    %2 = tpu.matmul %0, %1, %cst {dimension_numbers = #tpu.dot_dimension_numbers<[1], [0], [0], [1], [0, 0, 1, 1], [], []>} : vector<32x1152xbf16>, vector<1152x128xbf16>, vector<32x128xf32> -> vector<32x128xf32>
    %c0_3 = arith.constant 0 : index
    %c0_4 = arith.constant 0 : index
    %3 = vector.load %arg3[%c0_3, %c0_4] : memref<1x128xf32, #tpu.memory_space<vmem>>, vector<1x128xf32>
    %4 = vector.broadcast %3 : vector<1x128xf32> to vector<32x128xf32>
    %5 = arith.mulf %2, %4 : vector<32x128xf32>
    %c0_5 = arith.constant 0 : index
    %c0_6 = arith.constant 0 : index
    %6 = vector.load %arg4[%c0_5, %c0_6] : memref<1x128xf32, #tpu.memory_space<vmem>>, vector<1x128xf32>
    %7 = vector.broadcast %6 : vector<1x128xf32> to vector<32x128xf32>
    %8 = arith.addf %5, %7 : vector<32x128xf32>
    %cst_7 = arith.constant 0.000000e+00 : f32
    %9 = vector.broadcast %cst_7 : f32 to vector<32x128xf32>
    %10 = arith.maximumf %8, %9 : vector<32x128xf32>
    %11 = arith.truncf %10 : vector<32x128xf32> to vector<32x128xbf16>
    %c0_8 = arith.constant 0 : index
    %c0_9 = arith.constant 0 : index
    %12 = vector.load %arg5[%c0_8, %c0_9] : memref<32x128xbf16, #tpu.memory_space<vmem>>, vector<32x128xbf16>
    tpu.vector_store %arg5[%c0_8, %c0_9], %11 {strides = array<i32>} : memref<32x128xbf16, #tpu.memory_space<vmem>>, vector<32x128xbf16>,
    return
  }
  func.func @transform_0(%arg0: i32) -> (i32, i32) {
    %c0_i32 = arith.constant 0 : i32
    %c0_i32_0 = arith.constant 0 : i32
    return %arg0, %c0_i32 : i32, i32
  }
  func.func @transform_1(%arg0: i32) -> (i32, i32) {
    %c0_i32 = arith.constant 0 : i32
    %c0_i32_0 = arith.constant 0 : i32
    %c0_i32_1 = arith.constant 0 : i32
    return %c0_i32, %c0_i32_0 : i32, i32
  }
  func.func @transform_2(%arg0: i32) -> (i32, i32) {
    %c0_i32 = arith.constant 0 : i32
    %c0_i32_0 = arith.constant 0 : i32
    %c0_i32_1 = arith.constant 0 : i32
    return %c0_i32, %c0_i32_0 : i32, i32
  }
  func.func @transform_3(%arg0: i32) -> (i32, i32) {
    %c0_i32 = arith.constant 0 : i32
    %c0_i32_0 = arith.constant 0 : i32
    %c0_i32_1 = arith.constant 0 : i32
    return %c0_i32, %c0_i32_0 : i32, i32
  }
  func.func @transform_4(%arg0: i32) -> (i32, i32) {
    %c0_i32 = arith.constant 0 : i32
    %c0_i32_0 = arith.constant 0 : i32
    return %arg0, %c0_i32 : i32, i32
  }
}

module attributes {stable_mosaic.version = 11 : i64} {
  func.func @_conv_mm_res_kernel(%arg0: i32, %arg1: memref<32x1152xbf16, #tpu.memory_space<vmem>>, %arg2: memref<1152x128xbf16, #tpu.memory_space<vmem>>, %arg3: memref<1x128xf32, #tpu.memory_space<vmem>>, %arg4: memref<1x128xf32, #tpu.memory_space<vmem>>, %arg5: memref<32x128xbf16, #tpu.memory_space<vmem>>, %arg6: memref<32x128xbf16, #tpu.memory_space<vmem>>) attributes {dimension_semantics = [#tpu.dimension_semantics<parallel>], iteration_bounds = array<i64: 1>, scalar_prefetch = 0 : i64, scratch_operands = 0 : i64, tpu.core_type = #tpu.core_type<tc>, window_params = [{transform_indices = @transform_0, window_bounds = array<i64: 32, 1152>}, {pipeline_mode = #tpu.pipeline_mode<synchronous>, transform_indices = @transform_1, window_bounds = array<i64: 1152, 128>}, {pipeline_mode = #tpu.pipeline_mode<synchronous>, transform_indices = @transform_2, window_bounds = array<i64: 1, 128>}, {pipeline_mode = #tpu.pipeline_mode<synchronous>, transform_indices = @transform_3, window_bounds = array<i64: 1, 128>}, {transform_indices = @transform_4, window_bounds = array<i64: 32, 128>}, {transform_indices = @transform_5, window_bounds = array<i64: 32, 128>}]} {
    %c0 = arith.constant 0 : index
    %c0_0 = arith.constant 0 : index
    %0 = vector.load %arg1[%c0, %c0_0] : memref<32x1152xbf16, #tpu.memory_space<vmem>>, vector<32x1152xbf16>
    %c0_1 = arith.constant 0 : index
    %c0_2 = arith.constant 0 : index
    %1 = vector.load %arg2[%c0_1, %c0_2] : memref<1152x128xbf16, #tpu.memory_space<vmem>>, vector<1152x128xbf16>
    %cst = arith.constant dense<0.000000e+00> : vector<32x128xf32>
    %2 = tpu.matmul %0, %1, %cst {dimension_numbers = #tpu.dot_dimension_numbers<[1], [0], [0], [1], [0, 0, 1, 1], [], []>} : vector<32x1152xbf16>, vector<1152x128xbf16>, vector<32x128xf32> -> vector<32x128xf32>
    %c0_3 = arith.constant 0 : index
    %c0_4 = arith.constant 0 : index
    %3 = vector.load %arg3[%c0_3, %c0_4] : memref<1x128xf32, #tpu.memory_space<vmem>>, vector<1x128xf32>
    %4 = vector.broadcast %3 : vector<1x128xf32> to vector<32x128xf32>
    %5 = arith.mulf %2, %4 : vector<32x128xf32>
    %c0_5 = arith.constant 0 : index
    %c0_6 = arith.constant 0 : index
    %6 = vector.load %arg4[%c0_5, %c0_6] : memref<1x128xf32, #tpu.memory_space<vmem>>, vector<1x128xf32>
    %7 = vector.broadcast %6 : vector<1x128xf32> to vector<32x128xf32>
    %8 = arith.addf %5, %7 : vector<32x128xf32>
    %c0_7 = arith.constant 0 : index
    %c0_8 = arith.constant 0 : index
    %9 = vector.load %arg5[%c0_7, %c0_8] : memref<32x128xbf16, #tpu.memory_space<vmem>>, vector<32x128xbf16>
    %10 = arith.extf %9 : vector<32x128xbf16> to vector<32x128xf32>
    %11 = arith.addf %8, %10 : vector<32x128xf32>
    %cst_9 = arith.constant 0.000000e+00 : f32
    %12 = vector.broadcast %cst_9 : f32 to vector<32x128xf32>
    %13 = arith.maximumf %11, %12 : vector<32x128xf32>
    %14 = arith.truncf %13 : vector<32x128xf32> to vector<32x128xbf16>
    %c0_10 = arith.constant 0 : index
    %c0_11 = arith.constant 0 : index
    %15 = vector.load %arg6[%c0_10, %c0_11] : memref<32x128xbf16, #tpu.memory_space<vmem>>, vector<32x128xbf16>
    tpu.vector_store %arg6[%c0_10, %c0_11], %14 {strides = array<i32>} : memref<32x128xbf16, #tpu.memory_space<vmem>>, vector<32x128xbf16>,
    return
  }
  func.func @transform_0(%arg0: i32) -> (i32, i32) {
    %c0_i32 = arith.constant 0 : i32
    %c0_i32_0 = arith.constant 0 : i32
    return %arg0, %c0_i32 : i32, i32
  }
  func.func @transform_1(%arg0: i32) -> (i32, i32) {
    %c0_i32 = arith.constant 0 : i32
    %c0_i32_0 = arith.constant 0 : i32
    %c0_i32_1 = arith.constant 0 : i32
    return %c0_i32, %c0_i32_0 : i32, i32
  }
  func.func @transform_2(%arg0: i32) -> (i32, i32) {
    %c0_i32 = arith.constant 0 : i32
    %c0_i32_0 = arith.constant 0 : i32
    %c0_i32_1 = arith.constant 0 : i32
    return %c0_i32, %c0_i32_0 : i32, i32
  }
  func.func @transform_3(%arg0: i32) -> (i32, i32) {
    %c0_i32 = arith.constant 0 : i32
    %c0_i32_0 = arith.constant 0 : i32
    %c0_i32_1 = arith.constant 0 : i32
    return %c0_i32, %c0_i32_0 : i32, i32
  }
  func.func @transform_4(%arg0: i32) -> (i32, i32) {
    %c0_i32 = arith.constant 0 : i32
    %c0_i32_0 = arith.constant 0 : i32
    return %arg0, %c0_i32 : i32, i32
  }
  func.func @transform_5(%arg0: i32) -> (i32, i32) {
    %c0_i32 = arith.constant 0 : i32
    %c0_i32_0 = arith.constant 0 : i32
    return %arg0, %c0_i32 : i32, i32
  }
}

module attributes {stable_mosaic.version = 11 : i64} {
  func.func @_conv_mm_kernel(%arg0: i32, %arg1: memref<8x128xbf16, #tpu.memory_space<vmem>>, %arg2: memref<128x128xbf16, #tpu.memory_space<vmem>>, %arg3: memref<1x128xf32, #tpu.memory_space<vmem>>, %arg4: memref<1x128xf32, #tpu.memory_space<vmem>>, %arg5: memref<8x128xbf16, #tpu.memory_space<vmem>>) attributes {dimension_semantics = [#tpu.dimension_semantics<parallel>], iteration_bounds = array<i64: 1>, scalar_prefetch = 0 : i64, scratch_operands = 0 : i64, tpu.core_type = #tpu.core_type<tc>, window_params = [{transform_indices = @transform_0, window_bounds = array<i64: 8, 128>}, {pipeline_mode = #tpu.pipeline_mode<synchronous>, transform_indices = @transform_1, window_bounds = array<i64: 128, 128>}, {pipeline_mode = #tpu.pipeline_mode<synchronous>, transform_indices = @transform_2, window_bounds = array<i64: 1, 128>}, {pipeline_mode = #tpu.pipeline_mode<synchronous>, transform_indices = @transform_3, window_bounds = array<i64: 1, 128>}, {transform_indices = @transform_4, window_bounds = array<i64: 8, 128>}]} {
    %c0 = arith.constant 0 : index
    %c0_0 = arith.constant 0 : index
    %0 = vector.load %arg1[%c0, %c0_0] : memref<8x128xbf16, #tpu.memory_space<vmem>>, vector<8x128xbf16>
    %c0_1 = arith.constant 0 : index
    %c0_2 = arith.constant 0 : index
    %1 = vector.load %arg2[%c0_1, %c0_2] : memref<128x128xbf16, #tpu.memory_space<vmem>>, vector<128x128xbf16>
    %cst = arith.constant dense<0.000000e+00> : vector<8x128xf32>
    %2 = tpu.matmul %0, %1, %cst {dimension_numbers = #tpu.dot_dimension_numbers<[1], [0], [0], [1], [0, 0, 1, 1], [], []>} : vector<8x128xbf16>, vector<128x128xbf16>, vector<8x128xf32> -> vector<8x128xf32>
    %c0_3 = arith.constant 0 : index
    %c0_4 = arith.constant 0 : index
    %3 = vector.load %arg3[%c0_3, %c0_4] : memref<1x128xf32, #tpu.memory_space<vmem>>, vector<1x128xf32>
    %4 = vector.broadcast %3 : vector<1x128xf32> to vector<8x128xf32>
    %5 = arith.mulf %2, %4 : vector<8x128xf32>
    %c0_5 = arith.constant 0 : index
    %c0_6 = arith.constant 0 : index
    %6 = vector.load %arg4[%c0_5, %c0_6] : memref<1x128xf32, #tpu.memory_space<vmem>>, vector<1x128xf32>
    %7 = vector.broadcast %6 : vector<1x128xf32> to vector<8x128xf32>
    %8 = arith.addf %5, %7 : vector<8x128xf32>
    %9 = arith.truncf %8 : vector<8x128xf32> to vector<8x128xbf16>
    %c0_7 = arith.constant 0 : index
    %c0_8 = arith.constant 0 : index
    %10 = vector.load %arg5[%c0_7, %c0_8] : memref<8x128xbf16, #tpu.memory_space<vmem>>, vector<8x128xbf16>
    tpu.vector_store %arg5[%c0_7, %c0_8], %9 {strides = array<i32>} : memref<8x128xbf16, #tpu.memory_space<vmem>>, vector<8x128xbf16>,
    return
  }
  func.func @transform_0(%arg0: i32) -> (i32, i32) {
    %c0_i32 = arith.constant 0 : i32
    %c0_i32_0 = arith.constant 0 : i32
    return %arg0, %c0_i32 : i32, i32
  }
  func.func @transform_1(%arg0: i32) -> (i32, i32) {
    %c0_i32 = arith.constant 0 : i32
    %c0_i32_0 = arith.constant 0 : i32
    %c0_i32_1 = arith.constant 0 : i32
    return %c0_i32, %c0_i32_0 : i32, i32
  }
  func.func @transform_2(%arg0: i32) -> (i32, i32) {
    %c0_i32 = arith.constant 0 : i32
    %c0_i32_0 = arith.constant 0 : i32
    %c0_i32_1 = arith.constant 0 : i32
    return %c0_i32, %c0_i32_0 : i32, i32
  }
  func.func @transform_3(%arg0: i32) -> (i32, i32) {
    %c0_i32 = arith.constant 0 : i32
    %c0_i32_0 = arith.constant 0 : i32
    %c0_i32_1 = arith.constant 0 : i32
    return %c0_i32, %c0_i32_0 : i32, i32
  }
  func.func @transform_4(%arg0: i32) -> (i32, i32) {
    %c0_i32 = arith.constant 0 : i32
    %c0_i32_0 = arith.constant 0 : i32
    return %arg0, %c0_i32 : i32, i32
  }
}

module attributes {stable_mosaic.version = 11 : i64} {
  func.func @_conv_mm_kernel(%arg0: i32, %arg1: memref<8x1152xbf16, #tpu.memory_space<vmem>>, %arg2: memref<1152x128xbf16, #tpu.memory_space<vmem>>, %arg3: memref<1x128xf32, #tpu.memory_space<vmem>>, %arg4: memref<1x128xf32, #tpu.memory_space<vmem>>, %arg5: memref<8x128xbf16, #tpu.memory_space<vmem>>) attributes {dimension_semantics = [#tpu.dimension_semantics<parallel>], iteration_bounds = array<i64: 1>, scalar_prefetch = 0 : i64, scratch_operands = 0 : i64, tpu.core_type = #tpu.core_type<tc>, window_params = [{transform_indices = @transform_0, window_bounds = array<i64: 8, 1152>}, {pipeline_mode = #tpu.pipeline_mode<synchronous>, transform_indices = @transform_1, window_bounds = array<i64: 1152, 128>}, {pipeline_mode = #tpu.pipeline_mode<synchronous>, transform_indices = @transform_2, window_bounds = array<i64: 1, 128>}, {pipeline_mode = #tpu.pipeline_mode<synchronous>, transform_indices = @transform_3, window_bounds = array<i64: 1, 128>}, {transform_indices = @transform_4, window_bounds = array<i64: 8, 128>}]} {
    %c0 = arith.constant 0 : index
    %c0_0 = arith.constant 0 : index
    %0 = vector.load %arg1[%c0, %c0_0] : memref<8x1152xbf16, #tpu.memory_space<vmem>>, vector<8x1152xbf16>
    %c0_1 = arith.constant 0 : index
    %c0_2 = arith.constant 0 : index
    %1 = vector.load %arg2[%c0_1, %c0_2] : memref<1152x128xbf16, #tpu.memory_space<vmem>>, vector<1152x128xbf16>
    %cst = arith.constant dense<0.000000e+00> : vector<8x128xf32>
    %2 = tpu.matmul %0, %1, %cst {dimension_numbers = #tpu.dot_dimension_numbers<[1], [0], [0], [1], [0, 0, 1, 1], [], []>} : vector<8x1152xbf16>, vector<1152x128xbf16>, vector<8x128xf32> -> vector<8x128xf32>
    %c0_3 = arith.constant 0 : index
    %c0_4 = arith.constant 0 : index
    %3 = vector.load %arg3[%c0_3, %c0_4] : memref<1x128xf32, #tpu.memory_space<vmem>>, vector<1x128xf32>
    %4 = vector.broadcast %3 : vector<1x128xf32> to vector<8x128xf32>
    %5 = arith.mulf %2, %4 : vector<8x128xf32>
    %c0_5 = arith.constant 0 : index
    %c0_6 = arith.constant 0 : index
    %6 = vector.load %arg4[%c0_5, %c0_6] : memref<1x128xf32, #tpu.memory_space<vmem>>, vector<1x128xf32>
    %7 = vector.broadcast %6 : vector<1x128xf32> to vector<8x128xf32>
    %8 = arith.addf %5, %7 : vector<8x128xf32>
    %cst_7 = arith.constant 0.000000e+00 : f32
    %9 = vector.broadcast %cst_7 : f32 to vector<8x128xf32>
    %10 = arith.maximumf %8, %9 : vector<8x128xf32>
    %11 = arith.truncf %10 : vector<8x128xf32> to vector<8x128xbf16>
    %c0_8 = arith.constant 0 : index
    %c0_9 = arith.constant 0 : index
    %12 = vector.load %arg5[%c0_8, %c0_9] : memref<8x128xbf16, #tpu.memory_space<vmem>>, vector<8x128xbf16>
    tpu.vector_store %arg5[%c0_8, %c0_9], %11 {strides = array<i32>} : memref<8x128xbf16, #tpu.memory_space<vmem>>, vector<8x128xbf16>,
    return
  }
  func.func @transform_0(%arg0: i32) -> (i32, i32) {
    %c0_i32 = arith.constant 0 : i32
    %c0_i32_0 = arith.constant 0 : i32
    return %arg0, %c0_i32 : i32, i32
  }
  func.func @transform_1(%arg0: i32) -> (i32, i32) {
    %c0_i32 = arith.constant 0 : i32
    %c0_i32_0 = arith.constant 0 : i32
    %c0_i32_1 = arith.constant 0 : i32
    return %c0_i32, %c0_i32_0 : i32, i32
  }
  func.func @transform_2(%arg0: i32) -> (i32, i32) {
    %c0_i32 = arith.constant 0 : i32
    %c0_i32_0 = arith.constant 0 : i32
    %c0_i32_1 = arith.constant 0 : i32
    return %c0_i32, %c0_i32_0 : i32, i32
  }
  func.func @transform_3(%arg0: i32) -> (i32, i32) {
    %c0_i32 = arith.constant 0 : i32
    %c0_i32_0 = arith.constant 0 : i32
    %c0_i32_1 = arith.constant 0 : i32
    return %c0_i32, %c0_i32_0 : i32, i32
  }
  func.func @transform_4(%arg0: i32) -> (i32, i32) {
    %c0_i32 = arith.constant 0 : i32
    %c0_i32_0 = arith.constant 0 : i32
    return %arg0, %c0_i32 : i32, i32
  }
}

module attributes {stable_mosaic.version = 11 : i64} {
  func.func @_avgpool_fc_kernel(%arg0: memref<2x4x128xbf16, #tpu.memory_space<vmem>>, %arg1: memref<128x128xbf16, #tpu.memory_space<vmem>>, %arg2: memref<1x128xf32, #tpu.memory_space<vmem>>, %arg3: memref<2x128xf32, #tpu.memory_space<vmem>>) attributes {dimension_semantics = [], scalar_prefetch = 0 : i64, scratch_operands = 0 : i64, tpu.core_type = #tpu.core_type<tc>} {
    %c0 = arith.constant 0 : index
    %c0_0 = arith.constant 0 : index
    %c0_1 = arith.constant 0 : index
    %0 = vector.load %arg0[%c0, %c0_0, %c0_1] : memref<2x4x128xbf16, #tpu.memory_space<vmem>>, vector<2x4x128xbf16>
    %1 = arith.extf %0 : vector<2x4x128xbf16> to vector<2x4x128xf32>
    %cst = arith.constant dense<0.000000e+00> : vector<2x128xf32>
    %2 = vector.multi_reduction <add>, %1, %cst [1] : vector<2x4x128xf32> to vector<2x128xf32>
    %cst_2 = arith.constant 2.500000e-01 : f32
    %3 = vector.broadcast %cst_2 : f32 to vector<2x128xf32>
    %4 = arith.mulf %2, %3 : vector<2x128xf32>
    %5 = arith.truncf %4 : vector<2x128xf32> to vector<2x128xbf16>
    %c0_3 = arith.constant 0 : index
    %c0_4 = arith.constant 0 : index
    %6 = vector.load %arg1[%c0_3, %c0_4] : memref<128x128xbf16, #tpu.memory_space<vmem>>, vector<128x128xbf16>
    %cst_5 = arith.constant dense<0.000000e+00> : vector<2x128xf32>
    %7 = tpu.matmul %5, %6, %cst_5 {dimension_numbers = #tpu.dot_dimension_numbers<[1], [0], [0], [1], [0, 0, 1, 1], [], []>} : vector<2x128xbf16>, vector<128x128xbf16>, vector<2x128xf32> -> vector<2x128xf32>
    %c0_6 = arith.constant 0 : index
    %c0_7 = arith.constant 0 : index
    %8 = vector.load %arg2[%c0_6, %c0_7] : memref<1x128xf32, #tpu.memory_space<vmem>>, vector<1x128xf32>
    %9 = vector.broadcast %8 : vector<1x128xf32> to vector<2x128xf32>
    %10 = arith.addf %7, %9 : vector<2x128xf32>
    %c0_8 = arith.constant 0 : index
    %c0_9 = arith.constant 0 : index
    %11 = vector.load %arg3[%c0_8, %c0_9] : memref<2x128xf32, #tpu.memory_space<vmem>>, vector<2x128xf32>
    tpu.vector_store %arg3[%c0_8, %c0_9], %10 {strides = array<i32>} : memref<2x128xf32, #tpu.memory_space<vmem>>, vector<2x128xf32>,
    return
  }
}

module attributes {stable_mosaic.version = 11 : i64} {
  func.func @_conv_mm_res_kernel(%arg0: i32, %arg1: memref<8x1152xbf16, #tpu.memory_space<vmem>>, %arg2: memref<1152x128xbf16, #tpu.memory_space<vmem>>, %arg3: memref<1x128xf32, #tpu.memory_space<vmem>>, %arg4: memref<1x128xf32, #tpu.memory_space<vmem>>, %arg5: memref<8x128xbf16, #tpu.memory_space<vmem>>, %arg6: memref<8x128xbf16, #tpu.memory_space<vmem>>) attributes {dimension_semantics = [#tpu.dimension_semantics<parallel>], iteration_bounds = array<i64: 1>, scalar_prefetch = 0 : i64, scratch_operands = 0 : i64, tpu.core_type = #tpu.core_type<tc>, window_params = [{transform_indices = @transform_0, window_bounds = array<i64: 8, 1152>}, {pipeline_mode = #tpu.pipeline_mode<synchronous>, transform_indices = @transform_1, window_bounds = array<i64: 1152, 128>}, {pipeline_mode = #tpu.pipeline_mode<synchronous>, transform_indices = @transform_2, window_bounds = array<i64: 1, 128>}, {pipeline_mode = #tpu.pipeline_mode<synchronous>, transform_indices = @transform_3, window_bounds = array<i64: 1, 128>}, {transform_indices = @transform_4, window_bounds = array<i64: 8, 128>}, {transform_indices = @transform_5, window_bounds = array<i64: 8, 128>}]} {
    %c0 = arith.constant 0 : index
    %c0_0 = arith.constant 0 : index
    %0 = vector.load %arg1[%c0, %c0_0] : memref<8x1152xbf16, #tpu.memory_space<vmem>>, vector<8x1152xbf16>
    %c0_1 = arith.constant 0 : index
    %c0_2 = arith.constant 0 : index
    %1 = vector.load %arg2[%c0_1, %c0_2] : memref<1152x128xbf16, #tpu.memory_space<vmem>>, vector<1152x128xbf16>
    %cst = arith.constant dense<0.000000e+00> : vector<8x128xf32>
    %2 = tpu.matmul %0, %1, %cst {dimension_numbers = #tpu.dot_dimension_numbers<[1], [0], [0], [1], [0, 0, 1, 1], [], []>} : vector<8x1152xbf16>, vector<1152x128xbf16>, vector<8x128xf32> -> vector<8x128xf32>
    %c0_3 = arith.constant 0 : index
    %c0_4 = arith.constant 0 : index
    %3 = vector.load %arg3[%c0_3, %c0_4] : memref<1x128xf32, #tpu.memory_space<vmem>>, vector<1x128xf32>
    %4 = vector.broadcast %3 : vector<1x128xf32> to vector<8x128xf32>
    %5 = arith.mulf %2, %4 : vector<8x128xf32>
    %c0_5 = arith.constant 0 : index
    %c0_6 = arith.constant 0 : index
    %6 = vector.load %arg4[%c0_5, %c0_6] : memref<1x128xf32, #tpu.memory_space<vmem>>, vector<1x128xf32>
    %7 = vector.broadcast %6 : vector<1x128xf32> to vector<8x128xf32>
    %8 = arith.addf %5, %7 : vector<8x128xf32>
    %c0_7 = arith.constant 0 : index
    %c0_8 = arith.constant 0 : index
    %9 = vector.load %arg5[%c0_7, %c0_8] : memref<8x128xbf16, #tpu.memory_space<vmem>>, vector<8x128xbf16>
    %10 = arith.extf %9 : vector<8x128xbf16> to vector<8x128xf32>
    %11 = arith.addf %8, %10 : vector<8x128xf32>
    %cst_9 = arith.constant 0.000000e+00 : f32
    %12 = vector.broadcast %cst_9 : f32 to vector<8x128xf32>
    %13 = arith.maximumf %11, %12 : vector<8x128xf32>
    %14 = arith.truncf %13 : vector<8x128xf32> to vector<8x128xbf16>
    %c0_10 = arith.constant 0 : index
    %c0_11 = arith.constant 0 : index
    %15 = vector.load %arg6[%c0_10, %c0_11] : memref<8x128xbf16, #tpu.memory_space<vmem>>, vector<8x128xbf16>
    tpu.vector_store %arg6[%c0_10, %c0_11], %14 {strides = array<i32>} : memref<8x128xbf16, #tpu.memory_space<vmem>>, vector<8x128xbf16>,
    return
  }
  func.func @transform_0(%arg0: i32) -> (i32, i32) {
    %c0_i32 = arith.constant 0 : i32
    %c0_i32_0 = arith.constant 0 : i32
    return %arg0, %c0_i32 : i32, i32
  }
  func.func @transform_1(%arg0: i32) -> (i32, i32) {
    %c0_i32 = arith.constant 0 : i32
    %c0_i32_0 = arith.constant 0 : i32
    %c0_i32_1 = arith.constant 0 : i32
    return %c0_i32, %c0_i32_0 : i32, i32
  }
  func.func @transform_2(%arg0: i32) -> (i32, i32) {
    %c0_i32 = arith.constant 0 : i32
    %c0_i32_0 = arith.constant 0 : i32
    %c0_i32_1 = arith.constant 0 : i32
    return %c0_i32, %c0_i32_0 : i32, i32
  }
  func.func @transform_3(%arg0: i32) -> (i32, i32) {
    %c0_i32 = arith.constant 0 : i32
    %c0_i32_0 = arith.constant 0 : i32
    %c0_i32_1 = arith.constant 0 : i32
    return %c0_i32, %c0_i32_0 : i32, i32
  }
  func.func @transform_4(%arg0: i32) -> (i32, i32) {
    %c0_i32 = arith.constant 0 : i32
    %c0_i32_0 = arith.constant 0 : i32
    return %arg0, %c0_i32 : i32, i32
  }
  func.func @transform_5(%arg0: i32) -> (i32, i32) {
    %c0_i32 = arith.constant 0 : i32
    %c0_i32_0 = arith.constant 0 : i32
    return %arg0, %c0_i32 : i32, i32
  }
}

</mosaic_0001>

<bundles_post_ra>
// kernel: resnet_forward.11
= control target key start
LH: loop header
LB: loop body
LE: loop exit
PB: predicated region body
PF: predicated region fallthrough
CT: control target
= control target key end

     0   :  { %s1350_s15 = smov 0   ;;  %s1543_s0 = inlined_call_operand.vmem [shape: bf16[512,160], index: 0, kind: input, shape index: {}]   ;;  %s1544_s1 = inlined_call_operand.vmem [shape: bf16[160,128], index: 1, kind: input, shape index: {}]   ;;  %s1545_s2 = inlined_call_operand.vmem [shape: f32[1,128], index: 2, kind: input, shape index: {}]   ;;  %s1546_s3 = inlined_call_operand.vmem [shape: f32[1,128], index: 3, kind: input, shape index: {}]   ;;  %s1547_s4 = inlined_call_operand.vmem [shape: bf16[512,128], index: 4, kind: output, shape index: {}]  }
   0x1 LB: > { %s997_s16 = sadd.s32 4294967295, %s1322_s15   ;;  %p1001_p0 = scmp.ge.s32.totalorder %s1322_s15, 1  ;;  %s1322_s15 = sphi %s1350_s15, %s14_s15  }
   0x2   : > { %p164_p1 = scmp.lt.s32.totalorder %s1322_s15, 3 }
   0x4   : > { %p165_p2 = pnand %p1001_p0, %p164_p1 }
   0x5   : > { %v1258_v0 = vld [vmem:[%s1544_s1] sm:$0xff] (!%p165_p2)   ;;  %v1324_v1 = vmov (!%p165_p2), 0   ;;  %s1002_s19 = sshll.u32 (!%p165_p2), %s997_s16, 5  ;;  %v1259_v2 = vld [vmem:[%s1544_s1 + $0x8] sm:$0xff] (!%p165_p2)   ;;  %v1260_v3 = vld [vmem:[%s1544_s1 + $0x10] sm:$0xff] (!%p165_p2)   ;;  %vm461_vm0 = vcmask (!%p165_p2), 261120  }
   0x6   : > { %168 = sbr.rel (%p165_p2) target bundleno = 326 (0x146), region = 36  ;;  %510 = vmatprep.subr.bf16.mxu0 (!%p165_p2), %v1324_v1  ;;  %1229 = vmatprep.subr.bf16.mxu1 (!%p165_p2), %v1324_v1  ;;  %p192_p3 = scmp.lt.s32.totalorder (!%p165_p2), %s1002_s19, 63  ;;  %v1261_v4 = vld [vmem:[%s1544_s1 + $0x18] sm:$0xff] (!%p165_p2)   ;;  %v1262_v7 = vld [vmem:[%s1544_s1 + $0x20] sm:$0xff] (!%p165_p2)   ;;  %v1263_v8 = vld [vmem:[%s1544_s1 + $0x28] sm:$0xff] (!%p165_p2)  }
   0x7   : > { %511 = vmatpush1.bf16.msra.mxu0 (!%p165_p2), %v1258_v0  ;;  %1239 = vmatpush1.bf16.msra.mxu1 (!%p165_p2), %v1258_v0  ;;  %v1264_v9 = vld [vmem:[%s1544_s1 + $0x30] sm:$0xff] (!%p165_p2)   ;;  %v1265_v10 = vld [vmem:[%s1544_s1 + $0x38] sm:$0xff] (!%p165_p2)   ;;  %v1266_v11 = vld [vmem:[%s1544_s1 + $0x40] sm:$0xff] (!%p165_p2)  }
   0x8   : > { %512 = vmatprep.subr.bf16.mxu0 (!%p165_p2), %v1324_v1  ;;  %1230 = vmatprep.subr.bf16.mxu1 (!%p165_p2), %v1324_v1  ;;  %v1267_v12 = vld [vmem:[%s1544_s1 + $0x48] sm:$0xff] (!%p165_p2)   ;;  %v1447_v43 = vld [vmem:[%s1545_s2] ss:$0 sm:$0xff] (!%p165_p2) }
   0x9   : > { %v1452_v45 = vld [vmem:[%s1546_s3] ss:$0 sm:$0xff] (!%p165_p2) }
   0xb   : > { %513 = vmatpush1.bf16.msra.mxu0 (!%p165_p2), %v1259_v2  ;;  %1240 = vmatpush1.bf16.msra.mxu1 (!%p165_p2), %v1259_v2 }
   0xc   : > { %514 = vmatprep.subr.bf16.mxu0 (!%p165_p2), %v1324_v1  ;;  %1231 = vmatprep.subr.bf16.mxu1 (!%p165_p2), %v1324_v1 }
   0xd   : > { %s1549_s19 = smov (!%p192_p3, %s1002_s19), 63 }
   0xe   : > { %s1101_s24 = sshll.u32 %s1549_s19, 3  ;;  %s1006_s22 = sshll.u32 %s1549_s19, 2 }
   0xf   : > { %s1373_s27 = scalar_lea.vmem %s1543_s0, %s1101_s24  ;;  %515 = vmatpush1.bf16.msra.mxu0 %v1260_v3  ;;  %1241 = vmatpush1.bf16.msra.mxu1 %v1260_v3  ;;  %s1466_s25 = scalar_lea.vmem %s1547_s4, %s1006_s22 }
  0x10   : > { %516 = vmatprep.subr.bf16.mxu0 %v1324_v1  ;;  %1232 = vmatprep.subr.bf16.mxu1 %v1324_v1  ;;  %v1270_v5 = vld [vmem:[%s1373_s27 + $0x4] ss:$8 sps:$4 sm:$0xff]   ;;  %v1268_v13 = vld [vmem:[%s1373_s27] ss:$8 sps:$4 sm:$0xff]   ;;  %v1274_v15 = vld [vmem:[%s1373_s27 + $0x14] ss:$8 sps:$4 sm:$0xff]  }
  0x11   : > { %v1273_v6 = vld [vmem:[%s1373_s27 + $0x84] ss:$8 sps:$4 sm:$0xff]   ;;  %1049 = vmatprep.mubr.msk.bf16.mxu0 %vm461_vm0, %v1270_v5  ;;  %v1271_v14 = vld [vmem:[%s1373_s27 + $0x80] ss:$8 sps:$4 sm:$0xff]   ;;  %v1276_v16 = vld [vmem:[%s1373_s27 + $0x94] ss:$8 sps:$4 sm:$0xff]  }
  0x12   : > { %1057 = vmatprep.mubr.msk.bf16.mxu1 %vm461_vm0, %v1273_v6  ;;  %v1278_v17 = vld [vmem:[%s1373_s27 + $0x10] ss:$8 sps:$4 sm:$0xff]   ;;  %v1280_v19 = vld [vmem:[%s1373_s27 + $0x24] ss:$8 sps:$4 sm:$0xff]   ;;  %v1284_v21 = vld [vmem:[%s1373_s27 + $0x20] ss:$8 sps:$4 sm:$0xff]  }
  0x13   : > { %517 = vmatpush1.bf16.msra.mxu0 %v1261_v4  ;;  %1242 = vmatpush1.bf16.msra.mxu1 %v1261_v4  ;;  %v1279_v18 = vld [vmem:[%s1373_s27 + $0x90] ss:$8 sps:$4 sm:$0xff]   ;;  %v1282_v20 = vld [vmem:[%s1373_s27 + $0xa4] ss:$8 sps:$4 sm:$0xff]   ;;  %v1285_v22 = vld [vmem:[%s1373_s27 + $0xa0] ss:$8 sps:$4 sm:$0xff]  }
  0x14   : > { %518 = vmatprep.subr.bf16.mxu0 %v1324_v1  ;;  %1233 = vmatprep.subr.bf16.mxu1 %v1324_v1  ;;  %v1286_v23 = vld [vmem:[%s1373_s27 + $0x34] ss:$8 sps:$4 sm:$0xff]   ;;  %v1290_v25 = vld [vmem:[%s1373_s27 + $0x30] ss:$8 sps:$4 sm:$0xff]   ;;  %v1292_v27 = vld [vmem:[%s1373_s27 + $0x44] ss:$8 sps:$4 sm:$0xff]  }
  0x15   : > { %v1288_v24 = vld [vmem:[%s1373_s27 + $0xb4] ss:$8 sps:$4 sm:$0xff]   ;;  %v1291_v26 = vld [vmem:[%s1373_s27 + $0xb0] ss:$8 sps:$4 sm:$0xff]   ;;  %v1294_v28 = vld [vmem:[%s1373_s27 + $0xc4] ss:$8 sps:$4 sm:$0xff]  }
  0x16   : > { %v1296_v29 = vld [vmem:[%s1373_s27 + $0x40] ss:$8 sps:$4 sm:$0xff]   ;;  %v1298_v31 = vld [vmem:[%s1373_s27 + $0x54] ss:$8 sps:$4 sm:$0xff]   ;;  %v1302_v33 = vld [vmem:[%s1373_s27 + $0x50] ss:$8 sps:$4 sm:$0xff]  }
  0x17   : > { %519 = vmatpush1.bf16.msra.mxu0 %v1262_v7  ;;  %1243 = vmatpush1.bf16.msra.mxu1 %v1262_v7  ;;  %v1297_v30 = vld [vmem:[%s1373_s27 + $0xc0] ss:$8 sps:$4 sm:$0xff]   ;;  %v1300_v32 = vld [vmem:[%s1373_s27 + $0xd4] ss:$8 sps:$4 sm:$0xff]   ;;  %v1303_v34 = vld [vmem:[%s1373_s27 + $0xd0] ss:$8 sps:$4 sm:$0xff]  }
  0x18   : > { %520 = vmatprep.subr.bf16.mxu0 %v1324_v1  ;;  %1234 = vmatprep.subr.bf16.mxu1 %v1324_v1  ;;  %v1304_v35 = vld [vmem:[%s1373_s27 + $0x64] ss:$8 sps:$4 sm:$0xff]   ;;  %v1308_v37 = vld [vmem:[%s1373_s27 + $0x60] ss:$8 sps:$4 sm:$0xff]   ;;  %v1310_v39 = vld [vmem:[%s1373_s27 + $0x74] ss:$8 sps:$4 sm:$0xff]  }
  0x19   : > { %v1306_v36 = vld [vmem:[%s1373_s27 + $0xe4] ss:$8 sps:$4 sm:$0xff]   ;;  %v1309_v38 = vld [vmem:[%s1373_s27 + $0xe0] ss:$8 sps:$4 sm:$0xff]   ;;  %v1312_v40 = vld [vmem:[%s1373_s27 + $0xf4] ss:$8 sps:$4 sm:$0xff]  }
  0x1a   : > { %v1314_v41 = vld [vmem:[%s1373_s27 + $0x70] ss:$8 sps:$4 sm:$0xff]  }
  0x1b   : > { %521 = vmatpush1.bf16.msra.mxu0 %v1263_v8  ;;  %1244 = vmatpush1.bf16.msra.mxu1 %v1263_v8  ;;  %v1315_v42 = vld [vmem:[%s1373_s27 + $0xf0] ss:$8 sps:$4 sm:$0xff]  }
  0x1c   : > { %522 = vmatprep.subr.bf16.mxu0 %v1324_v1  ;;  %1235 = vmatprep.subr.bf16.mxu1 %v1324_v1 }
  0x1f   : > { %523 = vmatpush1.bf16.msra.mxu0 %v1264_v9  ;;  %1245 = vmatpush1.bf16.msra.mxu1 %v1264_v9 }
  0x20   : > { %524 = vmatprep.subr.bf16.mxu0 %v1324_v1  ;;  %1236 = vmatprep.subr.bf16.mxu1 %v1324_v1 }
  0x23   : > { %525 = vmatpush1.bf16.msra.mxu0 %v1265_v10  ;;  %1246 = vmatpush1.bf16.msra.mxu1 %v1265_v10 }
  0x24   : > { %526 = vmatprep.subr.bf16.mxu0 %v1324_v1  ;;  %1237 = vmatprep.subr.bf16.mxu1 %v1324_v1 }
  0x27   : > { %527 = vmatpush1.bf16.msra.mxu0 %v1266_v11  ;;  %1247 = vmatpush1.bf16.msra.mxu1 %v1266_v11 }
  0x28   : > { %528 = vmatprep.subr.bf16.mxu0 %v1324_v1  ;;  %1238 = vmatprep.subr.bf16.mxu1 %v1324_v1 }
  0x2b   : > { %529 = vmatpush1.bf16.msra.mxu0 %v1267_v12  ;;  %1248 = vmatpush1.bf16.msra.mxu1 %v1267_v12 }
  0x2e   : > { %543 = vmatmul.mubr.bf16.vlgmr.msra.gmra.mrb[0].mxu0 %v1268_v13  ;;  %607 = vmatmul.mubr.bf16.vlgmr.msra.gmra.mrb[0].mxu1 %v1271_v14 }
  0x2f   : > { %1050 = vmatprep.mubr.msk.bf16.mxu0 %vm461_vm0, %v1274_v15  ;;  %1058 = vmatprep.mubr.msk.bf16.mxu1 %vm461_vm0, %v1276_v16 }
  0x36   : > { %551 = vmatmul.mubr.bf16.gmra.mrb[4].mxu0 %v1278_v17  ;;  %615 = vmatmul.mubr.bf16.gmra.mrb[4].mxu1 %v1279_v18 }
  0x37   : > { %1051 = vmatprep.mubr.msk.bf16.mxu0 %vm461_vm0, %v1280_v19  ;;  %1059 = vmatprep.mubr.msk.bf16.mxu1 %vm461_vm0, %v1282_v20 }
  0x3e   : > { %559 = vmatmul.mubr.bf16.gmra.mrb[8].mxu0 %v1284_v21  ;;  %623 = vmatmul.mubr.bf16.gmra.mrb[8].mxu1 %v1285_v22 }
  0x3f   : > { %1052 = vmatprep.mubr.msk.bf16.mxu0 %vm461_vm0, %v1286_v23  ;;  %1060 = vmatprep.mubr.msk.bf16.mxu1 %vm461_vm0, %v1288_v24 }
  0x46   : > { %567 = vmatmul.mubr.bf16.gmra.mrb[12].mxu0 %v1290_v25  ;;  %631 = vmatmul.mubr.bf16.gmra.mrb[12].mxu1 %v1291_v26 }
  0x47   : > { %1053 = vmatprep.mubr.msk.bf16.mxu0 %vm461_vm0, %v1292_v27  ;;  %1061 = vmatprep.mubr.msk.bf16.mxu1 %vm461_vm0, %v1294_v28 }
  0x4e   : > { %575 = vmatmul.mubr.bf16.gmra.mrb[16].mxu0 %v1296_v29  ;;  %639 = vmatmul.mubr.bf16.gmra.mrb[16].mxu1 %v1297_v30 }
  0x4f   : > { %1054 = vmatprep.mubr.msk.bf16.mxu0 %vm461_vm0, %v1298_v31  ;;  %1062 = vmatprep.mubr.msk.bf16.mxu1 %vm461_vm0, %v1300_v32 }
  0x56   : > { %583 = vmatmul.mubr.bf16.gmra.mrb[20].mxu0 %v1302_v33  ;;  %647 = vmatmul.mubr.bf16.gmra.mrb[20].mxu1 %v1303_v34 }
  0x57   : > { %1055 = vmatprep.mubr.msk.bf16.mxu0 %vm461_vm0, %v1304_v35  ;;  %1063 = vmatprep.mubr.msk.bf16.mxu1 %vm461_vm0, %v1306_v36 }
  0x5e   : > { %591 = vmatmul.mubr.bf16.gmra.mrb[24].mxu0 %v1308_v37  ;;  %655 = vmatmul.mubr.bf16.gmra.mrb[24].mxu1 %v1309_v38 }
  0x5f   : > { %1056 = vmatprep.mubr.msk.bf16.mxu0 %vm461_vm0, %v1310_v39  ;;  %1064 = vmatprep.mubr.msk.bf16.mxu1 %vm461_vm0, %v1312_v40 }
  0x66   : > { %599 = vmatmul.mubr.bf16.gmra.mrb[28].mxu0 %v1314_v41  ;;  %663 = vmatmul.mubr.bf16.gmra.mrb[28].mxu1 %v1315_v42 }
 0x101   : > { %v544_v44 = vpop.f32.mrb[0].mxu0  ;;  %v608_v46 = vpop.f32.mrb[0].mxu1 }
 0x102   : > { %v678_v47 = vmul.f32 %v1447_v43, %v544_v44  ;;  %v694_v48 = vmul.f32 %v1447_v43, %v608_v46  ;;  %v546_v49 = vpop.f32.mrb[1].mxu0  ;;  %v610_v50 = vpop.f32.mrb[1].mxu1 }
 0x103   : > { %v547_v51 = vpop.f32.mrb[2].mxu0  ;;  %v611_v52 = vpop.f32.mrb[2].mxu1 }
 0x104   : > { %v717_v53 = vadd.f32 %v1452_v45, %v678_v47  ;;  %v733_v54 = vadd.f32 %v1452_v45, %v694_v48  ;;  %v679_v55 = vmul.f32 %v1447_v43, %v547_v51  ;;  %v695_v56 = vmul.f32 %v1447_v43, %v611_v52  ;;  %v549_v57 = vpop.f32.mrb[3].mxu0  ;;  %v613_v58 = vpop.f32.mrb[3].mxu1 }
 0x106   : > { %v718_v59 = vadd.f32 %v1452_v45, %v679_v55  ;;  %v734_v60 = vadd.f32 %v1452_v45, %v695_v56  ;;  %v749_v61 = vmax.f32 %v717_v53, 0.0  ;;  %v765_v62 = vmax.f32 %v733_v54, 0.0 }
 0x108   : > { %v750_v63 = vmax.f32 %v718_v59, 0.0  ;;  %v766_v0 = vmax.f32 %v734_v60, 0.0 }
 0x109   : > { %v552_v1 = vpop.f32.mrb[4].mxu0  ;;  %v616_v2 = vpop.f32.mrb[4].mxu1 }
 0x10a   : > { %v1137_v3 = vpack.c.bf16 %v750_v63, %v749_v61  ;;  %v1177_v4 = vpack.c.bf16 %v766_v0, %v765_v62  ;;  %v680_v5 = vmul.f32 %v1447_v43, %v552_v1  ;;  %v696_v6 = vmul.f32 %v1447_v43, %v616_v2  ;;  %v554_v7 = vpop.f32.mrb[5].mxu0  ;;  %v618_v8 = vpop.f32.mrb[5].mxu1 }
 0x10b   : > { %v555_v9 = vpop.f32.mrb[6].mxu0  ;;  %v619_v10 = vpop.f32.mrb[6].mxu1 }
 0x10c   : > { %1138 = vst [vmem:[%s1466_s25] sm:$0xff] %v1137_v3   ;;  %1221 = vst [vmem:[%s1466_s25 + $0x40] sm:$0xff] %v1177_v4   ;;  %v719_v11 = vadd.f32 %v1452_v45, %v680_v5  ;;  %v735_v12 = vadd.f32 %v1452_v45, %v696_v6  ;;  %v681_v13 = vmul.f32 %v1447_v43, %v555_v9  ;;  %v557_v15 = vpop.f32.mrb[7].mxu0  ;;  %v621_v16 = vpop.f32.mrb[7].mxu1 }
 0x10d   : > { %v697_v14 = vmul.f32 %v1447_v43, %v619_v10 }
 0x10e   : > { %v720_v17 = vadd.f32 %v1452_v45, %v681_v13  ;;  %v751_v19 = vmax.f32 %v719_v11, 0.0  ;;  %v767_v20 = vmax.f32 %v735_v12, 0.0 }
 0x10f   : > { %v736_v18 = vadd.f32 %v1452_v45, %v697_v14 }
 0x110   : > { %v752_v21 = vmax.f32 %v720_v17, 0.0 }
 0x111   : > { %v768_v22 = vmax.f32 %v736_v18, 0.0  ;;  %v560_v23 = vpop.f32.mrb[8].mxu0  ;;  %v624_v24 = vpop.f32.mrb[8].mxu1 }
 0x112   : > { %v1142_v25 = vpack.c.bf16 %v752_v21, %v751_v19  ;;  %v682_v27 = vmul.f32 %v1447_v43, %v560_v23  ;;  %v698_v28 = vmul.f32 %v1447_v43, %v624_v24  ;;  %v562_v29 = vpop.f32.mrb[9].mxu0  ;;  %v626_v30 = vpop.f32.mrb[9].mxu1 }
 0x113   : > { %v1182_v26 = vpack.c.bf16 %v768_v22, %v767_v20  ;;  %v563_v31 = vpop.f32.mrb[10].mxu0  ;;  %v627_v32 = vpop.f32.mrb[10].mxu1 }
 0x114   : > { %1214 = vst [vmem:[%s1466_s25 + $0x8] sm:$0xff] %v1142_v25   ;;  %v721_v33 = vadd.f32 %v1452_v45, %v682_v27  ;;  %v737_v34 = vadd.f32 %v1452_v45, %v698_v28  ;;  %v683_v35 = vmul.f32 %v1447_v43, %v563_v31  ;;  %v699_v36 = vmul.f32 %v1447_v43, %v627_v32  ;;  %v565_v37 = vpop.f32.mrb[11].mxu0  ;;  %v629_v38 = vpop.f32.mrb[11].mxu1 }
 0x115   : > { %1222 = vst [vmem:[%s1466_s25 + $0x48] sm:$0xff] %v1182_v26  }
 0x116   : > { %v722_v39 = vadd.f32 %v1452_v45, %v683_v35  ;;  %v738_v40 = vadd.f32 %v1452_v45, %v699_v36  ;;  %v753_v41 = vmax.f32 %v721_v33, 0.0  ;;  %v769_v42 = vmax.f32 %v737_v34, 0.0 }
 0x118   : > { %v754_v44 = vmax.f32 %v722_v39, 0.0  ;;  %v770_v46 = vmax.f32 %v738_v40, 0.0 }
 0x119   : > { %v568_v47 = vpop.f32.mrb[12].mxu0  ;;  %v632_v48 = vpop.f32.mrb[12].mxu1 }
 0x11a   : > { %v1147_v49 = vpack.c.bf16 %v754_v44, %v753_v41  ;;  %v1187_v50 = vpack.c.bf16 %v770_v46, %v769_v42  ;;  %v684_v51 = vmul.f32 %v1447_v43, %v568_v47  ;;  %v700_v52 = vmul.f32 %v1447_v43, %v632_v48  ;;  %v570_v53 = vpop.f32.mrb[13].mxu0  ;;  %v634_v54 = vpop.f32.mrb[13].mxu1 }
 0x11b   : > { %v571_v55 = vpop.f32.mrb[14].mxu0  ;;  %v635_v56 = vpop.f32.mrb[14].mxu1 }
 0x11c   : > { %1215 = vst [vmem:[%s1466_s25 + $0x10] sm:$0xff] %v1147_v49   ;;  %1223 = vst [vmem:[%s1466_s25 + $0x50] sm:$0xff] %v1187_v50   ;;  %v723_v57 = vadd.f32 %v1452_v45, %v684_v51  ;;  %v739_v58 = vadd.f32 %v1452_v45, %v700_v52  ;;  %v685_v59 = vmul.f32 %v1447_v43, %v571_v55  ;;  %v573_v61 = vpop.f32.mrb[15].mxu0  ;;  %v637_v62 = vpop.f32.mrb[15].mxu1 }
 0x11d   : > { %v701_v60 = vmul.f32 %v1447_v43, %v635_v56 }
 0x11e   : > { %v724_v63 = vadd.f32 %v1452_v45, %v685_v59  ;;  %v755_v1 = vmax.f32 %v723_v57, 0.0  ;;  %v771_v2 = vmax.f32 %v739_v58, 0.0 }
 0x11f   : > { %v740_v0 = vadd.f32 %v1452_v45, %v701_v60 }
 0x120   : > { %v756_v3 = vmax.f32 %v724_v63, 0.0 }
 0x121   : > { %v772_v4 = vmax.f32 %v740_v0, 0.0  ;;  %v576_v5 = vpop.f32.mrb[16].mxu0  ;;  %v640_v6 = vpop.f32.mrb[16].mxu1 }
 0x122   : > { %v1152_v7 = vpack.c.bf16 %v756_v3, %v755_v1  ;;  %v686_v9 = vmul.f32 %v1447_v43, %v576_v5  ;;  %v702_v10 = vmul.f32 %v1447_v43, %v640_v6  ;;  %v578_v11 = vpop.f32.mrb[17].mxu0  ;;  %v642_v12 = vpop.f32.mrb[17].mxu1 }
 0x123   : > { %v1192_v8 = vpack.c.bf16 %v772_v4, %v771_v2  ;;  %v579_v13 = vpop.f32.mrb[18].mxu0  ;;  %v643_v14 = vpop.f32.mrb[18].mxu1 }
 0x124   : > { %1216 = vst [vmem:[%s1466_s25 + $0x18] sm:$0xff] %v1152_v7   ;;  %v725_v15 = vadd.f32 %v1452_v45, %v686_v9  ;;  %v741_v16 = vadd.f32 %v1452_v45, %v702_v10  ;;  %v687_v17 = vmul.f32 %v1447_v43, %v579_v13  ;;  %v703_v18 = vmul.f32 %v1447_v43, %v643_v14  ;;  %v581_v19 = vpop.f32.mrb[19].mxu0  ;;  %v645_v20 = vpop.f32.mrb[19].mxu1 }
 0x125   : > { %1224 = vst [vmem:[%s1466_s25 + $0x58] sm:$0xff] %v1192_v8  }
 0x126   : > { %v726_v21 = vadd.f32 %v1452_v45, %v687_v17  ;;  %v742_v22 = vadd.f32 %v1452_v45, %v703_v18  ;;  %v757_v23 = vmax.f32 %v725_v15, 0.0  ;;  %v773_v24 = vmax.f32 %v741_v16, 0.0 }
 0x128   : > { %v758_v25 = vmax.f32 %v726_v21, 0.0  ;;  %v774_v26 = vmax.f32 %v742_v22, 0.0 }
 0x129   : > { %v584_v27 = vpop.f32.mrb[20].mxu0  ;;  %v648_v28 = vpop.f32.mrb[20].mxu1 }
 0x12a   : > { %v1157_v29 = vpack.c.bf16 %v758_v25, %v757_v23  ;;  %v1197_v30 = vpack.c.bf16 %v774_v26, %v773_v24  ;;  %v688_v31 = vmul.f32 %v1447_v43, %v584_v27  ;;  %v704_v32 = vmul.f32 %v1447_v43, %v648_v28  ;;  %v586_v33 = vpop.f32.mrb[21].mxu0  ;;  %v650_v34 = vpop.f32.mrb[21].mxu1 }
 0x12b   : > { %v587_v35 = vpop.f32.mrb[22].mxu0  ;;  %v651_v36 = vpop.f32.mrb[22].mxu1 }
 0x12c   : > { %1217 = vst [vmem:[%s1466_s25 + $0x20] sm:$0xff] %v1157_v29   ;;  %1225 = vst [vmem:[%s1466_s25 + $0x60] sm:$0xff] %v1197_v30   ;;  %v727_v37 = vadd.f32 %v1452_v45, %v688_v31  ;;  %v743_v38 = vadd.f32 %v1452_v45, %v704_v32  ;;  %v689_v39 = vmul.f32 %v1447_v43, %v587_v35  ;;  %v589_v41 = vpop.f32.mrb[23].mxu0  ;;  %v653_v42 = vpop.f32.mrb[23].mxu1 }
 0x12d   : > { %v705_v40 = vmul.f32 %v1447_v43, %v651_v36 }
 0x12e   : > { %v728_v44 = vadd.f32 %v1452_v45, %v689_v39  ;;  %v759_v47 = vmax.f32 %v727_v37, 0.0  ;;  %v775_v48 = vmax.f32 %v743_v38, 0.0 }
 0x12f   : > { %v744_v46 = vadd.f32 %v1452_v45, %v705_v40 }
 0x130   : > { %v760_v49 = vmax.f32 %v728_v44, 0.0 }
 0x131   : > { %v776_v50 = vmax.f32 %v744_v46, 0.0  ;;  %v592_v51 = vpop.f32.mrb[24].mxu0  ;;  %v656_v52 = vpop.f32.mrb[24].mxu1 }
 0x132   : > { %v1162_v53 = vpack.c.bf16 %v760_v49, %v759_v47  ;;  %v690_v55 = vmul.f32 %v1447_v43, %v592_v51  ;;  %v706_v56 = vmul.f32 %v1447_v43, %v656_v52  ;;  %v594_v57 = vpop.f32.mrb[25].mxu0  ;;  %v658_v58 = vpop.f32.mrb[25].mxu1 }
 0x133   : > { %v1202_v54 = vpack.c.bf16 %v776_v50, %v775_v48  ;;  %v595_v59 = vpop.f32.mrb[26].mxu0  ;;  %v659_v60 = vpop.f32.mrb[26].mxu1 }
 0x134   : > { %1218 = vst [vmem:[%s1466_s25 + $0x28] sm:$0xff] %v1162_v53   ;;  %v729_v61 = vadd.f32 %v1452_v45, %v690_v55  ;;  %v745_v62 = vadd.f32 %v1452_v45, %v706_v56  ;;  %v691_v63 = vmul.f32 %v1447_v43, %v595_v59  ;;  %v707_v0 = vmul.f32 %v1447_v43, %v659_v60  ;;  %v597_v1 = vpop.f32.mrb[27].mxu0  ;;  %v661_v2 = vpop.f32.mrb[27].mxu1 }
 0x135   : > { %1226 = vst [vmem:[%s1466_s25 + $0x68] sm:$0xff] %v1202_v54  }
 0x136   : > { %v730_v3 = vadd.f32 %v1452_v45, %v691_v63  ;;  %v746_v4 = vadd.f32 %v1452_v45, %v707_v0  ;;  %v761_v5 = vmax.f32 %v729_v61, 0.0  ;;  %v777_v6 = vmax.f32 %v745_v62, 0.0 }
 0x138   : > { %v762_v7 = vmax.f32 %v730_v3, 0.0  ;;  %v778_v8 = vmax.f32 %v746_v4, 0.0 }
 0x139   : > { %v600_v9 = vpop.f32.mrb[28].mxu0  ;;  %v664_v10 = vpop.f32.mrb[28].mxu1 }
 0x13a   : > { %v1167_v11 = vpack.c.bf16 %v762_v7, %v761_v5  ;;  %v1207_v12 = vpack.c.bf16 %v778_v8, %v777_v6  ;;  %v692_v13 = vmul.f32 %v1447_v43, %v600_v9  ;;  %v708_v14 = vmul.f32 %v1447_v43, %v664_v10  ;;  %v602_v15 = vpop.f32.mrb[29].mxu0  ;;  %v666_v16 = vpop.f32.mrb[29].mxu1 }
 0x13b   : > { %v603_v17 = vpop.f32.mrb[30].mxu0  ;;  %v667_v18 = vpop.f32.mrb[30].mxu1 }
 0x13c   : > { %1219 = vst [vmem:[%s1466_s25 + $0x30] sm:$0xff] %v1167_v11   ;;  %1227 = vst [vmem:[%s1466_s25 + $0x70] sm:$0xff] %v1207_v12   ;;  %v731_v19 = vadd.f32 %v1452_v45, %v692_v13  ;;  %v747_v20 = vadd.f32 %v1452_v45, %v708_v14  ;;  %v693_v21 = vmul.f32 %v1447_v43, %v603_v17  ;;  %v605_v23 = vpop.f32.mrb[31].mxu0  ;;  %v669_v24 = vpop.f32.mrb[31].mxu1 }
 0x13d   : > { %v709_v22 = vmul.f32 %v1447_v43, %v667_v18 }
 0x13e   : > { %v732_v25 = vadd.f32 %v1452_v45, %v693_v21  ;;  %v763_v27 = vmax.f32 %v731_v19, 0.0  ;;  %v779_v28 = vmax.f32 %v747_v20, 0.0 }
 0x13f   : > { %v748_v26 = vadd.f32 %v1452_v45, %v709_v22 }
 0x140   : > { %v764_v29 = vmax.f32 %v732_v25, 0.0 }
 0x141   : > { %v780_v30 = vmax.f32 %v748_v26, 0.0 }
 0x142   : > { %v1172_v31 = vpack.c.bf16 %v764_v29, %v763_v27 }
 0x143   : > { %v1212_v32 = vpack.c.bf16 %v780_v30, %v779_v28 }
 0x144   : > { %1220 = vst [vmem:[%s1466_s25 + $0x38] sm:$0xff] %v1172_v31  }
 0x145   : > { %1228 = vst [vmem:[%s1466_s25 + $0x78] sm:$0xff] %v1212_v32  }
 0x146 PF: > { %s14_s15 = sadd.s32 1, %s1322_s15  }
 0x147   : > { %p11_p4 = scmp.ge.s32.totalorder %s14_s15, 4  }
 0x149   :  { %13 = sbr.rel (!%p11_p4) target bundleno = 1 (0x1), region = 66 }

// kernel: resnet_forward.12
= control target key start
LH: loop header
LB: loop body
LE: loop exit
PB: predicated region body
PF: predicated region fallthrough
CT: control target
= control target key end

     0   :  { %vm114_vm0 = vsmask.f32 3328  ;;  %vm115_vm1 = vsmask.f32 7440  ;;  %s2545_s3 = inlined_call_operand.vmem [shape: bf16[2,9,9,128], index: 3, kind: input, shape index: {}]   ;;  %s2546_s0 = inlined_call_operand.vmem [shape: bf16[2,9,9,128], index: 0, kind: input, shape index: {}]   ;;  %s2547_s1 = inlined_call_operand.vmem [shape: bf16[2,9,9,128], index: 1, kind: input, shape index: {}]   ;;  %s2548_s2 = inlined_call_operand.vmem [shape: bf16[2,9,9,128], index: 2, kind: input, shape index: {}]   ;;  %s2549_s4 = inlined_call_operand.vmem [shape: bf16[2,8,8,128], index: 4, kind: output, shape index: {}]  }
   0x1   :  { %v1165_v0 = vld [vmem:[%s2545_s3] sm:$0xf]  ;;  %v1170_v1 = vld [vmem:[%s2545_s3 + $0x8] sm:$0xf]  ;;  %v1175_v2 = vld [vmem:[%s2545_s3 + $0x10] sm:$0xf] }
   0x2   :  { %v1180_v3 = vld [vmem:[%s2545_s3 + $0x18] sm:$0xf]  ;;  %v1185_v4 = vld [vmem:[%s2545_s3 + $0x20] sm:$0xf]  ;;  %v1190_v5 = vld [vmem:[%s2545_s3 + $0x28] sm:$0xf] }
   0x3   :  { %v1195_v6 = vld [vmem:[%s2545_s3 + $0x30] sm:$0xf]  ;;  %v1200_v7 = vld [vmem:[%s2545_s3 + $0x38] sm:$0xf]  ;;  %v1205_v8 = vld [vmem:[%s2545_s3 + $0x48] sm:$0xf] }
   0x4   :  { %v1210_v9 = vld [vmem:[%s2545_s3 + $0x50] sm:$0xf]  ;;  %v1215_v10 = vld [vmem:[%s2545_s3 + $0x58] sm:$0xf]  ;;  %v1220_v11 = vld [vmem:[%s2545_s3 + $0x60] sm:$0xf] }
   0x5   :  { %v1225_v12 = vld [vmem:[%s2546_s0] sm:$0xf]  ;;  %v1230_v13 = vld [vmem:[%s2546_s0 + $0x8] sm:$0xf]  ;;  %v1235_v14 = vld [vmem:[%s2546_s0 + $0x10] sm:$0xf] }
   0x6   :  { %v1240_v15 = vld [vmem:[%s2546_s0 + $0x18] sm:$0xf]  ;;  %v1245_v16 = vld [vmem:[%s2545_s3 + $0x68] sm:$0xf]  ;;  %v1250_v17 = vld [vmem:[%s2545_s3 + $0x70] sm:$0xf]  ;;  %v49_v32 = vmax.bf16 %v1225_v12, %v1165_v0  ;;  %v50_v33 = vmax.bf16 %v1230_v13, %v1170_v1  ;;  %v51_v34 = vmax.bf16 %v1235_v14, %v1175_v2 }
   0x7   :  { %v1255_v18 = vld [vmem:[%s2545_s3 + $0x78] sm:$0xf]  ;;  %v1260_v19 = vld [vmem:[%s2545_s3 + $0x80] sm:$0xf]  ;;  %v1270_v21 = vld [vmem:[%s2546_s0 + $0x28] sm:$0xf]  ;;  %v52_v35 = vmax.bf16 %v1240_v15, %v1180_v3 }
   0x8   :  { %v1265_v20 = vld [vmem:[%s2546_s0 + $0x20] sm:$0xf]  ;;  %v1275_v22 = vld [vmem:[%s2546_s0 + $0x30] sm:$0xf]  ;;  %v1280_v23 = vld [vmem:[%s2546_s0 + $0x38] sm:$0xf]  ;;  %v54_v37 = vmax.bf16 %v1270_v21, %v1190_v5 }
   0x9   :  { %v1285_v24 = vld [vmem:[%s2546_s0 + $0x48] sm:$0xf]  ;;  %v1290_v25 = vld [vmem:[%s2546_s0 + $0x50] sm:$0xf]  ;;  %v1295_v26 = vld [vmem:[%s2546_s0 + $0x58] sm:$0xf]  ;;  %v53_v36 = vmax.bf16 %v1265_v20, %v1185_v4  ;;  %v55_v38 = vmax.bf16 %v1275_v22, %v1195_v6  ;;  %v56_v39 = vmax.bf16 %v1280_v23, %v1200_v7 }
   0xa   :  { %v1300_v27 = vld [vmem:[%s2546_s0 + $0x60] sm:$0xf]  ;;  %v1305_v28 = vld [vmem:[%s2546_s0 + $0x68] sm:$0xf]  ;;  %v1310_v29 = vld [vmem:[%s2546_s0 + $0x70] sm:$0xf]  ;;  %v57_v43 = vmax.bf16 %v1285_v24, %v1205_v8  ;;  %v58_v44 = vmax.bf16 %v1290_v25, %v1210_v9  ;;  %v59_v45 = vmax.bf16 %v1295_v26, %v1215_v10 }
   0xb   :  { %v1315_v30 = vld [vmem:[%s2546_s0 + $0x78] sm:$0xf]  ;;  %v1320_v31 = vld [vmem:[%s2546_s0 + $0x80] sm:$0xf]  ;;  %v1341_v40 = vld [vmem:[%s2546_s0 + $0x8] sm:$0xf]  ;;  %v60_v46 = vmax.bf16 %v1300_v27, %v1220_v11  ;;  %v61_v50 = vmax.bf16 %v1305_v28, %v1245_v16  ;;  %v62_v51 = vmax.bf16 %v1310_v29, %v1250_v17 }
   0xc   :  { %2597 = vst [vmem:[#allocation2_spill] sm:$0xff] %v1341_v40  ;;  %v1346_v41 = vld [vmem:[%s2546_s0 + $0x10] sm:$0xf]  ;;  %v1351_v42 = vld [vmem:[%s2546_s0 + $0x18] sm:$0xf]  ;;  %v63_v52 = vmax.bf16 %v1315_v30, %v1255_v18  ;;  %v64_v53 = vmax.bf16 %v1320_v31, %v1260_v19  ;;  %v1415_v60 = vmax.bf16 %v1341_v40, %v49_v32  ;;  %vm1511_vm2 = vmor %vm114_vm0, %vm115_vm1  ;;  %v331_v40 = vshll.u32 %v1320_v31, 16 }
   0xd   :  { %2598 = vst [vmem:[#allocation3_spill] sm:$0xff] %v1346_v41  ;;  %2599 = vst [vmem:[#allocation4_spill] sm:$0xff] %v1351_v42  ;;  %v1364_v47 = vld [vmem:[%s2546_s0 + $0x20] sm:$0xf]  ;;  %v1369_v48 = vld [vmem:[%s2546_s0 + $0x28] sm:$0xf]  ;;  %v1418_v61 = vmax.bf16 %v1346_v41, %v50_v33  ;;  %v1421_v62 = vmax.bf16 %v1351_v42, %v51_v34 }
   0xe   :  { %2600 = vst [vmem:[#allocation5_spill] sm:$0xff] %v1364_v47  ;;  %2601 = vst [vmem:[#allocation6_spill] sm:$0xff] %v1369_v48  ;;  %v1374_v49 = vld [vmem:[%s2546_s0 + $0x30] sm:$0xf]  ;;  %v1387_v54 = vld [vmem:[%s2546_s0 + $0x38] sm:$0xf]  ;;  %v1424_v63 = vmax.bf16 %v1364_v47, %v52_v35  ;;  %v1437_v2 = vmax.bf16 %v1369_v48, %v53_v36 }
   0xf   :  { %2602 = vst [vmem:[#allocation7_spill] sm:$0xff] %v1374_v49  ;;  %2603 = vst [vmem:[#allocation8_spill] sm:$0xff] %v1387_v54  ;;  %v1392_v55 = vld [vmem:[%s2546_s0 + $0x40] sm:$0xf]  ;;  %v1397_v56 = vld [vmem:[%s2546_s0 + $0x50] sm:$0xf]  ;;  %v1440_v3 = vmax.bf16 %v1374_v49, %v54_v37  ;;  %v1443_v4 = vmax.bf16 %v1387_v54, %v55_v38 }
  0x10   :  { %2604 = vst [vmem:[#allocation9_spill] sm:$0xff] %v1392_v55  ;;  %2605 = vst [vmem:[#allocation10_spill] sm:$0xff] %v1397_v56  ;;  %v1402_v57 = vld [vmem:[%s2546_s0 + $0x58] sm:$0xf]  ;;  %v1407_v58 = vld [vmem:[%s2546_s0 + $0x60] sm:$0xf]  ;;  %v1446_v5 = vmax.bf16 %v1392_v55, %v56_v39  ;;  %v1462_v9 = vmax.bf16 %v1397_v56, %v57_v43 }
  0x11   :  { %2606 = vst [vmem:[#allocation11_spill] sm:$0xff] %v1402_v57  ;;  %2607 = vst [vmem:[#allocation12_spill] sm:$0xff] %v1407_v58  ;;  %v1412_v59 = vld [vmem:[%s2546_s0 + $0x68] sm:$0xf]  ;;  %v1429_v0 = vld [vmem:[%s2546_s0 + $0x70] sm:$0xf]  ;;  %v1465_v10 = vmax.bf16 %v1402_v57, %v58_v44  ;;  %v1468_v11 = vmax.bf16 %v1407_v58, %v59_v45 }
  0x12   :  { %2608 = vst [vmem:[#allocation13_spill] sm:$0xff] %v1412_v59  ;;  %2609 = vst [vmem:[#allocation14_spill] sm:$0xff] %v1429_v0  ;;  %v1434_v1 = vld [vmem:[%s2546_s0 + $0x78] sm:$0xf]  ;;  %v98_v6 = vld [vmem:[%s2546_s0 + $0x4] sm:$0x1]  ;;  %v1471_v16 = vmax.bf16 %v1412_v59, %v60_v46  ;;  %v1477_v18 = vmax.bf16 %v1429_v0, %v61_v50 }
  0x13   :  { %2610 = vst [vmem:[#allocation15_spill] sm:$0xff] %v1434_v1  ;;  %v1454_v7 = vld [vmem:[%s2546_s0 + $0x80] sm:$0xf]  ;;  %v1459_v8 = vld [vmem:[%s2546_s0 + $0x88] sm:$0xf]  ;;  %v1480_v19 = vmax.bf16 %v1434_v1, %v62_v51  ;;  %v118_v34 = vshrl.u32 %v1225_v12, 16 }
  0x14   :  { %2611 = vst [vmem:[#allocation16_spill] sm:$0xff] %v1454_v7  ;;  %2612 = vst [vmem:[#allocation17_spill] sm:$0xff] %v1459_v8  ;;  %v99_v17 = vld [vmem:[%s2546_s0 + $0xc] sm:$0x1]  ;;  %v1483_v32 = vmax.bf16 %v1454_v7, %v63_v52  ;;  %v1486_v33 = vmax.bf16 %v1459_v8, %v64_v53  ;;  %v121_v35 = vshll.u32 %v1225_v12, 16  ;;  %v127_v36 = vshll.u32 %v98_v6, 16 }
  0x15   :  { %v132_v37 = vshrl.u32 %v1230_v13, 16  ;;  %v100_v38 = vld [vmem:[%s2546_s0 + $0x14] sm:$0x1]  ;;  %v135_v39 = vshll.u32 %v1230_v13, 16  ;;  %v141_v43 = vshll.u32 %v99_v17, 16  ;;  %v146_v44 = vshrl.u32 %v1235_v14, 16 }
  0x16   :  { %2613 = vst [vmem:[#allocation18_spill] sm:$0xff] %v1486_v33  ;;  %v149_v45 = vshll.u32 %v1235_v14, 16  ;;  %v101_v46 = vld [vmem:[%s2546_s0 + $0x1c] sm:$0x1]  ;;  %v120_v50 = vrot.slane %v118_v34, 4  ;;  %v123_v12 = vrot.slane %v121_v35, 5 }
  0x17   :  { %v1500_v51 = vrot.slane %v127_v36, 5  ;;  %v134_v52 = vrot.slane %v132_v37, 4  ;;  %v137_v53 = vrot.slane %v135_v39, 5  ;;  %v1502_v6 = vrot.slane %v141_v43, 5  ;;  %v102_v0 = vld [vmem:[%s2546_s0 + $0x24] sm:$0x1] }
  0x18   :  { %v148_v8 = vrot.slane %v146_v44, 4  ;;  %v151_v7 = vrot.slane %v149_v45, 5  ;;  %v124_v13 = vor.u32 %v123_v12, %v120_v50  ;;  %v155_v17 = vshll.u32 %v100_v38, 16  ;;  %v103_v45 = vld [vmem:[%s2546_s0 + $0x2c] sm:$0x1] }
  0x19   :  { %v160_v1 = vshrl.u32 %v1240_v15, 16  ;;  %v163_v14 = vshll.u32 %v1240_v15, 16  ;;  %v138_v35 = vor.u32 %v137_v53, %v134_v52  ;;  %v169_v37 = vshll.u32 %v101_v46, 16  ;;  %v104_v53 = vld [vmem:[%s2546_s0 + $0x34] sm:$0x1] }
  0x1a   :  { %v152_v36 = vor.u32 %v151_v7, %v148_v8  ;;  %v174_v39 = vshrl.u32 %v1265_v20, 16  ;;  %v1516_v38 = vrot.slane %v124_v13, 4  ;;  %v1518_v43 = vrot.slane %v155_v17, 5 }
  0x1b   :  { %v162_v15 = vrot.slane %v160_v1, 4  ;;  %v165_v44 = vrot.slane %v163_v14, 5  ;;  %v1523_v50 = vrot.slane %v138_v35, 4  ;;  %v1527_v59 = vrot.slane %v169_v37, 5 }
  0x1c   :  { %v1525_v12 = vrot.slane %v152_v36, 4  ;;  %v176_v7 = vrot.slane %v174_v39, 4  ;;  %v177_v1 = vshll.u32 %v1265_v20, 16  ;;  %v183_v52 = vshll.u32 %v102_v0, 16  ;;  %v105_v39 = vld [vmem:[%s2546_s0 + $0x3c] sm:$0x1] }
  0x1d   :  { %v166_v46 = vor.u32 %v165_v44, %v162_v15  ;;  %v188_v14 = vshrl.u32 %v1270_v21, 16  ;;  %v191_v35 = vshll.u32 %v1270_v21, 16  ;;  %v197_v37 = vshll.u32 %v103_v45, 16 }
  0x1e   :  { %v179_v0 = vrot.slane %v177_v1, 5  ;;  %v1549_v36 = vrot.slane %v183_v52, 5  ;;  %v202_v13 = vshrl.u32 %v1275_v22, 16  ;;  %v205_v17 = vshll.u32 %v1275_v22, 16 }
  0x1f   :  { %v1547_v20 = vrot.slane %v166_v46, 4  ;;  %v190_v15 = vrot.slane %v188_v14, 4  ;;  %v193_v44 = vrot.slane %v191_v35, 5  ;;  %v1560_v1 = vrot.slane %v197_v37, 5  ;;  %v106_v14 = vld [vmem:[%s2546_s0 + $0x4c] sm:$0x1] }
  0x20   :  { %v180_v46 = vor.u32 %v179_v0, %v176_v7  ;;  %v211_v52 = vshll.u32 %v104_v53, 16  ;;  %v204_v8 = vrot.slane %v202_v13, 4  ;;  %v207_v58 = vrot.slane %v205_v17, 5  ;;  %v107_v17 = vld [vmem:[%s2546_s0 + $0x54] sm:$0x1] }
  0x21   :  { %v194_v45 = vor.u32 %v193_v44, %v190_v15  ;;  %v216_v57 = vshrl.u32 %v1280_v23, 16  ;;  %v219_v56 = vshll.u32 %v1280_v23, 16  ;;  %v225_v21 = vshll.u32 %v105_v39, 16 }
  0x22   :  { %v1566_v35 = vrot.slane %v180_v46, 4  ;;  %v1568_v22 = vrot.slane %v211_v52, 5  ;;  %v208_v0 = vor.u32 %v207_v58, %v204_v8  ;;  %v230_v13 = vshrl.u32 %v1285_v24, 16  ;;  %v108_v46 = vld [vmem:[%s2546_s0 + $0x5c] sm:$0x1] }
  0x23   :  { %v1571_v7 = vrot.slane %v194_v45, 4  ;;  %v218_v53 = vrot.slane %v216_v57, 4  ;;  %v221_v15 = vrot.slane %v219_v56, 5  ;;  %v1581_v44 = vrot.slane %v225_v21, 5 }
  0x24   :  { %v233_v23 = vshll.u32 %v1285_v24, 16  ;;  %v1588_v58 = vrot.slane %v208_v0, 4  ;;  %v232_v8 = vrot.slane %v230_v13, 4  ;;  %v239_v39 = vshll.u32 %v106_v14, 16  ;;  %v109_v13 = vld [vmem:[%s2546_s0 + $0x64] sm:$0x1] }
  0x25   :  { %v222_v52 = vor.u32 %v221_v15, %v218_v53  ;;  %v244_v56 = vshrl.u32 %v1290_v25, 16  ;;  %v247_v21 = vshll.u32 %v1290_v25, 16  ;;  %v253_v0 = vshll.u32 %v107_v17, 16 }
  0x26   :  { %v235_v45 = vrot.slane %v233_v23, 5  ;;  %v1599_v57 = vrot.slane %v239_v39, 5  ;;  %v258_v14 = vshrl.u32 %v1295_v26, 16  ;;  %v261_v54 = vshll.u32 %v1295_v26, 16 }
  0x27   :  { %v1605_v53 = vrot.slane %v222_v52, 4  ;;  %v246_v23 = vrot.slane %v244_v56, 4  ;;  %v249_v37 = vrot.slane %v247_v21, 5  ;;  %v1607_v25 = vrot.slane %v253_v0, 5 }
  0x28   :  { %v236_v15 = vor.u32 %v235_v45, %v232_v8  ;;  %v260_v55 = vrot.slane %v258_v14, 4  ;;  %v267_v24 = vshll.u32 %v108_v46, 16  ;;  %v272_v52 = vshrl.u32 %v1300_v27, 16  ;;  %v110_v8 = vld [vmem:[%s2546_s0 + $0x6c] sm:$0x1] }
  0x29   :  { %v250_v49 = vor.u32 %v249_v37, %v246_v23  ;;  %v263_v45 = vrot.slane %v261_v54, 5  ;;  %v275_v21 = vshll.u32 %v1300_v27, 16  ;;  %v281_v26 = vshll.u32 %v109_v13, 16 }
  0x2a   :  { %v1614_v39 = vrot.slane %v236_v15, 4  ;;  %v269_v56 = vrot.slane %v267_v24, 5  ;;  %v274_v14 = vrot.slane %v272_v52, 4  ;;  %v286_v37 = vshrl.u32 %v1305_v28, 16  ;;  %v111_v15 = vld [vmem:[%s2546_s0 + $0x74] sm:$0x1] }
  0x2b   :  { %v251_v0 = vrot.slane %v250_v49, 4  ;;  %v264_v23 = vor.u32 %v263_v45, %v260_v55  ;;  %v277_v17 = vrot.slane %v275_v21, 5  ;;  %v283_v54 = vrot.slane %v281_v26, 5 }
  0x2c   :  { %v242_v46 = vsel %vm1511_vm2, %v1614_v39, %v1599_v57  ;;  %v289_v24 = vshll.u32 %v1305_v28, 16  ;;  %v288_v13 = vrot.slane %v286_v37, 4  ;;  %v295_v48 = vshll.u32 %v110_v8, 16  ;;  %v112_v57 = vld [vmem:[%s2546_s0 + $0x7c] sm:$0x1] }
  0x2d   :  { %v256_v27 = vsel %vm1511_vm2, %v251_v0, %v1607_v25  ;;  %v300_v49 = vshrl.u32 %v1310_v29, 16  ;;  %v265_v39 = vrot.slane %v264_v23, 4  ;;  %v278_v52 = vor.u32 %v277_v17, %v274_v14  ;;  %v113_v25 = vld [vmem:[%s2546_s0 + $0x84] sm:$0x1] }
  0x2e   :  { %v291_v47 = vrot.slane %v289_v24, 5  ;;  %v303_v55 = vshll.u32 %v1310_v29, 16  ;;  %v297_v45 = vrot.slane %v295_v48, 5  ;;  %v309_v28 = vshll.u32 %v111_v15, 16 }
  0x2f   :  { %v302_v21 = vrot.slane %v300_v49, 4  ;;  %v314_v26 = vshrl.u32 %v1315_v30, 16  ;;  %v270_v8 = vsel %vm1511_vm2, %v265_v39, %v269_v56  ;;  %v279_v0 = vrot.slane %v278_v52, 4 }
  0x30   :  { %v292_v37 = vor.u32 %v291_v47, %v288_v13  ;;  %v305_v42 = vrot.slane %v303_v55, 5  ;;  %v311_v23 = vrot.slane %v309_v28, 5  ;;  %v317_v14 = vshll.u32 %v1315_v30, 16 }
  0x31   :  { %v316_v17 = vrot.slane %v314_v26, 4  ;;  %v323_v29 = vshll.u32 %v112_v57, 16  ;;  %v284_v48 = vsel %vm1511_vm2, %v279_v0, %v283_v54  ;;  %v328_v49 = vshrl.u32 %v1320_v31, 16 }
  0x32   :  { %v293_v15 = vrot.slane %v292_v37, 4  ;;  %v306_v24 = vor.u32 %v305_v42, %v302_v21  ;;  %v319_v33 = vrot.slane %v317_v14, 5  ;;  %v337_v56 = vshll.u32 %v113_v25, 16  ;;  %v1053_v25 = vld [vmem:[%s2546_s0 + $0x24] sm:$0x1] }
  0x33   :  { %v325_v41 = vrot.slane %v323_v29, 5  ;;  %v330_v39 = vrot.slane %v328_v49, 4  ;;  %v2616_v30 = vsel %vm1511_vm2, %v1516_v38, %v1500_v51  ;;  %v333_v57 = vrot.slane %v331_v40, 5 }
  0x34   :  { %v298_v47 = vsel %vm1511_vm2, %v293_v15, %v297_v45  ;;  %v307_v13 = vrot.slane %v306_v24, 4  ;;  %v1657_v54 = vmax.bf16 %v2616_v30, %v1415_v60  ;;  %v320_v42 = vor.u32 %v319_v33, %v316_v17 }
  0x35   :  { %v339_v52 = vrot.slane %v337_v56, 5  ;;  %v2617_v31 = vsel %vm1511_vm2, %v1523_v50, %v1502_v6  ;;  %v2618_v60 = vsel %vm1511_vm2, %v1525_v12, %v1518_v43  ;;  %v2619_v40 = vsel %vm1511_vm2, %v1547_v20, %v1527_v59  ;;  %v2628_v56 = vld [vmem:[#allocation5_spill] sm:$0xff] }
  0x36   :  { %v1665_v55 = vmax.bf16 %v2617_v31, %v1418_v61  ;;  %v312_v45 = vsel %vm1511_vm2, %v307_v13, %v311_v23  ;;  %v1675_v33 = vmax.bf16 %v2618_v60, %v1421_v62  ;;  %v1683_v51 = vmax.bf16 %v2619_v40, %v1424_v63  ;;  %v2627_v23 = vld [vmem:[#allocation4_spill] sm:$0xff]  ;;  %v2629_v40 = vld [vmem:[#allocation6_spill] sm:$0xff] }
  0x37   :  { %v2620_v61 = vsel %vm1511_vm2, %v1566_v35, %v1549_v36  ;;  %v321_v38 = vrot.slane %v320_v42, 4  ;;  %v334_v43 = vor.u32 %v333_v57, %v330_v39  ;;  %v2621_v62 = vsel %vm1511_vm2, %v1571_v7, %v1560_v1  ;;  %v2624_v7 = vld [vmem:[#allocation2_spill] sm:$0xff]  ;;  %v1054_v39 = vld [vmem:[%s2546_s0 + $0x2c] sm:$0x1] }
  0x38   :  { %v1691_v6 = vmax.bf16 %v2620_v61, %v1437_v2  ;;  %v1699_v50 = vmax.bf16 %v2621_v62, %v1440_v3  ;;  %v2622_v59 = vsel %vm1511_vm2, %v1588_v58, %v1568_v22  ;;  %v2623_v2 = vsel %vm1511_vm2, %v1605_v53, %v1581_v44  ;;  %v2625_v53 = vld [vmem:[#allocation3_spill] sm:$0xff] }
  0x39   :  { %v1707_v63 = vmax.bf16 %v2622_v59, %v1443_v4  ;;  %v1715_v12 = vmax.bf16 %v2623_v2, %v1446_v5  ;;  %v1718_v20 = vmax.bf16 %v242_v46, %v1462_v9  ;;  %v1721_v3 = vmax.bf16 %v256_v27, %v1465_v10  ;;  %v1050_v4 = vld [vmem:[%s2546_s0 + $0xc] sm:$0x1]  ;;  %v1051_v10 = vld [vmem:[%s2546_s0 + $0x14] sm:$0x1]  ;;  %v2626_v27 = vld [vmem:[#allocation18_spill] sm:$0xff] }
  0x3a   :  { %v1724_v36 = vmax.bf16 %v270_v8, %v1468_v11  ;;  %v326_v1 = vsel %vm1511_vm2, %v321_v38, %v325_v41  ;;  %v335_v35 = vrot.slane %v334_v43, 4  ;;  %v1732_v5 = vmax.bf16 %v284_v48, %v1471_v16  ;;  %v1055_v38 = vld [vmem:[%s2546_s0 + $0x34] sm:$0x1] }
  0x3b   :  { %v1735_v9 = vmax.bf16 %v298_v47, %v1477_v18  ;;  %v1741_v11 = vmax.bf16 %v312_v45, %v1480_v19  ;;  %v1744_v22 = vmax.bf16 %v326_v1, %v1483_v32  ;;  %v390_v44 = vshrl.u32 %v2624_v7, 16  ;;  %v1052_v18 = vld [vmem:[%s2546_s0 + $0x1c] sm:$0x1] }
  0x3c   :  { %v393_v41 = vshll.u32 %v2624_v7, 16  ;;  %v340_v16 = vsel %vm1511_vm2, %v335_v35, %v339_v52  ;;  %v399_v58 = vshll.u32 %v1050_v4, 16  ;;  %v404_v46 = vshrl.u32 %v2625_v53, 16 }
  0x3d   :  { %v407_v19 = vshll.u32 %v2625_v53, 16  ;;  %v1756_v21 = vmax.bf16 %v340_v16, %v2626_v27  ;;  %v392_v32 = vrot.slane %v390_v44, 4  ;;  %v413_v26 = vshll.u32 %v1051_v10, 16  ;;  %v2631_v27 = vld [vmem:[#allocation8_spill] sm:$0xff] }
  0x3e   :  { %v395_v28 = vrot.slane %v393_v41, 5  ;;  %v1761_v8 = vrot.slane %v399_v58, 5  ;;  %v406_v0 = vrot.slane %v404_v46, 4  ;;  %v418_v17 = vshrl.u32 %v2627_v23, 16  ;;  %v2630_v41 = vld [vmem:[#allocation7_spill] sm:$0xff] }
  0x3f   :  { %v409_v37 = vrot.slane %v407_v19, 5  ;;  %v1764_v29 = vrot.slane %v413_v26, 5  ;;  %v421_v48 = vshll.u32 %v2627_v23, 16  ;;  %v427_v15 = vshll.u32 %v1052_v18, 16  ;;  %v1056_v58 = vld [vmem:[%s2546_s0 + $0x3c] sm:$0x1] }
  0x40   :  { %v396_v14 = vor.u32 %v395_v28, %v392_v32  ;;  %v420_v49 = vrot.slane %v418_v17, 4  ;;  %v432_v47 = vshrl.u32 %v2628_v56, 16  ;;  %v435_v13 = vshll.u32 %v2628_v56, 16  ;;  %v1057_v28 = vld [vmem:[%s2546_s0 + $0x44] sm:$0x1]  ;;  %v2632_v56 = vld [vmem:[#allocation9_spill] sm:$0xff] }
  0x41   :  { %v410_v24 = vor.u32 %v409_v37, %v406_v0  ;;  %v423_v42 = vrot.slane %v421_v48, 5  ;;  %v1774_v57 = vrot.slane %v427_v15, 5  ;;  %v441_v52 = vshll.u32 %v1053_v25, 16  ;;  %v2640_v23 = vld [vmem:[#allocation17_spill] sm:$0xff] }
  0x42   :  { %v1772_v30 = vrot.slane %v396_v14, 4  ;;  %v434_v45 = vrot.slane %v432_v47, 4  ;;  %v437_v60 = vrot.slane %v435_v13, 5  ;;  %v446_v61 = vshrl.u32 %v2629_v40, 16  ;;  %v1058_v13 = vld [vmem:[%s2546_s0 + $0x54] sm:$0x1] }
  0x43   :  { %v1776_v31 = vrot.slane %v410_v24, 4  ;;  %v424_v62 = vor.u32 %v423_v42, %v420_v49  ;;  %v1786_v59 = vrot.slane %v441_v52, 5  ;;  %v449_v2 = vshll.u32 %v2629_v40, 16  ;;  %v1059_v40 = vld [vmem:[%s2546_s0 + $0x5c] sm:$0x1] }
  0x44   :  { %v438_v1 = vor.u32 %v437_v60, %v434_v45  ;;  %v448_v35 = vrot.slane %v446_v61, 4  ;;  %v455_v10 = vshll.u32 %v1054_v39, 16  ;;  %v460_v16 = vshrl.u32 %v2630_v41, 16  ;;  %v2633_v45 = vld [vmem:[#allocation10_spill] sm:$0xff] }
  0x45   :  { %v1793_v7 = vrot.slane %v424_v62, 4  ;;  %v451_v44 = vrot.slane %v449_v2, 5  ;;  %v463_v18 = vshll.u32 %v2630_v41, 16  ;;  %v469_v19 = vshll.u32 %v1055_v38, 16 }
  0x46   :  { %v1800_v53 = vrot.slane %v438_v1, 4  ;;  %v1802_v46 = vrot.slane %v455_v10, 5  ;;  %v474_v32 = vshrl.u32 %v2631_v27, 16  ;;  %v462_v0 = vrot.slane %v460_v16, 4 }
  0x47   :  { %v452_v25 = vor.u32 %v451_v44, %v448_v35  ;;  %v465_v37 = vrot.slane %v463_v18, 5  ;;  %v1816_v17 = vrot.slane %v469_v19, 5  ;;  %v477_v48 = vshll.u32 %v2631_v27, 16  ;;  %v1060_v27 = vld [vmem:[%s2546_s0 + $0x64] sm:$0x1] }
  0x48   :  { %v476_v14 = vrot.slane %v474_v32, 4  ;;  %v483_v49 = vshll.u32 %v1056_v58, 16  ;;  %v488_v47 = vshrl.u32 %v2632_v56, 16  ;;  %v491_v42 = vshll.u32 %v2632_v56, 16  ;;  %v2634_v58 = vld [vmem:[#allocation11_spill] sm:$0xff] }
  0x49   :  { %v1819_v15 = vrot.slane %v452_v25, 4  ;;  %v466_v24 = vor.u32 %v465_v37, %v462_v0  ;;  %v479_v39 = vrot.slane %v477_v48, 5  ;;  %v497_v52 = vshll.u32 %v1057_v28, 16  ;;  %v1061_v56 = vld [vmem:[%s2546_s0 + $0x6c] sm:$0x1] }
  0x4a   :  { %v502_v60 = vshrl.u32 %v2633_v45, 16  ;;  %v1836_v62 = vrot.slane %v483_v49, 5  ;;  %v490_v2 = vrot.slane %v488_v47, 4  ;;  %v493_v35 = vrot.slane %v491_v42, 5  ;;  %v2638_v47 = vld [vmem:[#allocation15_spill] sm:$0xff] }
  0x4b   :  { %v1834_v38 = vrot.slane %v466_v24, 4  ;;  %v480_v1 = vor.u32 %v479_v39, %v476_v14  ;;  %v1838_v10 = vrot.slane %v497_v52, 5  ;;  %v505_v16 = vshll.u32 %v2633_v45, 16  ;;  %v2635_v24 = vld [vmem:[#allocation12_spill] sm:$0xff] }
  0x4c   :  { %v504_v44 = vrot.slane %v502_v60, 4  ;;  %v511_v18 = vshll.u32 %v1058_v13, 16  ;;  %v516_v19 = vshrl.u32 %v2634_v58, 16  ;;  %v494_v28 = vor.u32 %v493_v35, %v490_v2  ;;  %v2636_v35 = vld [vmem:[#allocation13_spill] sm:$0xff] }
  0x4d   :  { %v1849_v32 = vrot.slane %v480_v1, 4  ;;  %v519_v25 = vshll.u32 %v2634_v58, 16  ;;  %v525_v0 = vshll.u32 %v1059_v40, 16  ;;  %v507_v37 = vrot.slane %v505_v16, 5  ;;  %v1062_v58 = vld [vmem:[%s2546_s0 + $0x74] sm:$0x1] }
  0x4e   :  { %v1852_v14 = vrot.slane %v511_v18, 5  ;;  %v518_v48 = vrot.slane %v516_v19, 4  ;;  %v530_v49 = vshrl.u32 %v2635_v24, 16  ;;  %v1862_v13 = vrot.slane %v494_v28, 4 }
  0x4f   :  { %v521_v39 = vrot.slane %v519_v25, 5  ;;  %v1864_v42 = vrot.slane %v525_v0, 5  ;;  %v508_v52 = vor.u32 %v507_v37, %v504_v44  ;;  %v533_v60 = vshll.u32 %v2635_v24, 16  ;;  %v2637_v24 = vld [vmem:[#allocation14_spill] sm:$0xff] }
  0x50   :  { %v532_v45 = vrot.slane %v530_v49, 4  ;;  %v539_v40 = vshll.u32 %v1060_v27, 16  ;;  %v544_v16 = vshrl.u32 %v2636_v35, 16  ;;  %v547_v18 = vshll.u32 %v2636_v35, 16  ;;  %v1063_v49 = vld [vmem:[%s2546_s0 + $0x7c] sm:$0x1] }
  0x51   :  { %v522_v1 = vor.u32 %v521_v39, %v518_v48  ;;  %v1876_v19 = vrot.slane %v508_v52, 4  ;;  %v535_v44 = vrot.slane %v533_v60, 5  ;;  %v553_v27 = vshll.u32 %v1061_v56, 16 }
  0x52   :  { %v1878_v28 = vrot.slane %v539_v40, 5  ;;  %v546_v0 = vrot.slane %v544_v16, 4  ;;  %v549_v37 = vrot.slane %v547_v18, 5  ;;  %v558_v48 = vshrl.u32 %v2637_v24, 16 }
  0x53   :  { %v1880_v25 = vrot.slane %v522_v1, 4  ;;  %v514_v39 = vsel %vm1511_vm2, %v1876_v19, %v1852_v14  ;;  %v536_v52 = vor.u32 %v535_v44, %v532_v45  ;;  %v1890_v60 = vrot.slane %v553_v27, 5  ;;  %v1064_v14 = vld [vmem:[%s2546_s0 + $0x84] sm:$0x1]  ;;  %v2639_v27 = vld [vmem:[#allocation16_spill] sm:$0xff] }
  0x54   :  { %v561_v56 = vshll.u32 %v2637_v24, 16  ;;  %v550_v1 = vor.u32 %v549_v37, %v546_v0  ;;  %v560_v35 = vrot.slane %v558_v48, 4  ;;  %v567_v16 = vshll.u32 %v1062_v58, 16 }
  0x55   :  { %v528_v40 = vsel %vm1511_vm2, %v1880_v25, %v1864_v42  ;;  %v537_v18 = vrot.slane %v536_v52, 4  ;;  %v572_v41 = vshrl.u32 %v2638_v47, 16  ;;  %v575_v61 = vshll.u32 %v2638_v47, 16  ;;  %v1065_v42 = vld [vmem:[%s2546_s0 + $0x8c] sm:$0x1] }
  0x56   :  { %v563_v2 = vrot.slane %v561_v56, 5  ;;  %v551_v45 = vrot.slane %v550_v1, 4  ;;  %v569_v19 = vrot.slane %v567_v16, 5  ;;  %v581_v44 = vshll.u32 %v1063_v49, 16 }
  0x57   :  { %v586_v24 = vshrl.u32 %v2639_v27, 16  ;;  %v542_v58 = vsel %vm1511_vm2, %v537_v18, %v1878_v28  ;;  %v574_v0 = vrot.slane %v572_v41, 4  ;;  %v577_v47 = vrot.slane %v575_v61, 5 }
  0x58   :  { %v564_v25 = vor.u32 %v563_v2, %v560_v35  ;;  %v556_v37 = vsel %vm1511_vm2, %v551_v45, %v1890_v60  ;;  %v583_v48 = vrot.slane %v581_v44, 5  ;;  %v589_v49 = vshll.u32 %v2639_v27, 16 }
  0x59   :  { %v588_v52 = vrot.slane %v586_v24, 4  ;;  %v578_v1 = vor.u32 %v577_v47, %v574_v0  ;;  %v595_v16 = vshll.u32 %v1064_v14, 16  ;;  %v600_v26 = vshrl.u32 %v2640_v23, 16  ;;  %v651_v24 = vld [vmem:[%s2547_s1 + $0x30] sm:$0xf] }
  0x5a   :  { %v565_v56 = vrot.slane %v564_v25, 4  ;;  %v591_v4 = vrot.slane %v589_v49, 5  ;;  %v603_v43 = vshll.u32 %v2640_v23, 16  ;;  %v609_v28 = vshll.u32 %v1065_v42, 16  ;;  %v653_v42 = vld [vmem:[%s2547_s1 + $0x48] sm:$0xf] }
  0x5b   :  { %v2641_v61 = vsel %vm1511_vm2, %v1772_v30, %v1761_v8  ;;  %v579_v60 = vrot.slane %v578_v1, 4  ;;  %v597_v35 = vrot.slane %v595_v16, 5  ;;  %v602_v18 = vrot.slane %v600_v26, 4  ;;  %v1941_v8 = vld [vmem:[%s2547_s1 + $0x8] sm:$0xf] }
  0x5c   :  { %v1921_v41 = vmax.bf16 %v2641_v61, %v1657_v54  ;;  %v570_v2 = vsel %vm1511_vm2, %v565_v56, %v569_v19  ;;  %v592_v14 = vor.u32 %v591_v4, %v588_v52  ;;  %v605_v45 = vrot.slane %v603_v43, 5  ;;  %v1936_v54 = vld [vmem:[%s2547_s1] sm:$0xf]  ;;  %v650_v19 = vld [vmem:[%s2547_s1 + $0x28] sm:$0xf] }
  0x5d   :  { %v611_v44 = vrot.slane %v609_v28, 5  ;;  %v2642_v23 = vsel %vm1511_vm2, %v1776_v31, %v1764_v29  ;;  %v584_v30 = vsel %vm1511_vm2, %v579_v60, %v583_v48  ;;  %v2644_v31 = vsel %vm1511_vm2, %v1800_v53, %v1786_v59  ;;  %v654_v25 = vld [vmem:[%s2547_s1 + $0x50] sm:$0xf]  ;;  %v659_v47 = vld [vmem:[%s2547_s1 + $0x78] sm:$0xf] }
  0x5e   :  { %v1931_v27 = vmax.bf16 %v2642_v23, %v1665_v55  ;;  %v2643_v55 = vsel %vm1511_vm2, %v1793_v7, %v1774_v57  ;;  %v1959_v43 = vmax.bf16 %v2644_v31, %v1683_v51  ;;  %v2645_v4 = vsel %vm1511_vm2, %v1819_v15, %v1802_v46  ;;  %v1977_v57 = vld [vmem:[%s2547_s1 + $0x18] sm:$0xf]  ;;  %v1982_v51 = vld [vmem:[%s2547_s1 + $0x20] sm:$0xf]  ;;  %v1067_v56 = vld [vmem:[%s2547_s1 + $0x10] sm:$0xf] }
  0x5f   :  { %v1951_v29 = vmax.bf16 %v2643_v55, %v1675_v33  ;;  %v1967_v26 = vmax.bf16 %v2645_v4, %v1691_v6  ;;  %v1972_v33 = vld [vmem:[%s2547_s1 + $0x10] sm:$0xf]  ;;  %v593_v59 = vrot.slane %v592_v14, 4  ;;  %v606_v7 = vor.u32 %v605_v45, %v602_v18  ;;  %v1068_v1 = vld [vmem:[%s2547_s1 + $0x18] sm:$0xf] }
  0x60   :  { %v2646_v6 = vsel %vm1511_vm2, %v1834_v38, %v1816_v17  ;;  %v2647_v46 = vsel %vm1511_vm2, %v1849_v32, %v1836_v62  ;;  %v2648_v17 = vsel %vm1511_vm2, %v1862_v13, %v1838_v10  ;;  %v2016_v38 = vmax.bf16 %v514_v39, %v1718_v20  ;;  %v656_v20 = vld [vmem:[%s2547_s1 + $0x60] sm:$0xf]  ;;  %v657_v39 = vld [vmem:[%s2547_s1 + $0x68] sm:$0xf]  ;;  %v1072_v18 = vld [vmem:[%s2547_s1 + $0x38] sm:$0xf] }
  0x61   :  { %v1990_v53 = vmax.bf16 %v2646_v6, %v1699_v50  ;;  %v1998_v15 = vmax.bf16 %v2647_v46, %v1707_v63  ;;  %v652_v50 = vld [vmem:[%s2547_s1 + $0x38] sm:$0xf]  ;;  %v636_v63 = vmax.bf16 %v2648_v17, %v1715_v12  ;;  %v2019_v62 = vmax.bf16 %v528_v40, %v1721_v3  ;;  %v658_v40 = vld [vmem:[%s2547_s1 + $0x70] sm:$0xf]  ;;  %v1069_v16 = vld [vmem:[%s2547_s1 + $0x20] sm:$0xf] }
  0x62   :  { %v2022_v32 = vmax.bf16 %v542_v58, %v1724_v36  ;;  %v655_v12 = vld [vmem:[%s2547_s1 + $0x58] sm:$0xf]  ;;  %v598_v3 = vsel %vm1511_vm2, %v593_v59, %v597_v35  ;;  %v607_v36 = vrot.slane %v606_v7, 4  ;;  %v640_v10 = vmax.bf16 %v556_v37, %v1732_v5  ;;  %v660_v5 = vld [vmem:[%s2547_s1 + $0x80] sm:$0xf] }
  0x63   :  { %v641_v13 = vmax.bf16 %v570_v2, %v1735_v9  ;;  %v642_v58 = vmax.bf16 %v584_v30, %v1741_v11  ;;  %v643_v0 = vmax.bf16 %v598_v3, %v1744_v22  ;;  %v661_v9 = vmax.bf16 %v1936_v54, %v1921_v41  ;;  %v1066_v11 = vld [vmem:[%s2547_s1 + $0x8] sm:$0xf]  ;;  %v1071_v35 = vld [vmem:[%s2547_s1 + $0x30] sm:$0xf]  ;;  %v1073_v23 = vld [vmem:[%s2547_s1 + $0x40] sm:$0xf] }
  0x64   :  { %v662_v37 = vmax.bf16 %v1941_v8, %v1931_v27  ;;  %v612_v22 = vsel %vm1511_vm2, %v607_v36, %v611_v44  ;;  %v663_v48 = vmax.bf16 %v1972_v33, %v1951_v29  ;;  %v664_v52 = vmax.bf16 %v1977_v57, %v1959_v43  ;;  %v1070_v60 = vld [vmem:[%s2547_s1 + $0x28] sm:$0xf]  ;;  %v1074_v27 = vld [vmem:[%s2547_s1 + $0x50] sm:$0xf]  ;;  %v1075_v54 = vld [vmem:[%s2547_s1 + $0x58] sm:$0xf] }
  0x65   :  { %v665_v49 = vmax.bf16 %v1982_v51, %v1967_v26  ;;  %v644_v28 = vmax.bf16 %v612_v22, %v1756_v21  ;;  %v666_v61 = vmax.bf16 %v650_v19, %v1990_v53  ;;  %v667_v41 = vmax.bf16 %v651_v24, %v1998_v15  ;;  %v1076_v31 = vld [vmem:[%s2547_s1 + $0x60] sm:$0xf]  ;;  %v1077_v43 = vld [vmem:[%s2547_s1 + $0x68] sm:$0xf]  ;;  %v1078_v4 = vld [vmem:[%s2547_s1 + $0x70] sm:$0xf] }
  0x66   :  { %v668_v2 = vmax.bf16 %v652_v50, %v636_v63  ;;  %v669_v14 = vmax.bf16 %v653_v42, %v2016_v38  ;;  %v670_v21 = vmax.bf16 %v654_v25, %v2019_v62  ;;  %v671_v45 = vmax.bf16 %v655_v12, %v2022_v32  ;;  %v1079_v26 = vld [vmem:[%s2547_s1 + $0x78] sm:$0xf]  ;;  %v1080_v33 = vld [vmem:[%s2547_s1 + $0x80] sm:$0xf]  ;;  %v1081_v57 = vld [vmem:[%s2547_s1 + $0x88] sm:$0xf] }
  0x67   :  { %v672_v44 = vmax.bf16 %v656_v20, %v640_v10  ;;  %v673_v8 = vmax.bf16 %v657_v39, %v641_v13  ;;  %v674_v30 = vmax.bf16 %v658_v40, %v642_v58  ;;  %v675_v55 = vmax.bf16 %v659_v47, %v643_v0  ;;  %v2139_v24 = vld [vmem:[%s2548_s2] sm:$0xf]  ;;  %v2144_v50 = vld [vmem:[%s2548_s2 + $0x8] sm:$0xf]  ;;  %v2149_v17 = vld [vmem:[%s2548_s2 + $0x10] sm:$0xf] }
  0x68   :  { %v676_v29 = vmax.bf16 %v660_v5, %v644_v28  ;;  %v2120_v51 = vmax.bf16 %v1066_v11, %v661_v9  ;;  %v2122_v59 = vmax.bf16 %v1067_v56, %v662_v37  ;;  %v2124_v7 = vmax.bf16 %v1068_v1, %v663_v48  ;;  %v2162_v42 = vld [vmem:[%s2548_s2 + $0x18] sm:$0xf]  ;;  %v2167_v25 = vld [vmem:[%s2548_s2 + $0x20] sm:$0xf]  ;;  %v2172_v12 = vld [vmem:[%s2548_s2 + $0x28] sm:$0xf] }
  0x69   :  { %v2126_v6 = vmax.bf16 %v1069_v16, %v664_v52  ;;  %v2128_v53 = vmax.bf16 %v1070_v60, %v665_v49  ;;  %v2130_v46 = vmax.bf16 %v1071_v35, %v666_v61  ;;  %v2132_v15 = vmax.bf16 %v1072_v18, %v667_v41  ;;  %v2185_v13 = vld [vmem:[%s2548_s2 + $0x30] sm:$0xf]  ;;  %v2190_v39 = vld [vmem:[%s2548_s2 + $0x38] sm:$0xf]  ;;  %v2195_v40 = vld [vmem:[%s2548_s2 + $0x48] sm:$0xf] }
  0x6a   :  { %v2134_v19 = vmax.bf16 %v1073_v23, %v668_v2  ;;  %v2151_v63 = vmax.bf16 %v1074_v27, %v669_v14  ;;  %v2153_v38 = vmax.bf16 %v1075_v54, %v670_v21  ;;  %v2155_v62 = vmax.bf16 %v1076_v31, %v671_v45  ;;  %2657 = vst [vmem:[#allocation9_spill] sm:$0xff] %v2195_v40  ;;  %v2200_v58 = vld [vmem:[%s2548_s2 + $0x50] sm:$0xf]  ;;  %v2205_v0 = vld [vmem:[%s2548_s2 + $0x58] sm:$0xf] }
  0x6b   :  { %v2157_v32 = vmax.bf16 %v1077_v43, %v672_v44  ;;  %v2174_v20 = vmax.bf16 %v1078_v4, %v673_v8  ;;  %v2176_v3 = vmax.bf16 %v1079_v26, %v674_v30  ;;  %v2178_v36 = vmax.bf16 %v1080_v33, %v675_v55  ;;  %2658 = vst [vmem:[#allocation10_spill] sm:$0xff] %v2200_v58  ;;  %v2210_v47 = vld [vmem:[%s2548_s2 + $0x60] sm:$0xf]  ;;  %v2223_v22 = vld [vmem:[%s2548_s2 + $0x68] sm:$0xf] }
  0x6c   :  { %2649 = vst [vmem:[#allocation2_spill] sm:$0xff] %v2151_v63  ;;  %2650 = vst [vmem:[#allocation3_spill] sm:$0xff] %v2153_v38  ;;  %v2180_v10 = vmax.bf16 %v1081_v57, %v676_v29  ;;  %v2228_v48 = vld [vmem:[%s2548_s2 + $0x70] sm:$0xf]  ;;  %v742_v16 = vld [vmem:[%s2548_s2 + $0x4] sm:$0x1] }
  0x6d   :  { %2651 = vst [vmem:[#allocation18_spill] sm:$0xff] %v2155_v62  ;;  %2652 = vst [vmem:[#allocation4_spill] sm:$0xff] %v2157_v32  ;;  %v2244_v28 = vld [vmem:[%s2548_s2 + $0x78] sm:$0xf]  ;;  %v2249_v61 = vld [vmem:[%s2548_s2 + $0x80] sm:$0xf] }
  0x6e   :  { %2653 = vst [vmem:[#allocation5_spill] sm:$0xff] %v2174_v20  ;;  %2654 = vst [vmem:[#allocation6_spill] sm:$0xff] %v2176_v3  ;;  %v743_v18 = vld [vmem:[%s2548_s2 + $0xc] sm:$0x1]  ;;  %v759_v23 = vshrl.u32 %v2139_v24, 16  ;;  %v762_v27 = vshll.u32 %v2139_v24, 16 }
  0x6f   :  { %2655 = vst [vmem:[#allocation7_spill] sm:$0xff] %v2178_v36  ;;  %2656 = vst [vmem:[#allocation8_spill] sm:$0xff] %v2180_v10  ;;  %v768_v54 = vshll.u32 %v742_v16, 16  ;;  %v773_v8 = vshrl.u32 %v2144_v50, 16  ;;  %v744_v30 = vld [vmem:[%s2548_s2 + $0x14] sm:$0x1] }
  0x70   :  { %2659 = vst [vmem:[#allocation11_spill] sm:$0xff] %v2205_v0  ;;  %2660 = vst [vmem:[#allocation12_spill] sm:$0xff] %v2210_v47  ;;  %v776_v55 = vshll.u32 %v2144_v50, 16  ;;  %v782_v29 = vshll.u32 %v743_v18, 16  ;;  %v787_v31 = vshrl.u32 %v2149_v17, 16  ;;  %v790_v43 = vshll.u32 %v2149_v17, 16 }
  0x71   :  { %2661 = vst [vmem:[#allocation13_spill] sm:$0xff] %v2223_v22  ;;  %2662 = vst [vmem:[#allocation14_spill] sm:$0xff] %v2228_v48  ;;  %v745_v4 = vld [vmem:[%s2548_s2 + $0x1c] sm:$0x1]  ;;  %v761_v26 = vrot.slane %v759_v23, 4  ;;  %v764_v33 = vrot.slane %v762_v27, 5 }
  0x72   :  { %v2282_v57 = vrot.slane %v768_v54, 5  ;;  %v775_v16 = vrot.slane %v773_v8, 4  ;;  %v778_v44 = vrot.slane %v776_v55, 5  ;;  %v2284_v45 = vrot.slane %v782_v29, 5  ;;  %v746_v41 = vld [vmem:[%s2548_s2 + $0x24] sm:$0x1] }
  0x73   :  { %v789_v21 = vrot.slane %v787_v31, 4  ;;  %v792_v14 = vrot.slane %v790_v43, 5  ;;  %v765_v35 = vor.u32 %v764_v33, %v761_v26  ;;  %v796_v18 = vshll.u32 %v744_v30, 16  ;;  %v747_v30 = vld [vmem:[%s2548_s2 + $0x2c] sm:$0x1] }
  0x74   :  { %v801_v60 = vshrl.u32 %v2162_v42, 16  ;;  %v804_v2 = vshll.u32 %v2162_v42, 16  ;;  %v779_v23 = vor.u32 %v778_v44, %v775_v16  ;;  %v810_v54 = vshll.u32 %v745_v4, 16  ;;  %v748_v44 = vld [vmem:[%s2548_s2 + $0x34] sm:$0x1] }
  0x75   :  { %v793_v27 = vor.u32 %v792_v14, %v789_v21  ;;  %v815_v8 = vshrl.u32 %v2167_v25, 16  ;;  %v2292_v55 = vrot.slane %v765_v35, 4  ;;  %v2294_v29 = vrot.slane %v796_v18, 5 }
  0x76   :  { %v803_v31 = vrot.slane %v801_v60, 4  ;;  %v806_v43 = vrot.slane %v804_v2, 5  ;;  %v2299_v26 = vrot.slane %v779_v23, 4  ;;  %v2303_v1 = vrot.slane %v810_v54, 5 }
  0x77   :  { %v2301_v33 = vrot.slane %v793_v27, 4  ;;  %v817_v14 = vrot.slane %v815_v8, 4  ;;  %v818_v60 = vshll.u32 %v2167_v25, 16  ;;  %v824_v2 = vshll.u32 %v746_v41, 16 }
  0x78   :  { %v807_v21 = vor.u32 %v806_v43, %v803_v31  ;;  %v829_v18 = vshrl.u32 %v2172_v12, 16  ;;  %v832_v23 = vshll.u32 %v2172_v12, 16  ;;  %v838_v8 = vshll.u32 %v747_v30, 16  ;;  %v749_v31 = vld [vmem:[%s2548_s2 + $0x3c] sm:$0x1] }
  0x79   :  { %v820_v41 = vrot.slane %v818_v60, 5  ;;  %v2325_v54 = vrot.slane %v824_v2, 5  ;;  %v843_v49 = vshrl.u32 %v2185_v13, 16  ;;  %v846_v52 = vshll.u32 %v2185_v13, 16 }
  0x7a   :  { %v2323_v27 = vrot.slane %v807_v21, 4  ;;  %v831_v43 = vrot.slane %v829_v18, 4  ;;  %v834_v56 = vrot.slane %v832_v23, 5  ;;  %v2336_v60 = vrot.slane %v838_v8, 5  ;;  %v750_v18 = vld [vmem:[%s2548_s2 + $0x4c] sm:$0x1] }
  0x7b   :  { %v821_v11 = vor.u32 %v820_v41, %v817_v14  ;;  %v852_v2 = vshll.u32 %v748_v44, 16  ;;  %v845_v16 = vrot.slane %v843_v49, 4  ;;  %v848_v37 = vrot.slane %v846_v52, 5  ;;  %v751_v52 = vld [vmem:[%s2548_s2 + $0x54] sm:$0x1] }
  0x7c   :  { %v835_v30 = vor.u32 %v834_v56, %v831_v43  ;;  %v857_v4 = vshrl.u32 %v2190_v39, 16  ;;  %v860_v35 = vshll.u32 %v2190_v39, 16  ;;  %v866_v21 = vshll.u32 %v749_v31, 16 }
  0x7d   :  { %v2342_v23 = vrot.slane %v821_v11, 4  ;;  %v2344_v9 = vrot.slane %v852_v2, 5  ;;  %v849_v41 = vor.u32 %v848_v37, %v845_v16  ;;  %v871_v49 = vshrl.u32 %v2195_v40, 16  ;;  %v752_v2 = vld [vmem:[%s2548_s2 + $0x5c] sm:$0x1] }
  0x7e   :  { %v2347_v14 = vrot.slane %v835_v30, 4  ;;  %v859_v44 = vrot.slane %v857_v4, 4  ;;  %v862_v56 = vrot.slane %v860_v35, 5  ;;  %v2357_v8 = vrot.slane %v866_v21, 5 }
  0x7f   :  { %v874_v31 = vshll.u32 %v2195_v40, 16  ;;  %v2364_v4 = vrot.slane %v849_v41, 4  ;;  %v873_v16 = vrot.slane %v871_v49, 4  ;;  %v880_v43 = vshll.u32 %v750_v18, 16  ;;  %v753_v49 = vld [vmem:[%s2548_s2 + $0x64] sm:$0x1] }
  0x80   :  { %2663 = vst [vmem:[#allocation15_spill] sm:$0xff] %v2357_v8  ;;  %v863_v30 = vor.u32 %v862_v56, %v859_v44  ;;  %v885_v35 = vshrl.u32 %v2200_v58, 16  ;;  %v888_v21 = vshll.u32 %v2200_v58, 16  ;;  %v894_v41 = vshll.u32 %v751_v52, 16 }
  0x81   :  { %v876_v11 = vrot.slane %v874_v31, 5  ;;  %v2375_v37 = vrot.slane %v880_v43, 5  ;;  %v899_v18 = vshrl.u32 %v2205_v0, 16  ;;  %v902_v20 = vshll.u32 %v2205_v0, 16 }
  0x82   :  { %v2381_v44 = vrot.slane %v863_v30, 4  ;;  %v887_v31 = vrot.slane %v885_v35, 4  ;;  %v890_v10 = vrot.slane %v888_v21, 5  ;;  %v2383_v36 = vrot.slane %v894_v41, 5 }
  0x83   :  { %v877_v56 = vor.u32 %v876_v11, %v873_v16  ;;  %v901_v3 = vrot.slane %v899_v18, 4  ;;  %v908_v5 = vshll.u32 %v752_v2, 16  ;;  %v913_v30 = vshrl.u32 %v2210_v47, 16  ;;  %v754_v11 = vld [vmem:[%s2548_s2 + $0x6c] sm:$0x1] }
  0x84   :  { %v891_v32 = vor.u32 %v890_v10, %v887_v31  ;;  %v904_v16 = vrot.slane %v902_v20, 5  ;;  %v916_v21 = vshll.u32 %v2210_v47, 16  ;;  %v922_v41 = vshll.u32 %v753_v49, 16  ;;  %v755_v31 = vld [vmem:[%s2548_s2 + $0x74] sm:$0x1] }
  0x85   :  { %v2390_v43 = vrot.slane %v877_v56, 4  ;;  %v910_v35 = vrot.slane %v908_v5, 5  ;;  %v915_v56 = vrot.slane %v913_v30, 4  ;;  %v927_v10 = vshrl.u32 %v2223_v22, 16 }
  0x86   :  { %v892_v18 = vrot.slane %v891_v32, 4  ;;  %v905_v52 = vor.u32 %v904_v16, %v901_v3  ;;  %v918_v62 = vrot.slane %v916_v21, 5  ;;  %v924_v20 = vrot.slane %v922_v41, 5 }
  0x87   :  { %v883_v2 = vsel %vm1511_vm2, %v2390_v43, %v2375_v37  ;;  %v930_v5 = vshll.u32 %v2223_v22, 16  ;;  %v929_v47 = vrot.slane %v927_v10, 4  ;;  %v936_v0 = vshll.u32 %v754_v11, 16  ;;  %v756_v37 = vld [vmem:[%s2548_s2 + $0x7c] sm:$0x1] }
  0x88   :  { %v897_v49 = vsel %vm1511_vm2, %v892_v18, %v2383_v36  ;;  %v941_v32 = vshrl.u32 %v2228_v48, 16  ;;  %v906_v43 = vrot.slane %v905_v52, 4  ;;  %v919_v30 = vor.u32 %v918_v62, %v915_v56  ;;  %v757_v36 = vld [vmem:[%s2548_s2 + $0x84] sm:$0x1] }
  0x89   :  { %v932_v38 = vrot.slane %v930_v5, 5  ;;  %v944_v3 = vshll.u32 %v2228_v48, 16  ;;  %v938_v16 = vrot.slane %v936_v0, 5  ;;  %v950_v41 = vshll.u32 %v755_v31, 16 }
  0x8a   :  { %v943_v21 = vrot.slane %v941_v32, 4  ;;  %v955_v22 = vshrl.u32 %v2244_v28, 16  ;;  %v911_v11 = vsel %vm1511_vm2, %v906_v43, %v910_v35  ;;  %v920_v18 = vrot.slane %v919_v30, 4 }
  0x8b   :  { %v933_v10 = vor.u32 %v932_v38, %v929_v47  ;;  %v946_v58 = vrot.slane %v944_v3, 5  ;;  %v952_v52 = vrot.slane %v950_v41, 5  ;;  %v958_v56 = vshll.u32 %v2244_v28, 16 }
  0x8c   :  { %v957_v62 = vrot.slane %v955_v22, 4  ;;  %v964_v5 = vshll.u32 %v756_v37, 16  ;;  %v925_v0 = vsel %vm1511_vm2, %v920_v18, %v924_v20  ;;  %v969_v48 = vshrl.u32 %v2249_v61, 16  ;;  %v2687_v18 = vld [vmem:[#allocation11_spill] sm:$0xff] }
  0x8d   :  { %v934_v31 = vrot.slane %v933_v10, 4  ;;  %v947_v32 = vor.u32 %v946_v58, %v943_v21  ;;  %v960_v63 = vrot.slane %v958_v56, 5  ;;  %v972_v8 = vshll.u32 %v2249_v61, 16 }
  0x8e   :  { %v966_v40 = vrot.slane %v964_v5, 5  ;;  %v978_v35 = vshll.u32 %v757_v36, 16  ;;  %v971_v22 = vrot.slane %v969_v48, 4  ;;  %v2664_v37 = vmax.bf16 %v2139_v24, %v2120_v51  ;;  %v2693_v5 = vld [vmem:[#allocation13_spill] sm:$0xff] }
  0x8f   :  { %v939_v38 = vsel %vm1511_vm2, %v934_v31, %v938_v16  ;;  %v948_v47 = vrot.slane %v947_v32, 4  ;;  %v2665_v58 = vsel %vm1511_vm2, %v2292_v55, %v2282_v57  ;;  %v961_v43 = vor.u32 %v960_v63, %v957_v62  ;;  %v2691_v62 = vld [vmem:[#allocation4_spill] sm:$0xff]  ;;  %v2694_v31 = vld [vmem:[#allocation5_spill] sm:$0xff] }
  0x90   :  { %v998_v20 = vmax.bf16 %v2665_v58, %v2664_v37  ;;  %v974_v30 = vrot.slane %v972_v8, 5  ;;  %v980_v3 = vrot.slane %v978_v35, 5  ;;  %v2666_v21 = vmax.bf16 %v2144_v50, %v2122_v59  ;;  %v2696_v35 = vld [vmem:[#allocation14_spill] sm:$0xff]  ;;  %v2699_v37 = vld [vmem:[#allocation7_spill] sm:$0xff] }
  0x91   :  { %v2667_v48 = vsel %vm1511_vm2, %v2299_v26, %v2284_v45  ;;  %v953_v51 = vsel %vm1511_vm2, %v948_v47, %v952_v52  ;;  %v2668_v24 = vmax.bf16 %v2149_v17, %v2124_v7  ;;  %v2669_v63 = vsel %vm1511_vm2, %v2301_v33, %v2294_v29  ;;  %v2690_v52 = vld [vmem:[#allocation12_spill] sm:$0xff]  ;;  %v2697_v47 = vld [vmem:[#allocation6_spill] sm:$0xff] }
  0x92   :  { %v999_v16 = vmax.bf16 %v2667_v48, %v2666_v21  ;;  %v2670_v59 = vmax.bf16 %v2162_v42, %v2126_v6  ;;  %v2671_v50 = vsel %vm1511_vm2, %v2323_v27, %v2303_v1  ;;  %v2672_v55 = vmax.bf16 %v2167_v25, %v2128_v53 }
  0x93   :  { %v1000_v57 = vmax.bf16 %v2669_v63, %v2668_v24  ;;  %v2673_v7 = vsel %vm1511_vm2, %v2342_v23, %v2325_v54  ;;  %v962_v29 = vrot.slane %v961_v43, 4  ;;  %v975_v26 = vor.u32 %v974_v30, %v971_v22  ;;  %v2682_v23 = vld [vmem:[#allocation2_spill] sm:$0xff]  ;;  %v2701_v24 = vld [vmem:[#allocation8_spill] sm:$0xff] }
  0x94   :  { %v1001_v45 = vmax.bf16 %v2671_v50, %v2670_v59  ;;  %v1002_v17 = vmax.bf16 %v2673_v7, %v2672_v55  ;;  %v2674_v6 = vmax.bf16 %v2172_v12, %v2130_v46  ;;  %v2675_v42 = vsel %vm1511_vm2, %v2347_v14, %v2336_v60  ;;  %v2679_v46 = vld [vmem:[#allocation15_spill] sm:$0xff]  ;;  %v2681_v60 = vld [vmem:[#allocation9_spill] sm:$0xff] }
  0x95   :  { %v2676_v53 = vmax.bf16 %v2185_v13, %v2132_v15  ;;  %v2677_v25 = vsel %vm1511_vm2, %v2364_v4, %v2344_v9  ;;  %v2678_v27 = vmax.bf16 %v2190_v39, %v2134_v19  ;;  %v2680_v12 = vsel %vm1511_vm2, %v2381_v44, %v2679_v46  ;;  %v2684_v15 = vld [vmem:[#allocation10_spill] sm:$0xff]  ;;  %v2685_v13 = vld [vmem:[#allocation3_spill] sm:$0xff] }
  0x96   :  { %v1003_v1 = vmax.bf16 %v2675_v42, %v2674_v6  ;;  %v2683_v14 = vmax.bf16 %v2681_v60, %v2682_v23  ;;  %v2686_v41 = vmax.bf16 %v2684_v15, %v2685_v13  ;;  %v2688_v9 = vld [vmem:[#allocation18_spill] sm:$0xff]  ;;  %v967_v19 = vsel %vm1511_vm2, %v962_v29, %v966_v40 }
  0x97   :  { %v1004_v33 = vmax.bf16 %v2677_v25, %v2676_v53  ;;  %v1005_v54 = vmax.bf16 %v2680_v12, %v2678_v27  ;;  %v2689_v4 = vmax.bf16 %v2687_v18, %v2688_v9  ;;  %v976_v39 = vrot.slane %v975_v26, 4 }
  0x98   :  { %v1006_v8 = vmax.bf16 %v883_v2, %v2683_v14  ;;  %v1007_v36 = vmax.bf16 %v897_v49, %v2686_v41  ;;  %v2692_v44 = vmax.bf16 %v2690_v52, %v2691_v62  ;;  %v2695_v32 = vmax.bf16 %v2693_v5, %v2694_v31 }
  0x99   :  { %v1008_v10 = vmax.bf16 %v911_v11, %v2689_v4  ;;  %v2698_v22 = vmax.bf16 %v2696_v35, %v2697_v47  ;;  %v2700_v58 = vmax.bf16 %v2244_v28, %v2699_v37  ;;  %v1122_v43 = vcombine.low %v998_v20, %v999_v16 }
  0x9a   :  { %v1009_v56 = vmax.bf16 %v925_v0, %v2692_v44  ;;  %v1010_v2 = vmax.bf16 %v939_v38, %v2695_v32  ;;  %v1123_v30 = vcombine.low %v1000_v57, %v1001_v45  ;;  %v981_v40 = vsel %vm1511_vm2, %v976_v39, %v980_v3 }
  0x9b   :  { %v1011_v49 = vmax.bf16 %v953_v51, %v2698_v22  ;;  %v1012_v11 = vmax.bf16 %v967_v19, %v2700_v58  ;;  %v1125_v21 = vcombine.low %v1002_v17, %v1003_v1  ;;  %v1127_v48 = vcombine.low %v1004_v33, %v1005_v54  ;;  %1086 = vst [vmem:[%s2549_s4] sm:$0xff] %v1122_v43  }
  0x9c   :  { %v1129_v0 = vcombine.low %v1006_v8, %v1007_v36  ;;  %v2702_v63 = vmax.bf16 %v2249_v61, %v2701_v24  ;;  %1124 = vst [vmem:[%s2549_s4 + $0x8] sm:$0xff] %v1123_v30   ;;  %v1131_v28 = vcombine.low %v1008_v10, %v1009_v56 }
  0x9d   :  { %v1133_v20 = vcombine.low %v1010_v2, %v1011_v49  ;;  %1126 = vst [vmem:[%s2549_s4 + $0x10] sm:$0xff] %v1125_v21   ;;  %1128 = vst [vmem:[%s2549_s4 + $0x18] sm:$0xff] %v1127_v48  }
  0x9e   :  { %v1013_v38 = vmax.bf16 %v981_v40, %v2702_v63  ;;  %1130 = vst [vmem:[%s2549_s4 + $0x20] sm:$0xff] %v1129_v0   ;;  %1132 = vst [vmem:[%s2549_s4 + $0x28] sm:$0xff] %v1131_v28  }
  0x9f   :  { %1134 = vst [vmem:[%s2549_s4 + $0x30] sm:$0xff] %v1133_v20  }
  0xa0   :  { %v1135_v34 = vcombine.low %v1012_v11, %v1013_v38 }
  0xa2   :  { %1136 = vst [vmem:[%s2549_s4 + $0x38] sm:$0xff] %v1135_v34  }

// kernel: resnet_forward.13
= control target key start
LH: loop header
LB: loop body
LE: loop exit
PB: predicated region body
PF: predicated region fallthrough
CT: control target
= control target key end

     0   :  { %s3004_s1 = inlined_call_operand.vmem [shape: bf16[1152,128], index: 1, kind: input, shape index: {}]   ;;  %s3005_s0 = inlined_call_operand.vmem [shape: bf16[128,1152], index: 0, kind: input, shape index: {}]   ;;  %s3006_s2 = inlined_call_operand.vmem [shape: f32[1,128], index: 2, kind: input, shape index: {}]   ;;  %s3007_s3 = inlined_call_operand.vmem [shape: f32[1,128], index: 3, kind: input, shape index: {}]   ;;  %s3008_s4 = inlined_call_operand.vmem [shape: bf16[128,128], index: 4, kind: output, shape index: {}]  }
   0x1   :  { %v2218_v0 = vld [vmem:[%s3004_s1 + $0x40] sm:$0xff]   ;;  %v2222_v4 = vld [vmem:[%s3004_s1 + $0x48] sm:$0xff]   ;;  %v2226_v8 = vld [vmem:[%s3004_s1 + $0x50] sm:$0xff]  }
   0x2   :  { %v2219_v1 = vld [vmem:[%s3004_s1 + $0xc0] sm:$0xff]   ;;  %1898 = vmatprep.subr.bf16.mxu0 %v2218_v0  ;;  %v2223_v5 = vld [vmem:[%s3004_s1 + $0xc8] sm:$0xff]   ;;  %v2227_v9 = vld [vmem:[%s3004_s1 + $0xd0] sm:$0xff]  }
   0x3   :  { %v2220_v2 = vld [vmem:[%s3004_s1] sm:$0xff]   ;;  %1962 = vmatprep.subr.bf16.mxu1 %v2219_v1  ;;  %v2224_v6 = vld [vmem:[%s3004_s1 + $0x8] sm:$0xff]   ;;  %v2228_v10 = vld [vmem:[%s3004_s1 + $0x10] sm:$0xff]  }
   0x4   :  { %v2221_v3 = vld [vmem:[%s3004_s1 + $0x80] sm:$0xff]   ;;  %1899 = vmatpush3.bf16.msra.mxu0 %v2220_v2  ;;  %v2225_v7 = vld [vmem:[%s3004_s1 + $0x88] sm:$0xff]   ;;  %v2229_v11 = vld [vmem:[%s3004_s1 + $0x90] sm:$0xff]  }
   0x5   :  { %1963 = vmatpush3.bf16.msra.mxu1 %v2221_v3  ;;  %1900 = vmatprep.subr.bf16.mxu0 %v2222_v4  ;;  %v2230_v12 = vld [vmem:[%s3004_s1 + $0x58] sm:$0xff]   ;;  %v2234_v16 = vld [vmem:[%s3004_s1 + $0x60] sm:$0xff]   ;;  %v2238_v20 = vld [vmem:[%s3004_s1 + $0x68] sm:$0xff]  }
   0x6   :  { %1964 = vmatprep.subr.bf16.mxu1 %v2223_v5  ;;  %v2231_v13 = vld [vmem:[%s3004_s1 + $0xd8] sm:$0xff]   ;;  %v2235_v17 = vld [vmem:[%s3004_s1 + $0xe0] sm:$0xff]   ;;  %v2239_v21 = vld [vmem:[%s3004_s1 + $0xe8] sm:$0xff]  }
   0x7   :  { %v2232_v14 = vld [vmem:[%s3004_s1 + $0x18] sm:$0xff]   ;;  %v2236_v18 = vld [vmem:[%s3004_s1 + $0x20] sm:$0xff]   ;;  %v2240_v22 = vld [vmem:[%s3004_s1 + $0x28] sm:$0xff]  }
   0x8   :  { %1901 = vmatpush3.bf16.msra.mxu0 %v2224_v6  ;;  %v2233_v15 = vld [vmem:[%s3004_s1 + $0x98] sm:$0xff]   ;;  %v2237_v19 = vld [vmem:[%s3004_s1 + $0xa0] sm:$0xff]   ;;  %v2241_v23 = vld [vmem:[%s3004_s1 + $0xa8] sm:$0xff]  }
   0x9   :  { %1965 = vmatpush3.bf16.msra.mxu1 %v2225_v7  ;;  %1902 = vmatprep.subr.bf16.mxu0 %v2226_v8  ;;  %v2242_v24 = vld [vmem:[%s3004_s1 + $0x70] sm:$0xff]   ;;  %v2246_v28 = vld [vmem:[%s3004_s1 + $0x78] sm:$0xff]   ;;  %v2250_v32 = vld [vmem:[%s3005_s0] ss:$36 sps:$4 sm:$0xff]  }
   0xa   :  { %1966 = vmatprep.subr.bf16.mxu1 %v2227_v9  ;;  %v2243_v25 = vld [vmem:[%s3004_s1 + $0xf0] sm:$0xff]   ;;  %v2247_v29 = vld [vmem:[%s3004_s1 + $0xf8] sm:$0xff]   ;;  %v2252_v33 = vld [vmem:[%s3005_s0 + $0x4] ss:$36 sps:$4 sm:$0xff]  }
   0xb   :  { %v2244_v26 = vld [vmem:[%s3004_s1 + $0x30] sm:$0xff]   ;;  %v2248_v30 = vld [vmem:[%s3004_s1 + $0x38] sm:$0xff]   ;;  %v2253_v34 = vld [vmem:[%s3005_s0 + $0x8] ss:$36 sps:$4 sm:$0xff]   ;;  %1074 = vmatprep.mubr.bf16.mxu0 %v2252_v33 }
   0xc   :  { %1903 = vmatpush3.bf16.msra.mxu0 %v2228_v10  ;;  %v2245_v27 = vld [vmem:[%s3004_s1 + $0xb0] sm:$0xff]   ;;  %v2249_v31 = vld [vmem:[%s3004_s1 + $0xb8] sm:$0xff]   ;;  %v2256_v36 = vld [vmem:[%s3004_s1 + $0x140] sm:$0xff]  }
   0xd   :  { %1967 = vmatpush3.bf16.msra.mxu1 %v2229_v11  ;;  %1904 = vmatprep.subr.bf16.mxu0 %v2230_v12  ;;  %v2255_v35 = vld [vmem:[%s3005_s0 + $0xc] ss:$36 sps:$4 sm:$0xff]   ;;  %v2257_v37 = vld [vmem:[%s3004_s1 + $0x1c0] sm:$0xff]   ;;  %v2262_v41 = vld [vmem:[%s3005_s0 + $0x54] ss:$36 sps:$4 sm:$0xff]  }
   0xe   :  { %1968 = vmatprep.subr.bf16.mxu1 %v2231_v13  ;;  %1171 = vmatprep.mubr.bf16.mxu1 %v2255_v35  ;;  %v2258_v38 = vld [vmem:[%s3004_s1 + $0x100] sm:$0xff]   ;;  %v2260_v40 = vld [vmem:[%s3005_s0 + $0x4c] ss:$36 sps:$4 sm:$0xff]   ;;  %v2270_v48 = vld [vmem:[%s3005_s0 + $0x94] ss:$36 sps:$4 sm:$0xff]  }
   0xf   :  { %v2259_v39 = vld [vmem:[%s3004_s1 + $0x180] sm:$0xff]   ;;  %v2264_v42 = vld [vmem:[%s3005_s0 + $0x48] ss:$36 sps:$4 sm:$0xff]   ;;  %v2265_v43 = vld [vmem:[%s3005_s0 + $0x50] ss:$36 sps:$4 sm:$0xff]  }
  0x10   :  { %1905 = vmatpush3.bf16.msra.mxu0 %v2232_v14  ;;  %v2266_v44 = vld [vmem:[%s3004_s1 + $0x148] sm:$0xff]   ;;  %v2272_v49 = vld [vmem:[%s3005_s0 + $0x9c] ss:$36 sps:$4 sm:$0xff]   ;;  %v2274_v50 = vld [vmem:[%s3005_s0 + $0x90] ss:$36 sps:$4 sm:$0xff]  }
  0x11   :  { %1969 = vmatpush3.bf16.msra.mxu1 %v2233_v15  ;;  %1906 = vmatprep.subr.bf16.mxu0 %v2234_v16  ;;  %v2267_v45 = vld [vmem:[%s3004_s1 + $0x1c8] sm:$0xff]   ;;  %v2275_v51 = vld [vmem:[%s3005_s0 + $0x98] ss:$36 sps:$4 sm:$0xff]   ;;  %v2276_v52 = vld [vmem:[%s3004_s1 + $0x150] sm:$0xff]  }
  0x12   :  { %1970 = vmatprep.subr.bf16.mxu1 %v2235_v17  ;;  %v2268_v46 = vld [vmem:[%s3004_s1 + $0x108] sm:$0xff]   ;;  %v2277_v53 = vld [vmem:[%s3004_s1 + $0x1d0] sm:$0xff]   ;;  %v2280_v56 = vld [vmem:[%s3005_s0 + $0xdc] ss:$36 sps:$4 sm:$0xff]  }
  0x13   :  { %v2269_v47 = vld [vmem:[%s3004_s1 + $0x188] sm:$0xff]   ;;  %v2278_v54 = vld [vmem:[%s3004_s1 + $0x110] sm:$0xff]   ;;  %v2284_v58 = vld [vmem:[%s3005_s0 + $0xd8] ss:$36 sps:$4 sm:$0xff]  }
  0x14   :  { %1907 = vmatpush3.bf16.msra.mxu0 %v2236_v18  ;;  %v2279_v55 = vld [vmem:[%s3004_s1 + $0x190] sm:$0xff]   ;;  %v2282_v57 = vld [vmem:[%s3005_s0 + $0xe4] ss:$36 sps:$4 sm:$0xff]   ;;  %v2286_v60 = vld [vmem:[%s3004_s1 + $0x158] sm:$0xff]  }
  0x15   :  { %1971 = vmatpush3.bf16.msra.mxu1 %v2237_v19  ;;  %1908 = vmatprep.subr.bf16.mxu0 %v2238_v20  ;;  %v2285_v59 = vld [vmem:[%s3005_s0 + $0xe0] ss:$36 sps:$4 sm:$0xff]   ;;  %v2287_v61 = vld [vmem:[%s3004_s1 + $0x1d8] sm:$0xff]   ;;  %v2292_v1 = vld [vmem:[%s3005_s0 + $0x12c] ss:$36 sps:$4 sm:$0xff]  }
  0x16   :  { %1972 = vmatprep.subr.bf16.mxu1 %v2239_v21  ;;  %v2288_v62 = vld [vmem:[%s3004_s1 + $0x118] sm:$0xff]   ;;  %v2290_v0 = vld [vmem:[%s3005_s0 + $0x124] ss:$36 sps:$4 sm:$0xff]   ;;  %v2300_v8 = vld [vmem:[%s3005_s0 + $0x16c] ss:$36 sps:$4 sm:$0xff]  }
  0x17   :  { %v2289_v63 = vld [vmem:[%s3004_s1 + $0x198] sm:$0xff]   ;;  %v2294_v2 = vld [vmem:[%s3005_s0 + $0x120] ss:$36 sps:$4 sm:$0xff]   ;;  %v2295_v4 = vld [vmem:[%s3005_s0 + $0x128] ss:$36 sps:$4 sm:$0xff]  }
  0x18   :  { %1909 = vmatpush3.bf16.msra.mxu0 %v2240_v22  ;;  %v2296_v3 = vld [vmem:[%s3004_s1 + $0x160] sm:$0xff]   ;;  %v2302_v9 = vld [vmem:[%s3005_s0 + $0x174] ss:$36 sps:$4 sm:$0xff]   ;;  %v2306_v10 = vld [vmem:[%s3004_s1 + $0x168] sm:$0xff]  }
  0x19   :  { %1973 = vmatpush3.bf16.msra.mxu1 %v2241_v23  ;;  %1910 = vmatprep.subr.bf16.mxu0 %v2242_v24  ;;  %v2297_v5 = vld [vmem:[%s3004_s1 + $0x1e0] sm:$0xff]   ;;  %v2307_v11 = vld [vmem:[%s3004_s1 + $0x1e8] sm:$0xff]   ;;  %v2305_v15 = vld [vmem:[%s3005_s0 + $0x170] ss:$36 sps:$4 sm:$0xff]  }
  0x1a   :  { %1974 = vmatprep.subr.bf16.mxu1 %v2243_v25  ;;  %v2298_v6 = vld [vmem:[%s3004_s1 + $0x120] sm:$0xff]   ;;  %v2304_v12 = vld [vmem:[%s3005_s0 + $0x168] ss:$36 sps:$4 sm:$0xff]   ;;  %v2310_v16 = vld [vmem:[%s3005_s0 + $0x1b4] ss:$36 sps:$4 sm:$0xff]  }
  0x1b   :  { %v2299_v7 = vld [vmem:[%s3004_s1 + $0x1a0] sm:$0xff]   ;;  %v2308_v13 = vld [vmem:[%s3004_s1 + $0x128] sm:$0xff]   ;;  %v2316_v18 = vld [vmem:[%s3004_s1 + $0x170] sm:$0xff]  }
  0x1c   :  { %1911 = vmatpush3.bf16.msra.mxu0 %v2244_v26  ;;  %v2309_v14 = vld [vmem:[%s3004_s1 + $0x1a8] sm:$0xff]   ;;  %v2312_v17 = vld [vmem:[%s3005_s0 + $0x1bc] ss:$36 sps:$4 sm:$0xff]   ;;  %v2317_v19 = vld [vmem:[%s3004_s1 + $0x1f0] sm:$0xff]  }
  0x1d   :  { %1975 = vmatpush3.bf16.msra.mxu1 %v2245_v27  ;;  %1912 = vmatprep.subr.bf16.mxu0 %v2246_v28  ;;  %v2318_v20 = vld [vmem:[%s3004_s1 + $0x130] sm:$0xff]   ;;  %v2315_v23 = vld [vmem:[%s3005_s0 + $0x1b8] ss:$36 sps:$4 sm:$0xff]   ;;  %v2322_v25 = vld [vmem:[%s3005_s0 + $0x204] ss:$36 sps:$4 sm:$0xff]  }
  0x1e   :  { %1976 = vmatprep.subr.bf16.mxu1 %v2247_v29  ;;  %v2319_v21 = vld [vmem:[%s3004_s1 + $0x1b0] sm:$0xff]   ;;  %v2320_v24 = vld [vmem:[%s3005_s0 + $0x1fc] ss:$36 sps:$4 sm:$0xff]  }
  0x1f   :  { %v2314_v22 = vld [vmem:[%s3005_s0 + $0x1b0] ss:$36 sps:$4 sm:$0xff]   ;;  %v2326_v26 = vld [vmem:[%s3004_s1 + $0x178] sm:$0xff]  }
  0x20   :  { %1913 = vmatpush3.bf16.msra.mxu0 %v2248_v30  ;;  %v2327_v27 = vld [vmem:[%s3004_s1 + $0x1f8] sm:$0xff]   ;;  %v2330_v35 = vld [vmem:[%s3005_s0 + $0x10] ss:$36 sps:$4 sm:$0xff]  }
  0x21   :  { %1977 = vmatpush3.bf16.msra.mxu1 %v2249_v31  ;;  %2026 = vmatprep.subr.bf16.mxu0 %v2256_v36  ;;  %v2328_v28 = vld [vmem:[%s3004_s1 + $0x138] sm:$0xff]   ;;  %v2325_v31 = vld [vmem:[%s3005_s0 + $0x200] ss:$36 sps:$4 sm:$0xff]  }
  0x22   :  { %2090 = vmatprep.subr.bf16.mxu1 %v2257_v37  ;;  %v2329_v29 = vld [vmem:[%s3004_s1 + $0x1b8] sm:$0xff]  }
  0x23   :  { %1075 = vmatmul.mubr.bf16.vlgmr.msra.gmra.mrb[0].mxu0 %v2250_v32  ;;  %v2324_v30 = vld [vmem:[%s3005_s0 + $0x1f8] ss:$36 sps:$4 sm:$0xff]   ;;  %v2336_v32 = vld [vmem:[%s3004_s1 + $0x200] sm:$0xff]  }
  0x24   :  { %1172 = vmatmul.mubr.bf16.vlgmr.msra.gmra.mrb[0].mxu1 %v2253_v34  ;;  %2027 = vmatpush3.bf16.msra.mxu0 %v2258_v38  ;;  %v2332_v33 = vld [vmem:[%s3005_s0 + $0x14] ss:$36 sps:$4 sm:$0xff]   ;;  %v2335_v34 = vld [vmem:[%s3005_s0 + $0x1c] ss:$36 sps:$4 sm:$0xff]   ;;  %v2339_v38 = vld [vmem:[%s3005_s0 + $0x64] ss:$36 sps:$4 sm:$0xff]  }
  0x25   :  { %2091 = vmatpush3.bf16.msra.mxu1 %v2259_v39  ;;  %1082 = vmatprep.mubr.bf16.mxu0 %v2260_v40  ;;  %v2333_v36 = vld [vmem:[%s3005_s0 + $0x18] ss:$36 sps:$4 sm:$0xff]   ;;  %v2343_v39 = vld [vmem:[%s3004_s1 + $0x208] sm:$0xff]   ;;  %v2350_v40 = vld [vmem:[%s3004_s1 + $0x210] sm:$0xff]  }
  0x26   :  { %1179 = vmatprep.mubr.bf16.mxu1 %v2262_v41  ;;  %2028 = vmatprep.subr.bf16.mxu0 %v2266_v44  ;;  %v2337_v37 = vld [vmem:[%s3005_s0 + $0x5c] ss:$36 sps:$4 sm:$0xff]   ;;  %v2346_v44 = vld [vmem:[%s3005_s0 + $0xac] ss:$36 sps:$4 sm:$0xff]  }
  0x27   :  { %2092 = vmatprep.subr.bf16.mxu1 %v2267_v45  ;;  %v2341_v41 = vld [vmem:[%s3005_s0 + $0x58] ss:$36 sps:$4 sm:$0xff]  }
  0x28   :  { %2029 = vmatpush3.bf16.msra.mxu0 %v2268_v46  ;;  %v2357_v45 = vld [vmem:[%s3004_s1 + $0x218] sm:$0xff]   ;;  %v2364_v46 = vld [vmem:[%s3004_s1 + $0x220] sm:$0xff]  }
  0x29   :  { %2093 = vmatpush3.bf16.msra.mxu1 %v2269_v47  ;;  %2030 = vmatprep.subr.bf16.mxu0 %v2276_v52  ;;  %v2348_v47 = vld [vmem:[%s3005_s0 + $0xa0] ss:$36 sps:$4 sm:$0xff]   ;;  %v2355_v52 = vld [vmem:[%s3005_s0 + $0xe8] ss:$36 sps:$4 sm:$0xff]  }
  0x2a   :  { %2094 = vmatprep.subr.bf16.mxu1 %v2277_v53  ;;  %v2378_v53 = vld [vmem:[%s3004_s1 + $0x230] sm:$0xff]  }
  0x2b   :  { %1083 = vmatmul.mubr.bf16.gmra.mrb[4].mxu0 %v2264_v42  ;;  %v2342_v42 = vld [vmem:[%s3005_s0 + $0x60] ss:$36 sps:$4 sm:$0xff]  }
  0x2c   :  { %1180 = vmatmul.mubr.bf16.gmra.mrb[4].mxu1 %v2265_v43  ;;  %1090 = vmatprep.mubr.bf16.mxu0 %v2270_v48  ;;  %v2344_v43 = vld [vmem:[%s3005_s0 + $0xa4] ss:$36 sps:$4 sm:$0xff]  }
  0x2d   :  { %1187 = vmatprep.mubr.bf16.mxu1 %v2272_v49  ;;  %2031 = vmatpush3.bf16.msra.mxu0 %v2278_v54  ;;  %v2349_v48 = vld [vmem:[%s3005_s0 + $0xa8] ss:$36 sps:$4 sm:$0xff]   ;;  %v2356_v54 = vld [vmem:[%s3005_s0 + $0xf0] ss:$36 sps:$4 sm:$0xff]  }
  0x2e   :  { %2095 = vmatpush3.bf16.msra.mxu1 %v2279_v55  ;;  %2032 = vmatprep.subr.bf16.mxu0 %v2286_v60  ;;  %v2351_v49 = vld [vmem:[%s3005_s0 + $0xec] ss:$36 sps:$4 sm:$0xff]   ;;  %v2358_v55 = vld [vmem:[%s3005_s0 + $0x134] ss:$36 sps:$4 sm:$0xff]   ;;  %v2365_v60 = vld [vmem:[%s3005_s0 + $0x17c] ss:$36 sps:$4 sm:$0xff]  }
  0x2f   :  { %2096 = vmatprep.subr.bf16.mxu1 %v2287_v61  ;;  %v2367_v61 = vld [vmem:[%s3005_s0 + $0x184] ss:$36 sps:$4 sm:$0xff]  }
  0x31   :  { %2033 = vmatpush3.bf16.msra.mxu0 %v2288_v62  ;;  %v2369_v62 = vld [vmem:[%s3005_s0 + $0x178] ss:$36 sps:$4 sm:$0xff]  }
  0x32   :  { %2097 = vmatpush3.bf16.msra.mxu1 %v2289_v63  ;;  %2034 = vmatprep.subr.bf16.mxu0 %v2296_v3  ;;  %v2370_v63 = vld [vmem:[%s3005_s0 + $0x180] ss:$36 sps:$4 sm:$0xff]   ;;  %v2377_v3 = vld [vmem:[%s3005_s0 + $0x1c8] ss:$36 sps:$4 sm:$0xff]  }
  0x33   :  { %1091 = vmatmul.mubr.bf16.gmra.mrb[8].mxu0 %v2274_v50  ;;  %2098 = vmatprep.subr.bf16.mxu1 %v2297_v5  ;;  %v2353_v50 = vld [vmem:[%s3005_s0 + $0xf4] ss:$36 sps:$4 sm:$0xff]  }
  0x34   :  { %1188 = vmatmul.mubr.bf16.gmra.mrb[8].mxu1 %v2275_v51  ;;  %1098 = vmatprep.mubr.bf16.mxu0 %v2280_v56  ;;  %v2371_v51 = vld [vmem:[%s3004_s1 + $0x228] sm:$0xff]   ;;  %v2360_v56 = vld [vmem:[%s3005_s0 + $0x13c] ss:$36 sps:$4 sm:$0xff]   ;;  %v2381_v5 = vld [vmem:[%s3005_s0 + $0x214] ss:$36 sps:$4 sm:$0xff]  }
  0x35   :  { %1195 = vmatprep.mubr.bf16.mxu1 %v2282_v57  ;;  %2035 = vmatpush3.bf16.msra.mxu0 %v2298_v6  ;;  %v2385_v57 = vld [vmem:[%s3004_s1 + $0x238] sm:$0xff]   ;;  %v2383_v6 = vld [vmem:[%s3005_s0 + $0x208] ss:$36 sps:$4 sm:$0xff]  }
  0x36   :  { %2099 = vmatpush3.bf16.msra.mxu1 %v2299_v7  ;;  %2036 = vmatprep.subr.bf16.mxu0 %v2306_v10  ;;  %v2384_v7 = vld [vmem:[%s3005_s0 + $0x210] ss:$36 sps:$4 sm:$0xff]   ;;  %v2388_v10 = vld [vmem:[%s3005_s0 + $0x68] ss:$36 sps:$4 sm:$0xff]  }
  0x37   :  { %2100 = vmatprep.subr.bf16.mxu1 %v2307_v11  ;;  %v2389_v11 = vld [vmem:[%s3005_s0 + $0x188] ss:$36 sps:$4 sm:$0xff]  }
  0x39   :  { %2037 = vmatpush3.bf16.msra.mxu0 %v2308_v13  ;;  %v2391_v13 = vld [vmem:[%s3005_s0 + $0x1d0] ss:$36 sps:$4 sm:$0xff]  }
  0x3a   :  { %2101 = vmatpush3.bf16.msra.mxu1 %v2309_v14  ;;  %2038 = vmatprep.subr.bf16.mxu0 %v2316_v18  ;;  %v2392_v14 = vld [vmem:[%s3005_s0 + $0xf8] ss:$36 sps:$4 sm:$0xff]  }
  0x3b   :  { %1099 = vmatmul.mubr.bf16.gmra.mrb[12].mxu0 %v2284_v58  ;;  %2102 = vmatprep.subr.bf16.mxu1 %v2317_v19  ;;  %v2362_v58 = vld [vmem:[%s3005_s0 + $0x130] ss:$36 sps:$4 sm:$0xff]  }
  0x3c   :  { %1196 = vmatmul.mubr.bf16.gmra.mrb[12].mxu1 %v2285_v59  ;;  %1106 = vmatprep.mubr.bf16.mxu0 %v2290_v0  ;;  %v2363_v59 = vld [vmem:[%s3005_s0 + $0x138] ss:$36 sps:$4 sm:$0xff]   ;;  %v2372_v0 = vld [vmem:[%s3005_s0 + $0x1c4] ss:$36 sps:$4 sm:$0xff]  }
  0x3d   :  { %1203 = vmatprep.mubr.bf16.mxu1 %v2292_v1  ;;  %2039 = vmatpush3.bf16.msra.mxu0 %v2318_v20  ;;  %v2374_v1 = vld [vmem:[%s3005_s0 + $0x1cc] ss:$36 sps:$4 sm:$0xff]  }
  0x3e   :  { %2103 = vmatpush3.bf16.msra.mxu1 %v2319_v21  ;;  %2040 = vmatprep.subr.bf16.mxu0 %v2326_v26 }
  0x3f   :  { %2104 = vmatprep.subr.bf16.mxu1 %v2327_v27 }
  0x41   :  { %2041 = vmatpush3.bf16.msra.mxu0 %v2328_v28 }
  0x42   :  { %2105 = vmatpush3.bf16.msra.mxu1 %v2329_v29  ;;  %2170 = vmatprep.subr.bf16.mxu0 %v2336_v32 }
  0x43   :  { %1107 = vmatmul.mubr.bf16.gmra.mrb[16].mxu0 %v2294_v2  ;;  %2202 = vmatprep.subr.bf16.mxu1 %v2336_v32  ;;  %v2376_v2 = vld [vmem:[%s3005_s0 + $0x1c0] ss:$36 sps:$4 sm:$0xff]  }
  0x44   :  { %1204 = vmatmul.mubr.bf16.gmra.mrb[16].mxu1 %v2295_v4  ;;  %1114 = vmatprep.mubr.bf16.mxu0 %v2300_v8  ;;  %v2379_v4 = vld [vmem:[%s3005_s0 + $0x20c] ss:$36 sps:$4 sm:$0xff]   ;;  %v2386_v8 = vld [vmem:[%s3005_s0 + $0x20] ss:$36 sps:$4 sm:$0xff]  }
  0x45   :  { %1211 = vmatprep.mubr.bf16.mxu1 %v2302_v9  ;;  %v2387_v9 = vld [vmem:[%s3005_s0 + $0x140] ss:$36 sps:$4 sm:$0xff]  }
  0x4b   :  { %1115 = vmatmul.mubr.bf16.gmra.mrb[20].mxu0 %v2304_v12  ;;  %v2390_v12 = vld [vmem:[%s3005_s0 + $0xb0] ss:$36 sps:$4 sm:$0xff]  }
  0x4c   :  { %1212 = vmatmul.mubr.bf16.gmra.mrb[20].mxu1 %v2305_v15  ;;  %1122 = vmatprep.mubr.bf16.mxu0 %v2310_v16  ;;  %v2393_v15 = vld [vmem:[%s3005_s0 + $0x218] ss:$36 sps:$4 sm:$0xff]  }
  0x4d   :  { %1219 = vmatprep.mubr.bf16.mxu1 %v2312_v17 }
  0x53   :  { %1123 = vmatmul.mubr.bf16.gmra.mrb[24].mxu0 %v2314_v22 }
  0x54   :  { %1220 = vmatmul.mubr.bf16.gmra.mrb[24].mxu1 %v2315_v23  ;;  %1130 = vmatprep.mubr.bf16.mxu0 %v2320_v24 }
  0x55   :  { %1227 = vmatprep.mubr.bf16.mxu1 %v2322_v25 }
  0x5b   :  { %1131 = vmatmul.mubr.bf16.gmra.mrb[28].mxu0 %v2324_v30 }
  0x5c   :  { %1228 = vmatmul.mubr.bf16.gmra.mrb[28].mxu1 %v2325_v31  ;;  %1268 = vmatprep.mubr.bf16.mxu0 %v2332_v33 }
  0x5d   :  { %1365 = vmatprep.mubr.bf16.mxu1 %v2335_v34 }
  0x63   :  { %1269 = vmatmul.mubr.bf16.vlgmr.msra.gmra.mrb[32].mxu0 %v2330_v35 }
  0x64   :  { %1366 = vmatmul.mubr.bf16.vlgmr.msra.gmra.mrb[32].mxu1 %v2333_v36  ;;  %2171 = vmatpush3.bf16.msra.mxu0 %v2336_v32 }
  0x65   :  { %2210 = vmatpush3.bf16.msra.mxu1 %v2336_v32  ;;  %1276 = vmatprep.mubr.bf16.mxu0 %v2337_v37 }
  0x66   :  { %1373 = vmatprep.mubr.bf16.mxu1 %v2339_v38  ;;  %2172 = vmatprep.subr.bf16.mxu0 %v2343_v39 }
  0x67   :  { %2203 = vmatprep.subr.bf16.mxu1 %v2343_v39 }
  0x68   :  { %2173 = vmatpush3.bf16.msra.mxu0 %v2343_v39 }
  0x69   :  { %2211 = vmatpush3.bf16.msra.mxu1 %v2343_v39  ;;  %2174 = vmatprep.subr.bf16.mxu0 %v2350_v40 }
  0x6a   :  { %2204 = vmatprep.subr.bf16.mxu1 %v2350_v40 }
  0x6b   :  { %1277 = vmatmul.mubr.bf16.gmra.mrb[36].mxu0 %v2341_v41 }
  0x6c   :  { %1374 = vmatmul.mubr.bf16.gmra.mrb[36].mxu1 %v2342_v42  ;;  %1284 = vmatprep.mubr.bf16.mxu0 %v2344_v43 }
  0x6d   :  { %1381 = vmatprep.mubr.bf16.mxu1 %v2346_v44  ;;  %2175 = vmatpush3.bf16.msra.mxu0 %v2350_v40 }
  0x6e   :  { %2212 = vmatpush3.bf16.msra.mxu1 %v2350_v40  ;;  %2176 = vmatprep.subr.bf16.mxu0 %v2357_v45 }
  0x6f   :  { %2205 = vmatprep.subr.bf16.mxu1 %v2357_v45 }
  0x71   :  { %2177 = vmatpush3.bf16.msra.mxu0 %v2357_v45 }
  0x72   :  { %2213 = vmatpush3.bf16.msra.mxu1 %v2357_v45  ;;  %2178 = vmatprep.subr.bf16.mxu0 %v2364_v46 }
  0x73   :  { %1285 = vmatmul.mubr.bf16.gmra.mrb[40].mxu0 %v2348_v47  ;;  %2206 = vmatprep.subr.bf16.mxu1 %v2364_v46 }
  0x74   :  { %1382 = vmatmul.mubr.bf16.gmra.mrb[40].mxu1 %v2349_v48  ;;  %1292 = vmatprep.mubr.bf16.mxu0 %v2351_v49 }
  0x75   :  { %1389 = vmatprep.mubr.bf16.mxu1 %v2353_v50  ;;  %2179 = vmatpush3.bf16.msra.mxu0 %v2364_v46 }
  0x76   :  { %2214 = vmatpush3.bf16.msra.mxu1 %v2364_v46  ;;  %2180 = vmatprep.subr.bf16.mxu0 %v2371_v51 }
  0x77   :  { %2207 = vmatprep.subr.bf16.mxu1 %v2371_v51 }
  0x79   :  { %2181 = vmatpush3.bf16.msra.mxu0 %v2371_v51 }
  0x7a   :  { %2215 = vmatpush3.bf16.msra.mxu1 %v2371_v51  ;;  %2182 = vmatprep.subr.bf16.mxu0 %v2378_v53 }
  0x7b   :  { %1293 = vmatmul.mubr.bf16.gmra.mrb[44].mxu0 %v2355_v52  ;;  %2208 = vmatprep.subr.bf16.mxu1 %v2378_v53 }
  0x7c   :  { %1390 = vmatmul.mubr.bf16.gmra.mrb[44].mxu1 %v2356_v54  ;;  %1300 = vmatprep.mubr.bf16.mxu0 %v2358_v55 }
  0x7d   :  { %1397 = vmatprep.mubr.bf16.mxu1 %v2360_v56  ;;  %2183 = vmatpush3.bf16.msra.mxu0 %v2378_v53 }
  0x7e   :  { %2216 = vmatpush3.bf16.msra.mxu1 %v2378_v53  ;;  %2184 = vmatprep.subr.bf16.mxu0 %v2385_v57 }
  0x7f   :  { %2209 = vmatprep.subr.bf16.mxu1 %v2385_v57 }
  0x81   :  { %2185 = vmatpush3.bf16.msra.mxu0 %v2385_v57 }
  0x82   :  { %2217 = vmatpush3.bf16.msra.mxu1 %v2385_v57 }
  0x83   :  { %1301 = vmatmul.mubr.bf16.gmra.mrb[48].mxu0 %v2362_v58 }
  0x84   :  { %1398 = vmatmul.mubr.bf16.gmra.mrb[48].mxu1 %v2363_v59  ;;  %1308 = vmatprep.mubr.bf16.mxu0 %v2365_v60 }
  0x85   :  { %1405 = vmatprep.mubr.bf16.mxu1 %v2367_v61 }
  0x8b   :  { %1309 = vmatmul.mubr.bf16.gmra.mrb[52].mxu0 %v2369_v62 }
  0x8c   :  { %1406 = vmatmul.mubr.bf16.gmra.mrb[52].mxu1 %v2370_v63  ;;  %1316 = vmatprep.mubr.bf16.mxu0 %v2372_v0 }
  0x8d   :  { %1413 = vmatprep.mubr.bf16.mxu1 %v2374_v1 }
  0x93   :  { %1317 = vmatmul.mubr.bf16.gmra.mrb[56].mxu0 %v2376_v2 }
  0x94   :  { %1414 = vmatmul.mubr.bf16.gmra.mrb[56].mxu1 %v2377_v3  ;;  %1324 = vmatprep.mubr.bf16.mxu0 %v2379_v4 }
  0x95   :  { %1421 = vmatprep.mubr.bf16.mxu1 %v2381_v5 }
  0x9b   :  { %1325 = vmatmul.mubr.bf16.gmra.mrb[60].mxu0 %v2383_v6 }
  0x9c   :  { %1422 = vmatmul.mubr.bf16.gmra.mrb[60].mxu1 %v2384_v7  ;;  %2186 = vmatprep.mubr.bf16.mxu0 %v2386_v8 }
  0x9d   :  { %2194 = vmatprep.mubr.bf16.mxu1 %v2387_v9 }
  0xa3   :  { %2187 = vmatmul.mubr.bf16.vlgmr.msra.gmra.mrb[64].mxu0 %v2388_v10 }
  0xa4   :  { %2195 = vmatmul.mubr.bf16.vlgmr.msra.gmra.mrb[64].mxu1 %v2389_v11  ;;  %2190 = vmatprep.mubr.bf16.mxu0 %v2390_v12 }
  0xa5   :  { %2198 = vmatprep.mubr.bf16.mxu1 %v2391_v13 }
  0xab   :  { %2191 = vmatmul.mubr.bf16.gmra.mrb[68].mxu0 %v2392_v14 }
  0xac   :  { %2199 = vmatmul.mubr.bf16.gmra.mrb[68].mxu1 %v2393_v15 }
  0xf6   :  { %v1914_v16 = vpop.f32.mrb[0].mxu0 }
  0xf7   :  { %v1978_v17 = vpop.f32.mrb[0].mxu1  ;;  %v1915_v18 = vpop.f32.mrb[1].mxu0 }
  0xf8   :  { %v1916_v19 = vadd.f32 %v1915_v18, %v1914_v16  ;;  %v1979_v20 = vpop.f32.mrb[1].mxu1  ;;  %v1917_v21 = vpop.f32.mrb[2].mxu0 }
  0xf9   :  { %v1980_v22 = vadd.f32 %v1979_v20, %v1978_v17  ;;  %v1981_v23 = vpop.f32.mrb[2].mxu1  ;;  %v1918_v24 = vpop.f32.mrb[3].mxu0 }
  0xfa   :  { %v1919_v25 = vadd.f32 %v1918_v24, %v1917_v21  ;;  %v1982_v26 = vpop.f32.mrb[3].mxu1 }
  0xfb   :  { %v2851_v27 = vadd.f32 %v1980_v22, %v1916_v19  ;;  %v1983_v28 = vadd.f32 %v1982_v26, %v1981_v23 }
  0xfd   :  { %v2853_v29 = vadd.f32 %v1983_v28, %v1919_v25 }
  0xfe   :  { %v1920_v30 = vpop.f32.mrb[4].mxu0 }
  0xff   :  { %v1984_v31 = vpop.f32.mrb[4].mxu1  ;;  %v1921_v32 = vpop.f32.mrb[5].mxu0 }
 0x100   :  { %v1922_v33 = vadd.f32 %v1921_v32, %v1920_v30  ;;  %v1985_v34 = vpop.f32.mrb[5].mxu1  ;;  %v1923_v35 = vpop.f32.mrb[6].mxu0 }
 0x101   :  { %v1986_v36 = vadd.f32 %v1985_v34, %v1984_v31  ;;  %v1987_v37 = vpop.f32.mrb[6].mxu1  ;;  %v1924_v38 = vpop.f32.mrb[7].mxu0 }
 0x102   :  { %v1925_v39 = vadd.f32 %v1924_v38, %v1923_v35  ;;  %v1988_v40 = vpop.f32.mrb[7].mxu1 }
 0x103   :  { %v2855_v41 = vadd.f32 %v1986_v36, %v1922_v33  ;;  %v1989_v42 = vadd.f32 %v1988_v40, %v1987_v37 }
 0x105   :  { %v2857_v43 = vadd.f32 %v1989_v42, %v1925_v39 }
 0x106   :  { %v1926_v44 = vpop.f32.mrb[8].mxu0 }
 0x107   :  { %v1990_v45 = vpop.f32.mrb[8].mxu1  ;;  %v1927_v46 = vpop.f32.mrb[9].mxu0 }
 0x108   :  { %v1928_v47 = vadd.f32 %v1927_v46, %v1926_v44  ;;  %v1991_v48 = vpop.f32.mrb[9].mxu1  ;;  %v1929_v49 = vpop.f32.mrb[10].mxu0 }
 0x109   :  { %v1992_v50 = vadd.f32 %v1991_v48, %v1990_v45  ;;  %v1993_v51 = vpop.f32.mrb[10].mxu1  ;;  %v1930_v52 = vpop.f32.mrb[11].mxu0 }
 0x10a   :  { %v1931_v53 = vadd.f32 %v1930_v52, %v1929_v49  ;;  %v1994_v54 = vpop.f32.mrb[11].mxu1 }
 0x10b   :  { %v2859_v55 = vadd.f32 %v1992_v50, %v1928_v47  ;;  %v1995_v56 = vadd.f32 %v1994_v54, %v1993_v51 }
 0x10d   :  { %v2861_v57 = vadd.f32 %v1995_v56, %v1931_v53 }
 0x10e   :  { %v1932_v58 = vpop.f32.mrb[12].mxu0 }
 0x10f   :  { %v1996_v59 = vpop.f32.mrb[12].mxu1  ;;  %v1933_v60 = vpop.f32.mrb[13].mxu0 }
 0x110   :  { %v1934_v61 = vadd.f32 %v1933_v60, %v1932_v58  ;;  %v1997_v62 = vpop.f32.mrb[13].mxu1  ;;  %v1935_v63 = vpop.f32.mrb[14].mxu0 }
 0x111   :  { %v1998_v0 = vadd.f32 %v1997_v62, %v1996_v59  ;;  %v1999_v1 = vpop.f32.mrb[14].mxu1  ;;  %v1936_v2 = vpop.f32.mrb[15].mxu0 }
 0x112   :  { %v1937_v3 = vadd.f32 %v1936_v2, %v1935_v63  ;;  %v2000_v4 = vpop.f32.mrb[15].mxu1 }
 0x113   :  { %v2863_v5 = vadd.f32 %v1998_v0, %v1934_v61  ;;  %v2001_v6 = vadd.f32 %v2000_v4, %v1999_v1 }
 0x115   :  { %v2865_v7 = vadd.f32 %v2001_v6, %v1937_v3 }
 0x116   :  { %v1938_v8 = vpop.f32.mrb[16].mxu0 }
 0x117   :  { %v2002_v9 = vpop.f32.mrb[16].mxu1  ;;  %v1939_v10 = vpop.f32.mrb[17].mxu0 }
 0x118   :  { %v1940_v11 = vadd.f32 %v1939_v10, %v1938_v8  ;;  %v2003_v12 = vpop.f32.mrb[17].mxu1  ;;  %v1941_v13 = vpop.f32.mrb[18].mxu0 }
 0x119   :  { %v2004_v14 = vadd.f32 %v2003_v12, %v2002_v9  ;;  %v2005_v15 = vpop.f32.mrb[18].mxu1  ;;  %v1942_v16 = vpop.f32.mrb[19].mxu0 }
 0x11a   :  { %v1943_v17 = vadd.f32 %v1942_v16, %v1941_v13  ;;  %v2006_v18 = vpop.f32.mrb[19].mxu1 }
 0x11b   :  { %v2867_v19 = vadd.f32 %v2004_v14, %v1940_v11  ;;  %v2007_v20 = vadd.f32 %v2006_v18, %v2005_v15 }
 0x11d   :  { %v2869_v21 = vadd.f32 %v2007_v20, %v1943_v17 }
 0x11e   :  { %v1944_v22 = vpop.f32.mrb[20].mxu0 }
 0x11f   :  { %v2008_v23 = vpop.f32.mrb[20].mxu1  ;;  %v1945_v24 = vpop.f32.mrb[21].mxu0 }
 0x120   :  { %v1946_v25 = vadd.f32 %v1945_v24, %v1944_v22  ;;  %v2009_v26 = vpop.f32.mrb[21].mxu1  ;;  %v1947_v28 = vpop.f32.mrb[22].mxu0 }
 0x121   :  { %v2010_v30 = vadd.f32 %v2009_v26, %v2008_v23  ;;  %v2011_v31 = vpop.f32.mrb[22].mxu1  ;;  %v1948_v32 = vpop.f32.mrb[23].mxu0 }
 0x122   :  { %v1949_v33 = vadd.f32 %v1948_v32, %v1947_v28  ;;  %v2012_v34 = vpop.f32.mrb[23].mxu1 }
 0x123   :  { %v2871_v35 = vadd.f32 %v2010_v30, %v1946_v25  ;;  %v2013_v36 = vadd.f32 %v2012_v34, %v2011_v31 }
 0x125   :  { %v2873_v37 = vadd.f32 %v2013_v36, %v1949_v33 }
 0x126   :  { %v1950_v38 = vpop.f32.mrb[24].mxu0 }
 0x127   :  { %v2014_v39 = vpop.f32.mrb[24].mxu1  ;;  %v1951_v40 = vpop.f32.mrb[25].mxu0 }
 0x128   :  { %v1952_v42 = vadd.f32 %v1951_v40, %v1950_v38  ;;  %v2015_v44 = vpop.f32.mrb[25].mxu1  ;;  %v1953_v45 = vpop.f32.mrb[26].mxu0 }
 0x129   :  { %v2016_v46 = vadd.f32 %v2015_v44, %v2014_v39  ;;  %v2017_v47 = vpop.f32.mrb[26].mxu1  ;;  %v1954_v48 = vpop.f32.mrb[27].mxu0 }
 0x12a   :  { %v1955_v49 = vadd.f32 %v1954_v48, %v1953_v45  ;;  %v2018_v50 = vpop.f32.mrb[27].mxu1 }
 0x12b   :  { %v2875_v51 = vadd.f32 %v2016_v46, %v1952_v42  ;;  %v2019_v52 = vadd.f32 %v2018_v50, %v2017_v47 }
 0x12d   :  { %v2877_v53 = vadd.f32 %v2019_v52, %v1955_v49 }
 0x12e   :  { %v1956_v54 = vpop.f32.mrb[28].mxu0 }
 0x12f   :  { %v2020_v56 = vpop.f32.mrb[28].mxu1  ;;  %v1957_v58 = vpop.f32.mrb[29].mxu0 }
 0x130   :  { %v1958_v59 = vadd.f32 %v1957_v58, %v1956_v54  ;;  %v2021_v60 = vpop.f32.mrb[29].mxu1  ;;  %v1959_v61 = vpop.f32.mrb[30].mxu0 }
 0x131   :  { %v2022_v62 = vadd.f32 %v2021_v60, %v2020_v56  ;;  %v2023_v63 = vpop.f32.mrb[30].mxu1  ;;  %v1960_v0 = vpop.f32.mrb[31].mxu0 }
 0x132   :  { %v1961_v1 = vadd.f32 %v1960_v0, %v1959_v61  ;;  %v2024_v2 = vpop.f32.mrb[31].mxu1 }
 0x133   :  { %v2879_v3 = vadd.f32 %v2022_v62, %v1958_v59  ;;  %v2025_v4 = vadd.f32 %v2024_v2, %v2023_v63 }
 0x135   :  { %v2881_v6 = vadd.f32 %v2025_v4, %v1961_v1 }
 0x136   :  { %v2042_v8 = vpop.f32.mrb[32].mxu0 }
 0x137   :  { %v2106_v9 = vpop.f32.mrb[32].mxu1  ;;  %v2043_v10 = vpop.f32.mrb[33].mxu0 }
 0x138   :  { %v2044_v11 = vadd.f32 %v2043_v10, %v2042_v8  ;;  %v2107_v12 = vpop.f32.mrb[33].mxu1  ;;  %v2045_v13 = vpop.f32.mrb[34].mxu0 }
 0x139   :  { %v2108_v14 = vadd.f32 %v2107_v12, %v2106_v9  ;;  %v2109_v15 = vpop.f32.mrb[34].mxu1  ;;  %v2046_v16 = vpop.f32.mrb[35].mxu0 }
 0x13a   :  { %v1271_v17 = vadd.f32 %v2044_v11, %v2851_v27  ;;  %v2047_v18 = vadd.f32 %v2046_v16, %v2045_v13  ;;  %v2110_v20 = vpop.f32.mrb[35].mxu1 }
 0x13b   :  { %v2111_v22 = vadd.f32 %v2110_v20, %v2109_v15 }
 0x13c   :  { %v1274_v23 = vadd.f32 %v2047_v18, %v2853_v29  ;;  %v2885_v24 = vadd.f32 %v2108_v14, %v1271_v17 }
 0x13e   :  { %v2048_v25 = vpop.f32.mrb[36].mxu0  ;;  %v2887_v26 = vadd.f32 %v2111_v22, %v1274_v23 }
 0x13f   :  { %v2112_v28 = vpop.f32.mrb[36].mxu1  ;;  %v2049_v30 = vpop.f32.mrb[37].mxu0 }
 0x140   :  { %v2050_v31 = vadd.f32 %v2049_v30, %v2048_v25  ;;  %v2113_v32 = vpop.f32.mrb[37].mxu1  ;;  %v2051_v33 = vpop.f32.mrb[38].mxu0 }
 0x141   :  { %v2114_v34 = vadd.f32 %v2113_v32, %v2112_v28  ;;  %v2115_v36 = vpop.f32.mrb[38].mxu1  ;;  %v2052_v38 = vpop.f32.mrb[39].mxu0 }
 0x142   :  { %v1279_v27 = vadd.f32 %v2050_v31, %v2855_v41  ;;  %v2053_v39 = vadd.f32 %v2052_v38, %v2051_v33  ;;  %v2116_v40 = vpop.f32.mrb[39].mxu1 }
 0x143   :  { %v2117_v42 = vadd.f32 %v2116_v40, %v2115_v36 }
 0x144   :  { %v1282_v29 = vadd.f32 %v2053_v39, %v2857_v43  ;;  %v2891_v44 = vadd.f32 %v2114_v34, %v1279_v27 }
 0x146   :  { %v2054_v45 = vpop.f32.mrb[40].mxu0  ;;  %v2893_v46 = vadd.f32 %v2117_v42, %v1282_v29 }
 0x147   :  { %v2118_v47 = vpop.f32.mrb[40].mxu1  ;;  %v2055_v48 = vpop.f32.mrb[41].mxu0 }
 0x148   :  { %v2056_v49 = vadd.f32 %v2055_v48, %v2054_v45  ;;  %v2119_v50 = vpop.f32.mrb[41].mxu1  ;;  %v2057_v52 = vpop.f32.mrb[42].mxu0 }
 0x149   :  { %v2120_v54 = vadd.f32 %v2119_v50, %v2118_v47  ;;  %v2121_v56 = vpop.f32.mrb[42].mxu1  ;;  %v2058_v58 = vpop.f32.mrb[43].mxu0 }
 0x14a   :  { %v1287_v41 = vadd.f32 %v2056_v49, %v2859_v55  ;;  %v2059_v59 = vadd.f32 %v2058_v58, %v2057_v52  ;;  %v2122_v60 = vpop.f32.mrb[43].mxu1 }
 0x14b   :  { %v2123_v61 = vadd.f32 %v2122_v60, %v2121_v56 }
 0x14c   :  { %v1290_v43 = vadd.f32 %v2059_v59, %v2861_v57  ;;  %v2897_v62 = vadd.f32 %v2120_v54, %v1287_v41 }
 0x14e   :  { %v2060_v63 = vpop.f32.mrb[44].mxu0  ;;  %v2899_v0 = vadd.f32 %v2123_v61, %v1290_v43 }
 0x14f   :  { %v2124_v1 = vpop.f32.mrb[44].mxu1  ;;  %v2061_v2 = vpop.f32.mrb[45].mxu0 }
 0x150   :  { %v2062_v4 = vadd.f32 %v2061_v2, %v2060_v63  ;;  %v2125_v8 = vpop.f32.mrb[45].mxu1  ;;  %v2063_v9 = vpop.f32.mrb[46].mxu0 }
 0x151   :  { %v2126_v10 = vadd.f32 %v2125_v8, %v2124_v1  ;;  %v2127_v11 = vpop.f32.mrb[46].mxu1  ;;  %v2064_v12 = vpop.f32.mrb[47].mxu0 }
 0x152   :  { %v1295_v55 = vadd.f32 %v2062_v4, %v2863_v5  ;;  %v2065_v13 = vadd.f32 %v2064_v12, %v2063_v9  ;;  %v2128_v14 = vpop.f32.mrb[47].mxu1 }
 0x153   :  { %v2129_v15 = vadd.f32 %v2128_v14, %v2127_v11 }
 0x154   :  { %v1298_v57 = vadd.f32 %v2065_v13, %v2865_v7  ;;  %v2903_v16 = vadd.f32 %v2126_v10, %v1295_v55 }
 0x156   :  { %v2066_v17 = vpop.f32.mrb[48].mxu0  ;;  %v2905_v18 = vadd.f32 %v2129_v15, %v1298_v57 }
 0x157   :  { %v2130_v20 = vpop.f32.mrb[48].mxu1  ;;  %v2067_v22 = vpop.f32.mrb[49].mxu0 }
 0x158   :  { %v2068_v23 = vadd.f32 %v2067_v22, %v2066_v17  ;;  %v2131_v25 = vpop.f32.mrb[49].mxu1  ;;  %v2069_v28 = vpop.f32.mrb[50].mxu0 }
 0x159   :  { %v2132_v30 = vadd.f32 %v2131_v25, %v2130_v20  ;;  %v2133_v31 = vpop.f32.mrb[50].mxu1  ;;  %v2070_v32 = vpop.f32.mrb[51].mxu0 }
 0x15a   :  { %v1303_v5 = vadd.f32 %v2068_v23, %v2867_v19  ;;  %v2071_v33 = vadd.f32 %v2070_v32, %v2069_v28  ;;  %v2134_v34 = vpop.f32.mrb[51].mxu1 }
 0x15b   :  { %v2135_v36 = vadd.f32 %v2134_v34, %v2133_v31 }
 0x15c   :  { %v1306_v7 = vadd.f32 %v2071_v33, %v2869_v21  ;;  %v2909_v38 = vadd.f32 %v2132_v30, %v1303_v5  ;;  %v2926_v33 = vld [vmem:[%s3006_s2] ss:$0 sm:$0xff] }
 0x15e   :  { %v2072_v27 = vpop.f32.mrb[52].mxu0  ;;  %v2911_v39 = vadd.f32 %v2135_v36, %v1306_v7 }
 0x15f   :  { %v2136_v40 = vpop.f32.mrb[52].mxu1  ;;  %v2073_v42 = vpop.f32.mrb[53].mxu0 }
 0x160   :  { %v2074_v29 = vadd.f32 %v2073_v42, %v2072_v27  ;;  %v2137_v45 = vpop.f32.mrb[53].mxu1  ;;  %v2075_v47 = vpop.f32.mrb[54].mxu0 }
 0x161   :  { %v2138_v48 = vadd.f32 %v2137_v45, %v2136_v40  ;;  %v2139_v49 = vpop.f32.mrb[54].mxu1  ;;  %v2076_v50 = vpop.f32.mrb[55].mxu0 }
 0x162   :  { %v1311_v19 = vadd.f32 %v2074_v29, %v2871_v35  ;;  %v2077_v52 = vadd.f32 %v2076_v50, %v2075_v47  ;;  %v2140_v54 = vpop.f32.mrb[55].mxu1 }
 0x163   :  { %v2141_v56 = vadd.f32 %v2140_v54, %v2139_v49 }
 0x164   :  { %v1314_v21 = vadd.f32 %v2077_v52, %v2873_v37  ;;  %v1408_v58 = vadd.f32 %v2138_v48, %v1311_v19 }
 0x166   :  { %v2078_v41 = vpop.f32.mrb[56].mxu0  ;;  %v1411_v59 = vadd.f32 %v2141_v56, %v1314_v21 }
 0x167   :  { %v2142_v60 = vpop.f32.mrb[56].mxu1  ;;  %v2079_v61 = vpop.f32.mrb[57].mxu0 }
 0x168   :  { %v2080_v43 = vadd.f32 %v2079_v61, %v2078_v41  ;;  %v2143_v63 = vpop.f32.mrb[57].mxu1  ;;  %v2081_v1 = vpop.f32.mrb[58].mxu0 }
 0x169   :  { %v2144_v2 = vadd.f32 %v2143_v63, %v2142_v60  ;;  %v2145_v4 = vpop.f32.mrb[58].mxu1  ;;  %v2082_v8 = vpop.f32.mrb[59].mxu0 }
 0x16a   :  { %v1319_v9 = vadd.f32 %v2080_v43, %v2875_v51  ;;  %v2083_v10 = vadd.f32 %v2082_v8, %v2081_v1  ;;  %v2146_v35 = vpop.f32.mrb[59].mxu1 }
 0x16b   :  { %v2147_v11 = vadd.f32 %v2146_v35, %v2145_v4 }
 0x16c   :  { %v1322_v12 = vadd.f32 %v2083_v10, %v2877_v53  ;;  %v2917_v55 = vadd.f32 %v2144_v2, %v1319_v9 }
 0x16e   :  { %v2084_v37 = vpop.f32.mrb[60].mxu0  ;;  %v2919_v13 = vadd.f32 %v2147_v11, %v1322_v12 }
 0x16f   :  { %v2148_v14 = vpop.f32.mrb[60].mxu1  ;;  %v2085_v15 = vpop.f32.mrb[61].mxu0 }
 0x170   :  { %v2086_v57 = vadd.f32 %v2085_v15, %v2084_v37  ;;  %v2149_v17 = vpop.f32.mrb[61].mxu1  ;;  %v2087_v20 = vpop.f32.mrb[62].mxu0 }
 0x171   :  { %v2150_v22 = vadd.f32 %v2149_v17, %v2148_v14  ;;  %v2151_v23 = vpop.f32.mrb[62].mxu1  ;;  %v2088_v25 = vpop.f32.mrb[63].mxu0 }
 0x172   :  { %v1327_v51 = vadd.f32 %v2086_v57, %v2879_v3  ;;  %v2089_v28 = vadd.f32 %v2088_v25, %v2087_v20  ;;  %v2152_v30 = vpop.f32.mrb[63].mxu1  ;;  %v2934_v3 = vld [vmem:[%s3007_s3] ss:$0 sm:$0xff] }
 0x173   :  { %v2153_v31 = vadd.f32 %v2152_v30, %v2151_v23 }
 0x174   :  { %v1330_v53 = vadd.f32 %v2089_v28, %v2881_v6  ;;  %v1424_v32 = vadd.f32 %v2150_v22, %v1327_v51 }
 0x176   :  { %v2188_v5 = vpop.f32.mrb[64].mxu0  ;;  %v2928_v34 = vadd.f32 %v2153_v31, %v1330_v53 }
 0x177   :  { %v1473_v36 = vadd.f32 %v2188_v5, %v2891_v44  ;;  %v2196_v7 = vpop.f32.mrb[64].mxu1  ;;  %v1464_v27 = vpop.f32.mrb[65].mxu0 }
 0x178   :  { %v1505_v40 = vadd.f32 %v2196_v7, %v1408_v58  ;;  %v1465_v6 = vadd.f32 %v1464_v27, %v2885_v24  ;;  %v1496_v42 = vpop.f32.mrb[65].mxu1  ;;  %v2189_v29 = vpop.f32.mrb[66].mxu0 }
 0x179   :  { %v1536_v45 = vmul.f32 %v2926_v33, %v1473_v36  ;;  %v1497_v47 = vadd.f32 %v1496_v42, %v2909_v38  ;;  %v1476_v48 = vadd.f32 %v2189_v29, %v2893_v46  ;;  %v2197_v49 = vpop.f32.mrb[66].mxu1  ;;  %v1467_v44 = vpop.f32.mrb[67].mxu0 }
 0x17a   :  { %v1544_v50 = vmul.f32 %v2926_v33, %v1505_v40  ;;  %v1534_v19 = vmul.f32 %v2926_v33, %v1465_v6  ;;  %v1508_v52 = vadd.f32 %v2197_v49, %v1411_v59  ;;  %v1468_v54 = vadd.f32 %v1467_v44, %v2887_v26  ;;  %v1499_v56 = vpop.f32.mrb[67].mxu1 }
 0x17b   :  { %v1559_v24 = vadd.f32 %v2934_v3, %v1536_v45  ;;  %v1542_v21 = vmul.f32 %v2926_v33, %v1497_v47  ;;  %v1537_v58 = vmul.f32 %v2926_v33, %v1476_v48  ;;  %v1500_v38 = vadd.f32 %v1499_v56, %v2911_v39 }
 0x17c   :  { %v1567_v46 = vadd.f32 %v2934_v3, %v1544_v50  ;;  %v1557_v41 = vadd.f32 %v2934_v3, %v1534_v19  ;;  %v1545_v60 = vmul.f32 %v2926_v33, %v1508_v52  ;;  %v1535_v61 = vmul.f32 %v2926_v33, %v1468_v54 }
 0x17d   :  { %v1575_v59 = vmax.f32 %v1559_v24, 0.0  ;;  %v1565_v26 = vadd.f32 %v2934_v3, %v1542_v21  ;;  %v1560_v43 = vadd.f32 %v2934_v3, %v1537_v58  ;;  %v1543_v63 = vmul.f32 %v2926_v33, %v1500_v38 }
 0x17e   :  { %v1583_v1 = vmax.f32 %v1567_v46, 0.0  ;;  %v1573_v2 = vmax.f32 %v1557_v41, 0.0  ;;  %v1568_v4 = vadd.f32 %v2934_v3, %v1545_v60  ;;  %v1558_v39 = vadd.f32 %v2934_v3, %v1535_v61  ;;  %v2192_v8 = vpop.f32.mrb[68].mxu0 }
 0x17f   :  { %v1581_v9 = vmax.f32 %v1565_v26, 0.0  ;;  %v1576_v10 = vmax.f32 %v1560_v43, 0.0  ;;  %v1566_v35 = vadd.f32 %v2934_v3, %v1543_v63  ;;  %v1489_v11 = vadd.f32 %v2192_v8, %v2903_v16  ;;  %v2200_v12 = vpop.f32.mrb[68].mxu1  ;;  %v1480_v37 = vpop.f32.mrb[69].mxu0 }
 0x180   :  { %v1584_v14 = vmax.f32 %v1568_v4, 0.0  ;;  %v1574_v15 = vmax.f32 %v1558_v39, 0.0  ;;  %v1521_v57 = vadd.f32 %v2200_v12, %v1424_v32  ;;  %v1481_v17 = vadd.f32 %v1480_v37, %v2897_v62  ;;  %v1512_v20 = vpop.f32.mrb[69].mxu1  ;;  %v2193_v22 = vpop.f32.mrb[70].mxu0 }
 0x181   :  { %v1859_v23 = vpack.c.bf16 %v1576_v10, %v1575_v59  ;;  %v1582_v25 = vmax.f32 %v1566_v35, 0.0  ;;  %v1540_v51 = vmul.f32 %v2926_v33, %v1489_v11  ;;  %v1513_v28 = vadd.f32 %v1512_v20, %v2917_v55  ;;  %v2201_v30 = vpop.f32.mrb[70].mxu1  ;;  %v1483_v31 = vpop.f32.mrb[71].mxu0 }
 0x182   :  { %v1879_v53 = vpack.c.bf16 %v1584_v14, %v1583_v1  ;;  %v1854_v5 = vpack.c.bf16 %v1574_v15, %v1573_v2  ;;  %v1548_v16 = vmul.f32 %v2926_v33, %v1521_v57  ;;  %v1538_v36 = vmul.f32 %v2926_v33, %v1481_v17  ;;  %v1515_v7 = vpop.f32.mrb[71].mxu1 }
 0x183   :  { %1891 = vst [vmem:[%s3008_s4 + $0x8] sm:$0xff] %v1859_v23   ;;  %v1874_v62 = vpack.c.bf16 %v1582_v25, %v1581_v9  ;;  %v1546_v32 = vmul.f32 %v2926_v33, %v1513_v28  ;;  %v1492_v27 = vadd.f32 %v2193_v22, %v2905_v18  ;;  %v1524_v55 = vadd.f32 %v2201_v30, %v2928_v34 }
 0x184   :  { %1895 = vst [vmem:[%s3008_s4 + $0x28] sm:$0xff] %v1879_v53   ;;  %1855 = vst [vmem:[%s3008_s4] sm:$0xff] %v1854_v5   ;;  %v1484_v40 = vadd.f32 %v1483_v31, %v2899_v0  ;;  %v1563_v6 = vadd.f32 %v2934_v3, %v1540_v51  ;;  %v1516_v42 = vadd.f32 %v1515_v7, %v2919_v13 }
 0x185   :  { %1894 = vst [vmem:[%s3008_s4 + $0x20] sm:$0xff] %v1874_v62   ;;  %v1541_v18 = vmul.f32 %v2926_v33, %v1492_v27  ;;  %v1571_v29 = vadd.f32 %v2934_v3, %v1548_v16  ;;  %v1561_v45 = vadd.f32 %v2934_v3, %v1538_v36  ;;  %v1549_v47 = vmul.f32 %v2926_v33, %v1524_v55 }
 0x186   :  { %v1539_v34 = vmul.f32 %v2926_v33, %v1484_v40  ;;  %v1569_v0 = vadd.f32 %v2934_v3, %v1546_v32  ;;  %v1547_v49 = vmul.f32 %v2926_v33, %v1516_v42  ;;  %v1579_v19 = vmax.f32 %v1563_v6, 0.0 }
 0x187   :  { %v1564_v48 = vadd.f32 %v2934_v3, %v1541_v18  ;;  %v1572_v44 = vadd.f32 %v2934_v3, %v1549_v47  ;;  %v1587_v54 = vmax.f32 %v1571_v29, 0.0  ;;  %v1577_v56 = vmax.f32 %v1561_v45, 0.0 }
 0x188   :  { %v1562_v50 = vadd.f32 %v2934_v3, %v1539_v34  ;;  %v1570_v52 = vadd.f32 %v2934_v3, %v1547_v49  ;;  %v1585_v58 = vmax.f32 %v1569_v0, 0.0 }
 0x189   :  { %v1580_v13 = vmax.f32 %v1564_v48, 0.0  ;;  %v1588_v24 = vmax.f32 %v1572_v44, 0.0 }
 0x18a   :  { %v1578_v21 = vmax.f32 %v1562_v50, 0.0  ;;  %v1586_v46 = vmax.f32 %v1570_v52, 0.0 }
 0x18b   :  { %v1869_v38 = vpack.c.bf16 %v1580_v13, %v1579_v19  ;;  %v1889_v41 = vpack.c.bf16 %v1588_v24, %v1587_v54 }
 0x18c   :  { %v1864_v60 = vpack.c.bf16 %v1578_v21, %v1577_v56  ;;  %v1884_v33 = vpack.c.bf16 %v1586_v46, %v1585_v58 }
 0x18d   :  { %1893 = vst [vmem:[%s3008_s4 + $0x18] sm:$0xff] %v1869_v38   ;;  %1897 = vst [vmem:[%s3008_s4 + $0x38] sm:$0xff] %v1889_v41  }
 0x18e   :  { %1892 = vst [vmem:[%s3008_s4 + $0x10] sm:$0xff] %v1864_v60   ;;  %1896 = vst [vmem:[%s3008_s4 + $0x30] sm:$0xff] %v1884_v33  }

// kernel: resnet_forward.16
= control target key start
LH: loop header
LB: loop body
LE: loop exit
PB: predicated region body
PF: predicated region fallthrough
CT: control target
= control target key end

     0   :  { %s331_s1 = inlined_call_operand.vmem [shape: bf16[128,128], index: 1, kind: input, shape index: {}]   ;;  %s332_s0 = inlined_call_operand.vmem [shape: bf16[32,128], index: 0, kind: input, shape index: {}]   ;;  %s333_s2 = inlined_call_operand.vmem [shape: f32[1,128], index: 2, kind: input, shape index: {}]   ;;  %s334_s3 = inlined_call_operand.vmem [shape: f32[1,128], index: 3, kind: input, shape index: {}]   ;;  %s335_s4 = inlined_call_operand.vmem [shape: bf16[32,128], index: 4, kind: output, shape index: {}]  }
   0x1   :  { %v254_v0 = vld [vmem:[%s331_s1] sm:$0xff]   ;;  %v255_v1 = vld [vmem:[%s331_s1 + $0x8] sm:$0xff]   ;;  %v256_v2 = vld [vmem:[%s331_s1 + $0x10] sm:$0xff]  }
   0x2   :  { %234 = vmatprep.subr.bf16.mxu0 %v254_v0  ;;  %v257_v3 = vld [vmem:[%s331_s1 + $0x18] sm:$0xff]   ;;  %v262_v4 = vld [vmem:[%s332_s0] sm:$0xff]   ;;  %v259_v6 = vld [vmem:[%s331_s1 + $0x28] sm:$0xff]  }
   0x3   :  { %235 = vmatpush3.bf16.msra.mxu0 %v254_v0  ;;  %250 = vmatprep.mubr.bf16.mxu0 %v262_v4  ;;  %v258_v5 = vld [vmem:[%s331_s1 + $0x20] sm:$0xff]   ;;  %v260_v7 = vld [vmem:[%s331_s1 + $0x30] sm:$0xff]   ;;  %v261_v8 = vld [vmem:[%s331_s1 + $0x38] sm:$0xff]  }
   0x4   :  { %236 = vmatprep.subr.bf16.mxu0 %v255_v1  ;;  %v263_v9 = vld [vmem:[%s332_s0 + $0x8] sm:$0xff]   ;;  %v203_v10 = vld [vmem:[%s333_s2] ss:$0 sm:$0xff] }
   0x5   :  { %v204_v14 = vld [vmem:[%s334_s3] ss:$0 sm:$0xff] }
   0x7   :  { %237 = vmatpush3.bf16.msra.mxu0 %v255_v1 }
   0x8   :  { %238 = vmatprep.subr.bf16.mxu0 %v256_v2 }
   0xb   :  { %239 = vmatpush3.bf16.msra.mxu0 %v256_v2 }
   0xc   :  { %240 = vmatprep.subr.bf16.mxu0 %v257_v3 }
   0xf   :  { %241 = vmatpush3.bf16.msra.mxu0 %v257_v3 }
  0x10   :  { %242 = vmatprep.subr.bf16.mxu0 %v258_v5 }
  0x13   :  { %243 = vmatpush3.bf16.msra.mxu0 %v258_v5 }
  0x14   :  { %244 = vmatprep.subr.bf16.mxu0 %v259_v6 }
  0x17   :  { %245 = vmatpush3.bf16.msra.mxu0 %v259_v6 }
  0x18   :  { %246 = vmatprep.subr.bf16.mxu0 %v260_v7 }
  0x1b   :  { %247 = vmatpush3.bf16.msra.mxu0 %v260_v7 }
  0x1c   :  { %248 = vmatprep.subr.bf16.mxu0 %v261_v8 }
  0x1f   :  { %249 = vmatpush3.bf16.msra.mxu0 %v261_v8 }
  0x22   :  { %251 = vmatmul.mubr.bf16.vlgmr.msra.gmra.mrb[0].mxu0 %v263_v9 }
  0xf5   :  { %v252_v11 = vpop.f32.mrb[0].mxu0 }
  0xf6   :  { %v156_v12 = vmul.f32 %v252_v11, %v203_v10  ;;  %v132_v13 = vpop.f32.mrb[1].mxu0 }
  0xf7   :  { %v154_v15 = vmul.f32 %v203_v10, %v132_v13  ;;  %v253_v16 = vpop.f32.mrb[2].mxu0 }
  0xf8   :  { %v157_v17 = vmul.f32 %v253_v16, %v203_v10  ;;  %v135_v18 = vpop.f32.mrb[3].mxu0  ;;  %v167_v20 = vadd.f32 %v204_v14, %v156_v12 }
  0xf9   :  { %v155_v19 = vmul.f32 %v203_v10, %v135_v18  ;;  %v165_v22 = vadd.f32 %v204_v14, %v154_v15 }
  0xfa   :  { %v168_v21 = vadd.f32 %v204_v14, %v157_v17 }
  0xfb   :  { %v166_v23 = vadd.f32 %v204_v14, %v155_v19 }
  0xfc   :  { %v221_v24 = vpack.c.bf16 %v168_v21, %v167_v20 }
  0xfd   :  { %v216_v25 = vpack.c.bf16 %v166_v23, %v165_v22 }
  0xfe   :  { %223 = vst [vmem:[%s335_s4 + $0x8] sm:$0xff] %v221_v24  }
  0xff   :  { %217 = vst [vmem:[%s335_s4] sm:$0xff] %v216_v25  }

// kernel: resnet_forward.14
= control target key start
LH: loop header
LB: loop body
LE: loop exit
PB: predicated region body
PF: predicated region fallthrough
CT: control target
= control target key end

     0   :  { %s3169_s1 = inlined_call_operand.vmem [shape: bf16[1152,128], index: 1, kind: input, shape index: {}]   ;;  %s3170_s0 = inlined_call_operand.vmem [shape: bf16[128,1152], index: 0, kind: input, shape index: {}]   ;;  %s3171_s4 = inlined_call_operand.vmem [shape: bf16[128,128], index: 4, kind: input, shape index: {}]   ;;  %s3172_s2 = inlined_call_operand.vmem [shape: f32[1,128], index: 2, kind: input, shape index: {}]   ;;  %s3173_s3 = inlined_call_operand.vmem [shape: f32[1,128], index: 3, kind: input, shape index: {}]   ;;  %s3174_s5 = inlined_call_operand.vmem [shape: bf16[128,128], index: 5, kind: output, shape index: {}]  }
   0x1   :  { %v2308_v0 = vld [vmem:[%s3169_s1 + $0x40] sm:$0xff]   ;;  %v2312_v4 = vld [vmem:[%s3169_s1 + $0x48] sm:$0xff]   ;;  %v2316_v8 = vld [vmem:[%s3169_s1 + $0x50] sm:$0xff]  }
   0x2   :  { %v2309_v1 = vld [vmem:[%s3169_s1 + $0xc0] sm:$0xff]   ;;  %1988 = vmatprep.subr.bf16.mxu0 %v2308_v0  ;;  %v2313_v5 = vld [vmem:[%s3169_s1 + $0xc8] sm:$0xff]   ;;  %v2317_v9 = vld [vmem:[%s3169_s1 + $0xd0] sm:$0xff]  }
   0x3   :  { %v2310_v2 = vld [vmem:[%s3169_s1] sm:$0xff]   ;;  %2052 = vmatprep.subr.bf16.mxu1 %v2309_v1  ;;  %v2314_v6 = vld [vmem:[%s3169_s1 + $0x8] sm:$0xff]   ;;  %v2318_v10 = vld [vmem:[%s3169_s1 + $0x10] sm:$0xff]  }
   0x4   :  { %v2311_v3 = vld [vmem:[%s3169_s1 + $0x80] sm:$0xff]   ;;  %1989 = vmatpush3.bf16.msra.mxu0 %v2310_v2  ;;  %v2315_v7 = vld [vmem:[%s3169_s1 + $0x88] sm:$0xff]   ;;  %v2319_v11 = vld [vmem:[%s3169_s1 + $0x90] sm:$0xff]  }
   0x5   :  { %2053 = vmatpush3.bf16.msra.mxu1 %v2311_v3  ;;  %1990 = vmatprep.subr.bf16.mxu0 %v2312_v4  ;;  %v2320_v12 = vld [vmem:[%s3169_s1 + $0x58] sm:$0xff]   ;;  %v2324_v16 = vld [vmem:[%s3169_s1 + $0x60] sm:$0xff]   ;;  %v2328_v20 = vld [vmem:[%s3169_s1 + $0x68] sm:$0xff]  }
   0x6   :  { %2054 = vmatprep.subr.bf16.mxu1 %v2313_v5  ;;  %v2321_v13 = vld [vmem:[%s3169_s1 + $0xd8] sm:$0xff]   ;;  %v2325_v17 = vld [vmem:[%s3169_s1 + $0xe0] sm:$0xff]   ;;  %v2329_v21 = vld [vmem:[%s3169_s1 + $0xe8] sm:$0xff]  }
   0x7   :  { %v2322_v14 = vld [vmem:[%s3169_s1 + $0x18] sm:$0xff]   ;;  %v2326_v18 = vld [vmem:[%s3169_s1 + $0x20] sm:$0xff]   ;;  %v2330_v22 = vld [vmem:[%s3169_s1 + $0x28] sm:$0xff]  }
   0x8   :  { %1991 = vmatpush3.bf16.msra.mxu0 %v2314_v6  ;;  %v2323_v15 = vld [vmem:[%s3169_s1 + $0x98] sm:$0xff]   ;;  %v2327_v19 = vld [vmem:[%s3169_s1 + $0xa0] sm:$0xff]   ;;  %v2331_v23 = vld [vmem:[%s3169_s1 + $0xa8] sm:$0xff]  }
   0x9   :  { %2055 = vmatpush3.bf16.msra.mxu1 %v2315_v7  ;;  %1992 = vmatprep.subr.bf16.mxu0 %v2316_v8  ;;  %v2332_v24 = vld [vmem:[%s3169_s1 + $0x70] sm:$0xff]   ;;  %v2336_v28 = vld [vmem:[%s3169_s1 + $0x78] sm:$0xff]   ;;  %v2340_v32 = vld [vmem:[%s3170_s0] ss:$36 sps:$4 sm:$0xff]  }
   0xa   :  { %2056 = vmatprep.subr.bf16.mxu1 %v2317_v9  ;;  %v2333_v25 = vld [vmem:[%s3169_s1 + $0xf0] sm:$0xff]   ;;  %v2337_v29 = vld [vmem:[%s3169_s1 + $0xf8] sm:$0xff]   ;;  %v2342_v33 = vld [vmem:[%s3170_s0 + $0x4] ss:$36 sps:$4 sm:$0xff]  }
   0xb   :  { %v2334_v26 = vld [vmem:[%s3169_s1 + $0x30] sm:$0xff]   ;;  %v2338_v30 = vld [vmem:[%s3169_s1 + $0x38] sm:$0xff]   ;;  %v2343_v34 = vld [vmem:[%s3170_s0 + $0x8] ss:$36 sps:$4 sm:$0xff]   ;;  %1077 = vmatprep.mubr.bf16.mxu0 %v2342_v33 }
   0xc   :  { %1993 = vmatpush3.bf16.msra.mxu0 %v2318_v10  ;;  %v2335_v27 = vld [vmem:[%s3169_s1 + $0xb0] sm:$0xff]   ;;  %v2339_v31 = vld [vmem:[%s3169_s1 + $0xb8] sm:$0xff]   ;;  %v2346_v36 = vld [vmem:[%s3169_s1 + $0x140] sm:$0xff]  }
   0xd   :  { %2057 = vmatpush3.bf16.msra.mxu1 %v2319_v11  ;;  %1994 = vmatprep.subr.bf16.mxu0 %v2320_v12  ;;  %v2345_v35 = vld [vmem:[%s3170_s0 + $0xc] ss:$36 sps:$4 sm:$0xff]   ;;  %v2347_v37 = vld [vmem:[%s3169_s1 + $0x1c0] sm:$0xff]   ;;  %v2352_v41 = vld [vmem:[%s3170_s0 + $0x54] ss:$36 sps:$4 sm:$0xff]  }
   0xe   :  { %2058 = vmatprep.subr.bf16.mxu1 %v2321_v13  ;;  %1174 = vmatprep.mubr.bf16.mxu1 %v2345_v35  ;;  %v2348_v38 = vld [vmem:[%s3169_s1 + $0x100] sm:$0xff]   ;;  %v2350_v40 = vld [vmem:[%s3170_s0 + $0x4c] ss:$36 sps:$4 sm:$0xff]   ;;  %v2360_v48 = vld [vmem:[%s3170_s0 + $0x94] ss:$36 sps:$4 sm:$0xff]  }
   0xf   :  { %v2349_v39 = vld [vmem:[%s3169_s1 + $0x180] sm:$0xff]   ;;  %v2354_v42 = vld [vmem:[%s3170_s0 + $0x48] ss:$36 sps:$4 sm:$0xff]   ;;  %v2355_v43 = vld [vmem:[%s3170_s0 + $0x50] ss:$36 sps:$4 sm:$0xff]  }
  0x10   :  { %1995 = vmatpush3.bf16.msra.mxu0 %v2322_v14  ;;  %v2356_v44 = vld [vmem:[%s3169_s1 + $0x148] sm:$0xff]   ;;  %v2362_v49 = vld [vmem:[%s3170_s0 + $0x9c] ss:$36 sps:$4 sm:$0xff]   ;;  %v2364_v50 = vld [vmem:[%s3170_s0 + $0x90] ss:$36 sps:$4 sm:$0xff]  }
  0x11   :  { %2059 = vmatpush3.bf16.msra.mxu1 %v2323_v15  ;;  %1996 = vmatprep.subr.bf16.mxu0 %v2324_v16  ;;  %v2357_v45 = vld [vmem:[%s3169_s1 + $0x1c8] sm:$0xff]   ;;  %v2365_v51 = vld [vmem:[%s3170_s0 + $0x98] ss:$36 sps:$4 sm:$0xff]   ;;  %v2366_v52 = vld [vmem:[%s3169_s1 + $0x150] sm:$0xff]  }
  0x12   :  { %2060 = vmatprep.subr.bf16.mxu1 %v2325_v17  ;;  %v2358_v46 = vld [vmem:[%s3169_s1 + $0x108] sm:$0xff]   ;;  %v2367_v53 = vld [vmem:[%s3169_s1 + $0x1d0] sm:$0xff]   ;;  %v2370_v56 = vld [vmem:[%s3170_s0 + $0xdc] ss:$36 sps:$4 sm:$0xff]  }
  0x13   :  { %v2359_v47 = vld [vmem:[%s3169_s1 + $0x188] sm:$0xff]   ;;  %v2368_v54 = vld [vmem:[%s3169_s1 + $0x110] sm:$0xff]   ;;  %v2374_v58 = vld [vmem:[%s3170_s0 + $0xd8] ss:$36 sps:$4 sm:$0xff]  }
  0x14   :  { %1997 = vmatpush3.bf16.msra.mxu0 %v2326_v18  ;;  %v2369_v55 = vld [vmem:[%s3169_s1 + $0x190] sm:$0xff]   ;;  %v2372_v57 = vld [vmem:[%s3170_s0 + $0xe4] ss:$36 sps:$4 sm:$0xff]   ;;  %v2376_v60 = vld [vmem:[%s3169_s1 + $0x158] sm:$0xff]  }
  0x15   :  { %2061 = vmatpush3.bf16.msra.mxu1 %v2327_v19  ;;  %1998 = vmatprep.subr.bf16.mxu0 %v2328_v20  ;;  %v2375_v59 = vld [vmem:[%s3170_s0 + $0xe0] ss:$36 sps:$4 sm:$0xff]   ;;  %v2377_v61 = vld [vmem:[%s3169_s1 + $0x1d8] sm:$0xff]   ;;  %v2382_v1 = vld [vmem:[%s3170_s0 + $0x12c] ss:$36 sps:$4 sm:$0xff]  }
  0x16   :  { %2062 = vmatprep.subr.bf16.mxu1 %v2329_v21  ;;  %v2378_v62 = vld [vmem:[%s3169_s1 + $0x118] sm:$0xff]   ;;  %v2380_v0 = vld [vmem:[%s3170_s0 + $0x124] ss:$36 sps:$4 sm:$0xff]   ;;  %v2390_v8 = vld [vmem:[%s3170_s0 + $0x16c] ss:$36 sps:$4 sm:$0xff]  }
  0x17   :  { %v2379_v63 = vld [vmem:[%s3169_s1 + $0x198] sm:$0xff]   ;;  %v2384_v2 = vld [vmem:[%s3170_s0 + $0x120] ss:$36 sps:$4 sm:$0xff]   ;;  %v2385_v4 = vld [vmem:[%s3170_s0 + $0x128] ss:$36 sps:$4 sm:$0xff]  }
  0x18   :  { %1999 = vmatpush3.bf16.msra.mxu0 %v2330_v22  ;;  %v2386_v3 = vld [vmem:[%s3169_s1 + $0x160] sm:$0xff]   ;;  %v2392_v9 = vld [vmem:[%s3170_s0 + $0x174] ss:$36 sps:$4 sm:$0xff]   ;;  %v2396_v10 = vld [vmem:[%s3169_s1 + $0x168] sm:$0xff]  }
  0x19   :  { %2063 = vmatpush3.bf16.msra.mxu1 %v2331_v23  ;;  %2000 = vmatprep.subr.bf16.mxu0 %v2332_v24  ;;  %v2387_v5 = vld [vmem:[%s3169_s1 + $0x1e0] sm:$0xff]   ;;  %v2397_v11 = vld [vmem:[%s3169_s1 + $0x1e8] sm:$0xff]   ;;  %v2395_v15 = vld [vmem:[%s3170_s0 + $0x170] ss:$36 sps:$4 sm:$0xff]  }
  0x1a   :  { %2064 = vmatprep.subr.bf16.mxu1 %v2333_v25  ;;  %v2388_v6 = vld [vmem:[%s3169_s1 + $0x120] sm:$0xff]   ;;  %v2394_v12 = vld [vmem:[%s3170_s0 + $0x168] ss:$36 sps:$4 sm:$0xff]   ;;  %v2400_v16 = vld [vmem:[%s3170_s0 + $0x1b4] ss:$36 sps:$4 sm:$0xff]  }
  0x1b   :  { %v2389_v7 = vld [vmem:[%s3169_s1 + $0x1a0] sm:$0xff]   ;;  %v2398_v13 = vld [vmem:[%s3169_s1 + $0x128] sm:$0xff]   ;;  %v2406_v18 = vld [vmem:[%s3169_s1 + $0x170] sm:$0xff]  }
  0x1c   :  { %2001 = vmatpush3.bf16.msra.mxu0 %v2334_v26  ;;  %v2399_v14 = vld [vmem:[%s3169_s1 + $0x1a8] sm:$0xff]   ;;  %v2402_v17 = vld [vmem:[%s3170_s0 + $0x1bc] ss:$36 sps:$4 sm:$0xff]   ;;  %v2407_v19 = vld [vmem:[%s3169_s1 + $0x1f0] sm:$0xff]  }
  0x1d   :  { %2065 = vmatpush3.bf16.msra.mxu1 %v2335_v27  ;;  %2002 = vmatprep.subr.bf16.mxu0 %v2336_v28  ;;  %v2408_v20 = vld [vmem:[%s3169_s1 + $0x130] sm:$0xff]   ;;  %v2405_v23 = vld [vmem:[%s3170_s0 + $0x1b8] ss:$36 sps:$4 sm:$0xff]   ;;  %v2412_v25 = vld [vmem:[%s3170_s0 + $0x204] ss:$36 sps:$4 sm:$0xff]  }
  0x1e   :  { %2066 = vmatprep.subr.bf16.mxu1 %v2337_v29  ;;  %v2409_v21 = vld [vmem:[%s3169_s1 + $0x1b0] sm:$0xff]   ;;  %v2410_v24 = vld [vmem:[%s3170_s0 + $0x1fc] ss:$36 sps:$4 sm:$0xff]  }
  0x1f   :  { %v2404_v22 = vld [vmem:[%s3170_s0 + $0x1b0] ss:$36 sps:$4 sm:$0xff]   ;;  %v2416_v26 = vld [vmem:[%s3169_s1 + $0x178] sm:$0xff]  }
  0x20   :  { %2003 = vmatpush3.bf16.msra.mxu0 %v2338_v30  ;;  %v2417_v27 = vld [vmem:[%s3169_s1 + $0x1f8] sm:$0xff]   ;;  %v2420_v35 = vld [vmem:[%s3170_s0 + $0x10] ss:$36 sps:$4 sm:$0xff]  }
  0x21   :  { %2067 = vmatpush3.bf16.msra.mxu1 %v2339_v31  ;;  %2116 = vmatprep.subr.bf16.mxu0 %v2346_v36  ;;  %v2418_v28 = vld [vmem:[%s3169_s1 + $0x138] sm:$0xff]   ;;  %v2415_v31 = vld [vmem:[%s3170_s0 + $0x200] ss:$36 sps:$4 sm:$0xff]  }
  0x22   :  { %2180 = vmatprep.subr.bf16.mxu1 %v2347_v37  ;;  %v2419_v29 = vld [vmem:[%s3169_s1 + $0x1b8] sm:$0xff]  }
  0x23   :  { %1078 = vmatmul.mubr.bf16.vlgmr.msra.gmra.mrb[0].mxu0 %v2340_v32  ;;  %v2414_v30 = vld [vmem:[%s3170_s0 + $0x1f8] ss:$36 sps:$4 sm:$0xff]   ;;  %v2426_v32 = vld [vmem:[%s3169_s1 + $0x200] sm:$0xff]  }
  0x24   :  { %1175 = vmatmul.mubr.bf16.vlgmr.msra.gmra.mrb[0].mxu1 %v2343_v34  ;;  %2117 = vmatpush3.bf16.msra.mxu0 %v2348_v38  ;;  %v2422_v33 = vld [vmem:[%s3170_s0 + $0x14] ss:$36 sps:$4 sm:$0xff]   ;;  %v2425_v34 = vld [vmem:[%s3170_s0 + $0x1c] ss:$36 sps:$4 sm:$0xff]   ;;  %v2429_v38 = vld [vmem:[%s3170_s0 + $0x64] ss:$36 sps:$4 sm:$0xff]  }
  0x25   :  { %2181 = vmatpush3.bf16.msra.mxu1 %v2349_v39  ;;  %1085 = vmatprep.mubr.bf16.mxu0 %v2350_v40  ;;  %v2423_v36 = vld [vmem:[%s3170_s0 + $0x18] ss:$36 sps:$4 sm:$0xff]   ;;  %v2433_v39 = vld [vmem:[%s3169_s1 + $0x208] sm:$0xff]   ;;  %v2440_v40 = vld [vmem:[%s3169_s1 + $0x210] sm:$0xff]  }
  0x26   :  { %1182 = vmatprep.mubr.bf16.mxu1 %v2352_v41  ;;  %2118 = vmatprep.subr.bf16.mxu0 %v2356_v44  ;;  %v2427_v37 = vld [vmem:[%s3170_s0 + $0x5c] ss:$36 sps:$4 sm:$0xff]   ;;  %v2436_v44 = vld [vmem:[%s3170_s0 + $0xac] ss:$36 sps:$4 sm:$0xff]  }
  0x27   :  { %2182 = vmatprep.subr.bf16.mxu1 %v2357_v45  ;;  %v2431_v41 = vld [vmem:[%s3170_s0 + $0x58] ss:$36 sps:$4 sm:$0xff]  }
  0x28   :  { %2119 = vmatpush3.bf16.msra.mxu0 %v2358_v46  ;;  %v2447_v45 = vld [vmem:[%s3169_s1 + $0x218] sm:$0xff]   ;;  %v2454_v46 = vld [vmem:[%s3169_s1 + $0x220] sm:$0xff]  }
  0x29   :  { %2183 = vmatpush3.bf16.msra.mxu1 %v2359_v47  ;;  %2120 = vmatprep.subr.bf16.mxu0 %v2366_v52  ;;  %v2438_v47 = vld [vmem:[%s3170_s0 + $0xa0] ss:$36 sps:$4 sm:$0xff]   ;;  %v2445_v52 = vld [vmem:[%s3170_s0 + $0xe8] ss:$36 sps:$4 sm:$0xff]  }
  0x2a   :  { %2184 = vmatprep.subr.bf16.mxu1 %v2367_v53  ;;  %v2468_v53 = vld [vmem:[%s3169_s1 + $0x230] sm:$0xff]  }
  0x2b   :  { %1086 = vmatmul.mubr.bf16.gmra.mrb[4].mxu0 %v2354_v42  ;;  %v2432_v42 = vld [vmem:[%s3170_s0 + $0x60] ss:$36 sps:$4 sm:$0xff]  }
  0x2c   :  { %1183 = vmatmul.mubr.bf16.gmra.mrb[4].mxu1 %v2355_v43  ;;  %1093 = vmatprep.mubr.bf16.mxu0 %v2360_v48  ;;  %v2434_v43 = vld [vmem:[%s3170_s0 + $0xa4] ss:$36 sps:$4 sm:$0xff]  }
  0x2d   :  { %1190 = vmatprep.mubr.bf16.mxu1 %v2362_v49  ;;  %2121 = vmatpush3.bf16.msra.mxu0 %v2368_v54  ;;  %v2439_v48 = vld [vmem:[%s3170_s0 + $0xa8] ss:$36 sps:$4 sm:$0xff]   ;;  %v2446_v54 = vld [vmem:[%s3170_s0 + $0xf0] ss:$36 sps:$4 sm:$0xff]  }
  0x2e   :  { %2185 = vmatpush3.bf16.msra.mxu1 %v2369_v55  ;;  %2122 = vmatprep.subr.bf16.mxu0 %v2376_v60  ;;  %v2441_v49 = vld [vmem:[%s3170_s0 + $0xec] ss:$36 sps:$4 sm:$0xff]   ;;  %v2448_v55 = vld [vmem:[%s3170_s0 + $0x134] ss:$36 sps:$4 sm:$0xff]   ;;  %v2455_v60 = vld [vmem:[%s3170_s0 + $0x17c] ss:$36 sps:$4 sm:$0xff]  }
  0x2f   :  { %2186 = vmatprep.subr.bf16.mxu1 %v2377_v61  ;;  %v2457_v61 = vld [vmem:[%s3170_s0 + $0x184] ss:$36 sps:$4 sm:$0xff]  }
  0x31   :  { %2123 = vmatpush3.bf16.msra.mxu0 %v2378_v62  ;;  %v2459_v62 = vld [vmem:[%s3170_s0 + $0x178] ss:$36 sps:$4 sm:$0xff]  }
  0x32   :  { %2187 = vmatpush3.bf16.msra.mxu1 %v2379_v63  ;;  %2124 = vmatprep.subr.bf16.mxu0 %v2386_v3  ;;  %v2460_v63 = vld [vmem:[%s3170_s0 + $0x180] ss:$36 sps:$4 sm:$0xff]   ;;  %v2467_v3 = vld [vmem:[%s3170_s0 + $0x1c8] ss:$36 sps:$4 sm:$0xff]  }
  0x33   :  { %1094 = vmatmul.mubr.bf16.gmra.mrb[8].mxu0 %v2364_v50  ;;  %2188 = vmatprep.subr.bf16.mxu1 %v2387_v5  ;;  %v2443_v50 = vld [vmem:[%s3170_s0 + $0xf4] ss:$36 sps:$4 sm:$0xff]  }
  0x34   :  { %1191 = vmatmul.mubr.bf16.gmra.mrb[8].mxu1 %v2365_v51  ;;  %1101 = vmatprep.mubr.bf16.mxu0 %v2370_v56  ;;  %v2461_v51 = vld [vmem:[%s3169_s1 + $0x228] sm:$0xff]   ;;  %v2450_v56 = vld [vmem:[%s3170_s0 + $0x13c] ss:$36 sps:$4 sm:$0xff]   ;;  %v2471_v5 = vld [vmem:[%s3170_s0 + $0x214] ss:$36 sps:$4 sm:$0xff]  }
  0x35   :  { %1198 = vmatprep.mubr.bf16.mxu1 %v2372_v57  ;;  %2125 = vmatpush3.bf16.msra.mxu0 %v2388_v6  ;;  %v2475_v57 = vld [vmem:[%s3169_s1 + $0x238] sm:$0xff]   ;;  %v2473_v6 = vld [vmem:[%s3170_s0 + $0x208] ss:$36 sps:$4 sm:$0xff]  }
  0x36   :  { %2189 = vmatpush3.bf16.msra.mxu1 %v2389_v7  ;;  %2126 = vmatprep.subr.bf16.mxu0 %v2396_v10  ;;  %v2474_v7 = vld [vmem:[%s3170_s0 + $0x210] ss:$36 sps:$4 sm:$0xff]   ;;  %v2478_v10 = vld [vmem:[%s3170_s0 + $0x68] ss:$36 sps:$4 sm:$0xff]  }
  0x37   :  { %2190 = vmatprep.subr.bf16.mxu1 %v2397_v11  ;;  %v2479_v11 = vld [vmem:[%s3170_s0 + $0x188] ss:$36 sps:$4 sm:$0xff]  }
  0x39   :  { %2127 = vmatpush3.bf16.msra.mxu0 %v2398_v13  ;;  %v2481_v13 = vld [vmem:[%s3170_s0 + $0x1d0] ss:$36 sps:$4 sm:$0xff]  }
  0x3a   :  { %2191 = vmatpush3.bf16.msra.mxu1 %v2399_v14  ;;  %2128 = vmatprep.subr.bf16.mxu0 %v2406_v18  ;;  %v2482_v14 = vld [vmem:[%s3170_s0 + $0xf8] ss:$36 sps:$4 sm:$0xff]  }
  0x3b   :  { %1102 = vmatmul.mubr.bf16.gmra.mrb[12].mxu0 %v2374_v58  ;;  %2192 = vmatprep.subr.bf16.mxu1 %v2407_v19  ;;  %v2452_v58 = vld [vmem:[%s3170_s0 + $0x130] ss:$36 sps:$4 sm:$0xff]  }
  0x3c   :  { %1199 = vmatmul.mubr.bf16.gmra.mrb[12].mxu1 %v2375_v59  ;;  %1109 = vmatprep.mubr.bf16.mxu0 %v2380_v0  ;;  %v2453_v59 = vld [vmem:[%s3170_s0 + $0x138] ss:$36 sps:$4 sm:$0xff]   ;;  %v2462_v0 = vld [vmem:[%s3170_s0 + $0x1c4] ss:$36 sps:$4 sm:$0xff]  }
  0x3d   :  { %1206 = vmatprep.mubr.bf16.mxu1 %v2382_v1  ;;  %2129 = vmatpush3.bf16.msra.mxu0 %v2408_v20  ;;  %v2464_v1 = vld [vmem:[%s3170_s0 + $0x1cc] ss:$36 sps:$4 sm:$0xff]  }
  0x3e   :  { %2193 = vmatpush3.bf16.msra.mxu1 %v2409_v21  ;;  %2130 = vmatprep.subr.bf16.mxu0 %v2416_v26 }
  0x3f   :  { %2194 = vmatprep.subr.bf16.mxu1 %v2417_v27 }
  0x41   :  { %2131 = vmatpush3.bf16.msra.mxu0 %v2418_v28 }
  0x42   :  { %2195 = vmatpush3.bf16.msra.mxu1 %v2419_v29  ;;  %2260 = vmatprep.subr.bf16.mxu0 %v2426_v32 }
  0x43   :  { %1110 = vmatmul.mubr.bf16.gmra.mrb[16].mxu0 %v2384_v2  ;;  %2292 = vmatprep.subr.bf16.mxu1 %v2426_v32  ;;  %v2466_v2 = vld [vmem:[%s3170_s0 + $0x1c0] ss:$36 sps:$4 sm:$0xff]  }
  0x44   :  { %1207 = vmatmul.mubr.bf16.gmra.mrb[16].mxu1 %v2385_v4  ;;  %1117 = vmatprep.mubr.bf16.mxu0 %v2390_v8  ;;  %v2469_v4 = vld [vmem:[%s3170_s0 + $0x20c] ss:$36 sps:$4 sm:$0xff]   ;;  %v2476_v8 = vld [vmem:[%s3170_s0 + $0x20] ss:$36 sps:$4 sm:$0xff]  }
  0x45   :  { %1214 = vmatprep.mubr.bf16.mxu1 %v2392_v9  ;;  %v2477_v9 = vld [vmem:[%s3170_s0 + $0x140] ss:$36 sps:$4 sm:$0xff]  }
  0x4b   :  { %1118 = vmatmul.mubr.bf16.gmra.mrb[20].mxu0 %v2394_v12  ;;  %v2480_v12 = vld [vmem:[%s3170_s0 + $0xb0] ss:$36 sps:$4 sm:$0xff]  }
  0x4c   :  { %1215 = vmatmul.mubr.bf16.gmra.mrb[20].mxu1 %v2395_v15  ;;  %1125 = vmatprep.mubr.bf16.mxu0 %v2400_v16  ;;  %v2483_v15 = vld [vmem:[%s3170_s0 + $0x218] ss:$36 sps:$4 sm:$0xff]  }
  0x4d   :  { %1222 = vmatprep.mubr.bf16.mxu1 %v2402_v17 }
  0x53   :  { %1126 = vmatmul.mubr.bf16.gmra.mrb[24].mxu0 %v2404_v22 }
  0x54   :  { %1223 = vmatmul.mubr.bf16.gmra.mrb[24].mxu1 %v2405_v23  ;;  %1133 = vmatprep.mubr.bf16.mxu0 %v2410_v24 }
  0x55   :  { %1230 = vmatprep.mubr.bf16.mxu1 %v2412_v25 }
  0x5b   :  { %1134 = vmatmul.mubr.bf16.gmra.mrb[28].mxu0 %v2414_v30 }
  0x5c   :  { %1231 = vmatmul.mubr.bf16.gmra.mrb[28].mxu1 %v2415_v31  ;;  %1271 = vmatprep.mubr.bf16.mxu0 %v2422_v33 }
  0x5d   :  { %1368 = vmatprep.mubr.bf16.mxu1 %v2425_v34 }
  0x63   :  { %1272 = vmatmul.mubr.bf16.vlgmr.msra.gmra.mrb[32].mxu0 %v2420_v35 }
  0x64   :  { %1369 = vmatmul.mubr.bf16.vlgmr.msra.gmra.mrb[32].mxu1 %v2423_v36  ;;  %2261 = vmatpush3.bf16.msra.mxu0 %v2426_v32 }
  0x65   :  { %2300 = vmatpush3.bf16.msra.mxu1 %v2426_v32  ;;  %1279 = vmatprep.mubr.bf16.mxu0 %v2427_v37 }
  0x66   :  { %1376 = vmatprep.mubr.bf16.mxu1 %v2429_v38  ;;  %2262 = vmatprep.subr.bf16.mxu0 %v2433_v39 }
  0x67   :  { %2293 = vmatprep.subr.bf16.mxu1 %v2433_v39 }
  0x68   :  { %2263 = vmatpush3.bf16.msra.mxu0 %v2433_v39 }
  0x69   :  { %2301 = vmatpush3.bf16.msra.mxu1 %v2433_v39  ;;  %2264 = vmatprep.subr.bf16.mxu0 %v2440_v40 }
  0x6a   :  { %2294 = vmatprep.subr.bf16.mxu1 %v2440_v40 }
  0x6b   :  { %1280 = vmatmul.mubr.bf16.gmra.mrb[36].mxu0 %v2431_v41 }
  0x6c   :  { %1377 = vmatmul.mubr.bf16.gmra.mrb[36].mxu1 %v2432_v42  ;;  %1287 = vmatprep.mubr.bf16.mxu0 %v2434_v43 }
  0x6d   :  { %1384 = vmatprep.mubr.bf16.mxu1 %v2436_v44  ;;  %2265 = vmatpush3.bf16.msra.mxu0 %v2440_v40 }
  0x6e   :  { %2302 = vmatpush3.bf16.msra.mxu1 %v2440_v40  ;;  %2266 = vmatprep.subr.bf16.mxu0 %v2447_v45 }
  0x6f   :  { %2295 = vmatprep.subr.bf16.mxu1 %v2447_v45 }
  0x71   :  { %2267 = vmatpush3.bf16.msra.mxu0 %v2447_v45 }
  0x72   :  { %2303 = vmatpush3.bf16.msra.mxu1 %v2447_v45  ;;  %2268 = vmatprep.subr.bf16.mxu0 %v2454_v46 }
  0x73   :  { %1288 = vmatmul.mubr.bf16.gmra.mrb[40].mxu0 %v2438_v47  ;;  %2296 = vmatprep.subr.bf16.mxu1 %v2454_v46 }
  0x74   :  { %1385 = vmatmul.mubr.bf16.gmra.mrb[40].mxu1 %v2439_v48  ;;  %1295 = vmatprep.mubr.bf16.mxu0 %v2441_v49 }
  0x75   :  { %1392 = vmatprep.mubr.bf16.mxu1 %v2443_v50  ;;  %2269 = vmatpush3.bf16.msra.mxu0 %v2454_v46 }
  0x76   :  { %2304 = vmatpush3.bf16.msra.mxu1 %v2454_v46  ;;  %2270 = vmatprep.subr.bf16.mxu0 %v2461_v51 }
  0x77   :  { %2297 = vmatprep.subr.bf16.mxu1 %v2461_v51 }
  0x79   :  { %2271 = vmatpush3.bf16.msra.mxu0 %v2461_v51 }
  0x7a   :  { %2305 = vmatpush3.bf16.msra.mxu1 %v2461_v51  ;;  %2272 = vmatprep.subr.bf16.mxu0 %v2468_v53 }
  0x7b   :  { %1296 = vmatmul.mubr.bf16.gmra.mrb[44].mxu0 %v2445_v52  ;;  %2298 = vmatprep.subr.bf16.mxu1 %v2468_v53 }
  0x7c   :  { %1393 = vmatmul.mubr.bf16.gmra.mrb[44].mxu1 %v2446_v54  ;;  %1303 = vmatprep.mubr.bf16.mxu0 %v2448_v55 }
  0x7d   :  { %1400 = vmatprep.mubr.bf16.mxu1 %v2450_v56  ;;  %2273 = vmatpush3.bf16.msra.mxu0 %v2468_v53 }
  0x7e   :  { %2306 = vmatpush3.bf16.msra.mxu1 %v2468_v53  ;;  %2274 = vmatprep.subr.bf16.mxu0 %v2475_v57 }
  0x7f   :  { %2299 = vmatprep.subr.bf16.mxu1 %v2475_v57 }
  0x81   :  { %2275 = vmatpush3.bf16.msra.mxu0 %v2475_v57 }
  0x82   :  { %2307 = vmatpush3.bf16.msra.mxu1 %v2475_v57 }
  0x83   :  { %1304 = vmatmul.mubr.bf16.gmra.mrb[48].mxu0 %v2452_v58 }
  0x84   :  { %1401 = vmatmul.mubr.bf16.gmra.mrb[48].mxu1 %v2453_v59  ;;  %1311 = vmatprep.mubr.bf16.mxu0 %v2455_v60 }
  0x85   :  { %1408 = vmatprep.mubr.bf16.mxu1 %v2457_v61 }
  0x8b   :  { %1312 = vmatmul.mubr.bf16.gmra.mrb[52].mxu0 %v2459_v62 }
  0x8c   :  { %1409 = vmatmul.mubr.bf16.gmra.mrb[52].mxu1 %v2460_v63  ;;  %1319 = vmatprep.mubr.bf16.mxu0 %v2462_v0 }
  0x8d   :  { %1416 = vmatprep.mubr.bf16.mxu1 %v2464_v1 }
  0x93   :  { %1320 = vmatmul.mubr.bf16.gmra.mrb[56].mxu0 %v2466_v2 }
  0x94   :  { %1417 = vmatmul.mubr.bf16.gmra.mrb[56].mxu1 %v2467_v3  ;;  %1327 = vmatprep.mubr.bf16.mxu0 %v2469_v4 }
  0x95   :  { %1424 = vmatprep.mubr.bf16.mxu1 %v2471_v5 }
  0x9b   :  { %1328 = vmatmul.mubr.bf16.gmra.mrb[60].mxu0 %v2473_v6 }
  0x9c   :  { %1425 = vmatmul.mubr.bf16.gmra.mrb[60].mxu1 %v2474_v7  ;;  %2276 = vmatprep.mubr.bf16.mxu0 %v2476_v8 }
  0x9d   :  { %2284 = vmatprep.mubr.bf16.mxu1 %v2477_v9 }
  0xa3   :  { %2277 = vmatmul.mubr.bf16.vlgmr.msra.gmra.mrb[64].mxu0 %v2478_v10 }
  0xa4   :  { %2285 = vmatmul.mubr.bf16.vlgmr.msra.gmra.mrb[64].mxu1 %v2479_v11  ;;  %2280 = vmatprep.mubr.bf16.mxu0 %v2480_v12 }
  0xa5   :  { %2288 = vmatprep.mubr.bf16.mxu1 %v2481_v13 }
  0xab   :  { %2281 = vmatmul.mubr.bf16.gmra.mrb[68].mxu0 %v2482_v14 }
  0xac   :  { %2289 = vmatmul.mubr.bf16.gmra.mrb[68].mxu1 %v2483_v15 }
  0xf6   :  { %v2004_v16 = vpop.f32.mrb[0].mxu0 }
  0xf7   :  { %v2068_v17 = vpop.f32.mrb[0].mxu1  ;;  %v2005_v18 = vpop.f32.mrb[1].mxu0 }
  0xf8   :  { %v2006_v19 = vadd.f32 %v2005_v18, %v2004_v16  ;;  %v2069_v20 = vpop.f32.mrb[1].mxu1  ;;  %v2007_v21 = vpop.f32.mrb[2].mxu0 }
  0xf9   :  { %v2070_v22 = vadd.f32 %v2069_v20, %v2068_v17  ;;  %v2071_v23 = vpop.f32.mrb[2].mxu1  ;;  %v2008_v24 = vpop.f32.mrb[3].mxu0 }
  0xfa   :  { %v2009_v25 = vadd.f32 %v2008_v24, %v2007_v21  ;;  %v2072_v26 = vpop.f32.mrb[3].mxu1 }
  0xfb   :  { %v2946_v27 = vadd.f32 %v2070_v22, %v2006_v19  ;;  %v2073_v28 = vadd.f32 %v2072_v26, %v2071_v23 }
  0xfd   :  { %v2948_v29 = vadd.f32 %v2073_v28, %v2009_v25 }
  0xfe   :  { %v2010_v30 = vpop.f32.mrb[4].mxu0 }
  0xff   :  { %v2074_v31 = vpop.f32.mrb[4].mxu1  ;;  %v2011_v32 = vpop.f32.mrb[5].mxu0 }
 0x100   :  { %v2012_v33 = vadd.f32 %v2011_v32, %v2010_v30  ;;  %v2075_v34 = vpop.f32.mrb[5].mxu1  ;;  %v2013_v35 = vpop.f32.mrb[6].mxu0 }
 0x101   :  { %v2076_v36 = vadd.f32 %v2075_v34, %v2074_v31  ;;  %v2077_v37 = vpop.f32.mrb[6].mxu1  ;;  %v2014_v38 = vpop.f32.mrb[7].mxu0 }
 0x102   :  { %v2015_v39 = vadd.f32 %v2014_v38, %v2013_v35  ;;  %v2078_v40 = vpop.f32.mrb[7].mxu1 }
 0x103   :  { %v2950_v41 = vadd.f32 %v2076_v36, %v2012_v33  ;;  %v2079_v42 = vadd.f32 %v2078_v40, %v2077_v37 }
 0x105   :  { %v2952_v43 = vadd.f32 %v2079_v42, %v2015_v39 }
 0x106   :  { %v2016_v44 = vpop.f32.mrb[8].mxu0 }
 0x107   :  { %v2080_v45 = vpop.f32.mrb[8].mxu1  ;;  %v2017_v46 = vpop.f32.mrb[9].mxu0 }
 0x108   :  { %v2018_v47 = vadd.f32 %v2017_v46, %v2016_v44  ;;  %v2081_v48 = vpop.f32.mrb[9].mxu1  ;;  %v2019_v49 = vpop.f32.mrb[10].mxu0 }
 0x109   :  { %v2082_v50 = vadd.f32 %v2081_v48, %v2080_v45  ;;  %v2083_v51 = vpop.f32.mrb[10].mxu1  ;;  %v2020_v52 = vpop.f32.mrb[11].mxu0 }
 0x10a   :  { %v2021_v53 = vadd.f32 %v2020_v52, %v2019_v49  ;;  %v2084_v54 = vpop.f32.mrb[11].mxu1 }
 0x10b   :  { %v2954_v55 = vadd.f32 %v2082_v50, %v2018_v47  ;;  %v2085_v56 = vadd.f32 %v2084_v54, %v2083_v51 }
 0x10d   :  { %v2956_v57 = vadd.f32 %v2085_v56, %v2021_v53 }
 0x10e   :  { %v2022_v58 = vpop.f32.mrb[12].mxu0 }
 0x10f   :  { %v2086_v59 = vpop.f32.mrb[12].mxu1  ;;  %v2023_v60 = vpop.f32.mrb[13].mxu0 }
 0x110   :  { %v2024_v61 = vadd.f32 %v2023_v60, %v2022_v58  ;;  %v2087_v62 = vpop.f32.mrb[13].mxu1  ;;  %v2025_v63 = vpop.f32.mrb[14].mxu0 }
 0x111   :  { %v2088_v0 = vadd.f32 %v2087_v62, %v2086_v59  ;;  %v2089_v1 = vpop.f32.mrb[14].mxu1  ;;  %v2026_v2 = vpop.f32.mrb[15].mxu0 }
 0x112   :  { %v2027_v3 = vadd.f32 %v2026_v2, %v2025_v63  ;;  %v2090_v4 = vpop.f32.mrb[15].mxu1 }
 0x113   :  { %v2958_v5 = vadd.f32 %v2088_v0, %v2024_v61  ;;  %v2091_v6 = vadd.f32 %v2090_v4, %v2089_v1 }
 0x115   :  { %v2960_v7 = vadd.f32 %v2091_v6, %v2027_v3 }
 0x116   :  { %v2028_v8 = vpop.f32.mrb[16].mxu0 }
 0x117   :  { %v2092_v9 = vpop.f32.mrb[16].mxu1  ;;  %v2029_v10 = vpop.f32.mrb[17].mxu0 }
 0x118   :  { %v2030_v11 = vadd.f32 %v2029_v10, %v2028_v8  ;;  %v2093_v12 = vpop.f32.mrb[17].mxu1  ;;  %v2031_v13 = vpop.f32.mrb[18].mxu0 }
 0x119   :  { %v2094_v14 = vadd.f32 %v2093_v12, %v2092_v9  ;;  %v2095_v15 = vpop.f32.mrb[18].mxu1  ;;  %v2032_v16 = vpop.f32.mrb[19].mxu0 }
 0x11a   :  { %v2033_v17 = vadd.f32 %v2032_v16, %v2031_v13  ;;  %v2096_v18 = vpop.f32.mrb[19].mxu1 }
 0x11b   :  { %v2962_v19 = vadd.f32 %v2094_v14, %v2030_v11  ;;  %v2097_v20 = vadd.f32 %v2096_v18, %v2095_v15 }
 0x11d   :  { %v2964_v21 = vadd.f32 %v2097_v20, %v2033_v17 }
 0x11e   :  { %v2034_v22 = vpop.f32.mrb[20].mxu0 }
 0x11f   :  { %v2098_v23 = vpop.f32.mrb[20].mxu1  ;;  %v2035_v24 = vpop.f32.mrb[21].mxu0 }
 0x120   :  { %v2036_v25 = vadd.f32 %v2035_v24, %v2034_v22  ;;  %v2099_v26 = vpop.f32.mrb[21].mxu1  ;;  %v2037_v28 = vpop.f32.mrb[22].mxu0 }
 0x121   :  { %v2100_v30 = vadd.f32 %v2099_v26, %v2098_v23  ;;  %v2101_v31 = vpop.f32.mrb[22].mxu1  ;;  %v2038_v32 = vpop.f32.mrb[23].mxu0 }
 0x122   :  { %v2039_v33 = vadd.f32 %v2038_v32, %v2037_v28  ;;  %v2102_v34 = vpop.f32.mrb[23].mxu1 }
 0x123   :  { %v2966_v35 = vadd.f32 %v2100_v30, %v2036_v25  ;;  %v2103_v36 = vadd.f32 %v2102_v34, %v2101_v31 }
 0x125   :  { %v2968_v37 = vadd.f32 %v2103_v36, %v2039_v33 }
 0x126   :  { %v2040_v38 = vpop.f32.mrb[24].mxu0 }
 0x127   :  { %v2104_v39 = vpop.f32.mrb[24].mxu1  ;;  %v2041_v40 = vpop.f32.mrb[25].mxu0 }
 0x128   :  { %v2042_v42 = vadd.f32 %v2041_v40, %v2040_v38  ;;  %v2105_v44 = vpop.f32.mrb[25].mxu1  ;;  %v2043_v45 = vpop.f32.mrb[26].mxu0 }
 0x129   :  { %v2106_v46 = vadd.f32 %v2105_v44, %v2104_v39  ;;  %v2107_v47 = vpop.f32.mrb[26].mxu1  ;;  %v2044_v48 = vpop.f32.mrb[27].mxu0 }
 0x12a   :  { %v2045_v49 = vadd.f32 %v2044_v48, %v2043_v45  ;;  %v2108_v50 = vpop.f32.mrb[27].mxu1 }
 0x12b   :  { %v2970_v51 = vadd.f32 %v2106_v46, %v2042_v42  ;;  %v2109_v52 = vadd.f32 %v2108_v50, %v2107_v47 }
 0x12d   :  { %v2972_v53 = vadd.f32 %v2109_v52, %v2045_v49 }
 0x12e   :  { %v2046_v54 = vpop.f32.mrb[28].mxu0 }
 0x12f   :  { %v2110_v56 = vpop.f32.mrb[28].mxu1  ;;  %v2047_v58 = vpop.f32.mrb[29].mxu0 }
 0x130   :  { %v2048_v59 = vadd.f32 %v2047_v58, %v2046_v54  ;;  %v2111_v60 = vpop.f32.mrb[29].mxu1  ;;  %v2049_v61 = vpop.f32.mrb[30].mxu0 }
 0x131   :  { %v2112_v62 = vadd.f32 %v2111_v60, %v2110_v56  ;;  %v2113_v63 = vpop.f32.mrb[30].mxu1  ;;  %v2050_v0 = vpop.f32.mrb[31].mxu0 }
 0x132   :  { %v2051_v1 = vadd.f32 %v2050_v0, %v2049_v61  ;;  %v2114_v2 = vpop.f32.mrb[31].mxu1 }
 0x133   :  { %v2974_v3 = vadd.f32 %v2112_v62, %v2048_v59  ;;  %v2115_v4 = vadd.f32 %v2114_v2, %v2113_v63 }
 0x135   :  { %v2976_v6 = vadd.f32 %v2115_v4, %v2051_v1 }
 0x136   :  { %v2132_v8 = vpop.f32.mrb[32].mxu0 }
 0x137   :  { %v2196_v9 = vpop.f32.mrb[32].mxu1  ;;  %v2133_v10 = vpop.f32.mrb[33].mxu0 }
 0x138   :  { %v2134_v11 = vadd.f32 %v2133_v10, %v2132_v8  ;;  %v2197_v12 = vpop.f32.mrb[33].mxu1  ;;  %v2135_v13 = vpop.f32.mrb[34].mxu0 }
 0x139   :  { %v2198_v14 = vadd.f32 %v2197_v12, %v2196_v9  ;;  %v2199_v15 = vpop.f32.mrb[34].mxu1  ;;  %v2136_v16 = vpop.f32.mrb[35].mxu0 }
 0x13a   :  { %v1274_v17 = vadd.f32 %v2134_v11, %v2946_v27  ;;  %v2137_v18 = vadd.f32 %v2136_v16, %v2135_v13  ;;  %v2200_v20 = vpop.f32.mrb[35].mxu1 }
 0x13b   :  { %v2201_v22 = vadd.f32 %v2200_v20, %v2199_v15 }
 0x13c   :  { %v1277_v23 = vadd.f32 %v2137_v18, %v2948_v29  ;;  %v2980_v24 = vadd.f32 %v2198_v14, %v1274_v17 }
 0x13e   :  { %v2138_v25 = vpop.f32.mrb[36].mxu0  ;;  %v2982_v26 = vadd.f32 %v2201_v22, %v1277_v23 }
 0x13f   :  { %v2202_v28 = vpop.f32.mrb[36].mxu1  ;;  %v2139_v30 = vpop.f32.mrb[37].mxu0 }
 0x140   :  { %v2140_v31 = vadd.f32 %v2139_v30, %v2138_v25  ;;  %v2203_v32 = vpop.f32.mrb[37].mxu1  ;;  %v2141_v33 = vpop.f32.mrb[38].mxu0 }
 0x141   :  { %v2204_v34 = vadd.f32 %v2203_v32, %v2202_v28  ;;  %v2205_v36 = vpop.f32.mrb[38].mxu1  ;;  %v2142_v38 = vpop.f32.mrb[39].mxu0 }
 0x142   :  { %v1282_v27 = vadd.f32 %v2140_v31, %v2950_v41  ;;  %v2143_v39 = vadd.f32 %v2142_v38, %v2141_v33  ;;  %v2206_v40 = vpop.f32.mrb[39].mxu1 }
 0x143   :  { %v2207_v42 = vadd.f32 %v2206_v40, %v2205_v36 }
 0x144   :  { %v1285_v29 = vadd.f32 %v2143_v39, %v2952_v43  ;;  %v2986_v44 = vadd.f32 %v2204_v34, %v1282_v27 }
 0x146   :  { %v2144_v45 = vpop.f32.mrb[40].mxu0  ;;  %v2988_v46 = vadd.f32 %v2207_v42, %v1285_v29 }
 0x147   :  { %v2208_v47 = vpop.f32.mrb[40].mxu1  ;;  %v2145_v48 = vpop.f32.mrb[41].mxu0 }
 0x148   :  { %v2146_v49 = vadd.f32 %v2145_v48, %v2144_v45  ;;  %v2209_v50 = vpop.f32.mrb[41].mxu1  ;;  %v2147_v52 = vpop.f32.mrb[42].mxu0 }
 0x149   :  { %v2210_v54 = vadd.f32 %v2209_v50, %v2208_v47  ;;  %v2211_v56 = vpop.f32.mrb[42].mxu1  ;;  %v2148_v58 = vpop.f32.mrb[43].mxu0 }
 0x14a   :  { %v1290_v41 = vadd.f32 %v2146_v49, %v2954_v55  ;;  %v2149_v59 = vadd.f32 %v2148_v58, %v2147_v52  ;;  %v2212_v60 = vpop.f32.mrb[43].mxu1 }
 0x14b   :  { %v2213_v61 = vadd.f32 %v2212_v60, %v2211_v56 }
 0x14c   :  { %v1293_v43 = vadd.f32 %v2149_v59, %v2956_v57  ;;  %v2992_v62 = vadd.f32 %v2210_v54, %v1290_v41 }
 0x14e   :  { %v2150_v63 = vpop.f32.mrb[44].mxu0  ;;  %v2994_v0 = vadd.f32 %v2213_v61, %v1293_v43 }
 0x14f   :  { %v2214_v1 = vpop.f32.mrb[44].mxu1  ;;  %v2151_v2 = vpop.f32.mrb[45].mxu0 }
 0x150   :  { %v2152_v4 = vadd.f32 %v2151_v2, %v2150_v63  ;;  %v2215_v8 = vpop.f32.mrb[45].mxu1  ;;  %v2153_v9 = vpop.f32.mrb[46].mxu0 }
 0x151   :  { %v2216_v10 = vadd.f32 %v2215_v8, %v2214_v1  ;;  %v2217_v11 = vpop.f32.mrb[46].mxu1  ;;  %v2154_v12 = vpop.f32.mrb[47].mxu0 }
 0x152   :  { %v1298_v55 = vadd.f32 %v2152_v4, %v2958_v5  ;;  %v2155_v13 = vadd.f32 %v2154_v12, %v2153_v9  ;;  %v2218_v14 = vpop.f32.mrb[47].mxu1 }
 0x153   :  { %v2219_v15 = vadd.f32 %v2218_v14, %v2217_v11 }
 0x154   :  { %v1301_v57 = vadd.f32 %v2155_v13, %v2960_v7  ;;  %v2998_v16 = vadd.f32 %v2216_v10, %v1298_v55 }
 0x156   :  { %v2156_v17 = vpop.f32.mrb[48].mxu0  ;;  %v3000_v18 = vadd.f32 %v2219_v15, %v1301_v57 }
 0x157   :  { %v2220_v20 = vpop.f32.mrb[48].mxu1  ;;  %v2157_v22 = vpop.f32.mrb[49].mxu0 }
 0x158   :  { %v2158_v23 = vadd.f32 %v2157_v22, %v2156_v17  ;;  %v2221_v25 = vpop.f32.mrb[49].mxu1  ;;  %v2159_v28 = vpop.f32.mrb[50].mxu0 }
 0x159   :  { %v2222_v30 = vadd.f32 %v2221_v25, %v2220_v20  ;;  %v2223_v31 = vpop.f32.mrb[50].mxu1  ;;  %v2160_v32 = vpop.f32.mrb[51].mxu0 }
 0x15a   :  { %v1306_v5 = vadd.f32 %v2158_v23, %v2962_v19  ;;  %v2161_v33 = vadd.f32 %v2160_v32, %v2159_v28  ;;  %v2224_v34 = vpop.f32.mrb[51].mxu1  ;;  %v3032_v32 = vld [vmem:[%s3171_s4] sm:$0xff]  }
 0x15b   :  { %v2225_v36 = vadd.f32 %v2224_v34, %v2223_v31  ;;  %v3027_v31 = vld [vmem:[%s3171_s4 + $0x28] sm:$0xff]   ;;  %v3043_v34 = vld [vmem:[%s3171_s4 + $0x18] sm:$0xff]  }
 0x15c   :  { %v1309_v7 = vadd.f32 %v2161_v33, %v2964_v21  ;;  %v3004_v38 = vadd.f32 %v2222_v30, %v1306_v5 }
 0x15e   :  { %v2162_v27 = vpop.f32.mrb[52].mxu0  ;;  %v3006_v39 = vadd.f32 %v2225_v36, %v1309_v7 }
 0x15f   :  { %v2226_v40 = vpop.f32.mrb[52].mxu1  ;;  %v2163_v42 = vpop.f32.mrb[53].mxu0 }
 0x160   :  { %v2164_v29 = vadd.f32 %v2163_v42, %v2162_v27  ;;  %v2227_v45 = vpop.f32.mrb[53].mxu1  ;;  %v2165_v47 = vpop.f32.mrb[54].mxu0  ;;  %v1924_v27 = vunpack.c.l.bf16 %v3027_v31  ;;  %v3053_v42 = vld [vmem:[%s3171_s4 + $0x38] sm:$0xff]  }
 0x161   :  { %v2228_v48 = vadd.f32 %v2227_v45, %v2226_v40  ;;  %v2229_v49 = vpop.f32.mrb[54].mxu1  ;;  %v2166_v50 = vpop.f32.mrb[55].mxu0  ;;  %v1904_v40 = vunpack.c.l.bf16 %v3032_v32  ;;  %v3063_v45 = vld [vmem:[%s3172_s2] ss:$0 sm:$0xff] }
 0x162   :  { %v1314_v19 = vadd.f32 %v2164_v29, %v2966_v35  ;;  %v2167_v52 = vadd.f32 %v2166_v50, %v2165_v47  ;;  %v2230_v54 = vpop.f32.mrb[55].mxu1  ;;  %v3071_v50 = vld [vmem:[%s3171_s4 + $0x30] sm:$0xff]  }
 0x163   :  { %v2231_v56 = vadd.f32 %v2230_v54, %v2229_v49  ;;  %v1925_v49 = vunpack.c.h.bf16 %v3027_v31 }
 0x164   :  { %v1317_v21 = vadd.f32 %v2167_v52, %v2968_v37  ;;  %v1411_v58 = vadd.f32 %v2228_v48, %v1314_v19 }
 0x166   :  { %v2168_v41 = vpop.f32.mrb[56].mxu0  ;;  %v3010_v59 = vadd.f32 %v2231_v56, %v1317_v21  ;;  %v1905_v21 = vunpack.c.h.bf16 %v3032_v32 }
 0x167   :  { %v2232_v60 = vpop.f32.mrb[56].mxu1  ;;  %v2169_v61 = vpop.f32.mrb[57].mxu0 }
 0x168   :  { %v2170_v43 = vadd.f32 %v2169_v61, %v2168_v41  ;;  %v2233_v63 = vpop.f32.mrb[57].mxu1  ;;  %v2171_v1 = vpop.f32.mrb[58].mxu0  ;;  %v3082_v61 = vld [vmem:[%s3173_s3] ss:$0 sm:$0xff] }
 0x169   :  { %v2234_v2 = vadd.f32 %v2233_v63, %v2232_v60  ;;  %v2235_v4 = vpop.f32.mrb[58].mxu1  ;;  %v2172_v8 = vpop.f32.mrb[59].mxu0  ;;  %v1916_v60 = vunpack.c.l.bf16 %v3043_v34 }
 0x16a   :  { %v1322_v9 = vadd.f32 %v2170_v43, %v2970_v51  ;;  %v2173_v35 = vadd.f32 %v2172_v8, %v2171_v1  ;;  %v2236_v10 = vpop.f32.mrb[59].mxu1 }
 0x16b   :  { %v2237_v11 = vadd.f32 %v2236_v10, %v2235_v4 }
 0x16c   :  { %v1325_v12 = vadd.f32 %v2173_v35, %v2972_v53  ;;  %v3014_v37 = vadd.f32 %v2234_v2, %v1322_v9  ;;  %v3022_v53 = vld [vmem:[%s3171_s4 + $0x8] sm:$0xff]  }
 0x16d   :  { %v1908_v7 = vunpack.c.l.bf16 %v3022_v53  ;;  %v1909_v48 = vunpack.c.h.bf16 %v3022_v53 }
 0x16e   :  { %v2174_v55 = vpop.f32.mrb[60].mxu0  ;;  %v3016_v13 = vadd.f32 %v2237_v11, %v1325_v12  ;;  %v1928_v12 = vunpack.c.l.bf16 %v3071_v50 }
 0x16f   :  { %v2238_v14 = vpop.f32.mrb[60].mxu1  ;;  %v2175_v15 = vpop.f32.mrb[61].mxu0 }
 0x170   :  { %v2176_v57 = vadd.f32 %v2175_v15, %v2174_v55  ;;  %v2239_v17 = vpop.f32.mrb[61].mxu1  ;;  %v2177_v20 = vpop.f32.mrb[62].mxu0 }
 0x171   :  { %v2240_v22 = vadd.f32 %v2239_v17, %v2238_v14  ;;  %v2241_v23 = vpop.f32.mrb[62].mxu1  ;;  %v2178_v25 = vpop.f32.mrb[63].mxu0 }
 0x172   :  { %v1330_v51 = vadd.f32 %v2176_v57, %v2974_v3  ;;  %v2179_v28 = vadd.f32 %v2178_v25, %v2177_v20  ;;  %v2242_v30 = vpop.f32.mrb[63].mxu1  ;;  %v3037_v3 = vld [vmem:[%s3171_s4 + $0x20] sm:$0xff]  }
 0x173   :  { %v2243_v5 = vadd.f32 %v2242_v30, %v2241_v23  ;;  %v1920_v47 = vunpack.c.l.bf16 %v3037_v3  ;;  %v1921_v41 = vunpack.c.h.bf16 %v3037_v3 }
 0x174   :  { %v1333_v33 = vadd.f32 %v2179_v28, %v2976_v6  ;;  %v3045_v36 = vadd.f32 %v2240_v22, %v1330_v51  ;;  %v3058_v6 = vld [vmem:[%s3171_s4 + $0x10] sm:$0xff]  }
 0x175   :  { %v1912_v4 = vunpack.c.l.bf16 %v3058_v6 }
 0x176   :  { %v2278_v29 = vpop.f32.mrb[64].mxu0  ;;  %v3073_v19 = vadd.f32 %v2243_v5, %v1333_v33 }
 0x177   :  { %v1476_v52 = vadd.f32 %v2278_v29, %v2986_v44  ;;  %v2286_v54 = vpop.f32.mrb[64].mxu1  ;;  %v1467_v56 = vpop.f32.mrb[65].mxu0  ;;  %v1932_v44 = vunpack.c.l.bf16 %v3053_v42 }
 0x178   :  { %v1508_v43 = vadd.f32 %v2286_v54, %v1411_v58  ;;  %v1468_v63 = vadd.f32 %v1467_v56, %v2980_v24  ;;  %v1499_v1 = vpop.f32.mrb[65].mxu1  ;;  %v2279_v2 = vpop.f32.mrb[66].mxu0 }
 0x179   :  { %v1539_v8 = vmul.f32 %v3063_v45, %v1476_v52  ;;  %v1500_v9 = vadd.f32 %v1499_v1, %v3004_v38  ;;  %v1479_v35 = vadd.f32 %v2279_v2, %v2988_v46  ;;  %v2287_v10 = vpop.f32.mrb[66].mxu1  ;;  %v1470_v11 = vpop.f32.mrb[67].mxu0 }
 0x17a   :  { %v1547_v58 = vmul.f32 %v3063_v45, %v1508_v43  ;;  %v1537_v24 = vmul.f32 %v3063_v45, %v1468_v63  ;;  %v1511_v55 = vadd.f32 %v2287_v10, %v3010_v59  ;;  %v1471_v14 = vadd.f32 %v1470_v11, %v2982_v26  ;;  %v1502_v15 = vpop.f32.mrb[67].mxu1 }
 0x17b   :  { %v1562_v57 = vadd.f32 %v3082_v61, %v1539_v8  ;;  %v1545_v17 = vmul.f32 %v3063_v45, %v1500_v9  ;;  %v1540_v38 = vmul.f32 %v3063_v45, %v1479_v35  ;;  %v1503_v46 = vadd.f32 %v1502_v15, %v3006_v39 }
 0x17c   :  { %v1570_v20 = vadd.f32 %v3082_v61, %v1547_v58  ;;  %v1560_v22 = vadd.f32 %v3082_v61, %v1537_v24  ;;  %v1548_v23 = vmul.f32 %v3063_v45, %v1511_v55  ;;  %v1538_v25 = vmul.f32 %v3063_v45, %v1471_v14 }
 0x17d   :  { %v1610_v59 = vadd.f32 %v1908_v7, %v1562_v57  ;;  %v1568_v26 = vadd.f32 %v3082_v61, %v1545_v17  ;;  %v1563_v51 = vadd.f32 %v3082_v61, %v1540_v38  ;;  %v1546_v28 = vmul.f32 %v3063_v45, %v1503_v46 }
 0x17e   :  { %v1618_v30 = vadd.f32 %v1924_v27, %v1570_v20  ;;  %v1608_v53 = vadd.f32 %v1904_v40, %v1560_v22  ;;  %v1571_v31 = vadd.f32 %v3082_v61, %v1548_v23  ;;  %v1561_v39 = vadd.f32 %v3082_v61, %v1538_v25  ;;  %v2282_v32 = vpop.f32.mrb[68].mxu0 }
 0x17f   :  { %v1626_v5 = vmax.f32 %v1610_v59, 0.0  ;;  %v1616_v3 = vadd.f32 %v1920_v47, %v1568_v26  ;;  %v1611_v33 = vadd.f32 %v1909_v48, %v1563_v51  ;;  %v1569_v29 = vadd.f32 %v3082_v61, %v1546_v28  ;;  %v2290_v52 = vpop.f32.mrb[68].mxu1  ;;  %v1483_v7 = vpop.f32.mrb[69].mxu0 }
 0x180   :  { %v1634_v54 = vmax.f32 %v1618_v30, 0.0  ;;  %v1624_v56 = vmax.f32 %v1608_v53, 0.0  ;;  %v1619_v43 = vadd.f32 %v1925_v49, %v1571_v31  ;;  %v1609_v63 = vadd.f32 %v1905_v21, %v1561_v39  ;;  %v1515_v1 = vpop.f32.mrb[69].mxu1  ;;  %v2283_v2 = vpop.f32.mrb[70].mxu0 }
 0x181   :  { %v1632_v27 = vmax.f32 %v1616_v3, 0.0  ;;  %v1627_v40 = vmax.f32 %v1611_v33, 0.0  ;;  %v1617_v8 = vadd.f32 %v1921_v41, %v1569_v29  ;;  %v1492_v9 = vadd.f32 %v2282_v32, %v2998_v16  ;;  %v2291_v35 = vpop.f32.mrb[70].mxu1  ;;  %v1486_v10 = vpop.f32.mrb[71].mxu0 }
 0x182   :  { %v1635_v11 = vmax.f32 %v1619_v43, 0.0  ;;  %v1625_v47 = vmax.f32 %v1609_v63, 0.0  ;;  %v1524_v48 = vadd.f32 %v2290_v52, %v3045_v36  ;;  %v1484_v58 = vadd.f32 %v1483_v7, %v2992_v62  ;;  %v1518_v24 = vpop.f32.mrb[71].mxu1 }
 0x183   :  { %v1942_v55 = vpack.c.bf16 %v1627_v40, %v1626_v5  ;;  %v1633_v14 = vmax.f32 %v1617_v8, 0.0  ;;  %v1543_v49 = vmul.f32 %v3063_v45, %v1492_v9  ;;  %v1516_v21 = vadd.f32 %v1515_v1, %v3014_v37 }
 0x184   :  { %v1962_v15 = vpack.c.bf16 %v1635_v11, %v1634_v54  ;;  %v1937_v57 = vpack.c.bf16 %v1625_v47, %v1624_v56  ;;  %v1551_v41 = vmul.f32 %v3063_v45, %v1524_v48  ;;  %v1541_v16 = vmul.f32 %v3063_v45, %v1484_v58 }
 0x185   :  { %1981 = vst [vmem:[%s3174_s5 + $0x8] sm:$0xff] %v1942_v55   ;;  %v1957_v36 = vpack.c.bf16 %v1633_v14, %v1632_v27  ;;  %v1566_v62 = vadd.f32 %v3082_v61, %v1543_v49  ;;  %v1549_v17 = vmul.f32 %v3063_v45, %v1516_v21  ;;  %v1495_v38 = vadd.f32 %v2283_v2, %v3000_v18 }
 0x186   :  { %1985 = vst [vmem:[%s3174_s5 + $0x28] sm:$0xff] %v1962_v15   ;;  %1938 = vst [vmem:[%s3174_s5] sm:$0xff] %v1937_v57   ;;  %v1574_v37 = vadd.f32 %v3082_v61, %v1551_v41  ;;  %v1564_v46 = vadd.f32 %v3082_v61, %v1541_v16  ;;  %v1527_v20 = vadd.f32 %v2291_v35, %v3073_v19  ;;  %v1917_v25 = vunpack.c.h.bf16 %v3043_v34 }
 0x187   :  { %v1487_v22 = vadd.f32 %v1486_v10, %v2994_v0  ;;  %1984 = vst [vmem:[%s3174_s5 + $0x20] sm:$0xff] %v1957_v36   ;;  %v1572_v18 = vadd.f32 %v3082_v61, %v1549_v17  ;;  %v1544_v23 = vmul.f32 %v3063_v45, %v1495_v38  ;;  %v1519_v59 = vadd.f32 %v1518_v24, %v3016_v13 }
 0x188   :  { %v1552_v26 = vmul.f32 %v3063_v45, %v1527_v20  ;;  %v1933_v51 = vunpack.c.h.bf16 %v3053_v42  ;;  %v1913_v0 = vunpack.c.h.bf16 %v3058_v6  ;;  %v1614_v28 = vadd.f32 %v1916_v60, %v1566_v62 }
 0x189   :  { %v1542_v19 = vmul.f32 %v3063_v45, %v1487_v22  ;;  %v1567_v30 = vadd.f32 %v3082_v61, %v1544_v23  ;;  %v1550_v53 = vmul.f32 %v3063_v45, %v1519_v59  ;;  %v1929_v31 = vunpack.c.h.bf16 %v3071_v50 }
 0x18a   :  { %v1622_v13 = vadd.f32 %v1932_v44, %v1574_v37  ;;  %v1612_v39 = vadd.f32 %v1912_v4, %v1564_v46  ;;  %v1575_v32 = vadd.f32 %v3082_v61, %v1552_v26  ;;  %v1620_v34 = vadd.f32 %v1928_v12, %v1572_v18 }
 0x18b   :  { %v1565_v5 = vadd.f32 %v3082_v61, %v1542_v19  ;;  %v1615_v60 = vadd.f32 %v1917_v25, %v1567_v30  ;;  %v1573_v3 = vadd.f32 %v3082_v61, %v1550_v53  ;;  %v1630_v29 = vmax.f32 %v1614_v28, 0.0 }
 0x18c   :  { %v1623_v33 = vadd.f32 %v1933_v51, %v1575_v32  ;;  %v1638_v42 = vmax.f32 %v1622_v13, 0.0  ;;  %v1628_v44 = vmax.f32 %v1612_v39, 0.0  ;;  %v1636_v4 = vmax.f32 %v1620_v34, 0.0 }
 0x18d   :  { %v1613_v45 = vadd.f32 %v1913_v0, %v1565_v5  ;;  %v1631_v52 = vmax.f32 %v1615_v60, 0.0  ;;  %v1621_v7 = vadd.f32 %v1929_v31, %v1573_v3 }
 0x18e   :  { %v1639_v54 = vmax.f32 %v1623_v33, 0.0 }
 0x18f   :  { %v1629_v6 = vmax.f32 %v1613_v45, 0.0  ;;  %v1952_v56 = vpack.c.bf16 %v1631_v52, %v1630_v29  ;;  %v1637_v43 = vmax.f32 %v1621_v7, 0.0 }
 0x190   :  { %v1972_v63 = vpack.c.bf16 %v1639_v54, %v1638_v42 }
 0x191   :  { %v1947_v1 = vpack.c.bf16 %v1629_v6, %v1628_v44  ;;  %1983 = vst [vmem:[%s3174_s5 + $0x18] sm:$0xff] %v1952_v56   ;;  %v1967_v50 = vpack.c.bf16 %v1637_v43, %v1636_v4 }
 0x192   :  { %1987 = vst [vmem:[%s3174_s5 + $0x38] sm:$0xff] %v1972_v63  }
 0x193   :  { %1982 = vst [vmem:[%s3174_s5 + $0x10] sm:$0xff] %v1947_v1   ;;  %1986 = vst [vmem:[%s3174_s5 + $0x30] sm:$0xff] %v1967_v50  }

// kernel: resnet_forward.15
= control target key start
LH: loop header
LB: loop body
LE: loop exit
PB: predicated region body
PF: predicated region fallthrough
CT: control target
= control target key end

     0   :  { %s1659_s1 = inlined_call_operand.vmem [shape: bf16[1152,128], index: 1, kind: input, shape index: {}]   ;;  %s1660_s0 = inlined_call_operand.vmem [shape: bf16[32,1152], index: 0, kind: input, shape index: {}]   ;;  %s1661_s2 = inlined_call_operand.vmem [shape: f32[1,128], index: 2, kind: input, shape index: {}]   ;;  %s1662_s3 = inlined_call_operand.vmem [shape: f32[1,128], index: 3, kind: input, shape index: {}]   ;;  %s1663_s4 = inlined_call_operand.vmem [shape: bf16[32,128], index: 4, kind: output, shape index: {}]  }
   0x1   :  { %v1254_v0 = vld [vmem:[%s1659_s1 + $0x40] sm:$0xff]   ;;  %v1258_v4 = vld [vmem:[%s1659_s1 + $0x48] sm:$0xff]   ;;  %v1262_v8 = vld [vmem:[%s1659_s1 + $0x50] sm:$0xff]  }
   0x2   :  { %v1255_v1 = vld [vmem:[%s1659_s1 + $0xc0] sm:$0xff]   ;;  %1112 = vmatprep.subr.bf16.mxu0 %v1254_v0  ;;  %v1259_v5 = vld [vmem:[%s1659_s1 + $0xc8] sm:$0xff]   ;;  %v1263_v9 = vld [vmem:[%s1659_s1 + $0xd0] sm:$0xff]  }
   0x3   :  { %v1256_v2 = vld [vmem:[%s1659_s1] sm:$0xff]   ;;  %1140 = vmatprep.subr.bf16.mxu1 %v1255_v1  ;;  %v1260_v6 = vld [vmem:[%s1659_s1 + $0x8] sm:$0xff]   ;;  %v1264_v10 = vld [vmem:[%s1659_s1 + $0x10] sm:$0xff]  }
   0x4   :  { %v1257_v3 = vld [vmem:[%s1659_s1 + $0x80] sm:$0xff]   ;;  %1113 = vmatpush3.bf16.msra.mxu0 %v1256_v2  ;;  %v1261_v7 = vld [vmem:[%s1659_s1 + $0x88] sm:$0xff]   ;;  %v1265_v11 = vld [vmem:[%s1659_s1 + $0x90] sm:$0xff]  }
   0x5   :  { %1141 = vmatpush3.bf16.msra.mxu1 %v1257_v3  ;;  %1114 = vmatprep.subr.bf16.mxu0 %v1258_v4  ;;  %v1266_v12 = vld [vmem:[%s1659_s1 + $0x58] sm:$0xff]   ;;  %v1270_v16 = vld [vmem:[%s1659_s1 + $0x60] sm:$0xff]   ;;  %v1274_v20 = vld [vmem:[%s1659_s1 + $0x68] sm:$0xff]  }
   0x6   :  { %1142 = vmatprep.subr.bf16.mxu1 %v1259_v5  ;;  %v1267_v13 = vld [vmem:[%s1659_s1 + $0xd8] sm:$0xff]   ;;  %v1271_v17 = vld [vmem:[%s1659_s1 + $0xe0] sm:$0xff]   ;;  %v1275_v21 = vld [vmem:[%s1659_s1 + $0xe8] sm:$0xff]  }
   0x7   :  { %v1268_v14 = vld [vmem:[%s1659_s1 + $0x18] sm:$0xff]   ;;  %v1272_v18 = vld [vmem:[%s1659_s1 + $0x20] sm:$0xff]   ;;  %v1276_v22 = vld [vmem:[%s1659_s1 + $0x28] sm:$0xff]  }
   0x8   :  { %1115 = vmatpush3.bf16.msra.mxu0 %v1260_v6  ;;  %v1269_v15 = vld [vmem:[%s1659_s1 + $0x98] sm:$0xff]   ;;  %v1273_v19 = vld [vmem:[%s1659_s1 + $0xa0] sm:$0xff]   ;;  %v1277_v23 = vld [vmem:[%s1659_s1 + $0xa8] sm:$0xff]  }
   0x9   :  { %1143 = vmatpush3.bf16.msra.mxu1 %v1261_v7  ;;  %1116 = vmatprep.subr.bf16.mxu0 %v1262_v8  ;;  %v1278_v24 = vld [vmem:[%s1659_s1 + $0x70] sm:$0xff]   ;;  %v1282_v28 = vld [vmem:[%s1659_s1 + $0x78] sm:$0xff]   ;;  %v1286_v32 = vld [vmem:[%s1660_s0] ss:$36 sps:$4 sm:$0xff]  }
   0xa   :  { %1144 = vmatprep.subr.bf16.mxu1 %v1263_v9  ;;  %v1279_v25 = vld [vmem:[%s1659_s1 + $0xf0] sm:$0xff]   ;;  %v1283_v29 = vld [vmem:[%s1659_s1 + $0xf8] sm:$0xff]   ;;  %v1288_v33 = vld [vmem:[%s1660_s0 + $0x4] ss:$36 sps:$4 sm:$0xff]  }
   0xb   :  { %v1280_v26 = vld [vmem:[%s1659_s1 + $0x30] sm:$0xff]   ;;  %v1284_v30 = vld [vmem:[%s1659_s1 + $0x38] sm:$0xff]   ;;  %v1289_v34 = vld [vmem:[%s1660_s0 + $0x8] ss:$36 sps:$4 sm:$0xff]   ;;  %738 = vmatprep.mubr.bf16.mxu0 %v1288_v33 }
   0xc   :  { %1117 = vmatpush3.bf16.msra.mxu0 %v1264_v10  ;;  %v1281_v27 = vld [vmem:[%s1659_s1 + $0xb0] sm:$0xff]   ;;  %v1285_v31 = vld [vmem:[%s1659_s1 + $0xb8] sm:$0xff]   ;;  %v1292_v36 = vld [vmem:[%s1659_s1 + $0x140] sm:$0xff]  }
   0xd   :  { %1145 = vmatpush3.bf16.msra.mxu1 %v1265_v11  ;;  %1118 = vmatprep.subr.bf16.mxu0 %v1266_v12  ;;  %v1291_v35 = vld [vmem:[%s1660_s0 + $0xc] ss:$36 sps:$4 sm:$0xff]   ;;  %v1293_v37 = vld [vmem:[%s1659_s1 + $0x100] sm:$0xff]   ;;  %v1304_v48 = vld [vmem:[%s1659_s1 + $0x158] sm:$0xff]  }
   0xe   :  { %1146 = vmatprep.subr.bf16.mxu1 %v1267_v13  ;;  %787 = vmatprep.mubr.bf16.mxu1 %v1291_v35  ;;  %v1294_v38 = vld [vmem:[%s1659_s1 + $0x1c0] sm:$0xff]   ;;  %v1296_v40 = vld [vmem:[%s1659_s1 + $0x148] sm:$0xff]   ;;  %v1300_v44 = vld [vmem:[%s1659_s1 + $0x150] sm:$0xff]  }
   0xf   :  { %v1295_v39 = vld [vmem:[%s1659_s1 + $0x180] sm:$0xff]   ;;  %v1297_v41 = vld [vmem:[%s1659_s1 + $0x108] sm:$0xff]   ;;  %v1301_v45 = vld [vmem:[%s1659_s1 + $0x110] sm:$0xff]  }
  0x10   :  { %1119 = vmatpush3.bf16.msra.mxu0 %v1268_v14  ;;  %v1298_v42 = vld [vmem:[%s1659_s1 + $0x1c8] sm:$0xff]   ;;  %v1302_v46 = vld [vmem:[%s1659_s1 + $0x1d0] sm:$0xff]   ;;  %v1305_v49 = vld [vmem:[%s1659_s1 + $0x118] sm:$0xff]  }
  0x11   :  { %1147 = vmatpush3.bf16.msra.mxu1 %v1269_v15  ;;  %1120 = vmatprep.subr.bf16.mxu0 %v1270_v16  ;;  %v1299_v43 = vld [vmem:[%s1659_s1 + $0x188] sm:$0xff]   ;;  %v1303_v47 = vld [vmem:[%s1659_s1 + $0x190] sm:$0xff]   ;;  %v1306_v50 = vld [vmem:[%s1659_s1 + $0x1d8] sm:$0xff]  }
  0x12   :  { %1148 = vmatprep.subr.bf16.mxu1 %v1271_v17  ;;  %v1307_v51 = vld [vmem:[%s1659_s1 + $0x198] sm:$0xff]   ;;  %v1308_v52 = vld [vmem:[%s1659_s1 + $0x160] sm:$0xff]   ;;  %v1312_v56 = vld [vmem:[%s1659_s1 + $0x168] sm:$0xff]  }
  0x13   :  { %v1309_v53 = vld [vmem:[%s1659_s1 + $0x120] sm:$0xff]   ;;  %v1313_v57 = vld [vmem:[%s1660_s0 + $0x4c] ss:$36 sps:$4 sm:$0xff]   ;;  %v1315_v58 = vld [vmem:[%s1660_s0 + $0x54] ss:$36 sps:$4 sm:$0xff]  }
  0x14   :  { %1121 = vmatpush3.bf16.msra.mxu0 %v1272_v18  ;;  %v1310_v54 = vld [vmem:[%s1659_s1 + $0x1e0] sm:$0xff]   ;;  %v1317_v59 = vld [vmem:[%s1659_s1 + $0x128] sm:$0xff]   ;;  %v1319_v61 = vld [vmem:[%s1660_s0 + $0x50] ss:$36 sps:$4 sm:$0xff]  }
  0x15   :  { %1149 = vmatpush3.bf16.msra.mxu1 %v1273_v19  ;;  %1122 = vmatprep.subr.bf16.mxu0 %v1274_v20  ;;  %v1311_v55 = vld [vmem:[%s1659_s1 + $0x1a0] sm:$0xff]   ;;  %v1318_v60 = vld [vmem:[%s1660_s0 + $0x48] ss:$36 sps:$4 sm:$0xff]   ;;  %v1322_v0 = vld [vmem:[%s1659_s1 + $0x170] sm:$0xff]  }
  0x16   :  { %1150 = vmatprep.subr.bf16.mxu1 %v1275_v21  ;;  %v1320_v62 = vld [vmem:[%s1659_s1 + $0x1e8] sm:$0xff]   ;;  %v1323_v1 = vld [vmem:[%s1659_s1 + $0x130] sm:$0xff]   ;;  %v1326_v4 = vld [vmem:[%s1659_s1 + $0x178] sm:$0xff]  }
  0x17   :  { %v1321_v63 = vld [vmem:[%s1659_s1 + $0x1a8] sm:$0xff]   ;;  %v1324_v2 = vld [vmem:[%s1659_s1 + $0x1f0] sm:$0xff]   ;;  %v1327_v5 = vld [vmem:[%s1659_s1 + $0x138] sm:$0xff]  }
  0x18   :  { %1123 = vmatpush3.bf16.msra.mxu0 %v1276_v22  ;;  %v1325_v3 = vld [vmem:[%s1659_s1 + $0x1b0] sm:$0xff]   ;;  %v1328_v6 = vld [vmem:[%s1659_s1 + $0x1f8] sm:$0xff]   ;;  %v1333_v10 = vld [vmem:[%s1659_s1 + $0x200] sm:$0xff]  }
  0x19   :  { %1151 = vmatpush3.bf16.msra.mxu1 %v1277_v23  ;;  %1124 = vmatprep.subr.bf16.mxu0 %v1278_v24  ;;  %v1329_v7 = vld [vmem:[%s1660_s0 + $0x10] ss:$36 sps:$4 sm:$0xff]   ;;  %v1332_v9 = vld [vmem:[%s1659_s1 + $0x1b8] sm:$0xff]   ;;  %v1337_v13 = vld [vmem:[%s1659_s1 + $0x208] sm:$0xff]  }
  0x1a   :  { %1152 = vmatprep.subr.bf16.mxu1 %v1279_v25  ;;  %v1331_v8 = vld [vmem:[%s1660_s0 + $0x14] ss:$36 sps:$4 sm:$0xff]   ;;  %v1336_v12 = vld [vmem:[%s1660_s0 + $0x1c] ss:$36 sps:$4 sm:$0xff]   ;;  %v1342_v17 = vld [vmem:[%s1660_s0 + $0x64] ss:$36 sps:$4 sm:$0xff]  }
  0x1b   :  { %v1334_v11 = vld [vmem:[%s1660_s0 + $0x18] ss:$36 sps:$4 sm:$0xff]   ;;  %v1341_v16 = vld [vmem:[%s1659_s1 + $0x210] sm:$0xff]   ;;  %v1344_v18 = vld [vmem:[%s1660_s0 + $0x60] ss:$36 sps:$4 sm:$0xff]  }
  0x1c   :  { %1125 = vmatpush3.bf16.msra.mxu0 %v1280_v26  ;;  %v1338_v14 = vld [vmem:[%s1660_s0 + $0x5c] ss:$36 sps:$4 sm:$0xff]   ;;  %v1347_v22 = vld [vmem:[%s1659_s1 + $0x228] sm:$0xff]   ;;  %v1348_v23 = vld [vmem:[%s1659_s1 + $0x230] sm:$0xff]  }
  0x1d   :  { %1153 = vmatpush3.bf16.msra.mxu1 %v1281_v27  ;;  %1126 = vmatprep.subr.bf16.mxu0 %v1282_v28  ;;  %v1340_v15 = vld [vmem:[%s1660_s0 + $0x58] ss:$36 sps:$4 sm:$0xff]   ;;  %v1346_v20 = vld [vmem:[%s1659_s1 + $0x220] sm:$0xff]   ;;  %v1351_v25 = vld [vmem:[%s1660_s0 + $0x68] ss:$36 sps:$4 sm:$0xff]  }
  0x1e   :  { %1154 = vmatprep.subr.bf16.mxu1 %v1283_v29  ;;  %v1345_v19 = vld [vmem:[%s1659_s1 + $0x218] sm:$0xff]   ;;  %v1350_v21 = vld [vmem:[%s1660_s0 + $0x20] ss:$36 sps:$4 sm:$0xff]  }
  0x1f   :  { %v1349_v24 = vld [vmem:[%s1659_s1 + $0x238] sm:$0xff]  }
  0x20   :  { %1127 = vmatpush3.bf16.msra.mxu0 %v1284_v30 }
  0x21   :  { %1155 = vmatpush3.bf16.msra.mxu1 %v1285_v31  ;;  %1168 = vmatprep.subr.bf16.mxu0 %v1292_v36 }
  0x22   :  { %1196 = vmatprep.subr.bf16.mxu1 %v1294_v38 }
  0x23   :  { %739 = vmatmul.mubr.bf16.vlgmr.msra.gmra.mrb[0].mxu0 %v1286_v32 }
  0x24   :  { %788 = vmatmul.mubr.bf16.vlgmr.msra.gmra.mrb[0].mxu1 %v1289_v34  ;;  %1169 = vmatpush3.bf16.msra.mxu0 %v1293_v37 }
  0x25   :  { %1197 = vmatpush3.bf16.msra.mxu1 %v1295_v39  ;;  %1170 = vmatprep.subr.bf16.mxu0 %v1296_v40 }
  0x26   :  { %1198 = vmatprep.subr.bf16.mxu1 %v1298_v42  ;;  %746 = vmatprep.mubr.bf16.mxu0 %v1313_v57 }
  0x27   :  { %795 = vmatprep.mubr.bf16.mxu1 %v1315_v58 }
  0x28   :  { %1171 = vmatpush3.bf16.msra.mxu0 %v1297_v41 }
  0x29   :  { %1199 = vmatpush3.bf16.msra.mxu1 %v1299_v43  ;;  %1172 = vmatprep.subr.bf16.mxu0 %v1300_v44 }
  0x2a   :  { %1200 = vmatprep.subr.bf16.mxu1 %v1302_v46 }
  0x2b   :  { %747 = vmatmul.mubr.bf16.gmra.mrb[4].mxu0 %v1318_v60 }
  0x2c   :  { %1173 = vmatpush3.bf16.msra.mxu0 %v1301_v45  ;;  %796 = vmatmul.mubr.bf16.gmra.mrb[4].mxu1 %v1319_v61 }
  0x2d   :  { %1201 = vmatpush3.bf16.msra.mxu1 %v1303_v47  ;;  %1174 = vmatprep.subr.bf16.mxu0 %v1304_v48 }
  0x2e   :  { %1202 = vmatprep.subr.bf16.mxu1 %v1306_v50  ;;  %836 = vmatprep.mubr.bf16.mxu0 %v1331_v8 }
  0x2f   :  { %885 = vmatprep.mubr.bf16.mxu1 %v1336_v12 }
  0x30   :  { %1175 = vmatpush3.bf16.msra.mxu0 %v1305_v49 }
  0x31   :  { %1203 = vmatpush3.bf16.msra.mxu1 %v1307_v51  ;;  %1176 = vmatprep.subr.bf16.mxu0 %v1308_v52 }
  0x32   :  { %1204 = vmatprep.subr.bf16.mxu1 %v1310_v54 }
  0x34   :  { %1177 = vmatpush3.bf16.msra.mxu0 %v1309_v53 }
  0x35   :  { %1205 = vmatpush3.bf16.msra.mxu1 %v1311_v55  ;;  %1178 = vmatprep.subr.bf16.mxu0 %v1312_v56 }
  0x36   :  { %1206 = vmatprep.subr.bf16.mxu1 %v1320_v62 }
  0x38   :  { %1179 = vmatpush3.bf16.msra.mxu0 %v1317_v59 }
  0x39   :  { %1207 = vmatpush3.bf16.msra.mxu1 %v1321_v63  ;;  %1180 = vmatprep.subr.bf16.mxu0 %v1322_v0 }
  0x3a   :  { %1208 = vmatprep.subr.bf16.mxu1 %v1324_v2 }
  0x3c   :  { %1181 = vmatpush3.bf16.msra.mxu0 %v1323_v1 }
  0x3d   :  { %1209 = vmatpush3.bf16.msra.mxu1 %v1325_v3  ;;  %1182 = vmatprep.subr.bf16.mxu0 %v1326_v4 }
  0x3e   :  { %1210 = vmatprep.subr.bf16.mxu1 %v1328_v6 }
  0x40   :  { %1183 = vmatpush3.bf16.msra.mxu0 %v1327_v5 }
  0x41   :  { %1211 = vmatpush3.bf16.msra.mxu1 %v1332_v9  ;;  %1234 = vmatprep.subr.bf16.mxu0 %v1333_v10 }
  0x43   :  { %837 = vmatmul.mubr.bf16.vlgmr.msra.gmra.mrb[8].mxu0 %v1329_v7 }
  0x44   :  { %1235 = vmatpush3.bf16.msra.mxu0 %v1333_v10  ;;  %886 = vmatmul.mubr.bf16.vlgmr.msra.gmra.mrb[8].mxu1 %v1334_v11 }
  0x45   :  { %1236 = vmatprep.subr.bf16.mxu0 %v1337_v13  ;;  %844 = vmatprep.mubr.bf16.mxu0 %v1338_v14 }
  0x46   :  { %893 = vmatprep.mubr.bf16.mxu1 %v1342_v17 }
  0x48   :  { %1237 = vmatpush3.bf16.msra.mxu0 %v1337_v13 }
  0x49   :  { %1238 = vmatprep.subr.bf16.mxu0 %v1341_v16 }
  0x4b   :  { %845 = vmatmul.mubr.bf16.gmra.mrb[12].mxu0 %v1340_v15 }
  0x4c   :  { %1239 = vmatpush3.bf16.msra.mxu0 %v1341_v16  ;;  %894 = vmatmul.mubr.bf16.gmra.mrb[12].mxu1 %v1344_v18 }
  0x4d   :  { %1240 = vmatprep.subr.bf16.mxu0 %v1345_v19  ;;  %1250 = vmatprep.mubr.bf16.mxu0 %v1350_v21 }
  0x50   :  { %1241 = vmatpush3.bf16.msra.mxu0 %v1345_v19 }
  0x51   :  { %1242 = vmatprep.subr.bf16.mxu0 %v1346_v20 }
  0x54   :  { %1243 = vmatpush3.bf16.msra.mxu0 %v1346_v20 }
  0x55   :  { %1244 = vmatprep.subr.bf16.mxu0 %v1347_v22 }
  0x58   :  { %1245 = vmatpush3.bf16.msra.mxu0 %v1347_v22 }
  0x59   :  { %1246 = vmatprep.subr.bf16.mxu0 %v1348_v23 }
  0x5c   :  { %1247 = vmatpush3.bf16.msra.mxu0 %v1348_v23  ;;  %v1091_v23 = vld [vmem:[%s1661_s2] ss:$0 sm:$0xff] }
  0x5d   :  { %1248 = vmatprep.subr.bf16.mxu0 %v1349_v24 }
  0x60   :  { %1249 = vmatpush3.bf16.msra.mxu0 %v1349_v24 }
  0x63   :  { %1251 = vmatmul.mubr.bf16.vlgmr.msra.gmra.mrb[16].mxu0 %v1351_v25 }
  0xf6   :  { %v1128_v26 = vpop.f32.mrb[0].mxu0 }
  0xf7   :  { %v1156_v27 = vpop.f32.mrb[0].mxu1  ;;  %v1129_v28 = vpop.f32.mrb[1].mxu0 }
  0xf8   :  { %v1130_v29 = vadd.f32 %v1129_v28, %v1128_v26  ;;  %v1157_v30 = vpop.f32.mrb[1].mxu1  ;;  %v1131_v31 = vpop.f32.mrb[2].mxu0  ;;  %v1092_v26 = vld [vmem:[%s1662_s3] ss:$0 sm:$0xff] }
  0xf9   :  { %v1158_v32 = vadd.f32 %v1157_v30, %v1156_v27  ;;  %v1159_v33 = vpop.f32.mrb[2].mxu1  ;;  %v1132_v34 = vpop.f32.mrb[3].mxu0 }
  0xfa   :  { %v1133_v35 = vadd.f32 %v1132_v34, %v1131_v31  ;;  %v1160_v36 = vpop.f32.mrb[3].mxu1 }
  0xfb   :  { %v790_v37 = vadd.f32 %v1158_v32, %v1130_v29  ;;  %v1161_v38 = vadd.f32 %v1160_v36, %v1159_v33 }
  0xfd   :  { %v793_v39 = vadd.f32 %v1161_v38, %v1133_v35 }
  0xfe   :  { %v1134_v40 = vpop.f32.mrb[4].mxu0 }
  0xff   :  { %v1162_v41 = vpop.f32.mrb[4].mxu1  ;;  %v1135_v42 = vpop.f32.mrb[5].mxu0 }
 0x100   :  { %v1163_v43 = vpop.f32.mrb[5].mxu1  ;;  %v1136_v44 = vadd.f32 %v1135_v42, %v1134_v40  ;;  %v1137_v46 = vpop.f32.mrb[6].mxu0 }
 0x101   :  { %v1164_v45 = vadd.f32 %v1163_v43, %v1162_v41  ;;  %v1165_v47 = vpop.f32.mrb[6].mxu1  ;;  %v1138_v48 = vpop.f32.mrb[7].mxu0 }
 0x102   :  { %v1166_v49 = vpop.f32.mrb[7].mxu1  ;;  %v1139_v51 = vadd.f32 %v1138_v48, %v1137_v46 }
 0x103   :  { %v798_v50 = vadd.f32 %v1164_v45, %v1136_v44  ;;  %v1167_v52 = vadd.f32 %v1166_v49, %v1165_v47 }
 0x105   :  { %v801_v53 = vadd.f32 %v1167_v52, %v1139_v51 }
 0x116   :  { %v1184_v54 = vpop.f32.mrb[8].mxu0 }
 0x117   :  { %v1185_v55 = vpop.f32.mrb[9].mxu0  ;;  %v1212_v58 = vpop.f32.mrb[8].mxu1 }
 0x118   :  { %v1186_v56 = vadd.f32 %v1185_v55, %v1184_v54  ;;  %v1187_v57 = vpop.f32.mrb[10].mxu0  ;;  %v1213_v62 = vpop.f32.mrb[9].mxu1 }
 0x119   :  { %v1188_v59 = vpop.f32.mrb[11].mxu0  ;;  %v1214_v63 = vadd.f32 %v1213_v62, %v1212_v58  ;;  %v1215_v0 = vpop.f32.mrb[10].mxu1 }
 0x11a   :  { %v839_v60 = vadd.f32 %v1186_v56, %v790_v37  ;;  %v1189_v61 = vadd.f32 %v1188_v59, %v1187_v57  ;;  %v1216_v2 = vpop.f32.mrb[11].mxu1 }
 0x11b   :  { %v1217_v3 = vadd.f32 %v1216_v2, %v1215_v0 }
 0x11c   :  { %v842_v1 = vadd.f32 %v1189_v61, %v793_v39  ;;  %v888_v4 = vadd.f32 %v1214_v63, %v839_v60 }
 0x11e   :  { %v1190_v5 = vpop.f32.mrb[12].mxu0  ;;  %v891_v7 = vadd.f32 %v1217_v3, %v842_v1 }
 0x11f   :  { %v1191_v6 = vpop.f32.mrb[13].mxu0  ;;  %v1218_v10 = vpop.f32.mrb[12].mxu1 }
 0x120   :  { %v1192_v8 = vadd.f32 %v1191_v6, %v1190_v5  ;;  %v1193_v9 = vpop.f32.mrb[14].mxu0  ;;  %v1219_v14 = vpop.f32.mrb[13].mxu1 }
 0x121   :  { %v1194_v11 = vpop.f32.mrb[15].mxu0  ;;  %v1220_v15 = vadd.f32 %v1219_v14, %v1218_v10  ;;  %v1221_v16 = vpop.f32.mrb[14].mxu1 }
 0x122   :  { %v847_v12 = vadd.f32 %v1192_v8, %v798_v50  ;;  %v1195_v13 = vadd.f32 %v1194_v11, %v1193_v9  ;;  %v1222_v18 = vpop.f32.mrb[15].mxu1 }
 0x123   :  { %v1223_v19 = vadd.f32 %v1222_v18, %v1221_v16 }
 0x124   :  { %v850_v17 = vadd.f32 %v1195_v13, %v801_v53  ;;  %v896_v20 = vadd.f32 %v1220_v15, %v847_v12 }
 0x126   :  { %v899_v21 = vadd.f32 %v1223_v19, %v850_v17 }
 0x136   :  { %v1252_v22 = vpop.f32.mrb[16].mxu0 }
 0x137   :  { %v945_v24 = vadd.f32 %v1252_v22, %v896_v20  ;;  %v936_v25 = vpop.f32.mrb[17].mxu0 }
 0x138   :  { %v937_v27 = vadd.f32 %v936_v25, %v888_v4  ;;  %v1253_v28 = vpop.f32.mrb[18].mxu0 }
 0x139   :  { %v960_v29 = vmul.f32 %v1091_v23, %v945_v24  ;;  %v948_v30 = vadd.f32 %v1253_v28, %v899_v21  ;;  %v939_v31 = vpop.f32.mrb[19].mxu0 }
 0x13a   :  { %v958_v32 = vmul.f32 %v1091_v23, %v937_v27  ;;  %v940_v33 = vadd.f32 %v939_v31, %v891_v7 }
 0x13b   :  { %v971_v34 = vadd.f32 %v1092_v26, %v960_v29  ;;  %v961_v35 = vmul.f32 %v1091_v23, %v948_v30 }
 0x13c   :  { %v969_v36 = vadd.f32 %v1092_v26, %v958_v32  ;;  %v959_v37 = vmul.f32 %v1091_v23, %v940_v33 }
 0x13d   :  { %v972_v38 = vadd.f32 %v1092_v26, %v961_v35  ;;  %v975_v40 = vmax.f32 %v971_v34, 0.0 }
 0x13e   :  { %v970_v39 = vadd.f32 %v1092_v26, %v959_v37  ;;  %v973_v42 = vmax.f32 %v969_v36, 0.0 }
 0x13f   :  { %v976_v41 = vmax.f32 %v972_v38, 0.0 }
 0x140   :  { %v974_v43 = vmax.f32 %v970_v39, 0.0 }
 0x141   :  { %v1109_v44 = vpack.c.bf16 %v976_v41, %v975_v40 }
 0x142   :  { %v1104_v45 = vpack.c.bf16 %v974_v43, %v973_v42 }
 0x143   :  { %1111 = vst [vmem:[%s1663_s4 + $0x8] sm:$0xff] %v1109_v44  }
 0x144   :  { %1105 = vst [vmem:[%s1663_s4] sm:$0xff] %v1104_v45  }

// kernel: resnet_forward.19
= control target key start
LH: loop header
LB: loop body
LE: loop exit
PB: predicated region body
PF: predicated region fallthrough
CT: control target
= control target key end

     0   :  { %v194_v0 = vmov 0.0   ;;  %vm195_vm0 = vmmov 0   ;;  %s257_s1 = inlined_call_operand.vmem [shape: bf16[128,128], index: 1, kind: input, shape index: {}]   ;;  %s258_s0 = inlined_call_operand.vmem [shape: bf16[8,128], index: 0, kind: input, shape index: {}]   ;;  %s259_s2 = inlined_call_operand.vmem [shape: f32[1,128], index: 2, kind: input, shape index: {}]   ;;  %s260_s3 = inlined_call_operand.vmem [shape: f32[1,128], index: 3, kind: input, shape index: {}]   ;;  %s261_s4 = inlined_call_operand.vmem [shape: bf16[8,128], index: 4, kind: output, shape index: {}]  }
   0x1   :  { %164 = vmatprep.subr.bf16.mxu0 %v194_v0  ;;  %v186_v1 = vld [vmem:[%s257_s1] sm:$0xff]   ;;  %180 = vmatprep.mubr.msk.bf16.mxu0 %vm195_vm0, %v194_v0  ;;  %v187_v2 = vld [vmem:[%s257_s1 + $0x8] sm:$0xff]   ;;  %v188_v3 = vld [vmem:[%s257_s1 + $0x10] sm:$0xff]  }
   0x2   :  { %165 = vmatpush3.bf16.msra.mxu0 %v186_v1  ;;  %v189_v4 = vld [vmem:[%s257_s1 + $0x18] sm:$0xff]   ;;  %v190_v5 = vld [vmem:[%s257_s1 + $0x20] sm:$0xff]   ;;  %v191_v6 = vld [vmem:[%s257_s1 + $0x28] sm:$0xff]  }
   0x3   :  { %166 = vmatprep.subr.bf16.mxu0 %v194_v0  ;;  %v192_v7 = vld [vmem:[%s257_s1 + $0x30] sm:$0xff]   ;;  %v193_v8 = vld [vmem:[%s257_s1 + $0x38] sm:$0xff]   ;;  %v18_v9 = vld [vmem:[%s258_s0] sm:$0xf] }
   0x4   :  { %v153_v10 = vld [vmem:[%s259_s2] ss:$0 sm:$0xff] }
   0x5   :  { %v154_v12 = vld [vmem:[%s260_s3] ss:$0 sm:$0xff] }
   0x6   :  { %167 = vmatpush3.bf16.msra.mxu0 %v187_v2 }
   0x7   :  { %168 = vmatprep.subr.bf16.mxu0 %v194_v0 }
   0xa   :  { %169 = vmatpush3.bf16.msra.mxu0 %v188_v3 }
   0xb   :  { %170 = vmatprep.subr.bf16.mxu0 %v194_v0 }
   0xe   :  { %171 = vmatpush3.bf16.msra.mxu0 %v189_v4 }
   0xf   :  { %172 = vmatprep.subr.bf16.mxu0 %v194_v0 }
  0x12   :  { %173 = vmatpush3.bf16.msra.mxu0 %v190_v5 }
  0x13   :  { %174 = vmatprep.subr.bf16.mxu0 %v194_v0 }
  0x16   :  { %175 = vmatpush3.bf16.msra.mxu0 %v191_v6 }
  0x17   :  { %176 = vmatprep.subr.bf16.mxu0 %v194_v0 }
  0x1a   :  { %177 = vmatpush3.bf16.msra.mxu0 %v192_v7 }
  0x1b   :  { %178 = vmatprep.subr.bf16.mxu0 %v194_v0 }
  0x1e   :  { %179 = vmatpush3.bf16.msra.mxu0 %v193_v8 }
  0x21   :  { %181 = vmatmul.mubr.bf16.vlgmr.msra.gmra.mrb[0].mxu0 %v18_v9 }
  0xf4   :  { %v117_v11 = vpop.f32.mrb[0].mxu0 }
  0xf5   :  { %v130_v13 = vmul.f32 %v153_v10, %v117_v11  ;;  %v182_v14 = vpop.f32.mrb[1].mxu0 }
  0xf6   :  { %v120_v15 = vpop.f32.mrb[2].mxu0 }
  0xf7   :  { %v138_v16 = vadd.f32 %v154_v12, %v130_v13  ;;  %v183_v17 = vpop.f32.mrb[3].mxu0 }
  0xf9   :  { %v139_v18 = vpack.c.bf16 %v138_v16, %v138_v16 }
  0xfb   :  { %140 = vst [vmem:[%s261_s4] sm:$0xf] %v139_v18 }

// kernel: resnet_forward.17
= control target key start
LH: loop header
LB: loop body
LE: loop exit
PB: predicated region body
PF: predicated region fallthrough
CT: control target
= control target key end

     0   :  { %s1694_s1 = inlined_call_operand.vmem [shape: bf16[1152,128], index: 1, kind: input, shape index: {}]   ;;  %s1695_s0 = inlined_call_operand.vmem [shape: bf16[32,1152], index: 0, kind: input, shape index: {}]   ;;  %s1696_s2 = inlined_call_operand.vmem [shape: f32[1,128], index: 2, kind: input, shape index: {}]   ;;  %s1697_s4 = inlined_call_operand.vmem [shape: bf16[32,128], index: 4, kind: input, shape index: {}]   ;;  %s1698_s3 = inlined_call_operand.vmem [shape: f32[1,128], index: 3, kind: input, shape index: {}]   ;;  %s1699_s5 = inlined_call_operand.vmem [shape: bf16[32,128], index: 5, kind: output, shape index: {}]  }
   0x1   :  { %v1278_v0 = vld [vmem:[%s1694_s1 + $0x40] sm:$0xff]   ;;  %v1282_v4 = vld [vmem:[%s1694_s1 + $0x48] sm:$0xff]   ;;  %v1286_v8 = vld [vmem:[%s1694_s1 + $0x50] sm:$0xff]  }
   0x2   :  { %v1279_v1 = vld [vmem:[%s1694_s1 + $0xc0] sm:$0xff]   ;;  %1136 = vmatprep.subr.bf16.mxu0 %v1278_v0  ;;  %v1283_v5 = vld [vmem:[%s1694_s1 + $0xc8] sm:$0xff]   ;;  %v1287_v9 = vld [vmem:[%s1694_s1 + $0xd0] sm:$0xff]  }
   0x3   :  { %v1280_v2 = vld [vmem:[%s1694_s1] sm:$0xff]   ;;  %1164 = vmatprep.subr.bf16.mxu1 %v1279_v1  ;;  %v1284_v6 = vld [vmem:[%s1694_s1 + $0x8] sm:$0xff]   ;;  %v1288_v10 = vld [vmem:[%s1694_s1 + $0x10] sm:$0xff]  }
   0x4   :  { %v1281_v3 = vld [vmem:[%s1694_s1 + $0x80] sm:$0xff]   ;;  %1137 = vmatpush3.bf16.msra.mxu0 %v1280_v2  ;;  %v1285_v7 = vld [vmem:[%s1694_s1 + $0x88] sm:$0xff]   ;;  %v1289_v11 = vld [vmem:[%s1694_s1 + $0x90] sm:$0xff]  }
   0x5   :  { %1165 = vmatpush3.bf16.msra.mxu1 %v1281_v3  ;;  %1138 = vmatprep.subr.bf16.mxu0 %v1282_v4  ;;  %v1290_v12 = vld [vmem:[%s1694_s1 + $0x58] sm:$0xff]   ;;  %v1294_v16 = vld [vmem:[%s1694_s1 + $0x60] sm:$0xff]   ;;  %v1298_v20 = vld [vmem:[%s1694_s1 + $0x68] sm:$0xff]  }
   0x6   :  { %1166 = vmatprep.subr.bf16.mxu1 %v1283_v5  ;;  %v1291_v13 = vld [vmem:[%s1694_s1 + $0xd8] sm:$0xff]   ;;  %v1295_v17 = vld [vmem:[%s1694_s1 + $0xe0] sm:$0xff]   ;;  %v1299_v21 = vld [vmem:[%s1694_s1 + $0xe8] sm:$0xff]  }
   0x7   :  { %v1292_v14 = vld [vmem:[%s1694_s1 + $0x18] sm:$0xff]   ;;  %v1296_v18 = vld [vmem:[%s1694_s1 + $0x20] sm:$0xff]   ;;  %v1300_v22 = vld [vmem:[%s1694_s1 + $0x28] sm:$0xff]  }
   0x8   :  { %1139 = vmatpush3.bf16.msra.mxu0 %v1284_v6  ;;  %v1293_v15 = vld [vmem:[%s1694_s1 + $0x98] sm:$0xff]   ;;  %v1297_v19 = vld [vmem:[%s1694_s1 + $0xa0] sm:$0xff]   ;;  %v1301_v23 = vld [vmem:[%s1694_s1 + $0xa8] sm:$0xff]  }
   0x9   :  { %1167 = vmatpush3.bf16.msra.mxu1 %v1285_v7  ;;  %1140 = vmatprep.subr.bf16.mxu0 %v1286_v8  ;;  %v1302_v24 = vld [vmem:[%s1694_s1 + $0x70] sm:$0xff]   ;;  %v1306_v28 = vld [vmem:[%s1694_s1 + $0x78] sm:$0xff]   ;;  %v1310_v32 = vld [vmem:[%s1695_s0] ss:$36 sps:$4 sm:$0xff]  }
   0xa   :  { %1168 = vmatprep.subr.bf16.mxu1 %v1287_v9  ;;  %v1303_v25 = vld [vmem:[%s1694_s1 + $0xf0] sm:$0xff]   ;;  %v1307_v29 = vld [vmem:[%s1694_s1 + $0xf8] sm:$0xff]   ;;  %v1312_v33 = vld [vmem:[%s1695_s0 + $0x4] ss:$36 sps:$4 sm:$0xff]  }
   0xb   :  { %v1304_v26 = vld [vmem:[%s1694_s1 + $0x30] sm:$0xff]   ;;  %v1308_v30 = vld [vmem:[%s1694_s1 + $0x38] sm:$0xff]   ;;  %v1313_v34 = vld [vmem:[%s1695_s0 + $0x8] ss:$36 sps:$4 sm:$0xff]   ;;  %741 = vmatprep.mubr.bf16.mxu0 %v1312_v33 }
   0xc   :  { %1141 = vmatpush3.bf16.msra.mxu0 %v1288_v10  ;;  %v1305_v27 = vld [vmem:[%s1694_s1 + $0xb0] sm:$0xff]   ;;  %v1309_v31 = vld [vmem:[%s1694_s1 + $0xb8] sm:$0xff]   ;;  %v1316_v36 = vld [vmem:[%s1694_s1 + $0x140] sm:$0xff]  }
   0xd   :  { %1169 = vmatpush3.bf16.msra.mxu1 %v1289_v11  ;;  %1142 = vmatprep.subr.bf16.mxu0 %v1290_v12  ;;  %v1315_v35 = vld [vmem:[%s1695_s0 + $0xc] ss:$36 sps:$4 sm:$0xff]   ;;  %v1317_v37 = vld [vmem:[%s1694_s1 + $0x100] sm:$0xff]   ;;  %v1328_v48 = vld [vmem:[%s1694_s1 + $0x158] sm:$0xff]  }
   0xe   :  { %1170 = vmatprep.subr.bf16.mxu1 %v1291_v13  ;;  %790 = vmatprep.mubr.bf16.mxu1 %v1315_v35  ;;  %v1318_v38 = vld [vmem:[%s1694_s1 + $0x1c0] sm:$0xff]   ;;  %v1320_v40 = vld [vmem:[%s1694_s1 + $0x148] sm:$0xff]   ;;  %v1324_v44 = vld [vmem:[%s1694_s1 + $0x150] sm:$0xff]  }
   0xf   :  { %v1319_v39 = vld [vmem:[%s1694_s1 + $0x180] sm:$0xff]   ;;  %v1321_v41 = vld [vmem:[%s1694_s1 + $0x108] sm:$0xff]   ;;  %v1325_v45 = vld [vmem:[%s1694_s1 + $0x110] sm:$0xff]  }
  0x10   :  { %1143 = vmatpush3.bf16.msra.mxu0 %v1292_v14  ;;  %v1322_v42 = vld [vmem:[%s1694_s1 + $0x1c8] sm:$0xff]   ;;  %v1326_v46 = vld [vmem:[%s1694_s1 + $0x1d0] sm:$0xff]   ;;  %v1329_v49 = vld [vmem:[%s1694_s1 + $0x118] sm:$0xff]  }
  0x11   :  { %1171 = vmatpush3.bf16.msra.mxu1 %v1293_v15  ;;  %1144 = vmatprep.subr.bf16.mxu0 %v1294_v16  ;;  %v1323_v43 = vld [vmem:[%s1694_s1 + $0x188] sm:$0xff]   ;;  %v1327_v47 = vld [vmem:[%s1694_s1 + $0x190] sm:$0xff]   ;;  %v1330_v50 = vld [vmem:[%s1694_s1 + $0x1d8] sm:$0xff]  }
  0x12   :  { %1172 = vmatprep.subr.bf16.mxu1 %v1295_v17  ;;  %v1331_v51 = vld [vmem:[%s1694_s1 + $0x198] sm:$0xff]   ;;  %v1332_v52 = vld [vmem:[%s1694_s1 + $0x160] sm:$0xff]   ;;  %v1336_v56 = vld [vmem:[%s1694_s1 + $0x168] sm:$0xff]  }
  0x13   :  { %v1333_v53 = vld [vmem:[%s1694_s1 + $0x120] sm:$0xff]   ;;  %v1337_v57 = vld [vmem:[%s1695_s0 + $0x4c] ss:$36 sps:$4 sm:$0xff]   ;;  %v1339_v58 = vld [vmem:[%s1695_s0 + $0x54] ss:$36 sps:$4 sm:$0xff]  }
  0x14   :  { %1145 = vmatpush3.bf16.msra.mxu0 %v1296_v18  ;;  %v1334_v54 = vld [vmem:[%s1694_s1 + $0x1e0] sm:$0xff]   ;;  %v1341_v59 = vld [vmem:[%s1694_s1 + $0x128] sm:$0xff]   ;;  %v1343_v61 = vld [vmem:[%s1695_s0 + $0x50] ss:$36 sps:$4 sm:$0xff]  }
  0x15   :  { %1173 = vmatpush3.bf16.msra.mxu1 %v1297_v19  ;;  %1146 = vmatprep.subr.bf16.mxu0 %v1298_v20  ;;  %v1335_v55 = vld [vmem:[%s1694_s1 + $0x1a0] sm:$0xff]   ;;  %v1342_v60 = vld [vmem:[%s1695_s0 + $0x48] ss:$36 sps:$4 sm:$0xff]   ;;  %v1346_v0 = vld [vmem:[%s1694_s1 + $0x170] sm:$0xff]  }
  0x16   :  { %1174 = vmatprep.subr.bf16.mxu1 %v1299_v21  ;;  %v1344_v62 = vld [vmem:[%s1694_s1 + $0x1e8] sm:$0xff]   ;;  %v1347_v1 = vld [vmem:[%s1694_s1 + $0x130] sm:$0xff]   ;;  %v1350_v4 = vld [vmem:[%s1694_s1 + $0x178] sm:$0xff]  }
  0x17   :  { %v1345_v63 = vld [vmem:[%s1694_s1 + $0x1a8] sm:$0xff]   ;;  %v1348_v2 = vld [vmem:[%s1694_s1 + $0x1f0] sm:$0xff]   ;;  %v1351_v5 = vld [vmem:[%s1694_s1 + $0x138] sm:$0xff]  }
  0x18   :  { %1147 = vmatpush3.bf16.msra.mxu0 %v1300_v22  ;;  %v1349_v3 = vld [vmem:[%s1694_s1 + $0x1b0] sm:$0xff]   ;;  %v1352_v6 = vld [vmem:[%s1694_s1 + $0x1f8] sm:$0xff]   ;;  %v1357_v10 = vld [vmem:[%s1694_s1 + $0x200] sm:$0xff]  }
  0x19   :  { %1175 = vmatpush3.bf16.msra.mxu1 %v1301_v23  ;;  %1148 = vmatprep.subr.bf16.mxu0 %v1302_v24  ;;  %v1353_v7 = vld [vmem:[%s1695_s0 + $0x10] ss:$36 sps:$4 sm:$0xff]   ;;  %v1356_v9 = vld [vmem:[%s1694_s1 + $0x1b8] sm:$0xff]   ;;  %v1361_v13 = vld [vmem:[%s1694_s1 + $0x208] sm:$0xff]  }
  0x1a   :  { %1176 = vmatprep.subr.bf16.mxu1 %v1303_v25  ;;  %v1355_v8 = vld [vmem:[%s1695_s0 + $0x14] ss:$36 sps:$4 sm:$0xff]   ;;  %v1360_v12 = vld [vmem:[%s1695_s0 + $0x1c] ss:$36 sps:$4 sm:$0xff]   ;;  %v1366_v17 = vld [vmem:[%s1695_s0 + $0x64] ss:$36 sps:$4 sm:$0xff]  }
  0x1b   :  { %v1358_v11 = vld [vmem:[%s1695_s0 + $0x18] ss:$36 sps:$4 sm:$0xff]   ;;  %v1365_v16 = vld [vmem:[%s1694_s1 + $0x210] sm:$0xff]   ;;  %v1368_v18 = vld [vmem:[%s1695_s0 + $0x60] ss:$36 sps:$4 sm:$0xff]  }
  0x1c   :  { %1149 = vmatpush3.bf16.msra.mxu0 %v1304_v26  ;;  %v1362_v14 = vld [vmem:[%s1695_s0 + $0x5c] ss:$36 sps:$4 sm:$0xff]   ;;  %v1371_v22 = vld [vmem:[%s1694_s1 + $0x228] sm:$0xff]   ;;  %v1372_v23 = vld [vmem:[%s1694_s1 + $0x230] sm:$0xff]  }
  0x1d   :  { %1177 = vmatpush3.bf16.msra.mxu1 %v1305_v27  ;;  %1150 = vmatprep.subr.bf16.mxu0 %v1306_v28  ;;  %v1364_v15 = vld [vmem:[%s1695_s0 + $0x58] ss:$36 sps:$4 sm:$0xff]   ;;  %v1370_v20 = vld [vmem:[%s1694_s1 + $0x220] sm:$0xff]   ;;  %v1375_v25 = vld [vmem:[%s1695_s0 + $0x68] ss:$36 sps:$4 sm:$0xff]  }
  0x1e   :  { %1178 = vmatprep.subr.bf16.mxu1 %v1307_v29  ;;  %v1369_v19 = vld [vmem:[%s1694_s1 + $0x218] sm:$0xff]   ;;  %v1374_v21 = vld [vmem:[%s1695_s0 + $0x20] ss:$36 sps:$4 sm:$0xff]  }
  0x1f   :  { %v1373_v24 = vld [vmem:[%s1694_s1 + $0x238] sm:$0xff]  }
  0x20   :  { %1151 = vmatpush3.bf16.msra.mxu0 %v1308_v30 }
  0x21   :  { %1179 = vmatpush3.bf16.msra.mxu1 %v1309_v31  ;;  %1192 = vmatprep.subr.bf16.mxu0 %v1316_v36 }
  0x22   :  { %1220 = vmatprep.subr.bf16.mxu1 %v1318_v38 }
  0x23   :  { %742 = vmatmul.mubr.bf16.vlgmr.msra.gmra.mrb[0].mxu0 %v1310_v32 }
  0x24   :  { %791 = vmatmul.mubr.bf16.vlgmr.msra.gmra.mrb[0].mxu1 %v1313_v34  ;;  %1193 = vmatpush3.bf16.msra.mxu0 %v1317_v37 }
  0x25   :  { %1221 = vmatpush3.bf16.msra.mxu1 %v1319_v39  ;;  %1194 = vmatprep.subr.bf16.mxu0 %v1320_v40 }
  0x26   :  { %1222 = vmatprep.subr.bf16.mxu1 %v1322_v42  ;;  %749 = vmatprep.mubr.bf16.mxu0 %v1337_v57 }
  0x27   :  { %798 = vmatprep.mubr.bf16.mxu1 %v1339_v58 }
  0x28   :  { %1195 = vmatpush3.bf16.msra.mxu0 %v1321_v41 }
  0x29   :  { %1223 = vmatpush3.bf16.msra.mxu1 %v1323_v43  ;;  %1196 = vmatprep.subr.bf16.mxu0 %v1324_v44 }
  0x2a   :  { %1224 = vmatprep.subr.bf16.mxu1 %v1326_v46 }
  0x2b   :  { %750 = vmatmul.mubr.bf16.gmra.mrb[4].mxu0 %v1342_v60 }
  0x2c   :  { %1197 = vmatpush3.bf16.msra.mxu0 %v1325_v45  ;;  %799 = vmatmul.mubr.bf16.gmra.mrb[4].mxu1 %v1343_v61 }
  0x2d   :  { %1225 = vmatpush3.bf16.msra.mxu1 %v1327_v47  ;;  %1198 = vmatprep.subr.bf16.mxu0 %v1328_v48 }
  0x2e   :  { %1226 = vmatprep.subr.bf16.mxu1 %v1330_v50  ;;  %839 = vmatprep.mubr.bf16.mxu0 %v1355_v8 }
  0x2f   :  { %888 = vmatprep.mubr.bf16.mxu1 %v1360_v12 }
  0x30   :  { %1199 = vmatpush3.bf16.msra.mxu0 %v1329_v49 }
  0x31   :  { %1227 = vmatpush3.bf16.msra.mxu1 %v1331_v51  ;;  %1200 = vmatprep.subr.bf16.mxu0 %v1332_v52 }
  0x32   :  { %1228 = vmatprep.subr.bf16.mxu1 %v1334_v54 }
  0x34   :  { %1201 = vmatpush3.bf16.msra.mxu0 %v1333_v53 }
  0x35   :  { %1229 = vmatpush3.bf16.msra.mxu1 %v1335_v55  ;;  %1202 = vmatprep.subr.bf16.mxu0 %v1336_v56 }
  0x36   :  { %1230 = vmatprep.subr.bf16.mxu1 %v1344_v62 }
  0x38   :  { %1203 = vmatpush3.bf16.msra.mxu0 %v1341_v59 }
  0x39   :  { %1231 = vmatpush3.bf16.msra.mxu1 %v1345_v63  ;;  %1204 = vmatprep.subr.bf16.mxu0 %v1346_v0 }
  0x3a   :  { %1232 = vmatprep.subr.bf16.mxu1 %v1348_v2 }
  0x3c   :  { %1205 = vmatpush3.bf16.msra.mxu0 %v1347_v1 }
  0x3d   :  { %1233 = vmatpush3.bf16.msra.mxu1 %v1349_v3  ;;  %1206 = vmatprep.subr.bf16.mxu0 %v1350_v4 }
  0x3e   :  { %1234 = vmatprep.subr.bf16.mxu1 %v1352_v6 }
  0x40   :  { %1207 = vmatpush3.bf16.msra.mxu0 %v1351_v5 }
  0x41   :  { %1235 = vmatpush3.bf16.msra.mxu1 %v1356_v9  ;;  %1258 = vmatprep.subr.bf16.mxu0 %v1357_v10 }
  0x43   :  { %840 = vmatmul.mubr.bf16.vlgmr.msra.gmra.mrb[8].mxu0 %v1353_v7 }
  0x44   :  { %1259 = vmatpush3.bf16.msra.mxu0 %v1357_v10  ;;  %889 = vmatmul.mubr.bf16.vlgmr.msra.gmra.mrb[8].mxu1 %v1358_v11 }
  0x45   :  { %1260 = vmatprep.subr.bf16.mxu0 %v1361_v13  ;;  %847 = vmatprep.mubr.bf16.mxu0 %v1362_v14 }
  0x46   :  { %896 = vmatprep.mubr.bf16.mxu1 %v1366_v17 }
  0x48   :  { %1261 = vmatpush3.bf16.msra.mxu0 %v1361_v13 }
  0x49   :  { %1262 = vmatprep.subr.bf16.mxu0 %v1365_v16 }
  0x4b   :  { %848 = vmatmul.mubr.bf16.gmra.mrb[12].mxu0 %v1364_v15 }
  0x4c   :  { %1263 = vmatpush3.bf16.msra.mxu0 %v1365_v16  ;;  %897 = vmatmul.mubr.bf16.gmra.mrb[12].mxu1 %v1368_v18 }
  0x4d   :  { %1264 = vmatprep.subr.bf16.mxu0 %v1369_v19  ;;  %1274 = vmatprep.mubr.bf16.mxu0 %v1374_v21 }
  0x50   :  { %1265 = vmatpush3.bf16.msra.mxu0 %v1369_v19 }
  0x51   :  { %1266 = vmatprep.subr.bf16.mxu0 %v1370_v20 }
  0x54   :  { %1267 = vmatpush3.bf16.msra.mxu0 %v1370_v20 }
  0x55   :  { %1268 = vmatprep.subr.bf16.mxu0 %v1371_v22 }
  0x58   :  { %1269 = vmatpush3.bf16.msra.mxu0 %v1371_v22 }
  0x59   :  { %1270 = vmatprep.subr.bf16.mxu0 %v1372_v23 }
  0x5c   :  { %1271 = vmatpush3.bf16.msra.mxu0 %v1372_v23  ;;  %v1106_v23 = vld [vmem:[%s1696_s2] ss:$0 sm:$0xff] }
  0x5d   :  { %1272 = vmatprep.subr.bf16.mxu0 %v1373_v24 }
  0x60   :  { %1273 = vmatpush3.bf16.msra.mxu0 %v1373_v24  ;;  %v1134_v24 = vld [vmem:[%s1697_s4 + $0x8] sm:$0xff]  }
  0x63   :  { %1275 = vmatmul.mubr.bf16.vlgmr.msra.gmra.mrb[16].mxu0 %v1375_v25 }
  0xf6   :  { %v1152_v26 = vpop.f32.mrb[0].mxu0 }
  0xf7   :  { %v1180_v27 = vpop.f32.mrb[0].mxu1  ;;  %v1153_v28 = vpop.f32.mrb[1].mxu0 }
  0xf8   :  { %v1154_v29 = vadd.f32 %v1153_v28, %v1152_v26  ;;  %v1181_v30 = vpop.f32.mrb[1].mxu1  ;;  %v1155_v31 = vpop.f32.mrb[2].mxu0  ;;  %v1107_v28 = vld [vmem:[%s1698_s3] ss:$0 sm:$0xff] }
  0xf9   :  { %v1182_v32 = vadd.f32 %v1181_v30, %v1180_v27  ;;  %v1183_v33 = vpop.f32.mrb[2].mxu1  ;;  %v1156_v34 = vpop.f32.mrb[3].mxu0  ;;  %v1117_v27 = vld [vmem:[%s1697_s4] sm:$0xff]  }
  0xfa   :  { %v1157_v35 = vadd.f32 %v1156_v34, %v1155_v31  ;;  %v1184_v36 = vpop.f32.mrb[3].mxu1 }
  0xfb   :  { %v793_v37 = vadd.f32 %v1182_v32, %v1154_v29  ;;  %v1185_v38 = vadd.f32 %v1184_v36, %v1183_v33  ;;  %v1122_v32 = vunpack.c.l.bf16 %v1134_v24  ;;  %v1118_v36 = vunpack.c.l.bf16 %v1117_v27 }
  0xfd   :  { %v796_v39 = vadd.f32 %v1185_v38, %v1157_v35 }
  0xfe   :  { %v1158_v40 = vpop.f32.mrb[4].mxu0 }
  0xff   :  { %v1186_v41 = vpop.f32.mrb[4].mxu1  ;;  %v1159_v42 = vpop.f32.mrb[5].mxu0 }
 0x100   :  { %v1187_v43 = vpop.f32.mrb[5].mxu1  ;;  %v1160_v44 = vadd.f32 %v1159_v42, %v1158_v40  ;;  %v1161_v46 = vpop.f32.mrb[6].mxu0  ;;  %v1123_v40 = vunpack.c.h.bf16 %v1134_v24 }
 0x101   :  { %v1188_v45 = vadd.f32 %v1187_v43, %v1186_v41  ;;  %v1189_v47 = vpop.f32.mrb[6].mxu1  ;;  %v1162_v48 = vpop.f32.mrb[7].mxu0  ;;  %v1119_v43 = vunpack.c.h.bf16 %v1117_v27 }
 0x102   :  { %v1190_v49 = vpop.f32.mrb[7].mxu1  ;;  %v1163_v51 = vadd.f32 %v1162_v48, %v1161_v46 }
 0x103   :  { %v801_v50 = vadd.f32 %v1188_v45, %v1160_v44  ;;  %v1191_v52 = vadd.f32 %v1190_v49, %v1189_v47 }
 0x105   :  { %v804_v53 = vadd.f32 %v1191_v52, %v1163_v51 }
 0x116   :  { %v1208_v54 = vpop.f32.mrb[8].mxu0 }
 0x117   :  { %v1209_v55 = vpop.f32.mrb[9].mxu0  ;;  %v1236_v58 = vpop.f32.mrb[8].mxu1 }
 0x118   :  { %v1210_v56 = vadd.f32 %v1209_v55, %v1208_v54  ;;  %v1211_v57 = vpop.f32.mrb[10].mxu0  ;;  %v1237_v62 = vpop.f32.mrb[9].mxu1 }
 0x119   :  { %v1212_v59 = vpop.f32.mrb[11].mxu0  ;;  %v1238_v63 = vadd.f32 %v1237_v62, %v1236_v58  ;;  %v1239_v0 = vpop.f32.mrb[10].mxu1 }
 0x11a   :  { %v842_v60 = vadd.f32 %v1210_v56, %v793_v37  ;;  %v1213_v61 = vadd.f32 %v1212_v59, %v1211_v57  ;;  %v1240_v2 = vpop.f32.mrb[11].mxu1 }
 0x11b   :  { %v1241_v3 = vadd.f32 %v1240_v2, %v1239_v0 }
 0x11c   :  { %v845_v1 = vadd.f32 %v1213_v61, %v796_v39  ;;  %v891_v4 = vadd.f32 %v1238_v63, %v842_v60 }
 0x11e   :  { %v1214_v5 = vpop.f32.mrb[12].mxu0  ;;  %v894_v7 = vadd.f32 %v1241_v3, %v845_v1 }
 0x11f   :  { %v1215_v6 = vpop.f32.mrb[13].mxu0  ;;  %v1242_v10 = vpop.f32.mrb[12].mxu1 }
 0x120   :  { %v1216_v8 = vadd.f32 %v1215_v6, %v1214_v5  ;;  %v1217_v9 = vpop.f32.mrb[14].mxu0  ;;  %v1243_v14 = vpop.f32.mrb[13].mxu1 }
 0x121   :  { %v1218_v11 = vpop.f32.mrb[15].mxu0  ;;  %v1244_v15 = vadd.f32 %v1243_v14, %v1242_v10  ;;  %v1245_v16 = vpop.f32.mrb[14].mxu1 }
 0x122   :  { %v850_v12 = vadd.f32 %v1216_v8, %v801_v50  ;;  %v1219_v13 = vadd.f32 %v1218_v11, %v1217_v9  ;;  %v1246_v18 = vpop.f32.mrb[15].mxu1 }
 0x123   :  { %v1247_v19 = vadd.f32 %v1246_v18, %v1245_v16 }
 0x124   :  { %v853_v17 = vadd.f32 %v1219_v13, %v804_v53  ;;  %v899_v20 = vadd.f32 %v1244_v15, %v850_v12 }
 0x126   :  { %v902_v21 = vadd.f32 %v1247_v19, %v853_v17 }
 0x136   :  { %v1276_v22 = vpop.f32.mrb[16].mxu0 }
 0x137   :  { %v948_v25 = vadd.f32 %v1276_v22, %v899_v20  ;;  %v939_v26 = vpop.f32.mrb[17].mxu0 }
 0x138   :  { %v940_v29 = vadd.f32 %v939_v26, %v891_v4  ;;  %v1277_v30 = vpop.f32.mrb[18].mxu0 }
 0x139   :  { %v963_v31 = vmul.f32 %v1106_v23, %v948_v25  ;;  %v951_v33 = vadd.f32 %v1277_v30, %v902_v21  ;;  %v942_v34 = vpop.f32.mrb[19].mxu0 }
 0x13a   :  { %v961_v35 = vmul.f32 %v1106_v23, %v940_v29  ;;  %v943_v37 = vadd.f32 %v942_v34, %v894_v7 }
 0x13b   :  { %v974_v38 = vadd.f32 %v1107_v28, %v963_v31  ;;  %v964_v39 = vmul.f32 %v1106_v23, %v951_v33 }
 0x13c   :  { %v972_v41 = vadd.f32 %v1107_v28, %v961_v35  ;;  %v962_v42 = vmul.f32 %v1106_v23, %v943_v37 }
 0x13d   :  { %v986_v44 = vadd.f32 %v1122_v32, %v974_v38  ;;  %v975_v45 = vadd.f32 %v1107_v28, %v964_v39 }
 0x13e   :  { %v984_v46 = vadd.f32 %v1118_v36, %v972_v41  ;;  %v973_v47 = vadd.f32 %v1107_v28, %v962_v42 }
 0x13f   :  { %v987_v48 = vadd.f32 %v1123_v40, %v975_v45  ;;  %v990_v50 = vmax.f32 %v986_v44, 0.0 }
 0x140   :  { %v985_v49 = vadd.f32 %v1119_v43, %v973_v47  ;;  %v988_v52 = vmax.f32 %v984_v46, 0.0 }
 0x141   :  { %v991_v51 = vmax.f32 %v987_v48, 0.0 }
 0x142   :  { %v989_v53 = vmax.f32 %v985_v49, 0.0 }
 0x143   :  { %v1132_v54 = vpack.c.bf16 %v991_v51, %v990_v50 }
 0x144   :  { %v1127_v55 = vpack.c.bf16 %v989_v53, %v988_v52 }
 0x145   :  { %1135 = vst [vmem:[%s1699_s5 + $0x8] sm:$0xff] %v1132_v54  }
 0x146   :  { %1128 = vst [vmem:[%s1699_s5] sm:$0xff] %v1127_v55  }

// kernel: resnet_forward.21
= control target key start
LH: loop header
LB: loop body
LE: loop exit
PB: predicated region body
PF: predicated region fallthrough
CT: control target
= control target key end

     0   :  { %v246_v1 = vmov 0.0   ;;  %vm247_vm0 = vmmov 0   ;;  %vm20_vm1 = vcmask 1043456   ;;  %s314_s0 = inlined_call_operand.vmem [shape: bf16[2,4,128], index: 0, kind: input, shape index: {}]   ;;  %s315_s1 = inlined_call_operand.vmem [shape: bf16[128,128], index: 1, kind: input, shape index: {}]   ;;  %s316_s2 = inlined_call_operand.vmem [shape: f32[1,128], index: 2, kind: input, shape index: {}]   ;;  %s317_s3 = inlined_call_operand.hbm [shape: f32[2,128], index: 3, kind: output, shape index: {}]  }
   0x1   :  { %v214_v0 = vld [vmem:[%s315_s1] sm:$0xff]   ;;  %191 = vmatprep.subr.bf16.mxu0 %v246_v1  ;;  %v215_v2 = vld [vmem:[%s315_s1 + $0x8] sm:$0xff]   ;;  %207 = vmatprep.mubr.msk.bf16.mxu0 %vm247_vm0, %v246_v1  ;;  %v216_v3 = vld [vmem:[%s315_s1 + $0x10] sm:$0xff]  }
   0x2   :  { %192 = vmatpush3.bf16.msra.mxu0 %v214_v0  ;;  %v16_v4 = vld [vmem:[%s314_s0] sm:$0x3]  ;;  %v17_v5 = vld [vmem:[%s314_s0 + $0x2] sm:$0x3] }
   0x3   :  { %193 = vmatprep.subr.bf16.mxu0 %v246_v1  ;;  %v18_v6 = vunpack.c.l.bf16 %v16_v4  ;;  %v19_v7 = vunpack.c.l.bf16 %v17_v5 }
   0x6   :  { %194 = vmatpush3.bf16.msra.mxu0 %v215_v2 }
   0x7   :  { %195 = vmatprep.subr.bf16.mxu0 %v246_v1 }
   0x8   :  { %8 = vsyncpa [#allocation3], 0  ;;  %v217_v8 = vld [vmem:[%s315_s1 + $0x18] sm:$0xff]   ;;  %v21_v9 = vsel %vm20_vm1, %v18_v6, 0.0  ;;  %v28_v10 = vsel %vm20_vm1, %v19_v7, 0.0  ;;  %v218_v13 = vld [vmem:[%s315_s1 + $0x20] sm:$0xff]  }
   0x9   :  { %v22_v11 = vrot.slane %v21_v9, 4  ;;  %v29_v12 = vrot.slane %v28_v10, 4  ;;  %v219_v18 = vld [vmem:[%s315_s1 + $0x28] sm:$0xff]   ;;  %v220_v23 = vld [vmem:[%s315_s1 + $0x30] sm:$0xff]   ;;  %v221_v28 = vld [vmem:[%s315_s1 + $0x38] sm:$0xff]   ;;  %vm66_vm2 = vcmask 1041409  }
   0xa   :  { %196 = vmatpush3.bf16.msra.mxu0 %v216_v3  ;;  %v173_v35 = vld [vmem:[%s316_s2] ss:$0 sm:$0xff]  ;;  %s248_s6 = smov [#allocation2]  }
   0xb   :  { %197 = vmatprep.subr.bf16.mxu0 %v246_v1  ;;  %v23_v14 = vadd.f32 %v22_v11, %v21_v9  ;;  %v30_v15 = vadd.f32 %v29_v12, %v28_v10  ;;  %s165_s7 = sshll.u32 %s248_s6, 4  ;;  %s166_s7 = int_to_ptr.vmem [resolvable:$true] %s165_s7 }
   0xc   :  { %s222_s1 = scalar_lea.vmem %s166_s7, 32  ;;  %p227_p1 = scmp.lt.s32.totalorder %s166_s7, %s166_s7 }
   0xd   :  { %v24_v16 = vrot.slane %v23_v14, 2  ;;  %v31_v17 = vrot.slane %v30_v15, 2  ;;  %p223_p0 = scmp.ne.s32.totalorder %s166_s7, %s222_s1  ;;  %p228_p2 = scmp.lt.s32.totalorder %s222_s1, %s222_s1 }
   0xe   :  { %198 = vmatpush3.bf16.msra.mxu0 %v217_v8 }
   0xf   :  { %199 = vmatprep.subr.bf16.mxu0 %v246_v1  ;;  %v25_v19 = vadd.f32 %v24_v16, %v23_v14  ;;  %v32_v20 = vadd.f32 %v31_v17, %v30_v15  ;;  %p229_p3 = por %p228_p2, %p227_p1 }
  0x11   :  { %v26_v21 = vrot.slane %v25_v19, 1  ;;  %v33_v22 = vrot.slane %v32_v20, 1  ;;  %p230_p4 = pnand %p229_p3, %p223_p0 }
  0x12   :  { %200 = vmatpush3.bf16.msra.mxu0 %v218_v13 }
  0x13   :  { %201 = vmatprep.subr.bf16.mxu0 %v246_v1  ;;  %v27_v24 = vadd.f32 %v26_v21, %v25_v19  ;;  %v34_v25 = vadd.f32 %v33_v22, %v32_v20 }
  0x15   :  { %v35_v26 = vmul.f32 0.25, %v27_v24  ;;  %v36_v27 = vmul.f32 0.25, %v34_v25 }
  0x16   :  { %202 = vmatpush3.bf16.msra.mxu0 %v219_v18 }
  0x17   :  { %203 = vmatprep.subr.bf16.mxu0 %v246_v1  ;;  %v37_v29 = vpack.c.bf16 %v35_v26, %v35_v26  ;;  %v38_v30 = vpack.c.bf16 %v36_v27, %v36_v27 }
  0x19   :  { %v64_v31 = vunpack.c.l.b16 %v37_v29  ;;  %v65_v32 = vunpack.c.l.b16 %v38_v30 }
  0x1a   :  { %204 = vmatpush3.bf16.msra.mxu0 %v220_v23 }
  0x1b   :  { %205 = vmatprep.subr.bf16.mxu0 %v246_v1  ;;  %v67_v33 = vsel %vm66_vm2, %v65_v32, %v64_v31 }
  0x1c   :  { %v68_v34 = vpack.c.b16 %v67_v33, %v67_v33 }
  0x1e   :  { %206 = vmatpush3.bf16.msra.mxu0 %v221_v28 }
  0x21   :  { %208 = vmatmul.mubr.bf16.vlgmr.msra.gmra.mrb[0].mxu0 %v68_v34 }
  0xf4   :  { %v152_v36 = vpop.f32.mrb[0].mxu0 }
  0xf5   :  { %v153_v37 = vadd.f32 %v173_v35, %v152_v36  ;;  %v209_v38 = vpop.f32.mrb[1].mxu0 }
  0xf6   :  { %v155_v39 = vpop.f32.mrb[2].mxu0 }
  0xf7   :  { %158 = vst [vmem:[#allocation2] sm:$0x3] %v153_v37  ;;  %v210_v40 = vpop.f32.mrb[3].mxu0 }
  0xf8   :  { %233 = shalt.err (!%p230_p4)
}
  0xf9   :  { %s234_s2 = scalar_lea.hbm %s317_s3, 32 }
  0xfa   :  { %p235_p5 = scmp.ne.s32.totalorder %s317_s3, %s234_s2  ;;  %p238_p6 = scmp.lt.u32.totalorder %s234_s2, %s317_s3 }
  0xfc   :  { %p240_p7 = pnand %p238_p6, %p235_p5 }
  0xfe   :  { %243 = shalt.err (!%p240_p7)
}
  0xff   :  { %168 = dma.vmem_to_hbm [thread:$0]  %s166_s7, 32, %s317_s3, [#allocation3]  }
 0x100   :  { %244 = dma.done.wait [#allocation3], 32  }
 0x101   :  { %245 = vsyncadd [#allocation3], 4294967264 }
 0x102   :  { %172 = vsyncpa [#allocation3], 1 }

// kernel: resnet_forward.18
= control target key start
LH: loop header
LB: loop body
LE: loop exit
PB: predicated region body
PF: predicated region fallthrough
CT: control target
= control target key end

     0   :  { %vm1138_vm0 = vmmov 0   ;;  %s1404_s1 = inlined_call_operand.vmem [shape: bf16[1152,128], index: 1, kind: input, shape index: {}]   ;;  %s1405_s0 = inlined_call_operand.vmem [shape: bf16[8,1152], index: 0, kind: input, shape index: {}]   ;;  %s1406_s2 = inlined_call_operand.vmem [shape: f32[1,128], index: 2, kind: input, shape index: {}]   ;;  %s1407_s3 = inlined_call_operand.vmem [shape: f32[1,128], index: 3, kind: input, shape index: {}]   ;;  %s1408_s4 = inlined_call_operand.vmem [shape: bf16[8,128], index: 4, kind: output, shape index: {}]  }
   0x1   :  { %v1056_v0 = vld [vmem:[%s1404_s1 + $0x40] sm:$0xff]   ;;  %v1060_v4 = vld [vmem:[%s1404_s1 + $0x48] sm:$0xff]   ;;  %v1064_v8 = vld [vmem:[%s1404_s1 + $0x50] sm:$0xff]  }
   0x2   :  { %v1057_v1 = vld [vmem:[%s1404_s1 + $0xc0] sm:$0xff]   ;;  %937 = vmatprep.subr.bf16.mxu0 %v1056_v0  ;;  %v1061_v5 = vld [vmem:[%s1404_s1 + $0xc8] sm:$0xff]   ;;  %v1065_v9 = vld [vmem:[%s1404_s1 + $0xd0] sm:$0xff]  }
   0x3   :  { %v1058_v2 = vld [vmem:[%s1404_s1] sm:$0xff]   ;;  %959 = vmatprep.subr.bf16.mxu1 %v1057_v1  ;;  %v1062_v6 = vld [vmem:[%s1404_s1 + $0x8] sm:$0xff]   ;;  %v1066_v10 = vld [vmem:[%s1404_s1 + $0x10] sm:$0xff]  }
   0x4   :  { %v1059_v3 = vld [vmem:[%s1404_s1 + $0x80] sm:$0xff]   ;;  %938 = vmatpush3.bf16.msra.mxu0 %v1058_v2  ;;  %v1063_v7 = vld [vmem:[%s1404_s1 + $0x88] sm:$0xff]   ;;  %v1067_v11 = vld [vmem:[%s1404_s1 + $0x90] sm:$0xff]  }
   0x5   :  { %960 = vmatpush3.bf16.msra.mxu1 %v1059_v3  ;;  %939 = vmatprep.subr.bf16.mxu0 %v1060_v4  ;;  %v1068_v12 = vld [vmem:[%s1404_s1 + $0x58] sm:$0xff]   ;;  %v1072_v16 = vld [vmem:[%s1404_s1 + $0x60] sm:$0xff]   ;;  %v1076_v20 = vld [vmem:[%s1404_s1 + $0x68] sm:$0xff]  }
   0x6   :  { %961 = vmatprep.subr.bf16.mxu1 %v1061_v5  ;;  %v1069_v13 = vld [vmem:[%s1404_s1 + $0xd8] sm:$0xff]   ;;  %v1073_v17 = vld [vmem:[%s1404_s1 + $0xe0] sm:$0xff]   ;;  %v1077_v21 = vld [vmem:[%s1404_s1 + $0xe8] sm:$0xff]  }
   0x7   :  { %v1070_v14 = vld [vmem:[%s1404_s1 + $0x18] sm:$0xff]   ;;  %v1074_v18 = vld [vmem:[%s1404_s1 + $0x20] sm:$0xff]   ;;  %v1078_v22 = vld [vmem:[%s1404_s1 + $0x28] sm:$0xff]  }
   0x8   :  { %940 = vmatpush3.bf16.msra.mxu0 %v1062_v6  ;;  %v1071_v15 = vld [vmem:[%s1404_s1 + $0x98] sm:$0xff]   ;;  %v1075_v19 = vld [vmem:[%s1404_s1 + $0xa0] sm:$0xff]   ;;  %v1079_v23 = vld [vmem:[%s1404_s1 + $0xa8] sm:$0xff]  }
   0x9   :  { %962 = vmatpush3.bf16.msra.mxu1 %v1063_v7  ;;  %941 = vmatprep.subr.bf16.mxu0 %v1064_v8  ;;  %v1080_v24 = vld [vmem:[%s1404_s1 + $0x70] sm:$0xff]   ;;  %v1084_v28 = vld [vmem:[%s1404_s1 + $0x78] sm:$0xff]   ;;  %v18_v32 = vld [vmem:[%s1405_s0] sm:$0xff] }
   0xa   :  { %963 = vmatprep.subr.bf16.mxu1 %v1065_v9  ;;  %v1081_v25 = vld [vmem:[%s1404_s1 + $0xf0] sm:$0xff]   ;;  %v1085_v29 = vld [vmem:[%s1404_s1 + $0xf8] sm:$0xff]   ;;  %v19_v33 = vld [vmem:[%s1405_s0 + $0x8] sm:$0xff]  ;;  %v854_v34 = vcombine.low %v18_v32, %v18_v32  ;;  %v855_v35 = vcombine.high %v18_v32, %v18_v32 }
   0xb   :  { %v1082_v26 = vld [vmem:[%s1404_s1 + $0x30] sm:$0xff]   ;;  %v1086_v30 = vld [vmem:[%s1404_s1 + $0x38] sm:$0xff]   ;;  %v856_v36 = vcombine.low %v19_v33, %v19_v33  ;;  %v857_v37 = vcombine.high %v19_v33, %v19_v33  ;;  %v1092_v38 = vld [vmem:[%s1404_s1 + $0x140] sm:$0xff]  }
   0xc   :  { %942 = vmatpush3.bf16.msra.mxu0 %v1066_v10  ;;  %v1083_v27 = vld [vmem:[%s1404_s1 + $0xb0] sm:$0xff]   ;;  %v1087_v31 = vld [vmem:[%s1404_s1 + $0xb8] sm:$0xff]   ;;  %v1093_v39 = vld [vmem:[%s1404_s1 + $0x100] sm:$0xff]   ;;  %663 = vmatprep.mubr.bf16.mxu0 %v855_v35 }
   0xd   :  { %964 = vmatpush3.bf16.msra.mxu1 %v1067_v11  ;;  %943 = vmatprep.subr.bf16.mxu0 %v1068_v12  ;;  %v1094_v40 = vld [vmem:[%s1404_s1 + $0x1c0] sm:$0xff]   ;;  %v1096_v42 = vld [vmem:[%s1404_s1 + $0x148] sm:$0xff]   ;;  %v1100_v46 = vld [vmem:[%s1404_s1 + $0x150] sm:$0xff]  }
   0xe   :  { %965 = vmatprep.subr.bf16.mxu1 %v1069_v13  ;;  %703 = vmatprep.mubr.bf16.mxu1 %v857_v37  ;;  %v1095_v41 = vld [vmem:[%s1404_s1 + $0x180] sm:$0xff]   ;;  %v1097_v43 = vld [vmem:[%s1404_s1 + $0x108] sm:$0xff]   ;;  %v1101_v47 = vld [vmem:[%s1404_s1 + $0x110] sm:$0xff]   ;;  %v1137_v13 = vmov 0.0  }
   0xf   :  { %v1098_v44 = vld [vmem:[%s1404_s1 + $0x1c8] sm:$0xff]   ;;  %v1102_v48 = vld [vmem:[%s1404_s1 + $0x1d0] sm:$0xff]   ;;  %v1104_v50 = vld [vmem:[%s1404_s1 + $0x158] sm:$0xff]  }
  0x10   :  { %944 = vmatpush3.bf16.msra.mxu0 %v1070_v14  ;;  %v1099_v45 = vld [vmem:[%s1404_s1 + $0x188] sm:$0xff]   ;;  %v1103_v49 = vld [vmem:[%s1404_s1 + $0x190] sm:$0xff]   ;;  %v1105_v51 = vld [vmem:[%s1404_s1 + $0x118] sm:$0xff]  }
  0x11   :  { %966 = vmatpush3.bf16.msra.mxu1 %v1071_v15  ;;  %945 = vmatprep.subr.bf16.mxu0 %v1072_v16  ;;  %v1106_v52 = vld [vmem:[%s1404_s1 + $0x1d8] sm:$0xff]   ;;  %v1108_v54 = vld [vmem:[%s1404_s1 + $0x160] sm:$0xff]   ;;  %v1112_v58 = vld [vmem:[%s1404_s1 + $0x168] sm:$0xff]  }
  0x12   :  { %967 = vmatprep.subr.bf16.mxu1 %v1073_v17  ;;  %v1107_v53 = vld [vmem:[%s1404_s1 + $0x198] sm:$0xff]   ;;  %v1109_v55 = vld [vmem:[%s1404_s1 + $0x120] sm:$0xff]   ;;  %v1113_v59 = vld [vmem:[%s1404_s1 + $0x128] sm:$0xff]  }
  0x13   :  { %v1110_v56 = vld [vmem:[%s1404_s1 + $0x1e0] sm:$0xff]   ;;  %v1114_v60 = vld [vmem:[%s1404_s1 + $0x1e8] sm:$0xff]   ;;  %v1116_v62 = vld [vmem:[%s1404_s1 + $0x170] sm:$0xff]  }
  0x14   :  { %946 = vmatpush3.bf16.msra.mxu0 %v1074_v18  ;;  %v1111_v57 = vld [vmem:[%s1404_s1 + $0x1a0] sm:$0xff]   ;;  %v1115_v61 = vld [vmem:[%s1404_s1 + $0x1a8] sm:$0xff]   ;;  %v1117_v63 = vld [vmem:[%s1404_s1 + $0x130] sm:$0xff]  }
  0x15   :  { %968 = vmatpush3.bf16.msra.mxu1 %v1075_v19  ;;  %947 = vmatprep.subr.bf16.mxu0 %v1076_v20  ;;  %v1118_v0 = vld [vmem:[%s1404_s1 + $0x1f0] sm:$0xff]   ;;  %v1120_v2 = vld [vmem:[%s1404_s1 + $0x178] sm:$0xff]   ;;  %v1128_v12 = vld [vmem:[%s1404_s1 + $0x200] sm:$0xff]  }
  0x16   :  { %969 = vmatprep.subr.bf16.mxu1 %v1077_v21  ;;  %v1119_v1 = vld [vmem:[%s1404_s1 + $0x1b0] sm:$0xff]   ;;  %v1121_v3 = vld [vmem:[%s1404_s1 + $0x138] sm:$0xff]   ;;  %v1129_v14 = vld [vmem:[%s1404_s1 + $0x208] sm:$0xff]  }
  0x17   :  { %v1122_v4 = vld [vmem:[%s1404_s1 + $0x1f8] sm:$0xff]   ;;  %v20_v5 = vld [vmem:[%s1405_s0 + $0x10] sm:$0xff]  ;;  %v1132_v17 = vld [vmem:[%s1404_s1 + $0x220] sm:$0xff]  }
  0x18   :  { %948 = vmatpush3.bf16.msra.mxu0 %v1078_v22  ;;  %v859_v6 = vcombine.high %v20_v5, %v20_v5  ;;  %v1125_v7 = vld [vmem:[%s1404_s1 + $0x1b8] sm:$0xff]   ;;  %v858_v8 = vcombine.low %v20_v5, %v20_v5  ;;  %v1130_v15 = vld [vmem:[%s1404_s1 + $0x210] sm:$0xff]   ;;  %v1133_v18 = vld [vmem:[%s1404_s1 + $0x228] sm:$0xff]  }
  0x19   :  { %970 = vmatpush3.bf16.msra.mxu1 %v1079_v23  ;;  %949 = vmatprep.subr.bf16.mxu0 %v1080_v24  ;;  %v21_v9 = vld [vmem:[%s1405_s0 + $0x18] sm:$0xff]  ;;  %v1134_v19 = vld [vmem:[%s1404_s1 + $0x230] sm:$0xff]   ;;  %v1136_v21 = vld [vmem:[%s1405_s0 + $0x20] ss:$0 sps:$4 sm:$0xff]  }
  0x1a   :  { %971 = vmatprep.subr.bf16.mxu1 %v1081_v25  ;;  %v860_v10 = vcombine.low %v21_v9, %v21_v9  ;;  %v861_v11 = vcombine.high %v21_v9, %v21_v9  ;;  %v1131_v16 = vld [vmem:[%s1404_s1 + $0x218] sm:$0xff]  }
  0x1b   :  { %v1135_v20 = vld [vmem:[%s1404_s1 + $0x238] sm:$0xff]  }
  0x1c   :  { %950 = vmatpush3.bf16.msra.mxu0 %v1082_v26 }
  0x1d   :  { %972 = vmatpush3.bf16.msra.mxu1 %v1083_v27  ;;  %951 = vmatprep.subr.bf16.mxu0 %v1084_v28 }
  0x1e   :  { %973 = vmatprep.subr.bf16.mxu1 %v1085_v29 }
  0x20   :  { %952 = vmatpush3.bf16.msra.mxu0 %v1086_v30 }
  0x21   :  { %974 = vmatpush3.bf16.msra.mxu1 %v1087_v31  ;;  %981 = vmatprep.subr.bf16.mxu0 %v1092_v38 }
  0x22   :  { %1003 = vmatprep.subr.bf16.mxu1 %v1094_v40 }
  0x23   :  { %664 = vmatmul.mubr.bf16.vlgmr.msra.gmra.mrb[0].mxu0 %v854_v34 }
  0x24   :  { %704 = vmatmul.mubr.bf16.vlgmr.msra.gmra.mrb[0].mxu1 %v856_v36  ;;  %982 = vmatpush3.bf16.msra.mxu0 %v1093_v39 }
  0x25   :  { %1004 = vmatpush3.bf16.msra.mxu1 %v1095_v41  ;;  %983 = vmatprep.subr.bf16.mxu0 %v1096_v42 }
  0x26   :  { %1005 = vmatprep.subr.bf16.mxu1 %v1098_v44  ;;  %743 = vmatprep.mubr.bf16.mxu0 %v859_v6 }
  0x27   :  { %783 = vmatprep.mubr.bf16.mxu1 %v861_v11 }
  0x28   :  { %984 = vmatpush3.bf16.msra.mxu0 %v1097_v43 }
  0x29   :  { %1006 = vmatpush3.bf16.msra.mxu1 %v1099_v45  ;;  %985 = vmatprep.subr.bf16.mxu0 %v1100_v46  ;;  %v935_v46 = vld [vmem:[%s1406_s2] ss:$0 sm:$0xff] }
  0x2a   :  { %1007 = vmatprep.subr.bf16.mxu1 %v1102_v48 }
  0x2c   :  { %986 = vmatpush3.bf16.msra.mxu0 %v1101_v47 }
  0x2d   :  { %1008 = vmatpush3.bf16.msra.mxu1 %v1103_v49  ;;  %987 = vmatprep.subr.bf16.mxu0 %v1104_v50  ;;  %v936_v49 = vld [vmem:[%s1407_s3] ss:$0 sm:$0xff] }
  0x2e   :  { %1009 = vmatprep.subr.bf16.mxu1 %v1106_v52 }
  0x30   :  { %988 = vmatpush3.bf16.msra.mxu0 %v1105_v51 }
  0x31   :  { %1010 = vmatpush3.bf16.msra.mxu1 %v1107_v53  ;;  %989 = vmatprep.subr.bf16.mxu0 %v1108_v54 }
  0x32   :  { %1011 = vmatprep.subr.bf16.mxu1 %v1110_v56 }
  0x34   :  { %990 = vmatpush3.bf16.msra.mxu0 %v1109_v55 }
  0x35   :  { %1012 = vmatpush3.bf16.msra.mxu1 %v1111_v57  ;;  %991 = vmatprep.subr.bf16.mxu0 %v1112_v58 }
  0x36   :  { %1013 = vmatprep.subr.bf16.mxu1 %v1114_v60 }
  0x38   :  { %992 = vmatpush3.bf16.msra.mxu0 %v1113_v59 }
  0x39   :  { %1014 = vmatpush3.bf16.msra.mxu1 %v1115_v61  ;;  %993 = vmatprep.subr.bf16.mxu0 %v1116_v62 }
  0x3a   :  { %1015 = vmatprep.subr.bf16.mxu1 %v1118_v0 }
  0x3c   :  { %994 = vmatpush3.bf16.msra.mxu0 %v1117_v63 }
  0x3d   :  { %1016 = vmatpush3.bf16.msra.mxu1 %v1119_v1  ;;  %995 = vmatprep.subr.bf16.mxu0 %v1120_v2 }
  0x3e   :  { %1017 = vmatprep.subr.bf16.mxu1 %v1122_v4 }
  0x40   :  { %996 = vmatpush3.bf16.msra.mxu0 %v1121_v3 }
  0x41   :  { %1018 = vmatpush3.bf16.msra.mxu1 %v1125_v7  ;;  %1034 = vmatprep.subr.bf16.mxu0 %v1137_v13 }
  0x43   :  { %744 = vmatmul.mubr.bf16.vlgmr.msra.gmra.mrb[4].mxu0 %v858_v8 }
  0x44   :  { %1035 = vmatpush3.bf16.msra.mxu0 %v1128_v12  ;;  %784 = vmatmul.mubr.bf16.vlgmr.msra.gmra.mrb[4].mxu1 %v860_v10 }
  0x45   :  { %1036 = vmatprep.subr.bf16.mxu0 %v1137_v13  ;;  %1050 = vmatprep.mubr.msk.bf16.mxu0 %vm1138_vm0, %v1137_v13 }
  0x48   :  { %1037 = vmatpush3.bf16.msra.mxu0 %v1129_v14 }
  0x49   :  { %1038 = vmatprep.subr.bf16.mxu0 %v1137_v13 }
  0x4c   :  { %1039 = vmatpush3.bf16.msra.mxu0 %v1130_v15 }
  0x4d   :  { %1040 = vmatprep.subr.bf16.mxu0 %v1137_v13 }
  0x50   :  { %1041 = vmatpush3.bf16.msra.mxu0 %v1131_v16 }
  0x51   :  { %1042 = vmatprep.subr.bf16.mxu0 %v1137_v13 }
  0x54   :  { %1043 = vmatpush3.bf16.msra.mxu0 %v1132_v17 }
  0x55   :  { %1044 = vmatprep.subr.bf16.mxu0 %v1137_v13 }
  0x58   :  { %1045 = vmatpush3.bf16.msra.mxu0 %v1133_v18 }
  0x59   :  { %1046 = vmatprep.subr.bf16.mxu0 %v1137_v13 }
  0x5c   :  { %1047 = vmatpush3.bf16.msra.mxu0 %v1134_v19 }
  0x5d   :  { %1048 = vmatprep.subr.bf16.mxu0 %v1137_v13 }
  0x60   :  { %1049 = vmatpush3.bf16.msra.mxu0 %v1135_v20 }
  0x63   :  { %1051 = vmatmul.mubr.bf16.vlgmr.msra.gmra.mrb[8].mxu0 %v1136_v21 }
  0xf6   :  { %v953_v22 = vpop.f32.mrb[0].mxu0 }
  0xf7   :  { %v975_v23 = vpop.f32.mrb[0].mxu1  ;;  %v954_v24 = vpop.f32.mrb[1].mxu0 }
  0xf8   :  { %v976_v25 = vpop.f32.mrb[1].mxu1  ;;  %v955_v26 = vadd.f32 %v954_v24, %v953_v22  ;;  %v956_v28 = vpop.f32.mrb[2].mxu0 }
  0xf9   :  { %v977_v27 = vadd.f32 %v976_v25, %v975_v23  ;;  %v978_v29 = vpop.f32.mrb[2].mxu1  ;;  %v957_v30 = vpop.f32.mrb[3].mxu0 }
  0xfa   :  { %v979_v31 = vpop.f32.mrb[3].mxu1 }
  0xfb   :  { %v706_v32 = vadd.f32 %v977_v27, %v955_v26 }
 0x116   :  { %v997_v33 = vpop.f32.mrb[4].mxu0 }
 0x117   :  { %v998_v34 = vpop.f32.mrb[5].mxu0  ;;  %v1019_v35 = vpop.f32.mrb[4].mxu1 }
 0x118   :  { %v999_v36 = vadd.f32 %v998_v34, %v997_v33  ;;  %v1000_v37 = vpop.f32.mrb[6].mxu0  ;;  %v1020_v38 = vpop.f32.mrb[5].mxu1 }
 0x119   :  { %v1001_v39 = vpop.f32.mrb[7].mxu0  ;;  %v1021_v40 = vadd.f32 %v1020_v38, %v1019_v35  ;;  %v1022_v41 = vpop.f32.mrb[6].mxu1 }
 0x11a   :  { %v746_v42 = vadd.f32 %v999_v36, %v706_v32  ;;  %v1023_v43 = vpop.f32.mrb[7].mxu1 }
 0x11c   :  { %v786_v44 = vadd.f32 %v1021_v40, %v746_v42 }
 0x136   :  { %v825_v45 = vpop.f32.mrb[8].mxu0 }
 0x137   :  { %v826_v47 = vadd.f32 %v825_v45, %v786_v44  ;;  %v1052_v48 = vpop.f32.mrb[9].mxu0 }
 0x138   :  { %v828_v50 = vpop.f32.mrb[10].mxu0 }
 0x139   :  { %v838_v51 = vmul.f32 %v935_v46, %v826_v47  ;;  %v1053_v52 = vpop.f32.mrb[11].mxu0 }
 0x13b   :  { %v846_v53 = vadd.f32 %v936_v49, %v838_v51 }
 0x13d   :  { %v847_v54 = vmax.f32 %v846_v53, 0.0 }
 0x13f   :  { %v848_v55 = vpack.c.bf16 %v847_v54, %v847_v54 }
 0x141   :  { %849 = vst [vmem:[%s1408_s4] sm:$0xf] %v848_v55 }

// kernel: resnet_forward.20
= control target key start
LH: loop header
LB: loop body
LE: loop exit
PB: predicated region body
PF: predicated region fallthrough
CT: control target
= control target key end

     0   :  { %vm1144_vm0 = vmmov 0   ;;  %s1418_s1 = inlined_call_operand.vmem [shape: bf16[1152,128], index: 1, kind: input, shape index: {}]   ;;  %s1419_s0 = inlined_call_operand.vmem [shape: bf16[8,1152], index: 0, kind: input, shape index: {}]   ;;  %s1420_s2 = inlined_call_operand.vmem [shape: f32[1,128], index: 2, kind: input, shape index: {}]   ;;  %s1421_s4 = inlined_call_operand.vmem [shape: bf16[8,128], index: 4, kind: input, shape index: {}]   ;;  %s1422_s3 = inlined_call_operand.vmem [shape: f32[1,128], index: 3, kind: input, shape index: {}]   ;;  %s1423_s5 = inlined_call_operand.vmem [shape: bf16[8,128], index: 5, kind: output, shape index: {}]  }
   0x1   :  { %v1062_v0 = vld [vmem:[%s1418_s1 + $0x40] sm:$0xff]   ;;  %v1066_v4 = vld [vmem:[%s1418_s1 + $0x48] sm:$0xff]   ;;  %v1070_v8 = vld [vmem:[%s1418_s1 + $0x50] sm:$0xff]  }
   0x2   :  { %v1063_v1 = vld [vmem:[%s1418_s1 + $0xc0] sm:$0xff]   ;;  %943 = vmatprep.subr.bf16.mxu0 %v1062_v0  ;;  %v1067_v5 = vld [vmem:[%s1418_s1 + $0xc8] sm:$0xff]   ;;  %v1071_v9 = vld [vmem:[%s1418_s1 + $0xd0] sm:$0xff]  }
   0x3   :  { %v1064_v2 = vld [vmem:[%s1418_s1] sm:$0xff]   ;;  %965 = vmatprep.subr.bf16.mxu1 %v1063_v1  ;;  %v1068_v6 = vld [vmem:[%s1418_s1 + $0x8] sm:$0xff]   ;;  %v1072_v10 = vld [vmem:[%s1418_s1 + $0x10] sm:$0xff]  }
   0x4   :  { %v1065_v3 = vld [vmem:[%s1418_s1 + $0x80] sm:$0xff]   ;;  %944 = vmatpush3.bf16.msra.mxu0 %v1064_v2  ;;  %v1069_v7 = vld [vmem:[%s1418_s1 + $0x88] sm:$0xff]   ;;  %v1073_v11 = vld [vmem:[%s1418_s1 + $0x90] sm:$0xff]  }
   0x5   :  { %966 = vmatpush3.bf16.msra.mxu1 %v1065_v3  ;;  %945 = vmatprep.subr.bf16.mxu0 %v1066_v4  ;;  %v1074_v12 = vld [vmem:[%s1418_s1 + $0x58] sm:$0xff]   ;;  %v1078_v16 = vld [vmem:[%s1418_s1 + $0x60] sm:$0xff]   ;;  %v1082_v20 = vld [vmem:[%s1418_s1 + $0x68] sm:$0xff]  }
   0x6   :  { %967 = vmatprep.subr.bf16.mxu1 %v1067_v5  ;;  %v1075_v13 = vld [vmem:[%s1418_s1 + $0xd8] sm:$0xff]   ;;  %v1079_v17 = vld [vmem:[%s1418_s1 + $0xe0] sm:$0xff]   ;;  %v1083_v21 = vld [vmem:[%s1418_s1 + $0xe8] sm:$0xff]  }
   0x7   :  { %v1076_v14 = vld [vmem:[%s1418_s1 + $0x18] sm:$0xff]   ;;  %v1080_v18 = vld [vmem:[%s1418_s1 + $0x20] sm:$0xff]   ;;  %v1084_v22 = vld [vmem:[%s1418_s1 + $0x28] sm:$0xff]  }
   0x8   :  { %946 = vmatpush3.bf16.msra.mxu0 %v1068_v6  ;;  %v1077_v15 = vld [vmem:[%s1418_s1 + $0x98] sm:$0xff]   ;;  %v1081_v19 = vld [vmem:[%s1418_s1 + $0xa0] sm:$0xff]   ;;  %v1085_v23 = vld [vmem:[%s1418_s1 + $0xa8] sm:$0xff]  }
   0x9   :  { %968 = vmatpush3.bf16.msra.mxu1 %v1069_v7  ;;  %947 = vmatprep.subr.bf16.mxu0 %v1070_v8  ;;  %v1086_v24 = vld [vmem:[%s1418_s1 + $0x70] sm:$0xff]   ;;  %v1090_v28 = vld [vmem:[%s1418_s1 + $0x78] sm:$0xff]   ;;  %v21_v32 = vld [vmem:[%s1419_s0] sm:$0xff] }
   0xa   :  { %969 = vmatprep.subr.bf16.mxu1 %v1071_v9  ;;  %v1087_v25 = vld [vmem:[%s1418_s1 + $0xf0] sm:$0xff]   ;;  %v1091_v29 = vld [vmem:[%s1418_s1 + $0xf8] sm:$0xff]   ;;  %v22_v33 = vld [vmem:[%s1419_s0 + $0x8] sm:$0xff]  ;;  %v860_v34 = vcombine.low %v21_v32, %v21_v32  ;;  %v861_v35 = vcombine.high %v21_v32, %v21_v32 }
   0xb   :  { %v1088_v26 = vld [vmem:[%s1418_s1 + $0x30] sm:$0xff]   ;;  %v1092_v30 = vld [vmem:[%s1418_s1 + $0x38] sm:$0xff]   ;;  %v862_v36 = vcombine.low %v22_v33, %v22_v33  ;;  %v863_v37 = vcombine.high %v22_v33, %v22_v33  ;;  %v1098_v38 = vld [vmem:[%s1418_s1 + $0x140] sm:$0xff]  }
   0xc   :  { %948 = vmatpush3.bf16.msra.mxu0 %v1072_v10  ;;  %v1089_v27 = vld [vmem:[%s1418_s1 + $0xb0] sm:$0xff]   ;;  %v1093_v31 = vld [vmem:[%s1418_s1 + $0xb8] sm:$0xff]   ;;  %v1099_v39 = vld [vmem:[%s1418_s1 + $0x100] sm:$0xff]   ;;  %666 = vmatprep.mubr.bf16.mxu0 %v861_v35 }
   0xd   :  { %970 = vmatpush3.bf16.msra.mxu1 %v1073_v11  ;;  %949 = vmatprep.subr.bf16.mxu0 %v1074_v12  ;;  %v1100_v40 = vld [vmem:[%s1418_s1 + $0x1c0] sm:$0xff]   ;;  %v1102_v42 = vld [vmem:[%s1418_s1 + $0x148] sm:$0xff]   ;;  %v1106_v46 = vld [vmem:[%s1418_s1 + $0x150] sm:$0xff]  }
   0xe   :  { %971 = vmatprep.subr.bf16.mxu1 %v1075_v13  ;;  %706 = vmatprep.mubr.bf16.mxu1 %v863_v37  ;;  %v1101_v41 = vld [vmem:[%s1418_s1 + $0x180] sm:$0xff]   ;;  %v1103_v43 = vld [vmem:[%s1418_s1 + $0x108] sm:$0xff]   ;;  %v1107_v47 = vld [vmem:[%s1418_s1 + $0x110] sm:$0xff]   ;;  %v1143_v13 = vmov 0.0  }
   0xf   :  { %v1104_v44 = vld [vmem:[%s1418_s1 + $0x1c8] sm:$0xff]   ;;  %v1108_v48 = vld [vmem:[%s1418_s1 + $0x1d0] sm:$0xff]   ;;  %v1110_v50 = vld [vmem:[%s1418_s1 + $0x158] sm:$0xff]  }
  0x10   :  { %950 = vmatpush3.bf16.msra.mxu0 %v1076_v14  ;;  %v1105_v45 = vld [vmem:[%s1418_s1 + $0x188] sm:$0xff]   ;;  %v1109_v49 = vld [vmem:[%s1418_s1 + $0x190] sm:$0xff]   ;;  %v1111_v51 = vld [vmem:[%s1418_s1 + $0x118] sm:$0xff]  }
  0x11   :  { %972 = vmatpush3.bf16.msra.mxu1 %v1077_v15  ;;  %951 = vmatprep.subr.bf16.mxu0 %v1078_v16  ;;  %v1112_v52 = vld [vmem:[%s1418_s1 + $0x1d8] sm:$0xff]   ;;  %v1114_v54 = vld [vmem:[%s1418_s1 + $0x160] sm:$0xff]   ;;  %v1118_v58 = vld [vmem:[%s1418_s1 + $0x168] sm:$0xff]  }
  0x12   :  { %973 = vmatprep.subr.bf16.mxu1 %v1079_v17  ;;  %v1113_v53 = vld [vmem:[%s1418_s1 + $0x198] sm:$0xff]   ;;  %v1115_v55 = vld [vmem:[%s1418_s1 + $0x120] sm:$0xff]   ;;  %v1119_v59 = vld [vmem:[%s1418_s1 + $0x128] sm:$0xff]  }
  0x13   :  { %v1116_v56 = vld [vmem:[%s1418_s1 + $0x1e0] sm:$0xff]   ;;  %v1120_v60 = vld [vmem:[%s1418_s1 + $0x1e8] sm:$0xff]   ;;  %v1122_v62 = vld [vmem:[%s1418_s1 + $0x170] sm:$0xff]  }
  0x14   :  { %952 = vmatpush3.bf16.msra.mxu0 %v1080_v18  ;;  %v1117_v57 = vld [vmem:[%s1418_s1 + $0x1a0] sm:$0xff]   ;;  %v1121_v61 = vld [vmem:[%s1418_s1 + $0x1a8] sm:$0xff]   ;;  %v1123_v63 = vld [vmem:[%s1418_s1 + $0x130] sm:$0xff]  }
  0x15   :  { %974 = vmatpush3.bf16.msra.mxu1 %v1081_v19  ;;  %953 = vmatprep.subr.bf16.mxu0 %v1082_v20  ;;  %v1124_v0 = vld [vmem:[%s1418_s1 + $0x1f0] sm:$0xff]   ;;  %v1126_v2 = vld [vmem:[%s1418_s1 + $0x178] sm:$0xff]   ;;  %v1134_v12 = vld [vmem:[%s1418_s1 + $0x200] sm:$0xff]  }
  0x16   :  { %975 = vmatprep.subr.bf16.mxu1 %v1083_v21  ;;  %v1125_v1 = vld [vmem:[%s1418_s1 + $0x1b0] sm:$0xff]   ;;  %v1127_v3 = vld [vmem:[%s1418_s1 + $0x138] sm:$0xff]   ;;  %v1135_v14 = vld [vmem:[%s1418_s1 + $0x208] sm:$0xff]  }
  0x17   :  { %v1128_v4 = vld [vmem:[%s1418_s1 + $0x1f8] sm:$0xff]   ;;  %v23_v5 = vld [vmem:[%s1419_s0 + $0x10] sm:$0xff]  ;;  %v1138_v17 = vld [vmem:[%s1418_s1 + $0x220] sm:$0xff]  }
  0x18   :  { %954 = vmatpush3.bf16.msra.mxu0 %v1084_v22  ;;  %v865_v6 = vcombine.high %v23_v5, %v23_v5  ;;  %v1131_v7 = vld [vmem:[%s1418_s1 + $0x1b8] sm:$0xff]   ;;  %v864_v8 = vcombine.low %v23_v5, %v23_v5  ;;  %v1136_v15 = vld [vmem:[%s1418_s1 + $0x210] sm:$0xff]   ;;  %v1139_v18 = vld [vmem:[%s1418_s1 + $0x228] sm:$0xff]  }
  0x19   :  { %976 = vmatpush3.bf16.msra.mxu1 %v1085_v23  ;;  %955 = vmatprep.subr.bf16.mxu0 %v1086_v24  ;;  %v24_v9 = vld [vmem:[%s1419_s0 + $0x18] sm:$0xff]  ;;  %v1140_v19 = vld [vmem:[%s1418_s1 + $0x230] sm:$0xff]   ;;  %v1142_v21 = vld [vmem:[%s1419_s0 + $0x20] ss:$0 sps:$4 sm:$0xff]  }
  0x1a   :  { %977 = vmatprep.subr.bf16.mxu1 %v1087_v25  ;;  %v866_v10 = vcombine.low %v24_v9, %v24_v9  ;;  %v867_v11 = vcombine.high %v24_v9, %v24_v9  ;;  %v1137_v16 = vld [vmem:[%s1418_s1 + $0x218] sm:$0xff]  }
  0x1b   :  { %v1141_v20 = vld [vmem:[%s1418_s1 + $0x238] sm:$0xff]  }
  0x1c   :  { %956 = vmatpush3.bf16.msra.mxu0 %v1088_v26 }
  0x1d   :  { %978 = vmatpush3.bf16.msra.mxu1 %v1089_v27  ;;  %957 = vmatprep.subr.bf16.mxu0 %v1090_v28 }
  0x1e   :  { %979 = vmatprep.subr.bf16.mxu1 %v1091_v29 }
  0x20   :  { %958 = vmatpush3.bf16.msra.mxu0 %v1092_v30 }
  0x21   :  { %980 = vmatpush3.bf16.msra.mxu1 %v1093_v31  ;;  %987 = vmatprep.subr.bf16.mxu0 %v1098_v38 }
  0x22   :  { %1009 = vmatprep.subr.bf16.mxu1 %v1100_v40 }
  0x23   :  { %667 = vmatmul.mubr.bf16.vlgmr.msra.gmra.mrb[0].mxu0 %v860_v34 }
  0x24   :  { %707 = vmatmul.mubr.bf16.vlgmr.msra.gmra.mrb[0].mxu1 %v862_v36  ;;  %988 = vmatpush3.bf16.msra.mxu0 %v1099_v39 }
  0x25   :  { %1010 = vmatpush3.bf16.msra.mxu1 %v1101_v41  ;;  %989 = vmatprep.subr.bf16.mxu0 %v1102_v42 }
  0x26   :  { %1011 = vmatprep.subr.bf16.mxu1 %v1104_v44  ;;  %746 = vmatprep.mubr.bf16.mxu0 %v865_v6 }
  0x27   :  { %786 = vmatprep.mubr.bf16.mxu1 %v867_v11 }
  0x28   :  { %990 = vmatpush3.bf16.msra.mxu0 %v1103_v43 }
  0x29   :  { %1012 = vmatpush3.bf16.msra.mxu1 %v1105_v45  ;;  %991 = vmatprep.subr.bf16.mxu0 %v1106_v46  ;;  %v941_v46 = vld [vmem:[%s1420_s2] ss:$0 sm:$0xff] }
  0x2a   :  { %1013 = vmatprep.subr.bf16.mxu1 %v1108_v48 }
  0x2c   :  { %992 = vmatpush3.bf16.msra.mxu0 %v1107_v47  ;;  %v850_v47 = vld [vmem:[%s1421_s4] sm:$0xf] }
  0x2d   :  { %1014 = vmatpush3.bf16.msra.mxu1 %v1109_v49  ;;  %993 = vmatprep.subr.bf16.mxu0 %v1110_v50  ;;  %v942_v50 = vld [vmem:[%s1422_s3] ss:$0 sm:$0xff] }
  0x2e   :  { %1015 = vmatprep.subr.bf16.mxu1 %v1112_v52 }
  0x30   :  { %994 = vmatpush3.bf16.msra.mxu0 %v1111_v51 }
  0x31   :  { %1016 = vmatpush3.bf16.msra.mxu1 %v1113_v53  ;;  %995 = vmatprep.subr.bf16.mxu0 %v1114_v54  ;;  %v851_v53 = vunpack.c.l.bf16 %v850_v47 }
  0x32   :  { %1017 = vmatprep.subr.bf16.mxu1 %v1116_v56 }
  0x34   :  { %996 = vmatpush3.bf16.msra.mxu0 %v1115_v55 }
  0x35   :  { %1018 = vmatpush3.bf16.msra.mxu1 %v1117_v57  ;;  %997 = vmatprep.subr.bf16.mxu0 %v1118_v58 }
  0x36   :  { %1019 = vmatprep.subr.bf16.mxu1 %v1120_v60 }
  0x38   :  { %998 = vmatpush3.bf16.msra.mxu0 %v1119_v59 }
  0x39   :  { %1020 = vmatpush3.bf16.msra.mxu1 %v1121_v61  ;;  %999 = vmatprep.subr.bf16.mxu0 %v1122_v62 }
  0x3a   :  { %1021 = vmatprep.subr.bf16.mxu1 %v1124_v0 }
  0x3c   :  { %1000 = vmatpush3.bf16.msra.mxu0 %v1123_v63 }
  0x3d   :  { %1022 = vmatpush3.bf16.msra.mxu1 %v1125_v1  ;;  %1001 = vmatprep.subr.bf16.mxu0 %v1126_v2 }
  0x3e   :  { %1023 = vmatprep.subr.bf16.mxu1 %v1128_v4 }
  0x40   :  { %1002 = vmatpush3.bf16.msra.mxu0 %v1127_v3 }
  0x41   :  { %1024 = vmatpush3.bf16.msra.mxu1 %v1131_v7  ;;  %1040 = vmatprep.subr.bf16.mxu0 %v1143_v13 }
  0x43   :  { %747 = vmatmul.mubr.bf16.vlgmr.msra.gmra.mrb[4].mxu0 %v864_v8 }
  0x44   :  { %1041 = vmatpush3.bf16.msra.mxu0 %v1134_v12  ;;  %787 = vmatmul.mubr.bf16.vlgmr.msra.gmra.mrb[4].mxu1 %v866_v10 }
  0x45   :  { %1042 = vmatprep.subr.bf16.mxu0 %v1143_v13  ;;  %1056 = vmatprep.mubr.msk.bf16.mxu0 %vm1144_vm0, %v1143_v13 }
  0x48   :  { %1043 = vmatpush3.bf16.msra.mxu0 %v1135_v14 }
  0x49   :  { %1044 = vmatprep.subr.bf16.mxu0 %v1143_v13 }
  0x4c   :  { %1045 = vmatpush3.bf16.msra.mxu0 %v1136_v15 }
  0x4d   :  { %1046 = vmatprep.subr.bf16.mxu0 %v1143_v13 }
  0x50   :  { %1047 = vmatpush3.bf16.msra.mxu0 %v1137_v16 }
  0x51   :  { %1048 = vmatprep.subr.bf16.mxu0 %v1143_v13 }
  0x54   :  { %1049 = vmatpush3.bf16.msra.mxu0 %v1138_v17 }
  0x55   :  { %1050 = vmatprep.subr.bf16.mxu0 %v1143_v13 }
  0x58   :  { %1051 = vmatpush3.bf16.msra.mxu0 %v1139_v18 }
  0x59   :  { %1052 = vmatprep.subr.bf16.mxu0 %v1143_v13 }
  0x5c   :  { %1053 = vmatpush3.bf16.msra.mxu0 %v1140_v19 }
  0x5d   :  { %1054 = vmatprep.subr.bf16.mxu0 %v1143_v13 }
  0x60   :  { %1055 = vmatpush3.bf16.msra.mxu0 %v1141_v20 }
  0x63   :  { %1057 = vmatmul.mubr.bf16.vlgmr.msra.gmra.mrb[8].mxu0 %v1142_v21 }
  0xf6   :  { %v959_v22 = vpop.f32.mrb[0].mxu0 }
  0xf7   :  { %v981_v23 = vpop.f32.mrb[0].mxu1  ;;  %v960_v24 = vpop.f32.mrb[1].mxu0 }
  0xf8   :  { %v982_v25 = vpop.f32.mrb[1].mxu1  ;;  %v961_v26 = vadd.f32 %v960_v24, %v959_v22  ;;  %v962_v28 = vpop.f32.mrb[2].mxu0 }
  0xf9   :  { %v983_v27 = vadd.f32 %v982_v25, %v981_v23  ;;  %v984_v29 = vpop.f32.mrb[2].mxu1  ;;  %v963_v30 = vpop.f32.mrb[3].mxu0 }
  0xfa   :  { %v985_v31 = vpop.f32.mrb[3].mxu1 }
  0xfb   :  { %v709_v32 = vadd.f32 %v983_v27, %v961_v26 }
 0x116   :  { %v1003_v33 = vpop.f32.mrb[4].mxu0 }
 0x117   :  { %v1004_v34 = vpop.f32.mrb[5].mxu0  ;;  %v1025_v35 = vpop.f32.mrb[4].mxu1 }
 0x118   :  { %v1005_v36 = vadd.f32 %v1004_v34, %v1003_v33  ;;  %v1006_v37 = vpop.f32.mrb[6].mxu0  ;;  %v1026_v38 = vpop.f32.mrb[5].mxu1 }
 0x119   :  { %v1007_v39 = vpop.f32.mrb[7].mxu0  ;;  %v1027_v40 = vadd.f32 %v1026_v38, %v1025_v35  ;;  %v1028_v41 = vpop.f32.mrb[6].mxu1 }
 0x11a   :  { %v749_v42 = vadd.f32 %v1005_v36, %v709_v32  ;;  %v1029_v43 = vpop.f32.mrb[7].mxu1 }
 0x11c   :  { %v789_v44 = vadd.f32 %v1027_v40, %v749_v42 }
 0x136   :  { %v828_v45 = vpop.f32.mrb[8].mxu0 }
 0x137   :  { %v829_v48 = vadd.f32 %v828_v45, %v789_v44  ;;  %v1058_v49 = vpop.f32.mrb[9].mxu0 }
 0x138   :  { %v831_v51 = vpop.f32.mrb[10].mxu0 }
 0x139   :  { %v841_v52 = vmul.f32 %v941_v46, %v829_v48  ;;  %v1059_v54 = vpop.f32.mrb[11].mxu0 }
 0x13b   :  { %v849_v55 = vadd.f32 %v942_v50, %v841_v52 }
 0x13d   :  { %v852_v56 = vadd.f32 %v851_v53, %v849_v55 }
 0x13f   :  { %v853_v57 = vmax.f32 %v852_v56, 0.0 }
 0x141   :  { %v854_v58 = vpack.c.bf16 %v853_v57, %v853_v57 }
 0x143   :  { %855 = vst [vmem:[%s1423_s5] sm:$0xf] %v854_v58 }

</bundles_post_ra>
